<compile_context>
chip_gen: v6e
topology: v6e:2x2x1
jax: 0.10.0
libtpu: 0.0.40
codegen_flags: <defaults>
</compile_context>

<pallas_src>
import functools

import numpy as np
import jax
import jax.numpy as jnp
from jax import lax
from jax.experimental import pallas as pl
from jax.experimental.pallas import tpu as pltpu

# 1-D Gaussian taps; the module's 5x5 kernel is outer(g, g), g = [1,4,6,4,1]/16.
_G1D = np.array([1.0, 4.0, 6.0, 4.0, 1.0], dtype=np.float64) / 16.0
_G2D = np.outer(_G1D, _G1D)              # == the module's kernel (already /256)


# ----------------------- per-level linear operators --------------------------

def _reflect(p, n):
    """Index map of 2-pixel reflect padding (no edge repeat) — torch/np semantics."""
    if p < 0:
        return -p
    if p >= n:
        return 2 * n - 2 - p
    return p


def _down_matrix(n):
    """(n//2, n): reflect-pad(2) + 5-tap gauss + keep even outputs, one axis."""
    m = np.zeros((n // 2, n), np.float64)
    for i in range(n // 2):
        for t in range(5):
            m[i, _reflect(2 * i + t - 2, n)] += _G1D[t]
    return m


def _up_matrix(n):
    """(n, n//2): zero-insert 2x upsample + reflect-pad(2) + 5-tap (2*gauss), one axis."""
    m = np.zeros((n, n // 2), np.float64)
    for y in range(n):
        for t in range(5):
            p = _reflect(y + t - 2, n)
            if p % 2 == 0:               # only even (non-zero) samples contribute
                m[y, p // 2] += 2.0 * _G1D[t]
    return m


def _block_diag(mat, k):
    r, c = mat.shape
    out = np.zeros((k * r, k * c), mat.dtype)
    for i in range(k):
        out[i * r:(i + 1) * r, i * c:(i + 1) * c] = mat
    return out


def _round_up(x, m):
    return -(-x // m) * m


@functools.lru_cache(maxsize=None)
def _packed_operators(level_dims, blk):
    """Pack every level's 4 operator matrices into one lane-padded f32 array.

    Returns (packed[np.float32, (rows, lanes)],
             metas: per level (dct, drb, uwt, uhb) with (row_off, rows, cols)).
    Row-axis (H) operators are block-diagonal over the blk stacked images so the
    kernel can apply them to the whole block with a single 2-D matmul.
    """
    blobs, metas = [], []
    row, max_cols = 0, 0

    def add(mat):
        nonlocal row, max_cols
        r, c = mat.shape
        off = row
        blobs.append((off, mat.astype(np.float32)))
        row = _round_up(row + r, 8)           # sublane-aligned bands
        max_cols = max(max_cols, c)
        return (off, r, c)

    for (H, W) in level_dims:
        dr, dc = _down_matrix(H), _down_matrix(W)
        uh, uw = _up_matrix(H), _up_matrix(W)
        metas.append((
            add(dc.T),                        # (W,        W//2)   lane-axis down
            add(_block_diag(dr, blk)),        # (blk*H//2, blk*H)  sublane-axis down
            add(uw.T),                        # (W//2,     W)      lane-axis up
            add(_block_diag(uh, blk)),        # (blk*H,    blk*H//2) sublane-axis up
        ))
    pack_w = _round_up(max(max_cols, 128), 128)
    packed = np.zeros((_round_up(row, 8), pack_w), np.float32)
    for off, mat in blobs:
        packed[off:off + mat.shape[0], :mat.shape[1]] = mat
    return packed, tuple(metas)


# ------------------------------ Pallas kernel --------------------------------

def _lap_pyramid_kernel(consts_ref, inp_ref, tgt_ref, out_ref, *,
                        level_dims, metas, inv_counts):
    """All pyramid levels for one block of blk sublane-stacked images.

    cur layout: (blk*H_l, W_l) — images stacked along sublanes.
      down = DrB @ (cur @ DcT) ;  up = UhB @ (down @ UwT)
      level-l L1 partial (scaled by 1/(m*H_l*W_l)) goes to out_ref[l, :W_l].
    """
    out_ref[...] = jnp.zeros_like(out_ref)
    # Fused subtraction: the difference image never touches HBM.
    cur = inp_ref[...].astype(jnp.float32) - tgt_ref[...].astype(jnp.float32)

    def mat(meta):                              # load each matrix at point of use
        off, r, c = meta
        return consts_ref[off:off + r, 0:c]

    hi = lax.Precision.HIGHEST
    for lvl, (H, W) in enumerate(level_dims):
        m_dct, m_drb, m_uwt, m_uhb = metas[lvl]
        t1 = jnp.dot(cur, mat(m_dct), precision=hi,
                     preferred_element_type=jnp.float32)        # (blk*H,    W//2)
        down = jnp.dot(mat(m_drb), t1, precision=hi,
                       preferred_element_type=jnp.float32)      # (blk*H//2, W//2)
        u1 = jnp.dot(down, mat(m_uwt), precision=hi,
                     preferred_element_type=jnp.float32)        # (blk*H//2, W)
        up = jnp.dot(mat(m_uhb), u1, precision=hi,
                     preferred_element_type=jnp.float32)        # (blk*H,    W)
        # Reduce only over the sublane-stacked axis (VPU adds); one lane-resolved
        # partial row per level, no scalar chaining, no in-kernel cross-lane reduce.
        part = jnp.sum(jnp.abs(cur - up), axis=0, keepdims=True) * inv_counts[lvl]
        out_ref[lvl:lvl + 1, 0:W] = part
        cur = down


# ------------------------------ block / VMEM sizing ---------------------------

def _vmem_budget_and_limit():
    try:
        cap = int(pltpu.get_tpu_info().vmem_capacity_bytes)
    except Exception:
        cap = 64 << 20                         # conservative default (v7x per-core)
    limit = int(min(max(cap // 2, 32 << 20), 96 << 20))
    budget = int(min(cap * 3 // 8, 40 << 20, limit - (4 << 20)))
    return budget, limit


def _estimate_vmem(blk, level_dims):
    H0, W0 = level_dims[0]
    img = blk * H0 * W0 * 4
    streams = 2 * 2 * img                      # inp + tgt blocks, double-buffered
    consts = 0
    for (H, W) in level_dims:
        h, w = H // 2, W // 2
        consts += (W * w + w * W + 2 * (blk * h) * (blk * H)) * 4
    work = 6 * img                             # cur / t1 / down / u1 / up / |diff|
    return streams + 2 * consts + work + (1 << 16)


def _pick_block(m, level_dims, budget):
    fits = [b for b in range(1, m + 1)
            if m % b == 0 and _estimate_vmem(b, level_dims) <= budget]
    if not fits:
        return 1
    even = [b for b in fits if (m // b) % 2 == 0]   # keep both v7x TensorCores busy
    multi = [b for b in fits if m // b >= 2]
    for cand in (even, multi, fits):
        if cand:
            return max(cand)


# --------------------------------- forward -----------------------------------

def lap_loss(inp, tgt, max_levels=5):
    n, c, h, w = inp.shape
    assert max_levels <= 8
    # Same validity requirement as the torch module: every level stays even
    # (down/up shape match) and the deepest conv input is >= 3 (reflect pad 2).
    assert h % (1 << max_levels) == 0 and w % (1 << max_levels) == 0, (h, w)
    assert (min(h, w) >> (max_levels - 1)) >= 3, (h, w, max_levels)
    m = n * c
    dims = tuple((h >> l, w >> l) for l in range(max_levels))

    budget, vmem_limit = _vmem_budget_and_limit()
    blk = _pick_block(m, dims, budget)
    g = m // blk
    packed_np, metas = _packed_operators(dims, blk)
    consts = jnp.asarray(packed_np)
    lanes = _round_up(max(w, 128), 128)
    # Linearity: loss == sum_l mean |Lap_l(inp - tgt)| ; per-level mean uses
    # the full image count m even though each grid step only processes blk.
    inv_counts = tuple(1.0 / float(m * hl * wl) for hl, wl in dims)

    inp2 = inp.reshape(m * h, w)               # free reshape; subtraction in-kernel
    tgt2 = tgt.reshape(m * h, w)

    kernel = functools.partial(_lap_pyramid_kernel, level_dims=dims,
                               metas=metas, inv_counts=inv_counts)
    partials = pl.pallas_call(
        kernel,
        out_shape=jax.ShapeDtypeStruct((g * 8, lanes), jnp.float32),
        grid=(g,),
        in_specs=[pl.BlockSpec(packed_np.shape, lambda i: (0, 0)),
                  pl.BlockSpec((blk * h, w), lambda i: (i, 0)),
                  pl.BlockSpec((blk * h, w), lambda i: (i, 0))],
        out_specs=pl.BlockSpec((8, lanes), lambda i: (i, 0)),
        compiler_params=pltpu.CompilerParams(
            dimension_semantics=("parallel",),
            vmem_limit_bytes=vmem_limit),
    )(consts, inp2, tgt2)
    return jnp.sum(partials)


# --------------------------- numpy reference (module-faithful) ----------------

def _np_conv_gauss(x, scale):
    n, c, h, w = x.shape
    xp = np.pad(x, ((0, 0), (0, 0), (2, 2), (2, 2)), mode='reflect')
    out = np.zeros((n, c, h, w), np.float64)
    for dy in range(5):
        for dx in range(5):
            out += (scale * _G2D[dy, dx]) * xp[:, :, dy:dy + h, dx:dx + w]
    return out


def _np_lap_pyramid(img, levels):
    cur, pyr = img.astype(np.float64), []
    for _ in range(levels):
        filt = _np_conv_gauss(cur, 1.0)
        down = filt[:, :, ::2, ::2]
        z = np.zeros((down.shape[0], down.shape[1],
                      2 * down.shape[2], 2 * down.shape[3]), np.float64)
        z[:, :, ::2, ::2] = down
        pyr.append(cur - _np_conv_gauss(z, 4.0))
        cur = down
    return pyr


def _np_lap_loss(a, b, levels):
    return float(sum(np.mean(np.abs(x - y))
                     for x, y in zip(_np_lap_pyramid(a, levels),
                                     _np_lap_pyramid(b, levels))))


# ----------------------------------- main -------------------------------------

if __name__ == "__main__":
    key = jax.random.PRNGKey(0)
    k1, k2 = jax.random.split(key)
    # Module defaults: max_levels=5, channels=3.  Spatial 64 is the smallest size
    # that keeps every pyramid level even and >= 4 (valid reflect pad of 2).
    N, C, H, W = 2, 3, 64, 64
    x = jax.random.uniform(k1, (N, C, H, W), dtype=jnp.float32)
    y = jax.random.uniform(k2, (N, C, H, W), dtype=jnp.float32)

    loss_fn = jax.jit(functools.partial(lap_loss, max_levels=5))
    loss = jax.block_until_ready(loss_fn(x, y))

    ref = _np_lap_loss(np.asarray(x), np.asarray(y), 5)
    assert np.allclose(np.asarray(loss), ref, rtol=2e-3, atol=1e-5), (float(loss), ref)
    print("KERNEL_OK")
</pallas_src>

<mosaic_0001>
module attributes {stable_mosaic.version = 11 : i64} {
  func.func @_lap_pyramid_kernel(%arg0: i32, %arg1: memref<768x256xf32, #tpu.memory_space<vmem>>, %arg2: memref<192x64xf32, #tpu.memory_space<vmem>>, %arg3: memref<192x64xf32, #tpu.memory_space<vmem>>, %arg4: memref<8x128xf32, #tpu.memory_space<vmem>>) attributes {dimension_semantics = [#tpu.dimension_semantics<parallel>], iteration_bounds = array<i64: 2>, scalar_prefetch = 0 : i64, scratch_operands = 0 : i64, tpu.core_type = #tpu.core_type<tc>, window_params = [{pipeline_mode = #tpu.pipeline_mode<synchronous>, transform_indices = @transform_0, window_bounds = array<i64: 768, 256>}, {transform_indices = @transform_1, window_bounds = array<i64: 192, 64>}, {transform_indices = @transform_2, window_bounds = array<i64: 192, 64>}, {transform_indices = @transform_3, window_bounds = array<i64: 8, 128>}]} {
    %cst = arith.constant 0.000000e+00 : f32
    %0 = vector.broadcast %cst : f32 to vector<8x128xf32>
    %c0 = arith.constant 0 : index
    %c0_0 = arith.constant 0 : index
    %1 = vector.load %arg4[%c0, %c0_0] : memref<8x128xf32, #tpu.memory_space<vmem>>, vector<8x128xf32>
    tpu.vector_store %arg4[%c0, %c0_0], %0 {strides = array<i32>} : memref<8x128xf32, #tpu.memory_space<vmem>>, vector<8x128xf32>,
    %c0_1 = arith.constant 0 : index
    %c0_2 = arith.constant 0 : index
    %2 = vector.load %arg2[%c0_1, %c0_2] : memref<192x64xf32, #tpu.memory_space<vmem>>, vector<192x64xf32>
    %c0_3 = arith.constant 0 : index
    %c0_4 = arith.constant 0 : index
    %3 = vector.load %arg3[%c0_3, %c0_4] : memref<192x64xf32, #tpu.memory_space<vmem>>, vector<192x64xf32>
    %4 = arith.subf %2, %3 : vector<192x64xf32>
    %c0_5 = arith.constant 0 : index
    %c0_6 = arith.constant 0 : index
    %5 = vector.load %arg1[%c0_5, %c0_6] : memref<768x256xf32, #tpu.memory_space<vmem>>, vector<64x32xf32>
    %cst_7 = arith.constant dense<0.000000e+00> : vector<192x32xf32>
    %6 = tpu.matmul %4, %5, %cst_7 {dimension_numbers = #tpu.dot_dimension_numbers<[1], [0], [0], [1], [0, 0, 1, 1], [], []>, precision = #tpu.contract_precision<fp32>} : vector<192x64xf32>, vector<64x32xf32>, vector<192x32xf32> -> vector<192x32xf32>
    %c64 = arith.constant 64 : index
    %c0_8 = arith.constant 0 : index
    %7 = vector.load %arg1[%c64, %c0_8] : memref<768x256xf32, #tpu.memory_space<vmem>>, vector<96x192xf32>
    %cst_9 = arith.constant dense<0.000000e+00> : vector<96x32xf32>
    %8 = tpu.matmul %7, %6, %cst_9 {dimension_numbers = #tpu.dot_dimension_numbers<[1], [0], [0], [1], [0, 0, 1, 1], [], []>, precision = #tpu.contract_precision<fp32>} : vector<96x192xf32>, vector<192x32xf32>, vector<96x32xf32> -> vector<96x32xf32>
    %c160 = arith.constant 160 : index
    %c0_10 = arith.constant 0 : index
    %9 = vector.load %arg1[%c160, %c0_10] : memref<768x256xf32, #tpu.memory_space<vmem>>, vector<32x64xf32>
    %cst_11 = arith.constant dense<0.000000e+00> : vector<96x64xf32>
    %10 = tpu.matmul %8, %9, %cst_11 {dimension_numbers = #tpu.dot_dimension_numbers<[1], [0], [0], [1], [0, 0, 1, 1], [], []>, precision = #tpu.contract_precision<fp32>} : vector<96x32xf32>, vector<32x64xf32>, vector<96x64xf32> -> vector<96x64xf32>
    %c192 = arith.constant 192 : index
    %c0_12 = arith.constant 0 : index
    %11 = vector.load %arg1[%c192, %c0_12] : memref<768x256xf32, #tpu.memory_space<vmem>>, vector<192x96xf32>
    %cst_13 = arith.constant dense<0.000000e+00> : vector<192x64xf32>
    %12 = tpu.matmul %11, %10, %cst_13 {dimension_numbers = #tpu.dot_dimension_numbers<[1], [0], [0], [1], [0, 0, 1, 1], [], []>, precision = #tpu.contract_precision<fp32>} : vector<192x96xf32>, vector<96x64xf32>, vector<192x64xf32> -> vector<192x64xf32>
    %13 = arith.subf %4, %12 : vector<192x64xf32>
    %14 = math.absf %13 : vector<192x64xf32>
    %cst_14 = arith.constant dense<0.000000e+00> : vector<64xf32>
    %15 = vector.multi_reduction <add>, %14, %cst_14 [0] : vector<192x64xf32> to vector<64xf32>
    %16 = vector.shape_cast %15 : vector<64xf32> to vector<1x64xf32>
    %cst_15 = arith.constant 4.06901054E-5 : f32
    %17 = vector.broadcast %cst_15 : f32 to vector<1x64xf32>
    %18 = arith.mulf %16, %17 : vector<1x64xf32>
    %c0_16 = arith.constant 0 : index
    %c0_17 = arith.constant 0 : index
    %19 = vector.load %arg4[%c0_16, %c0_17] : memref<8x128xf32, #tpu.memory_space<vmem>>, vector<1x64xf32>
    tpu.vector_store %arg4[%c0_16, %c0_17], %18 {strides = array<i32>} : memref<8x128xf32, #tpu.memory_space<vmem>>, vector<1x64xf32>,
    %c384 = arith.constant 384 : index
    %c0_18 = arith.constant 0 : index
    %20 = vector.load %arg1[%c384, %c0_18] : memref<768x256xf32, #tpu.memory_space<vmem>>, vector<32x16xf32>
    %cst_19 = arith.constant dense<0.000000e+00> : vector<96x16xf32>
    %21 = tpu.matmul %8, %20, %cst_19 {dimension_numbers = #tpu.dot_dimension_numbers<[1], [0], [0], [1], [0, 0, 1, 1], [], []>, precision = #tpu.contract_precision<fp32>} : vector<96x32xf32>, vector<32x16xf32>, vector<96x16xf32> -> vector<96x16xf32>
    %c416 = arith.constant 416 : index
    %c0_20 = arith.constant 0 : index
    %22 = vector.load %arg1[%c416, %c0_20] : memref<768x256xf32, #tpu.memory_space<vmem>>, vector<48x96xf32>
    %cst_21 = arith.constant dense<0.000000e+00> : vector<48x16xf32>
    %23 = tpu.matmul %22, %21, %cst_21 {dimension_numbers = #tpu.dot_dimension_numbers<[1], [0], [0], [1], [0, 0, 1, 1], [], []>, precision = #tpu.contract_precision<fp32>} : vector<48x96xf32>, vector<96x16xf32>, vector<48x16xf32> -> vector<48x16xf32>
    %c464 = arith.constant 464 : index
    %c0_22 = arith.constant 0 : index
    %24 = vector.load %arg1[%c464, %c0_22] : memref<768x256xf32, #tpu.memory_space<vmem>>, vector<16x32xf32>
    %cst_23 = arith.constant dense<0.000000e+00> : vector<48x32xf32>
    %25 = tpu.matmul %23, %24, %cst_23 {dimension_numbers = #tpu.dot_dimension_numbers<[1], [0], [0], [1], [0, 0, 1, 1], [], []>, precision = #tpu.contract_precision<fp32>} : vector<48x16xf32>, vector<16x32xf32>, vector<48x32xf32> -> vector<48x32xf32>
    %c480 = arith.constant 480 : index
    %c0_24 = arith.constant 0 : index
    %26 = vector.load %arg1[%c480, %c0_24] : memref<768x256xf32, #tpu.memory_space<vmem>>, vector<96x48xf32>
    %cst_25 = arith.constant dense<0.000000e+00> : vector<96x32xf32>
    %27 = tpu.matmul %26, %25, %cst_25 {dimension_numbers = #tpu.dot_dimension_numbers<[1], [0], [0], [1], [0, 0, 1, 1], [], []>, precision = #tpu.contract_precision<fp32>} : vector<96x48xf32>, vector<48x32xf32>, vector<96x32xf32> -> vector<96x32xf32>
    %28 = arith.subf %8, %27 : vector<96x32xf32>
    %29 = math.absf %28 : vector<96x32xf32>
    %cst_26 = arith.constant dense<0.000000e+00> : vector<32xf32>
    %30 = vector.multi_reduction <add>, %29, %cst_26 [0] : vector<96x32xf32> to vector<32xf32>
    %31 = vector.shape_cast %30 : vector<32xf32> to vector<1x32xf32>
    %cst_27 = arith.constant 1.62760422E-4 : f32
    %32 = vector.broadcast %cst_27 : f32 to vector<1x32xf32>
    %33 = arith.mulf %31, %32 : vector<1x32xf32>
    %c1 = arith.constant 1 : index
    %c0_28 = arith.constant 0 : index
    %34 = vector.load %arg4[%c1, %c0_28] : memref<8x128xf32, #tpu.memory_space<vmem>>, vector<1x32xf32>
    tpu.vector_store %arg4[%c1, %c0_28], %33 {strides = array<i32>} : memref<8x128xf32, #tpu.memory_space<vmem>>, vector<1x32xf32>,
    %c576 = arith.constant 576 : index
    %c0_29 = arith.constant 0 : index
    %35 = vector.load %arg1[%c576, %c0_29] : memref<768x256xf32, #tpu.memory_space<vmem>>, vector<16x8xf32>
    %cst_30 = arith.constant dense<0.000000e+00> : vector<48x8xf32>
    %36 = tpu.matmul %23, %35, %cst_30 {dimension_numbers = #tpu.dot_dimension_numbers<[1], [0], [0], [1], [0, 0, 1, 1], [], []>, precision = #tpu.contract_precision<fp32>} : vector<48x16xf32>, vector<16x8xf32>, vector<48x8xf32> -> vector<48x8xf32>
    %c592 = arith.constant 592 : index
    %c0_31 = arith.constant 0 : index
    %37 = vector.load %arg1[%c592, %c0_31] : memref<768x256xf32, #tpu.memory_space<vmem>>, vector<24x48xf32>
    %cst_32 = arith.constant dense<0.000000e+00> : vector<24x8xf32>
    %38 = tpu.matmul %37, %36, %cst_32 {dimension_numbers = #tpu.dot_dimension_numbers<[1], [0], [0], [1], [0, 0, 1, 1], [], []>, precision = #tpu.contract_precision<fp32>} : vector<24x48xf32>, vector<48x8xf32>, vector<24x8xf32> -> vector<24x8xf32>
    %c616 = arith.constant 616 : index
    %c0_33 = arith.constant 0 : index
    %39 = vector.load %arg1[%c616, %c0_33] : memref<768x256xf32, #tpu.memory_space<vmem>>, vector<8x16xf32>
    %cst_34 = arith.constant dense<0.000000e+00> : vector<24x16xf32>
    %40 = tpu.matmul %38, %39, %cst_34 {dimension_numbers = #tpu.dot_dimension_numbers<[1], [0], [0], [1], [0, 0, 1, 1], [], []>, precision = #tpu.contract_precision<fp32>} : vector<24x8xf32>, vector<8x16xf32>, vector<24x16xf32> -> vector<24x16xf32>
    %c624 = arith.constant 624 : index
    %c0_35 = arith.constant 0 : index
    %41 = vector.load %arg1[%c624, %c0_35] : memref<768x256xf32, #tpu.memory_space<vmem>>, vector<48x24xf32>
    %cst_36 = arith.constant dense<0.000000e+00> : vector<48x16xf32>
    %42 = tpu.matmul %41, %40, %cst_36 {dimension_numbers = #tpu.dot_dimension_numbers<[1], [0], [0], [1], [0, 0, 1, 1], [], []>, precision = #tpu.contract_precision<fp32>} : vector<48x24xf32>, vector<24x16xf32>, vector<48x16xf32> -> vector<48x16xf32>
    %43 = arith.subf %23, %42 : vector<48x16xf32>
    %44 = math.absf %43 : vector<48x16xf32>
    %cst_37 = arith.constant dense<0.000000e+00> : vector<16xf32>
    %45 = vector.multi_reduction <add>, %44, %cst_37 [0] : vector<48x16xf32> to vector<16xf32>
    %46 = vector.shape_cast %45 : vector<16xf32> to vector<1x16xf32>
    %cst_38 = arith.constant 6.51041686E-4 : f32
    %47 = vector.broadcast %cst_38 : f32 to vector<1x16xf32>
    %48 = arith.mulf %46, %47 : vector<1x16xf32>
    %c2 = arith.constant 2 : index
    %c0_39 = arith.constant 0 : index
    %49 = vector.load %arg4[%c2, %c0_39] : memref<8x128xf32, #tpu.memory_space<vmem>>, vector<1x16xf32>
    tpu.vector_store %arg4[%c2, %c0_39], %48 {strides = array<i32>} : memref<8x128xf32, #tpu.memory_space<vmem>>, vector<1x16xf32>,
    %c672 = arith.constant 672 : index
    %c0_40 = arith.constant 0 : index
    %50 = vector.load %arg1[%c672, %c0_40] : memref<768x256xf32, #tpu.memory_space<vmem>>, vector<8x4xf32>
    %cst_41 = arith.constant dense<0.000000e+00> : vector<24x4xf32>
    %51 = tpu.matmul %38, %50, %cst_41 {dimension_numbers = #tpu.dot_dimension_numbers<[1], [0], [0], [1], [0, 0, 1, 1], [], []>, precision = #tpu.contract_precision<fp32>} : vector<24x8xf32>, vector<8x4xf32>, vector<24x4xf32> -> vector<24x4xf32>
    %c680 = arith.constant 680 : index
    %c0_42 = arith.constant 0 : index
    %52 = vector.load %arg1[%c680, %c0_42] : memref<768x256xf32, #tpu.memory_space<vmem>>, vector<12x24xf32>
    %cst_43 = arith.constant dense<0.000000e+00> : vector<12x4xf32>
    %53 = tpu.matmul %52, %51, %cst_43 {dimension_numbers = #tpu.dot_dimension_numbers<[1], [0], [0], [1], [0, 0, 1, 1], [], []>, precision = #tpu.contract_precision<fp32>} : vector<12x24xf32>, vector<24x4xf32>, vector<12x4xf32> -> vector<12x4xf32>
    %c696 = arith.constant 696 : index
    %c0_44 = arith.constant 0 : index
    %54 = vector.load %arg1[%c696, %c0_44] : memref<768x256xf32, #tpu.memory_space<vmem>>, vector<4x8xf32>
    %cst_45 = arith.constant dense<0.000000e+00> : vector<12x8xf32>
    %55 = tpu.matmul %53, %54, %cst_45 {dimension_numbers = #tpu.dot_dimension_numbers<[1], [0], [0], [1], [0, 0, 1, 1], [], []>, precision = #tpu.contract_precision<fp32>} : vector<12x4xf32>, vector<4x8xf32>, vector<12x8xf32> -> vector<12x8xf32>
    %c704 = arith.constant 704 : index
    %c0_46 = arith.constant 0 : index
    %56 = vector.load %arg1[%c704, %c0_46] : memref<768x256xf32, #tpu.memory_space<vmem>>, vector<24x12xf32>
    %cst_47 = arith.constant dense<0.000000e+00> : vector<24x8xf32>
    %57 = tpu.matmul %56, %55, %cst_47 {dimension_numbers = #tpu.dot_dimension_numbers<[1], [0], [0], [1], [0, 0, 1, 1], [], []>, precision = #tpu.contract_precision<fp32>} : vector<24x12xf32>, vector<12x8xf32>, vector<24x8xf32> -> vector<24x8xf32>
    %58 = arith.subf %38, %57 : vector<24x8xf32>
    %59 = math.absf %58 : vector<24x8xf32>
    %cst_48 = arith.constant dense<0.000000e+00> : vector<8xf32>
    %60 = vector.multi_reduction <add>, %59, %cst_48 [0] : vector<24x8xf32> to vector<8xf32>
    %61 = vector.shape_cast %60 : vector<8xf32> to vector<1x8xf32>
    %cst_49 = arith.constant 0.00260416674 : f32
    %62 = vector.broadcast %cst_49 : f32 to vector<1x8xf32>
    %63 = arith.mulf %61, %62 : vector<1x8xf32>
    %c3 = arith.constant 3 : index
    %c0_50 = arith.constant 0 : index
    %64 = vector.load %arg4[%c3, %c0_50] : memref<8x128xf32, #tpu.memory_space<vmem>>, vector<1x8xf32>
    tpu.vector_store %arg4[%c3, %c0_50], %63 {strides = array<i32>} : memref<8x128xf32, #tpu.memory_space<vmem>>, vector<1x8xf32>,
    %c728 = arith.constant 728 : index
    %c0_51 = arith.constant 0 : index
    %65 = vector.load %arg1[%c728, %c0_51] : memref<768x256xf32, #tpu.memory_space<vmem>>, vector<4x2xf32>
    %cst_52 = arith.constant dense<0.000000e+00> : vector<12x2xf32>
    %66 = tpu.matmul %53, %65, %cst_52 {dimension_numbers = #tpu.dot_dimension_numbers<[1], [0], [0], [1], [0, 0, 1, 1], [], []>, precision = #tpu.contract_precision<fp32>} : vector<12x4xf32>, vector<4x2xf32>, vector<12x2xf32> -> vector<12x2xf32>
    %c736 = arith.constant 736 : index
    %c0_53 = arith.constant 0 : index
    %67 = vector.load %arg1[%c736, %c0_53] : memref<768x256xf32, #tpu.memory_space<vmem>>, vector<6x12xf32>
    %cst_54 = arith.constant dense<0.000000e+00> : vector<6x2xf32>
    %68 = tpu.matmul %67, %66, %cst_54 {dimension_numbers = #tpu.dot_dimension_numbers<[1], [0], [0], [1], [0, 0, 1, 1], [], []>, precision = #tpu.contract_precision<fp32>} : vector<6x12xf32>, vector<12x2xf32>, vector<6x2xf32> -> vector<6x2xf32>
    %c744 = arith.constant 744 : index
    %c0_55 = arith.constant 0 : index
    %69 = vector.load %arg1[%c744, %c0_55] : memref<768x256xf32, #tpu.memory_space<vmem>>, vector<2x4xf32>
    %cst_56 = arith.constant dense<0.000000e+00> : vector<6x4xf32>
    %70 = tpu.matmul %68, %69, %cst_56 {dimension_numbers = #tpu.dot_dimension_numbers<[1], [0], [0], [1], [0, 0, 1, 1], [], []>, precision = #tpu.contract_precision<fp32>} : vector<6x2xf32>, vector<2x4xf32>, vector<6x4xf32> -> vector<6x4xf32>
    %c752 = arith.constant 752 : index
    %c0_57 = arith.constant 0 : index
    %71 = vector.load %arg1[%c752, %c0_57] : memref<768x256xf32, #tpu.memory_space<vmem>>, vector<12x6xf32>
    %cst_58 = arith.constant dense<0.000000e+00> : vector<12x4xf32>
    %72 = tpu.matmul %71, %70, %cst_58 {dimension_numbers = #tpu.dot_dimension_numbers<[1], [0], [0], [1], [0, 0, 1, 1], [], []>, precision = #tpu.contract_precision<fp32>} : vector<12x6xf32>, vector<6x4xf32>, vector<12x4xf32> -> vector<12x4xf32>
    %73 = arith.subf %53, %72 : vector<12x4xf32>
    %74 = math.absf %73 : vector<12x4xf32>
    %cst_59 = arith.constant dense<0.000000e+00> : vector<4xf32>
    %75 = vector.multi_reduction <add>, %74, %cst_59 [0] : vector<12x4xf32> to vector<4xf32>
    %76 = vector.shape_cast %75 : vector<4xf32> to vector<1x4xf32>
    %cst_60 = arith.constant 0.010416667 : f32
    %77 = vector.broadcast %cst_60 : f32 to vector<1x4xf32>
    %78 = arith.mulf %76, %77 : vector<1x4xf32>
    %c4 = arith.constant 4 : index
    %c0_61 = arith.constant 0 : index
    %79 = vector.load %arg4[%c4, %c0_61] : memref<8x128xf32, #tpu.memory_space<vmem>>, vector<1x4xf32>
    tpu.vector_store %arg4[%c4, %c0_61], %78 {strides = array<i32>} : memref<8x128xf32, #tpu.memory_space<vmem>>, vector<1x4xf32>,
    return
  }
  func.func @transform_0(%arg0: i32) -> (i32, i32) {
    %c0_i32 = arith.constant 0 : i32
    %c0_i32_0 = arith.constant 0 : i32
    %c0_i32_1 = arith.constant 0 : i32
    return %c0_i32, %c0_i32_0 : i32, i32
  }
  func.func @transform_1(%arg0: i32) -> (i32, i32) {
    %c0_i32 = arith.constant 0 : i32
    %c0_i32_0 = arith.constant 0 : i32
    return %arg0, %c0_i32 : i32, i32
  }
  func.func @transform_2(%arg0: i32) -> (i32, i32) {
    %c0_i32 = arith.constant 0 : i32
    %c0_i32_0 = arith.constant 0 : i32
    return %arg0, %c0_i32 : i32, i32
  }
  func.func @transform_3(%arg0: i32) -> (i32, i32) {
    %c0_i32 = arith.constant 0 : i32
    %c0_i32_0 = arith.constant 0 : i32
    return %arg0, %c0_i32 : i32, i32
  }
}

</mosaic_0001>

<bundles_post_ra>
// kernel: lap_loss.1
= control target key start
LH: loop header
LB: loop body
LE: loop exit
PB: predicated region body
PF: predicated region fallthrough
CT: control target
= control target key end

     0   :  { %8 = vsyncpa [#allocation3], 0  ;;  %s25582_s0 = inlined_call_operand.hbm [shape: f32[768,256], index: 0, kind: input, shape index: {}]   ;;  %s25583_s1 = inlined_call_operand.hbm [shape: f32[384,64], index: 1, kind: input, shape index: {}]   ;;  %s25584_s2 = inlined_call_operand.hbm [shape: f32[384,64], index: 2, kind: input, shape index: {}]   ;;  %s25585_s3 = inlined_call_operand.vmem [shape: f32[16,128], index: 3, kind: output, shape index: {}]  }
   0x1   :  { %9 = vsyncpa [#allocation5], 0 }
   0x2   :  { %11 = vsyncpa [#allocation5 + $0x1], 0  ;;  %s20049_s12 = smov 0   ;;  %s20051_s13 = smov 0  }
   0x3   :  { %s20053_s14 = smov 0   ;;  %s20055_s15 = smov 0  }
   0x4 LB: > { %s20070_s16 = sadd.s32 1, %s20018_s15   ;;  %s45_s17 = sadd.s32 1, %s20014_s14  ;;  %s20018_s15 = sphi %s20055_s15, %s26656_s15   ;;  %s20014_s14 = sphi %s20053_s14, %s26655_s14   ;;  %s20010_s13 = sphi %s20051_s13, %s26654_s13   ;;  %s20006_s12 = sphi %s20049_s12, %s26653_s12  }
   0x5   : > { %s42_s18 = ssub.s32 %s20018_s15, %s20070_s16  ;;  %p52_p0 = scmp.ne.s32.totalorder %s20014_s14, %s20010_s13 }
   0x6   : > { %p43_p1 = scmp.eq.s32.totalorder %s42_s18, 0  ;;  %p53_p2 = scmp.eq.s32.totalorder %s20018_s15, 0 }
   0x7   : > { %p19857_p3 = scmp.lt.s32.totalorder %s20018_s15, 2  ;;  %s147_s20 = sand.u32 1, %s20018_s15  }
   0x8   : > { %s20080_s19 = scalar_select %p43_p1, %s20014_s14, %s45_s17  }
   0x9   : > { %p54_p4 = por %p53_p2, %p52_p0  ;;  %s149_s21 = sand.u32 1, %s20014_s14  }
   0xa   : > { %s20084_s22 = smul.u32 192, %s149_s21  ;;  %s20101_s30 = scalar_lea.sflag [#allocation5], %s147_s20 }
   0xb   : > { %p20086_p5 = pnand %p19857_p3, %p54_p4  ;;  %s16460_s24 = smul.u32 3072, %s20018_s15 }
   0xc   : > { %s151_s28 = scalar_lea.vmem [#allocation4], %s20084_s22  ;;  %s19903_s7 = scalar_lea.hbm %s25583_s1, 6144 }
   0xd   : > { %s20096_s27 = scalar_lea.hbm %s25583_s1, %s16460_s24  ;;  %s158_s29 = sshll.u32 %s151_s28, 4  ;;  %s20099_s29 = int_to_ptr.vmem [resolvable:$true] %s158_s29 }
   0xe   : > { %s19898_s4 = scalar_lea.hbm %s20096_s27, 3072  ;;  %p19900_p7 = pneg %p20086_p5 }
   0xf   : > { %p19899_p6 = scmp.ne.s32.totalorder %s20096_s27, %s19898_s4  ;;  %p19904_p10 = scmp.lt.s32.totalorder %s20096_s27, %s25583_s1 }
  0x10   : > { %p19905_p11 = scmp.lt.s32.totalorder %s19903_s7, %s19898_s4 }
  0x11   : > { %p19901_p8 = pnand %p19900_p7, %p19899_p6 }
  0x12   : > { %p19906_p12 = por %p19905_p11, %p19904_p10 }
  0x13   : > { %p19902_p9 = pneg %p19901_p8 }
  0x15   : > { %p19907_p13 = pnand %p19906_p12, %p19902_p9 }
  0x17   : > { %19910 = shalt.err (!%p19907_p13)
}
  0x18   : > { %s19911_s10 = scalar_lea.vmem %s20099_s29, 3072  ;;  %s20020_s11 = smov [#allocation4]  }
  0x19   : > { %p19912_p0 = scmp.ne.s32.totalorder %s20099_s29, %s19911_s10  ;;  %s19916_s17 = sshll.u32 %s20020_s11, 4  ;;  %s19917_s17 = int_to_ptr.vmem [resolvable:$false] %s19916_s17 }
  0x1a   : > { %s19918_s18 = scalar_lea.vmem %s19917_s17, 6144  ;;  %p19919_p3 = scmp.lt.s32.totalorder %s20099_s29, %s19917_s17 }
  0x1b   : > { %p19914_p1 = pnand %p19912_p0, %p19900_p7  ;;  %p19920_p4 = scmp.lt.s32.totalorder %s19918_s18, %s19911_s10 }
  0x1d   : > { %p19915_p2 = pneg %p19914_p1  ;;  %p19921_p6 = por %p19920_p4, %p19919_p3 }
  0x1f   : > { %p19922_p8 = pnand %p19921_p6, %p19915_p2 }
  0x21   : > { %19925 = shalt.err (!%p19922_p8)
}
  0x22   : > { %s20021_s20 = smov 128   ;;  %s20022_s21 = smov 8  }
  0x23   : > { %19852 = dma.hbm_to_vmem [thread:$0]  (!%p20086_p5), %s20096_s27, 3072, %s20099_s29, %s20101_s30, %s20021_s20, %s20021_s20, %s20022_s21  }
  0x24   : > { %s20132_s25 = sadd.s32 4294967295, %s20018_s15   ;;  %p58_p10 = scmp.ne.s32.totalorder %s20010_s13, %s20006_s12 }
  0x25   : > { %p25586_p9 = scmp.eq.s32.totalorder %s20132_s25, 0  ;;  %p16450_p11 = scmp.ge.s32.totalorder %s20018_s15, 1 }
  0x26   : > { %p121_p12 = scmp.lt.s32.totalorder %s20018_s15, 3  ;;  %s20023_s27 = smov [#allocation2]  }
  0x27   : > { %p20141_p13 = por %p25586_p9, %p58_p10  ;;  %s133_s29 = sshll.u32 %s20023_s27, 4  ;;  %s134_s29 = int_to_ptr.vmem [resolvable:$true] %s133_s29 }
  0x28   : > { %p20145_p0 = pnand %p16450_p11, %p121_p12  ;;  %s172_s4 = scalar_lea.vmem [#allocation6], %s20084_s22 }
  0x29   : > { %s25928_s26 = scalar_select %p20141_p13, 1, 0 }
  0x2a   : > { %p19845_p1 = pneg %p20145_p0  ;;  %s179_s5 = sshll.u32 %s172_s4, 4  ;;  %s20165_s5 = int_to_ptr.vmem [resolvable:$true] %s179_s5 }
  0x2b   : > { %s20163_s8 = scalar_lea.hbm %s25584_s2, %s16460_s24  ;;  %s19937_s9 = scalar_lea.vmem %s134_s29, 24576 }
  0x2c   : > { %p20153_p2 = pnand %p19845_p1, %p25586_p9  ;;  %p19938_p4 = scmp.ne.s32.totalorder %s134_s29, %s19937_s9 }
  0x2d   : > { %p19945_p10 = scmp.lt.s32.totalorder %s134_s29, %s134_s29  ;;  %p19946_p11 = scmp.lt.s32.totalorder %s19937_s9, %s19937_s9 }
  0x2e   : > { %p19928_p3 = pneg %p20153_p2 }
  0x2f   : > { %p19947_p12 = por %p19946_p11, %p19945_p10 }
  0x30   : > { %p19940_p6 = pnand %p19938_p4, %p19928_p3 }
  0x32   : > { %p19941_p8 = pneg %p19940_p6 }
  0x34   : > { %p19948_p1 = pnand %p19947_p12, %p19941_p8 }
  0x36   : > { %19951 = shalt.err (!%p19948_p1)
}
  0x37   : > { %s20024_s22 = smov 256   ;;  %s20025_s15 = smov 16  }
  0x38   : > { %19848 = dma.hbm_to_vmem [thread:$0]  (!%p20153_p2), %s25582_s0, 24576, %s134_s29, [#allocation3], %s20024_s22, %s20024_s22, %s20025_s15  }
  0x39   : > { %s19952_s11 = scalar_lea.hbm %s20163_s8, 3072  ;;  %s19957_s27 = scalar_lea.hbm %s25584_s2, 6144 }
  0x3a   : > { %p19953_p3 = scmp.ne.s32.totalorder %s20163_s8, %s19952_s11  ;;  %p19958_p8 = scmp.lt.s32.totalorder %s20163_s8, %s25584_s2 }
  0x3b   : > { %p19959_p10 = scmp.lt.s32.totalorder %s19957_s27, %s19952_s11 }
  0x3c   : > { %p19955_p4 = pnand %p19953_p3, %p19900_p7 }
  0x3d   : > { %p19960_p11 = por %p19959_p10, %p19958_p8 }
  0x3e   : > { %p19956_p6 = pneg %p19955_p4 }
  0x40   : > { %p19961_p12 = pnand %p19960_p11, %p19956_p6 }
  0x42   : > { %19964 = shalt.err (!%p19961_p12)
}
  0x43   : > { %s19965_s29 = scalar_lea.vmem %s20165_s5, 3072  ;;  %s20026_s12 = smov [#allocation6]  }
  0x44   : > { %p19966_p2 = scmp.ne.s32.totalorder %s20165_s5, %s19965_s29  ;;  %s19970_s7 = sshll.u32 %s20026_s12, 4  ;;  %s19971_s7 = int_to_ptr.vmem [resolvable:$false] %s19970_s7 }
  0x45   : > { %s19972_s9 = scalar_lea.vmem %s19971_s7, 6144  ;;  %p19973_p4 = scmp.lt.s32.totalorder %s20165_s5, %s19971_s7 }
  0x46   : > { %p19968_p1 = pnand %p19966_p2, %p19900_p7  ;;  %p19974_p9 = scmp.lt.s32.totalorder %s19972_s9, %s19965_s29 }
  0x48   : > { %p19969_p3 = pneg %p19968_p1  ;;  %p19975_p13 = por %p19974_p9, %p19973_p4 }
  0x4a   : > { %p19976_p8 = pnand %p19975_p13, %p19969_p3 }
  0x4c   : > { %19979 = shalt.err (!%p19976_p8)
}
  0x4d   : > { %19855 = dma.hbm_to_vmem [thread:$0]  (!%p20086_p5), %s20163_s8, 3072, %s20165_s5, %s20101_s30, %s20021_s20, %s20021_s20, %s20022_s21  }
  0x4e   : > { %191 = sbr.rel (%p20145_p0) target bundleno = 4598 (0x11f6), region = 32 }
  0x53   : > { %p25931_p7 = scmp.eq.s32.totalorder %s20132_s25, 0 }
  0x55   : > { %19997 = dma.done.wait (%p25931_p7), [#allocation3], 24576   ;;  %p25932_p6 = pmov %p25931_p7 }
  0x56   : > { %s197_s23 = sand.u32 1, %s20132_s25   ;;  %s199_s22 = sand.u32 1, %s20010_s13  }
  0x57   : > { %19999 = vsyncadd (%p25932_p6), [#allocation3], 4294942720  ;;  %s19836_s15 = smul.u32 192, %s199_s22  ;;  %s198_s24 = scalar_lea.sflag [#allocation5], %s197_s23 }
  0x58   : > { %p25933_p9 = scmp.ne.s32.totalorder %s25928_s26, 0 }
  0x59   : > { %s20208_s10 = scalar_lea.vmem [#allocation4], %s19836_s15 }
  0x5a   : > { %20001 = dma.done.wait (%p25933_p9), %s198_s24, 6144  }
  0x5b   : > { %20003 = vsyncadd (%p25933_p9), %s198_s24, 4294961152  ;;  %v323_v0 = vld [vmem:[#allocation2 + $0x70] sm:$0xff]  ;;  %v322_v1 = vld [vmem:[#allocation2 + $0x60] sm:$0xff]  ;;  %vm324_vm0 = vcmask 523264   ;;  %s20241_s30 = scalar_lea.vmem [#allocation6], %s19836_s15  ;;  %vm3361_vm1 = vcmask 261120  }
  0x5c   : > { %v321_v2 = vld [vmem:[#allocation2 + $0x50] sm:$0xff]  ;;  %v20214_v3 = vand.u32 4294901760, %v323_v0  ;;  %v20216_v4 = vand.u32 4294901760, %v322_v1  ;;  %v320_v6 = vld [vmem:[#allocation2 + $0x40] sm:$0xff]  ;;  %v245_v20 = vld [vmem:[%s20208_s10 + $0x8] sm:$0xff]  ;;  %vm4380_vm2 = vcmask 785408  }
  0x5d   : > { %v20218_v5 = vand.u32 4294901760, %v321_v2  ;;  %v319_v7 = vld [vmem:[#allocation2 + $0x30] sm:$0xff]  ;;  %v318_v8 = vld [vmem:[#allocation2 + $0x20] sm:$0xff]  ;;  %v20220_v9 = vand.u32 4294901760, %v320_v6  ;;  %v269_v21 = vld [vmem:[%s20241_s30 + $0x8] sm:$0xff]  ;;  %p239_p5 = scmp.lt.s32.totalorder %s20132_s25, 1 }
  0x5e   : > { %v20222_v10 = vand.u32 4294901760, %v319_v7  ;;  %v20224_v11 = vand.u32 4294901760, %v318_v8  ;;  %v317_v12 = vld [vmem:[#allocation2 + $0x10] sm:$0xff]  ;;  %v20226_v13 = vld [vmem:[#allocation2] sm:$0xff]  ;;  %17674 = vmatprep.subr.mxu0 %v20214_v3  ;;  %v20231_v15 = vsub.f32 %v323_v0, %v20214_v3  ;;  %v20234_v16 = vsub.f32 %v322_v1, %v20216_v4  ;;  %v247_v44 = vld [vmem:[%s20208_s10 + $0x18] sm:$0xff] }
  0x5f   : > { %v244_v14 = vld [vmem:[%s20208_s10] sm:$0xff]  ;;  %v20236_v17 = vand.u32 4294901760, %v317_v12  ;;  %v20239_v18 = vsub.f32 %v321_v2, %v20218_v5  ;;  %17675 = vmatpush3.msra.mxu0 %v20214_v3  ;;  %v20248_v22 = vand.u32 4294901760, %v20226_v13  ;;  %v20251_v23 = vsub.f32 %v320_v6, %v20220_v9  ;;  %v246_v38 = vld [vmem:[%s20208_s10 + $0x10] sm:$0xff]  ;;  %v271_v45 = vld [vmem:[%s20241_s30 + $0x18] sm:$0xff]  ;;  %s26658_s25 = smov (!%p239_p5, %s20132_s25), 1 }
  0x60   : > { %v268_v19 = vld [vmem:[%s20241_s30] sm:$0xff]  ;;  %v20255_v25 = vsub.f32 %v245_v20, %v269_v21  ;;  %17676 = vmatprep.subr.mxu0 %v20216_v4  ;;  %v20259_v26 = vand.u32 4294901760, %v20231_v15  ;;  %v20262_v27 = vand.u32 4294901760, %v20234_v16  ;;  %v20268_v29 = vsub.f32 %v319_v7, %v20222_v10  ;;  %v270_v43 = vld [vmem:[%s20241_s30 + $0x10] sm:$0xff]  ;;  %v249_v0 = vld [vmem:[%s20208_s10 + $0x28] sm:$0xff]  ;;  %s16457_s20 = sshll.u32 %s26658_s25, 3 }
  0x61   : > { %v20253_v24 = vsub.f32 %v244_v14, %v268_v19  ;;  %v20265_v28 = vand.u32 4294901760, %v20239_v18  ;;  %17677 = vmatpush3.msra.mxu0 %v20216_v4  ;;  %v20272_v30 = vand.u32 4294901760, %v20251_v23  ;;  %v20279_v33 = vsub.f32 %v318_v8, %v20224_v11  ;;  %v248_v58 = vld [vmem:[%s20208_s10 + $0x20] sm:$0xff]  ;;  %v273_v1 = vld [vmem:[%s20241_s30 + $0x28] sm:$0xff]  ;;  %v250_v20 = vld [vmem:[%s20208_s10 + $0x30] sm:$0xff]  ;;  %s23424_s28 = scalar_lea.vmem %s25585_s3, %s16457_s20 }
  0x62   : > { %25935 = vst [vmem:[#allocation10_spill] sm:$0xff] %v20255_v25  ;;  %v329_v32 = vsel %vm324_vm0, %v20255_v25, 0  ;;  %17678 = vmatprep.subr.mxu0 %v20218_v5  ;;  %v730_v34 = vsub.f32 %v20231_v15, %v20259_v26  ;;  %v737_v35 = vsub.f32 %v20234_v16, %v20262_v27  ;;  %v20297_v41 = vand.u32 4294901760, %v20268_v29  ;;  %v272_v63 = vld [vmem:[%s20241_s30 + $0x20] sm:$0xff]  ;;  %v274_v21 = vld [vmem:[%s20241_s30 + $0x30] sm:$0xff] }
  0x63   : > { %25934 = vst [vmem:[#allocation9_spill] sm:$0xff] %v20253_v24  ;;  %v326_v31 = vsel %vm324_vm0, %v20253_v24, 0  ;;  %v744_v36 = vsub.f32 %v20239_v18, %v20265_v28  ;;  %17679 = vmatpush3.msra.mxu0 %v20218_v5  ;;  %v751_v39 = vsub.f32 %v20251_v23, %v20272_v30  ;;  %v20294_v40 = vand.u32 4294901760, %v329_v32 }
  0x64   : > { %v20288_v37 = vand.u32 4294901760, %v326_v31  ;;  %v20300_v42 = vand.u32 4294901760, %v20279_v33  ;;  %17680 = vmatprep.subr.mxu0 %v20220_v9  ;;  %v731_v46 = vand.u32 4294901760, %v730_v34  ;;  %v738_v47 = vand.u32 4294901760, %v737_v35 }
  0x65   : > { %25937 = vst [vmem:[#allocation12_spill] sm:$0xff] %v20294_v40  ;;  %v745_v48 = vand.u32 4294901760, %v744_v36  ;;  %17681 = vmatpush3.msra.mxu0 %v20220_v9  ;;  %v20311_v50 = vand.u32 4294901760, %v751_v39  ;;  %v20314_v51 = vsub.f32 %v329_v32, %v20294_v40  ;;  %v758_v52 = vsub.f32 %v20268_v29, %v20297_v41  ;;  %v251_v36 = vld [vmem:[%s20208_s10 + $0x38] sm:$0xff] }
  0x66   : > { %25936 = vst [vmem:[#allocation11_spill] sm:$0xff] %v20288_v37  ;;  %v20307_v49 = vsub.f32 %v326_v31, %v20288_v37  ;;  %17742 = vmatprep.mubr.f32.mxu1 %v20288_v37  ;;  %v765_v53 = vsub.f32 %v20279_v33, %v20300_v42  ;;  %17682 = vmatprep.subr.mxu0 %v20222_v10  ;;  %v266_v37 = vld [vmem:[%s20208_s10 + $0xb0] sm:$0xff]  ;;  %vm6133_vm3 = vcmask 516096   ;;  %vm7927_vm4 = vcmask 130048  }
  0x67   : > { %17726 = vmatprep.subr.mxu1 %v731_v46  ;;  %v20322_v55 = vsub.f32 %v246_v38, %v270_v43  ;;  %v20324_v56 = vsub.f32 %v247_v44, %v271_v45  ;;  %v20327_v57 = vsub.f32 %v317_v12, %v20236_v17  ;;  %17683 = vmatpush3.msra.mxu0 %v20222_v10  ;;  %v25590_v59 = vand.u32 4294901760, %v20314_v51  ;;  %v275_v45 = vld [vmem:[%s20241_s30 + $0x38] sm:$0xff] }
  0x68   : > { %v25591_v54 = vand.u32 4294901760, %v20307_v49  ;;  %17727 = vmatpush3.msra.mxu1 %v731_v46  ;;  %v759_v60 = vand.u32 4294901760, %v758_v52  ;;  %v20332_v61 = vand.u32 4294901760, %v765_v53  ;;  %v20336_v62 = vsub.f32 %v20226_v13, %v20248_v22  ;;  %17684 = vmatprep.subr.mxu0 %v20224_v11  ;;  %v252_v46 = vld [vmem:[%s20208_s10 + $0x40] sm:$0xff] }
  0x69   : > { %25938 = vst [vmem:[#allocation13_spill] sm:$0xff] %v20322_v55  ;;  %25939 = vst [vmem:[#allocation14_spill] sm:$0xff] %v20324_v56  ;;  %17728 = vmatprep.subr.mxu1 %v738_v47  ;;  %v332_v6 = vsel %vm324_vm0, %v20322_v55, 0  ;;  %v335_v7 = vsel %vm324_vm0, %v20324_v56, 0  ;;  %v20350_v8 = vand.u32 4294901760, %v20327_v57  ;;  %17685 = vmatpush3.msra.mxu0 %v20224_v11  ;;  %v483_v12 = vsub.f32 %v20314_v51, %v25590_v59  ;;  %v284_v55 = vld [vmem:[%s20241_s30 + $0x80] sm:$0xff] }
  0x6a   : > { %v473_v2 = vsub.f32 %v20307_v49, %v25591_v54  ;;  %17729 = vmatpush3.msra.mxu1 %v738_v47  ;;  %v20356_v13 = vand.u32 4294901760, %v332_v6  ;;  %v20358_v14 = vand.u32 4294901760, %v335_v7  ;;  %v20361_v19 = vand.u32 4294901760, %v20336_v62  ;;  %17686 = vmatprep.subr.mxu0 %v20236_v17  ;;  %v276_v47 = vld [vmem:[%s20241_s30 + $0x40] sm:$0xff] }
  0x6b   : > { %17730 = vmatprep.subr.mxu1 %v745_v48  ;;  %v772_v32 = vsub.f32 %v20327_v57, %v20350_v8  ;;  %v20368_v34 = vsub.f32 %v248_v58, %v272_v63  ;;  %v20370_v35 = vsub.f32 %v249_v0, %v273_v1  ;;  %17687 = vmatpush3.msra.mxu0 %v20236_v17  ;;  %v484_v38 = vand.u32 4294901760, %v483_v12 }
  0x6c   : > { %25940 = vst [vmem:[#allocation15_spill] sm:$0xff] %v20356_v13  ;;  %25941 = vst [vmem:[#allocation16_spill] sm:$0xff] %v20358_v14  ;;  %v474_v31 = vand.u32 4294901760, %v473_v2  ;;  %17731 = vmatpush3.msra.mxu1 %v745_v48  ;;  %v20375_v39 = vsub.f32 %v332_v6, %v20356_v13  ;;  %v20378_v43 = vsub.f32 %v335_v7, %v20358_v14  ;;  %17688 = vmatprep.subr.mxu0 %v20248_v22  ;;  %v253_v6 = vld [vmem:[%s20208_s10 + $0x48] sm:$0xff]  ;;  %vm8632_vm5 = vcmask 392192  }
  0x6d   : > { %25942 = vst [vmem:[#allocation17_spill] sm:$0xff] %v20368_v34  ;;  %25943 = vst [vmem:[#allocation18_spill] sm:$0xff] %v20370_v35  ;;  %v779_v44 = vsub.f32 %v20336_v62, %v20361_v19  ;;  %17732 = vmatprep.subr.mxu1 %v20311_v50  ;;  %v773_v48 = vand.u32 4294901760, %v772_v32  ;;  %v338_v52 = vsel %vm324_vm0, %v20368_v34, 0  ;;  %v341_v53 = vsel %vm324_vm0, %v20370_v35, 0  ;;  %17689 = vmatpush3.msra.mxu0 %v20248_v22  ;;  %v277_v7 = vld [vmem:[%s20241_s30 + $0x48] sm:$0xff] }
  0x6e   : > { %v20391_v58 = vsub.f32 %v250_v20, %v274_v21  ;;  %17690 = vmatprep.mubr.f32.mxu0 %v474_v31  ;;  %v25589_v63 = vand.u32 4294901760, %v20375_v39  ;;  %v25588_v0 = vand.u32 4294901760, %v20378_v43  ;;  %v20396_v2 = vand.u32 4294901760, %v338_v52  ;;  %17733 = vmatpush3.msra.mxu1 %v20311_v50  ;;  %v257_v34 = vld [vmem:[%s20208_s10 + $0x68] sm:$0xff]  ;;  %v260_v35 = vld [vmem:[%s20208_s10 + $0x80] sm:$0xff] }
  0x6f   : > { %v780_v1 = vand.u32 4294901760, %v779_v44  ;;  %17691 = vmatmul.mubr.f32.vlgmr.msra.gmra.mxu0 %v484_v38  ;;  %v20401_v12 = vand.u32 4294901760, %v341_v53  ;;  %v20405_v21 = vsub.f32 %v251_v36, %v275_v45  ;;  %v20407_v31 = vsub.f32 %v252_v46, %v276_v47  ;;  %17734 = vmatprep.subr.mxu1 %v759_v60 }
  0x70   : > { %25944 = vst [vmem:[#allocation19_spill] sm:$0xff] %v20391_v58  ;;  %25945 = vst [vmem:[#allocation20_spill] sm:$0xff] %v20396_v2  ;;  %v344_v20 = vsel %vm324_vm0, %v20391_v58, 0  ;;  %v493_v32 = vsub.f32 %v20375_v39, %v25589_v63  ;;  %v503_v50 = vsub.f32 %v20378_v43, %v25588_v0  ;;  %v20416_v38 = vsub.f32 %v338_v52, %v20396_v2  ;;  %v254_v52 = vld [vmem:[%s20208_s10 + $0x50] sm:$0xff]  ;;  %v280_v58 = vld [vmem:[%s20241_s30 + $0x60] sm:$0xff] }
  0x71   : > { %25946 = vst [vmem:[#allocation21_spill] sm:$0xff] %v20401_v12  ;;  %25947 = vst [vmem:[#allocation22_spill] sm:$0xff] %v20405_v21  ;;  %v20418_v44 = vand.u32 4294901760, %v344_v20  ;;  %17778 = vmatprep.subr.mxu0 %v20231_v15  ;;  %17735 = vmatpush3.msra.mxu1 %v759_v60  ;;  %v20422_v36 = vsub.f32 %v341_v53, %v20401_v12  ;;  %v347_v45 = vsel %vm324_vm0, %v20405_v21, 0  ;;  %v350_v46 = vsel %vm324_vm0, %v20407_v31, 0  ;;  %v278_v0 = vld [vmem:[%s20241_s30 + $0x50] sm:$0xff] }
  0x72   : > { %25948 = vst [vmem:[#allocation23_spill] sm:$0xff] %v20407_v31  ;;  %17779 = vmatpush3.msra.mxu0 %v20231_v15  ;;  %v20429_v47 = vsub.f32 %v253_v6, %v277_v7  ;;  %17736 = vmatprep.subr.mxu1 %v20332_v61  ;;  %v494_v63 = vand.u32 4294901760, %v493_v32  ;;  %v504_v59 = vand.u32 4294901760, %v503_v50  ;;  %v25594_v60 = vand.u32 4294901760, %v20416_v38  ;;  %v255_v15 = vld [vmem:[%s20208_s10 + $0x58] sm:$0xff] }
  0x73   : > { %25949 = vst [vmem:[#allocation24_spill] sm:$0xff] %v20418_v44  ;;  %v20436_v53 = vsub.f32 %v344_v20, %v20418_v44  ;;  %17780 = vmatprep.subr.mxu0 %v20234_v16  ;;  %17737 = vmatpush3.msra.mxu1 %v20332_v61  ;;  %v20441_v6 = vand.u32 4294901760, %v347_v45  ;;  %v20443_v7 = vand.u32 4294901760, %v350_v46  ;;  %v20454_v54 = vsub.f32 %v254_v52, %v278_v0  ;;  %v256_v20 = vld [vmem:[%s20208_s10 + $0x60] sm:$0xff] }
  0x74   : > { %25950 = vst [vmem:[#allocation25_spill] sm:$0xff] %v20429_v47  ;;  %v353_v32 = vsel %vm324_vm0, %v20429_v47, 0  ;;  %17781 = vmatpush3.msra.mxu0 %v20234_v16  ;;  %17693 = vmatprep.mubr.f32.mxu0 %v494_v63  ;;  %v513_v61 = vsub.f32 %v20416_v38, %v25594_v60  ;;  %v25955_v31 = vand.u32 4294901760, %v20422_v36  ;;  %v279_v60 = vld [vmem:[%s20241_s30 + $0x58] sm:$0xff]  ;;  %vm20028_vm6 = vmmov 0  }
  0x75   : > { %25951 = vst [vmem:[#allocation26_spill] sm:$0xff] %v20441_v6  ;;  %25952 = vst [vmem:[#allocation27_spill] sm:$0xff] %v20443_v7  ;;  %17738 = vmatprep.subr.mxu1 %v773_v48  ;;  %v20452_v50 = vand.u32 4294901760, %v353_v32  ;;  %17694 = vmatmul.mubr.f32.gmra.mxu0 %v504_v59  ;;  %v20461_v16 = vsub.f32 %v347_v45, %v20441_v6  ;;  %v20464_v63 = vsub.f32 %v350_v46, %v20443_v7  ;;  %vm9707_vm7 = vcmask 253952  }
  0x76   : > { %25954 = vst [vmem:[#allocation29_spill] sm:$0xff] %v20454_v54  ;;  %17739 = vmatpush3.msra.mxu1 %v773_v48  ;;  %v523_v47 = vsub.f32 %v20422_v36, %v25955_v31  ;;  %v514_v0 = vand.u32 4294901760, %v513_v61  ;;  %v25956_v59 = vand.u32 4294901760, %v20436_v53  ;;  %v356_v31 = vsel %vm324_vm0, %v20454_v54, 0  ;;  %17782 = vmatprep.subr.mxu0 %v20239_v18  ;;  %v283_v54 = vld [vmem:[%s20241_s30 + $0x78] sm:$0xff] }
  0x77   : > { %25953 = vst [vmem:[#allocation28_spill] sm:$0xff] %v20452_v50  ;;  %17740 = vmatprep.subr.mxu1 %v780_v1  ;;  %v20473_v52 = vsub.f32 %v353_v32, %v20452_v50  ;;  %v20480_v61 = vand.u32 4294901760, %v356_v31  ;;  %17783 = vmatpush3.msra.mxu0 %v20239_v18  ;;  %v20489_v46 = vsub.f32 %v256_v20, %v280_v58  ;;  %v25960_v21 = vand.u32 4294901760, %v20461_v16  ;;  %v259_v58 = vld [vmem:[%s20208_s10 + $0x78] sm:$0xff] }
  0x78   : > { %v533_v48 = vsub.f32 %v20436_v53, %v25956_v59  ;;  %17741 = vmatpush3.msra.mxu1 %v780_v1  ;;  %v524_v45 = vand.u32 4294901760, %v523_v47  ;;  %v281_v59 = vld [vmem:[%s20241_s30 + $0x68] sm:$0xff]  ;;  %17696 = vmatprep.mubr.f32.mxu0 %v514_v0  ;;  %v20487_v47 = vsub.f32 %v255_v15, %v279_v60  ;;  %v25961_v0 = vand.u32 4294901760, %v20464_v63  ;;  %v258_v60 = vld [vmem:[%s20208_s10 + $0x70] sm:$0xff] }
  0x79   : > { %25957 = vst [vmem:[#allocation30_spill] sm:$0xff] %v20480_v61  ;;  %17743 = vmatmul.mubr.f32.vlgmr.msra.gmra.mxu1 %v20294_v40  ;;  %25959 = vst [vmem:[#allocation32_spill] sm:$0xff] %v20489_v46  ;;  %v543_v18 = vsub.f32 %v20461_v16, %v25960_v21  ;;  %v20499_v1 = vsub.f32 %v356_v31, %v20480_v61  ;;  %v282_v15 = vld [vmem:[%s20241_s30 + $0x70] sm:$0xff]  ;;  %17830 = vmatprep.subr.mxu1 %v20214_v3  ;;  %v25962_v20 = vand.u32 4294901760, %v20473_v52  ;;  %v289_v40 = vld [vmem:[%s20241_s30 + $0xa8] sm:$0xff]  ;;  %vm10995_vm8 = vcmask 64512  }
  0x7a   : > { %v534_v32 = vand.u32 4294901760, %v533_v48  ;;  %25958 = vst [vmem:[#allocation31_spill] sm:$0xff] %v20487_v47  ;;  %17697 = vmatmul.mubr.f32.gmra.mxu0 %v524_v45  ;;  %17745 = vmatprep.mubr.f32.mxu1 %v20356_v13  ;;  %v553_v48 = vsub.f32 %v20464_v63, %v25961_v0  ;;  %v359_v21 = vsel %vm324_vm0, %v20487_v47, 0  ;;  %v362_v0 = vsel %vm324_vm0, %v20489_v46, 0  ;;  %v285_v47 = vld [vmem:[%s20241_s30 + $0x88] sm:$0xff] }
  0x7b   : > { %v563_v45 = vsub.f32 %v20473_v52, %v25962_v20  ;;  %v20512_v31 = vsub.f32 %v257_v34, %v281_v59  ;;  %v544_v56 = vand.u32 4294901760, %v543_v18  ;;  %17831 = vmatpush3.msra.mxu1 %v20214_v3  ;;  %v25610_v24 = vand.u32 4294901760, %v20499_v1  ;;  %17784 = vmatprep.subr.mxu0 %v20251_v23  ;;  %v261_v20 = vld [vmem:[%s20208_s10 + $0x88] sm:$0xff] }
  0x7c   : > { %17699 = vmatprep.mubr.f32.mxu0 %v534_v32  ;;  %v554_v32 = vand.u32 4294901760, %v553_v48  ;;  %v20519_v25 = vand.u32 4294901760, %v359_v21  ;;  %17832 = vmatprep.subr.mxu1 %v20216_v4  ;;  %v20526_v34 = vand.u32 4294901760, %v362_v0  ;;  %v20530_v18 = vsub.f32 %v258_v60, %v282_v15 }
  0x7d   : > { %25963 = vst [vmem:[#allocation33_spill] sm:$0xff] %v20512_v31  ;;  %17746 = vmatmul.mubr.f32.gmra.mxu1 %v20358_v14  ;;  %v564_v46 = vand.u32 4294901760, %v563_v45  ;;  %v365_v59 = vsel %vm324_vm0, %v20512_v31, 0  ;;  %v573_v48 = vsub.f32 %v20499_v1, %v25610_v24  ;;  %v20541_v13 = vsub.f32 %v259_v58, %v283_v54  ;;  %17785 = vmatpush3.msra.mxu0 %v20251_v23  ;;  %v262_v58 = vld [vmem:[%s20208_s10 + $0x90] sm:$0xff] }
  0x7e   : > { %25964 = vst [vmem:[#allocation34_spill] sm:$0xff] %v20530_v18  ;;  %17700 = vmatmul.mubr.f32.gmra.mxu0 %v544_v56  ;;  %17748 = vmatprep.mubr.f32.mxu1 %v20396_v2  ;;  %v20537_v14 = vsub.f32 %v359_v21, %v20519_v25  ;;  %v20539_v45 = vand.u32 4294901760, %v365_v59  ;;  %v20545_v56 = vsub.f32 %v362_v0, %v20526_v34  ;;  %v368_v60 = vsel %vm324_vm0, %v20530_v18, 0  ;;  %v286_v0 = vld [vmem:[%s20241_s30 + $0x90] sm:$0xff] }
  0x7f   : > { %25965 = vst [vmem:[#allocation35_spill] sm:$0xff] %v20541_v13  ;;  %17702 = vmatprep.mubr.f32.mxu0 %v554_v32  ;;  %17833 = vmatpush3.msra.mxu1 %v20216_v4  ;;  %v20549_v15 = vsub.f32 %v260_v35, %v284_v55  ;;  %v20551_v24 = vsub.f32 %v261_v20, %v285_v47  ;;  %v574_v21 = vand.u32 4294901760, %v573_v48  ;;  %v20558_v54 = vand.u32 4294901760, %v368_v60 }
  0x80   : > { %v25615_v31 = vand.u32 4294901760, %v20537_v14  ;;  %v20555_v2 = vsub.f32 %v365_v59, %v20539_v45  ;;  %17834 = vmatprep.subr.mxu1 %v20218_v5  ;;  %v25619_v55 = vand.u32 4294901760, %v20545_v56  ;;  %v371_v35 = vsel %vm324_vm0, %v20541_v13, 0  ;;  %17786 = vmatprep.subr.mxu0 %v20268_v29  ;;  %v265_v13 = vld [vmem:[%s20208_s10 + $0xa8] sm:$0xff] }
  0x81   : > { %25966 = vst [vmem:[#allocation36_spill] sm:$0xff] %v20549_v15  ;;  %25967 = vst [vmem:[#allocation37_spill] sm:$0xff] %v20551_v24  ;;  %17749 = vmatmul.mubr.f32.gmra.mxu1 %v20401_v12  ;;  %v374_v47 = vsel %vm324_vm0, %v20549_v15, 0  ;;  %v377_v32 = vsel %vm324_vm0, %v20551_v24, 0  ;;  %v20578_v59 = vsub.f32 %v368_v60, %v20558_v54  ;;  %v20580_v48 = vand.u32 4294901760, %v371_v35  ;;  %v263_v60 = vld [vmem:[%s20208_s10 + $0x98] sm:$0xff]  ;;  %17787 = vmatpush3.msra.mxu0 %v20268_v29 }
  0x82   : > { %17703 = vmatmul.mubr.f32.gmra.mxu0 %v564_v46  ;;  %17751 = vmatprep.mubr.f32.mxu1 %v20418_v44  ;;  %v583_v23 = vsub.f32 %v20537_v14, %v25615_v31  ;;  %v593_v46 = vsub.f32 %v20545_v56, %v25619_v55  ;;  %v20586_v15 = vand.u32 4294901760, %v374_v47  ;;  %v20588_v31 = vand.u32 4294901760, %v377_v32  ;;  %v287_v44 = vld [vmem:[%s20241_s30 + $0x98] sm:$0xff] }
  0x83   : > { %25968 = vst [vmem:[#allocation38_spill] sm:$0xff] %v20578_v59  ;;  %17705 = vmatprep.mubr.f32.mxu0 %v574_v21  ;;  %17835 = vmatpush3.msra.mxu1 %v20218_v5  ;;  %v20590_v24 = vsub.f32 %v262_v58, %v286_v0  ;;  %v25970_v18 = vand.u32 4294901760, %v20555_v2  ;;  %v20598_v55 = vsub.f32 %v371_v35, %v20580_v48  ;;  %v264_v58 = vld [vmem:[%s20208_s10 + $0xa0] sm:$0xff]  ;;  %vm11543_vm9 = vcmask 195584  }
  0x84   : > { %v584_v20 = vand.u32 4294901760, %v583_v23  ;;  %17836 = vmatprep.subr.mxu1 %v20220_v9  ;;  %v288_v0 = vld [vmem:[%s20241_s30 + $0xa0] sm:$0xff]  ;;  %v594_v12 = vand.u32 4294901760, %v593_v46  ;;  %v20607_v23 = vsub.f32 %v374_v47, %v20586_v15  ;;  %17788 = vmatprep.subr.mxu0 %v20279_v33  ;;  %v25972_v46 = vand.u32 4294901760, %v20578_v59 }
  0x85   : > { %25969 = vst [vmem:[#allocation39_spill] sm:$0xff] %v20590_v24  ;;  %v603_v21 = vsub.f32 %v20555_v2, %v25970_v18  ;;  %17752 = vmatmul.mubr.f32.gmra.mxu1 %v20441_v6  ;;  %v20610_v18 = vsub.f32 %v377_v32, %v20588_v31  ;;  %v380_v35 = vsel %vm324_vm0, %v20590_v24, 0  ;;  %v25635_v32 = vand.u32 4294901760, %v20598_v55  ;;  %v290_v24 = vld [vmem:[%s20241_s30 + $0xb0] sm:$0xff]  ;;  %17789 = vmatpush3.msra.mxu0 %v20279_v33 }
  0x86   : > { %17706 = vmatmul.mubr.f32.gmra.mxu0 %v584_v20  ;;  %17754 = vmatprep.mubr.f32.mxu1 %v20443_v7  ;;  %v613_v47 = vsub.f32 %v20578_v59, %v25972_v46  ;;  %v20622_v6 = vand.u32 4294901760, %v380_v35  ;;  %v20627_v20 = vsub.f32 %v263_v60, %v287_v44  ;;  %v20629_v7 = vsub.f32 %v264_v58, %v288_v0 }
  0x87   : > { %25971 = vst [vmem:[#allocation40_spill] sm:$0xff] %v20610_v18  ;;  %v604_v29 = vand.u32 4294901760, %v603_v21  ;;  %17708 = vmatprep.mubr.f32.mxu0 %v594_v12  ;;  %17837 = vmatpush3.msra.mxu1 %v20220_v9  ;;  %v623_v46 = vsub.f32 %v20598_v55, %v25635_v32  ;;  %v20638_v12 = vsub.f32 %v265_v13, %v289_v40  ;;  %v25976_v44 = vand.u32 4294901760, %v20607_v23  ;;  %v267_v32 = vld [vmem:[%s20208_s10 + $0xb8] sm:$0xff] }
  0x88   : > { %25973 = vst [vmem:[#allocation41_spill] sm:$0xff] %v20627_v20  ;;  %25974 = vst [vmem:[#allocation42_spill] sm:$0xff] %v20629_v7  ;;  %v614_v21 = vand.u32 4294901760, %v613_v47  ;;  %v20635_v59 = vsub.f32 %v380_v35, %v20622_v6  ;;  %17838 = vmatprep.subr.mxu1 %v20222_v10  ;;  %v25977_v58 = vand.u32 4294901760, %v20610_v18  ;;  %v383_v40 = vsel %vm324_vm0, %v20627_v20, 0  ;;  %17790 = vmatprep.subr.mxu0 %v20327_v57 }
  0x89   : > { %25975 = vst [vmem:[#allocation43_spill] sm:$0xff] %v20638_v12  ;;  %17755 = vmatmul.mubr.f32.gmra.mxu1 %v20452_v50  ;;  %v633_v60 = vsub.f32 %v20607_v23, %v25976_v44  ;;  %v386_v13 = vsel %vm324_vm0, %v20629_v7, 0  ;;  %v624_v33 = vand.u32 4294901760, %v623_v46  ;;  %v20657_v47 = vand.u32 4294901760, %v383_v40  ;;  %17791 = vmatpush3.msra.mxu0 %v20327_v57 }
  0x8a   : > { %v643_v0 = vsub.f32 %v20610_v18, %v25977_v58  ;;  %17709 = vmatmul.mubr.f32.gmra.mxu0 %v604_v29  ;;  %17757 = vmatprep.mubr.f32.mxu1 %v20480_v61  ;;  %v25644_v35 = vand.u32 4294901760, %v20635_v59  ;;  %v20659_v44 = vand.u32 4294901760, %v386_v13  ;;  %v291_v58 = vld [vmem:[%s20241_s30 + $0xb8] sm:$0xff]  ;;  %v389_v7 = vsel %vm324_vm0, %v20638_v12, 0 }
  0x8b   : > { %17711 = vmatprep.mubr.f32.mxu0 %v614_v21  ;;  %v634_v50 = vand.u32 4294901760, %v633_v60  ;;  %17839 = vmatpush3.msra.mxu1 %v20222_v10  ;;  %v20666_v20 = vsub.f32 %v266_v37, %v290_v24  ;;  %v20672_v46 = vsub.f32 %v383_v40, %v20657_v47  ;;  %v20677_v18 = vand.u32 4294901760, %v389_v7 }
  0x8c   : > { %v653_v29 = vsub.f32 %v20635_v59, %v25644_v35  ;;  %v20675_v61 = vsub.f32 %v386_v13, %v20659_v44  ;;  %17840 = vmatprep.subr.mxu1 %v20224_v11  ;;  %v20684_v37 = vsub.f32 %v267_v32, %v291_v58  ;;  %17792 = vmatprep.subr.mxu0 %v20336_v62  ;;  %v644_v21 = vand.u32 4294901760, %v643_v0 }
  0x8d   : > { %25978 = vst [vmem:[#allocation44_spill] sm:$0xff] %v20666_v20  ;;  %17758 = vmatmul.mubr.f32.gmra.mxu1 %v20519_v25  ;;  %v392_v24 = vsel %vm324_vm0, %v20666_v20, 0  ;;  %v25646_v60 = vand.u32 4294901760, %v20672_v46  ;;  %v20691_v13 = vsub.f32 %v389_v7, %v20677_v18  ;;  %17793 = vmatpush3.msra.mxu0 %v20336_v62  ;;  %vm12279_vm10 = vcmask 122880  }
  0x8e   : > { %25979 = vst [vmem:[#allocation45_spill] sm:$0xff] %v20684_v37  ;;  %17712 = vmatmul.mubr.f32.gmra.mxu0 %v624_v33  ;;  %17760 = vmatprep.mubr.f32.mxu1 %v20526_v34  ;;  %v25645_v40 = vand.u32 4294901760, %v20675_v61  ;;  %v654_v57 = vand.u32 4294901760, %v653_v29  ;;  %v20693_v35 = vand.u32 4294901760, %v392_v24  ;;  %v395_v32 = vsel %vm324_vm0, %v20684_v37, 0 }
  0x8f   : > { %17714 = vmatprep.mubr.f32.mxu0 %v634_v50  ;;  %17841 = vmatpush3.msra.mxu1 %v20224_v11  ;;  %v663_v0 = vsub.f32 %v20672_v46, %v25646_v60  ;;  %v682_v7 = vand.u32 4294901760, %v20691_v13  ;;  %v20705_v58 = vand.u32 4294901760, %v395_v32  ;;  %vm13345_vm11 = vcmask 1043456  }
  0x90   : > { %v673_v33 = vsub.f32 %v20675_v61, %v25645_v40  ;;  %17842 = vmatprep.subr.mxu1 %v20236_v17  ;;  %v20711_v50 = vsub.f32 %v392_v24, %v20693_v35  ;;  %17882 = vmatprep.subr.mxu0 %v20259_v26  ;;  %vm13338_vm12 = vcmask 31744   ;;  %vm13841_vm13 = vcmask 97280  }
  0x91   : > { %17761 = vmatmul.mubr.f32.gmra.mxu1 %v20539_v45  ;;  %v664_v29 = vand.u32 4294901760, %v663_v0  ;;  %v683_v40 = vsub.f32 %v20691_v13, %v682_v7  ;;  %v20719_v60 = vsub.f32 %v395_v32, %v20705_v58  ;;  %vm14417_vm14 = vcmask 57344  }
  0x92   : > { %17715 = vmatmul.mubr.f32.gmra.mxu0 %v644_v21  ;;  %17763 = vmatprep.mubr.f32.mxu1 %v20558_v54  ;;  %v674_v62 = vand.u32 4294901760, %v673_v33  ;;  %v692_v20 = vand.u32 4294901760, %v20711_v50  ;;  %vm15383_vm15 = vcmask 1041408  }
  0x93   : > { %17717 = vmatprep.mubr.f32.mxu0 %v654_v57  ;;  %17843 = vmatpush3.msra.mxu1 %v20236_v17  ;;  %v702_v24 = vand.u32 4294901760, %v20719_v60  ;;  %v684_v32 = vand.u32 4294901760, %v683_v40  ;;  %v25980_v40 = vand.u32 4294901760, %v20307_v49 }
  0x94   : > { %17844 = vmatprep.subr.mxu1 %v20248_v22  ;;  %v693_v21 = vsub.f32 %v20711_v50, %v692_v20 }
  0x95   : > { %17764 = vmatmul.mubr.f32.gmra.mxu1 %v20580_v48  ;;  %v703_v57 = vsub.f32 %v20719_v60, %v702_v24 }
  0x96   : > { %17718 = vmatmul.mubr.f32.gmra.mxu0 %v664_v29  ;;  %17766 = vmatprep.mubr.f32.mxu1 %v20586_v15  ;;  %v694_v0 = vand.u32 4294901760, %v693_v21  ;;  %v25981_v29 = vand.u32 4294901760, %v20314_v51 }
  0x97   : > { %17720 = vmatprep.mubr.f32.mxu0 %v674_v62  ;;  %17845 = vmatpush3.msra.mxu1 %v20248_v22  ;;  %v704_v33 = vand.u32 4294901760, %v703_v57 }
  0x98   : > { %17934 = vmatprep.subr.mxu1 %v20214_v3 }
  0x99   : > { %17767 = vmatmul.mubr.f32.gmra.mxu1 %v20588_v31 }
  0x9a   : > { %17721 = vmatmul.mubr.f32.gmra.mxu0 %v684_v32  ;;  %17769 = vmatprep.mubr.f32.mxu1 %v20622_v6 }
  0x9b   : > { %17723 = vmatprep.mubr.f32.mxu0 %v694_v0 }
  0x9d   : > { %17770 = vmatmul.mubr.f32.gmra.mxu1 %v20657_v47 }
  0x9e   : > { %17724 = vmatmul.mubr.f32.gmra.mxu0 %v704_v33  ;;  %17772 = vmatprep.mubr.f32.mxu1 %v20659_v44 }
  0x9f   : > { %17794 = vmatprep.mubr.f32.mxu0 %v20307_v49  ;;  %v25991_v49 = vld [vmem:[#allocation38_spill] sm:$0xff] }
  0xa1   : > { %17773 = vmatmul.mubr.f32.gmra.mxu1 %v20677_v18 }
  0xa2   : > { %17795 = vmatmul.mubr.f32.vlgmr.msra.gmra.mxu0 %v20314_v51  ;;  %17775 = vmatprep.mubr.f32.mxu1 %v20693_v35  ;;  %v25993_v51 = vand.u32 4294901760, %v20545_v56 }
  0xa3   : > { %17797 = vmatprep.mubr.f32.mxu0 %v20375_v39  ;;  %17883 = vmatpush3.msra.mxu0 %v20259_v26  ;;  %v25982_v26 = vand.u32 4294901760, %v20375_v39 }
  0xa4   : > { %17884 = vmatprep.subr.mxu0 %v20262_v27 }
  0xa5   : > { %17776 = vmatmul.mubr.f32.gmra.mxu1 %v20705_v58  ;;  %17885 = vmatpush3.msra.mxu0 %v20262_v27  ;;  %v25983_v27 = vand.u32 4294901760, %v20378_v43 }
  0xa6   : > { %17798 = vmatmul.mubr.f32.gmra.mxu0 %v20378_v43  ;;  %17846 = vmatprep.mubr.f32.mxu1 %v25980_v40  ;;  %v26001_v43 = vand.u32 4294901760, %v20672_v46 }
  0xa7   : > { %17800 = vmatprep.mubr.f32.mxu0 %v20416_v38  ;;  %17886 = vmatprep.subr.mxu0 %v20265_v28 }
  0xa8   : > { %17887 = vmatpush3.msra.mxu0 %v20265_v28  ;;  %v25984_v28 = vand.u32 4294901760, %v20416_v38  ;;  %v26003_v38 = vld [vmem:[#allocation11_spill] sm:$0xff] }
  0xa9   : > { %17847 = vmatmul.mubr.f32.vlgmr.msra.gmra.mxu1 %v25981_v29  ;;  %17888 = vmatprep.subr.mxu0 %v20272_v30 }
  0xaa   : > { %17801 = vmatmul.mubr.f32.gmra.mxu0 %v20422_v36  ;;  %17849 = vmatprep.mubr.f32.mxu1 %v25982_v26 }
  0xab   : > { %17803 = vmatprep.mubr.f32.mxu0 %v20436_v53  ;;  %17935 = vmatpush3.msra.mxu1 %v20214_v3  ;;  %v25985_v3 = vand.u32 4294901760, %v20422_v36  ;;  %v26005_v36 = vld [vmem:[#allocation15_spill] sm:$0xff] }
  0xac   : > { %17936 = vmatprep.subr.mxu1 %v20216_v4  ;;  %17889 = vmatpush3.msra.mxu0 %v20272_v30  ;;  %v25986_v30 = vand.u32 4294901760, %v20436_v53  ;;  %v26006_v53 = vld [vmem:[#allocation16_spill] sm:$0xff] }
  0xad   : > { %17850 = vmatmul.mubr.f32.gmra.mxu1 %v25983_v27  ;;  %17890 = vmatprep.subr.mxu0 %v20297_v41 }
  0xae   : > { %17804 = vmatmul.mubr.f32.gmra.mxu0 %v20461_v16  ;;  %17852 = vmatprep.mubr.f32.mxu1 %v25984_v28 }
  0xaf   : > { %17806 = vmatprep.mubr.f32.mxu0 %v20464_v63  ;;  %17937 = vmatpush3.msra.mxu1 %v20216_v4  ;;  %v25987_v4 = vand.u32 4294901760, %v20461_v16  ;;  %v26007_v16 = vld [vmem:[#allocation20_spill] sm:$0xff] }
  0xb0   : > { %17938 = vmatprep.subr.mxu1 %v20218_v5  ;;  %17891 = vmatpush3.msra.mxu0 %v20297_v41  ;;  %v25988_v41 = vand.u32 4294901760, %v20464_v63  ;;  %v26008_v63 = vld [vmem:[#allocation21_spill] sm:$0xff] }
  0xb1   : > { %17853 = vmatmul.mubr.f32.gmra.mxu1 %v25985_v3  ;;  %17892 = vmatprep.subr.mxu0 %v20300_v42 }
  0xb2   : > { %17807 = vmatmul.mubr.f32.gmra.mxu0 %v20473_v52  ;;  %17855 = vmatprep.mubr.f32.mxu1 %v25986_v30 }
  0xb3   : > { %17809 = vmatprep.mubr.f32.mxu0 %v20499_v1  ;;  %17939 = vmatpush3.msra.mxu1 %v20218_v5  ;;  %v25989_v5 = vand.u32 4294901760, %v20473_v52  ;;  %v26009_v52 = vld [vmem:[#allocation24_spill] sm:$0xff] }
  0xb4   : > { %17940 = vmatprep.subr.mxu1 %v20220_v9  ;;  %17893 = vmatpush3.msra.mxu0 %v20300_v42  ;;  %v25990_v42 = vand.u32 4294901760, %v20499_v1  ;;  %v26011_v1 = vld [vmem:[#allocation27_spill] sm:$0xff] }
  0xb5   : > { %17856 = vmatmul.mubr.f32.gmra.mxu1 %v25987_v4  ;;  %17894 = vmatprep.subr.mxu0 %v20350_v8 }
  0xb6   : > { %17810 = vmatmul.mubr.f32.gmra.mxu0 %v20537_v14  ;;  %17858 = vmatprep.mubr.f32.mxu1 %v25988_v41 }
  0xb7   : > { %17812 = vmatprep.mubr.f32.mxu0 %v20545_v56  ;;  %17941 = vmatpush3.msra.mxu1 %v20220_v9  ;;  %v25992_v9 = vand.u32 4294901760, %v20537_v14  ;;  %v25997_v14 = vand.u32 4294901760, %v20598_v55  ;;  %v26012_v56 = vld [vmem:[#allocation28_spill] sm:$0xff] }
  0xb8   : > { %17942 = vmatprep.subr.mxu1 %v20222_v10  ;;  %17895 = vmatpush3.msra.mxu0 %v20350_v8  ;;  %v25995_v8 = vld [vmem:[#allocation40_spill] sm:$0xff] }
  0xb9   : > { %17859 = vmatmul.mubr.f32.gmra.mxu1 %v25989_v5  ;;  %17896 = vmatprep.subr.mxu0 %v20361_v19  ;;  %v25999_v39 = vand.u32 4294901760, %v25995_v8 }
  0xba   : > { %17813 = vmatmul.mubr.f32.gmra.mxu0 %v20555_v2  ;;  %17861 = vmatprep.mubr.f32.mxu1 %v25990_v42 }
  0xbb   : > { %17815 = vmatprep.mubr.f32.mxu0 %v25991_v49  ;;  %17943 = vmatpush3.msra.mxu1 %v20222_v10  ;;  %v25994_v10 = vand.u32 4294901760, %v20555_v2  ;;  %v26002_v2 = vand.u32 4294901760, %v20675_v61 }
  0xbc   : > { %17944 = vmatprep.subr.mxu1 %v20224_v11  ;;  %17897 = vmatpush3.msra.mxu0 %v20361_v19  ;;  %v25996_v19 = vand.u32 4294901760, %v25991_v49 }
  0xbd   : > { %17862 = vmatmul.mubr.f32.gmra.mxu1 %v25992_v9 }
  0xbe   : > { %17816 = vmatmul.mubr.f32.gmra.mxu0 %v20598_v55  ;;  %17864 = vmatprep.mubr.f32.mxu1 %v25993_v51  ;;  %v26013_v55 = vld [vmem:[#allocation30_spill] sm:$0xff] }
  0xbf   : > { %17818 = vmatprep.mubr.f32.mxu0 %v20607_v23  ;;  %17945 = vmatpush3.msra.mxu1 %v20224_v11  ;;  %v25998_v11 = vand.u32 4294901760, %v20607_v23 }
  0xc0   : > { %17946 = vmatprep.subr.mxu1 %v20236_v17 }
  0xc1   : > { %17865 = vmatmul.mubr.f32.gmra.mxu1 %v25994_v10 }
  0xc2   : > { %17819 = vmatmul.mubr.f32.gmra.mxu0 %v25995_v8  ;;  %17867 = vmatprep.mubr.f32.mxu1 %v25996_v19 }
  0xc3   : > { %17821 = vmatprep.mubr.f32.mxu0 %v20635_v59  ;;  %17947 = vmatpush3.msra.mxu1 %v20236_v17  ;;  %v26000_v17 = vand.u32 4294901760, %v20635_v59  ;;  %v25649_v59 = vmov 0.0  }
  0xc4   : > { %17948 = vmatprep.subr.mxu1 %v20248_v22  ;;  %1983 = vmatprep.subr.mxu0 %v25649_v59 }
  0xc5   : > { %17868 = vmatmul.mubr.f32.gmra.mxu1 %v25997_v14 }
  0xc6   : > { %17822 = vmatmul.mubr.f32.gmra.mxu0 %v20672_v46  ;;  %17870 = vmatprep.mubr.f32.mxu1 %v25998_v11 }
  0xc7   : > { %17824 = vmatprep.mubr.f32.mxu0 %v20675_v61  ;;  %17949 = vmatpush3.msra.mxu1 %v20248_v22  ;;  %v26004_v22 = vld [vmem:[#allocation12_spill] sm:$0xff]  ;;  %v26010_v61 = vld [vmem:[#allocation26_spill] sm:$0xff] }
  0xc8   : > { %2252 = vmatprep.subr.mxu1 %v25649_v59 }
  0xc9   : > { %17871 = vmatmul.mubr.f32.gmra.mxu1 %v25999_v39 }
  0xca   : > { %17825 = vmatmul.mubr.f32.gmra.mxu0 %v20691_v13  ;;  %17873 = vmatprep.mubr.f32.mxu1 %v26000_v17 }
  0xcb   : > { %17827 = vmatprep.mubr.f32.mxu0 %v20711_v50 }
  0xcd   : > { %17874 = vmatmul.mubr.f32.gmra.mxu1 %v26001_v43 }
  0xce   : > { %17828 = vmatmul.mubr.f32.gmra.mxu0 %v20719_v60  ;;  %17876 = vmatprep.mubr.f32.mxu1 %v26002_v2 }
  0xcf   : > { %17898 = vmatprep.mubr.f32.mxu0 %v26003_v38 }
  0xd1   : > { %17877 = vmatmul.mubr.f32.gmra.mxu1 %v682_v7 }
  0xd2   : > { %17899 = vmatmul.mubr.f32.vlgmr.msra.gmra.mxu0 %v26004_v22  ;;  %17879 = vmatprep.mubr.f32.mxu1 %v692_v20 }
  0xd3   : > { %17901 = vmatprep.mubr.f32.mxu0 %v26005_v36 }
  0xd5   : > { %17880 = vmatmul.mubr.f32.gmra.mxu1 %v702_v24 }
  0xd6   : > { %17902 = vmatmul.mubr.f32.gmra.mxu0 %v26006_v53  ;;  %17950 = vmatprep.mubr.f32.mxu1 %v26003_v38  ;;  %v1924_v38 = vld [vmem:[#allocation2 + $0x88] sm:$0xff] }
  0xd7   : > { %17904 = vmatprep.mubr.f32.mxu0 %v26007_v16 }
  0xd9   : > { %17951 = vmatmul.mubr.f32.vlgmr.msra.gmra.mxu1 %v26004_v22 }
  0xda   : > { %17905 = vmatmul.mubr.f32.gmra.mxu0 %v26008_v63  ;;  %17953 = vmatprep.mubr.f32.mxu1 %v26005_v36 }
  0xdb   : > { %17907 = vmatprep.mubr.f32.mxu0 %v26009_v52 }
  0xdd   : > { %17954 = vmatmul.mubr.f32.gmra.mxu1 %v26006_v53  ;;  %v1948_v53 = vsel %vm324_vm0, %v1924_v38, 0 }
  0xde   : > { %17908 = vmatmul.mubr.f32.gmra.mxu0 %v26010_v61  ;;  %17956 = vmatprep.mubr.f32.mxu1 %v26007_v16 }
  0xdf   : > { %17910 = vmatprep.mubr.f32.mxu0 %v26011_v1 }
  0xe1   : > { %17957 = vmatmul.mubr.f32.gmra.mxu1 %v26008_v63  ;;  %v20949_v63 = vand.u32 4294901760, %v1948_v53 }
  0xe2   : > { %17911 = vmatmul.mubr.f32.gmra.mxu0 %v26012_v56  ;;  %17959 = vmatprep.mubr.f32.mxu1 %v26009_v52 }
  0xe3   : > { %17913 = vmatprep.mubr.f32.mxu0 %v26013_v55  ;;  %26014 = vst [vmem:[#allocation38_spill] sm:$0xff] %v20949_v63 }
  0xe5   : > { %17960 = vmatmul.mubr.f32.gmra.mxu1 %v26010_v61 }
  0xe6   : > { %17914 = vmatmul.mubr.f32.gmra.mxu0 %v20519_v25  ;;  %17962 = vmatprep.mubr.f32.mxu1 %v26011_v1  ;;  %v20954_v1 = vsub.f32 %v1948_v53, %v20949_v63 }
  0xe7   : > { %17916 = vmatprep.mubr.f32.mxu0 %v20526_v34 }
  0xe8   : > { %26015 = vst [vmem:[#allocation40_spill] sm:$0xff] %v20954_v1 }
  0xe9   : > { %17963 = vmatmul.mubr.f32.gmra.mxu1 %v26012_v56 }
  0xea   : > { %17917 = vmatmul.mubr.f32.gmra.mxu0 %v20539_v45  ;;  %17965 = vmatprep.mubr.f32.mxu1 %v26013_v55 }
  0xeb   : > { %17919 = vmatprep.mubr.f32.mxu0 %v20558_v54 }
  0xed   : > { %17966 = vmatmul.mubr.f32.gmra.mxu1 %v20519_v25 }
  0xee   : > { %17920 = vmatmul.mubr.f32.gmra.mxu0 %v20580_v48  ;;  %17968 = vmatprep.mubr.f32.mxu1 %v20526_v34 }
  0xef   : > { %17922 = vmatprep.mubr.f32.mxu0 %v20586_v15 }
  0xf1   : > { %17969 = vmatmul.mubr.f32.gmra.mxu1 %v20539_v45 }
  0xf2   : > { %17923 = vmatmul.mubr.f32.gmra.mxu0 %v20588_v31  ;;  %17971 = vmatprep.mubr.f32.mxu1 %v20558_v54 }
  0xf3   : > { %17925 = vmatprep.mubr.f32.mxu0 %v20622_v6 }
  0xf5   : > { %17972 = vmatmul.mubr.f32.gmra.mxu1 %v20580_v48 }
  0xf6   : > { %17926 = vmatmul.mubr.f32.gmra.mxu0 %v20657_v47  ;;  %17974 = vmatprep.mubr.f32.mxu1 %v20586_v15 }
  0xf7   : > { %17928 = vmatprep.mubr.f32.mxu0 %v20659_v44 }
  0xf9   : > { %17975 = vmatmul.mubr.f32.gmra.mxu1 %v20588_v31 }
  0xfa   : > { %17929 = vmatmul.mubr.f32.gmra.mxu0 %v20677_v18  ;;  %17977 = vmatprep.mubr.f32.mxu1 %v20622_v6 }
  0xfb   : > { %17931 = vmatprep.mubr.f32.mxu0 %v20693_v35 }
  0xfd   : > { %17978 = vmatmul.mubr.f32.gmra.mxu1 %v20657_v47 }
  0xfe   : > { %17932 = vmatmul.mubr.f32.gmra.mxu0 %v20705_v58  ;;  %17980 = vmatprep.mubr.f32.mxu1 %v20659_v44 }
 0x101   : > { %17981 = vmatmul.mubr.f32.gmra.mxu1 %v20677_v18 }
 0x102   : > { %17983 = vmatprep.mubr.f32.mxu1 %v20693_v35 }
 0x105   : > { %17984 = vmatmul.mubr.f32.gmra.mxu1 %v20705_v58 }
 0x106   : > { %2437 = vmatprep.mubr.f32.mxu1 %v20949_v63 }
 0x12f   : > { %v17692_v25 = vpop.f32.mrf.mxu0 }
 0x131   : > { %v20892_v31 = vpop.f32.mrf.mxu0 }
 0x135   : > { %v17695_v34 = vpop.f32.mrf.mxu0 }
 0x137   : > { %v20894_v45 = vpop.f32.mrf.mxu0 }
 0x139   : > { %v17744_v6 = vpop.f32.mrf.mxu1 }
 0x13a   : > { %v17698_v15 = vpop.f32.mrf.mxu0  ;;  %v824_v54 = vadd.f32 %v17744_v6, %v17692_v25  ;;  %v25648_v6 = vand.u32 4294901760, %v20954_v1 }
 0x13b   : > { %v20898_v48 = vpop.f32.mrf.mxu1 }
 0x13c   : > { %v20900_v23 = vpop.f32.mrf.mxu0 }
 0x13d   : > { %v17747_v18 = vpop.f32.mrf.mxu1 }
 0x13e   : > { %v17701_v20 = vpop.f32.mrf.mxu0  ;;  %v836_v35 = vadd.f32 %v17747_v18, %v17695_v34 }
 0x13f   : > { %v20902_v47 = vpop.f32.mrf.mxu1 }
 0x140   : > { %v20904_v44 = vpop.f32.mrf.mxu0 }
 0x141   : > { %v17750_v46 = vpop.f32.mrf.mxu1 }
 0x142   : > { %v17704_v60 = vpop.f32.mrf.mxu0  ;;  %v848_v13 = vadd.f32 %v17750_v46, %v17698_v15 }
 0x143   : > { %v20906_v7 = vpop.f32.mrf.mxu1 }
 0x144   : > { %v20908_v58 = vpop.f32.mrf.mxu0 }
 0x145   : > { %v17753_v50 = vpop.f32.mrf.mxu1 }
 0x146   : > { %v17707_v62 = vpop.f32.mrf.mxu0  ;;  %v20910_v24 = vadd.f32 %v17753_v50, %v17701_v20  ;;  %v2074_v20 = vsub.f32 %v20954_v1, %v25648_v6 }
 0x147   : > { %v20912_v21 = vpop.f32.mrf.mxu1 }
 0x148   : > { %v20914_v32 = vpop.f32.mrf.mxu0 }
 0x149   : > { %v17756_v57 = vpop.f32.mrf.mxu1 }
 0x14a   : > { %v17710_v0 = vpop.f32.mrf.mxu0  ;;  %v20916_v33 = vadd.f32 %v17756_v57, %v17704_v60  ;;  %v2075_v57 = vand.u32 4294901760, %v2074_v20 }
 0x14b   : > { %v20918_v40 = vpop.f32.mrf.mxu1 }
 0x14c   : > { %v20920_v29 = vpop.f32.mrf.mxu0  ;;  %2076 = vmatprep.mubr.f32.mxu0 %v2075_v57 }
 0x14d   : > { %v17759_v26 = vpop.f32.mrf.mxu1 }
 0x14e   : > { %v17713_v27 = vpop.f32.mrf.mxu0  ;;  %v20922_v28 = vadd.f32 %v17759_v26, %v17707_v62 }
 0x14f   : > { %v20924_v3 = vpop.f32.mrf.mxu1 }
 0x150   : > { %v20926_v30 = vpop.f32.mrf.mxu0 }
 0x151   : > { %v17762_v4 = vpop.f32.mrf.mxu1 }
 0x152   : > { %v17716_v41 = vpop.f32.mrf.mxu0  ;;  %v20928_v5 = vadd.f32 %v17762_v4, %v17710_v0 }
 0x153   : > { %v20930_v42 = vpop.f32.mrf.mxu1 }
 0x154   : > { %v20932_v49 = vpop.f32.mrf.mxu0 }
 0x155   : > { %v17765_v9 = vpop.f32.mrf.mxu1 }
 0x156   : > { %v17719_v51 = vpop.f32.mrf.mxu0  ;;  %v20934_v10 = vadd.f32 %v17765_v9, %v17713_v27 }
 0x157   : > { %v20936_v8 = vpop.f32.mrf.mxu1 }
 0x158   : > { %v20938_v19 = vpop.f32.mrf.mxu0 }
 0x159   : > { %v17768_v14 = vpop.f32.mrf.mxu1 }
 0x15a   : > { %v17722_v11 = vpop.f32.mrf.mxu0  ;;  %v20940_v39 = vadd.f32 %v17768_v14, %v17716_v41 }
 0x15b   : > { %v20942_v17 = vpop.f32.mrf.mxu1 }
 0x15c   : > { %v20944_v43 = vpop.f32.mrf.mxu0 }
 0x15d   : > { %v17771_v2 = vpop.f32.mrf.mxu1 }
 0x15e   : > { %v17725_v22 = vpop.f32.mrf.mxu0  ;;  %v932_v36 = vadd.f32 %v17771_v2, %v17719_v51 }
 0x15f   : > { %v20947_v16 = vpop.f32.mrf.mxu1 }
 0x160   : > { %v20951_v52 = vpop.f32.mrf.mxu0 }
 0x161   : > { %v17774_v61 = vpop.f32.mrf.mxu1 }
 0x162   : > { %v944_v56 = vadd.f32 %v17774_v61, %v17722_v11  ;;  %v17796_v55 = vpop.f32.mrf.mxu0 }
 0x163   : > { %v1051_v25 = vadd.f32 %v17796_v55, %v824_v54  ;;  %v20957_v34 = vpop.f32.mrf.mxu1 }
 0x164   : > { %v20960_v15 = vpop.f32.mrf.mxu0 }
 0x165   : > { %v17777_v18 = vpop.f32.mrf.mxu1 }
 0x166   : > { %v20965_v46 = vadd.f32 %v17777_v18, %v17725_v22  ;;  %v17799_v60 = vpop.f32.mrf.mxu0 }
 0x167   : > { %v1065_v50 = vadd.f32 %v17799_v60, %v836_v35  ;;  %v20967_v62 = vpop.f32.mrf.mxu1 }
 0x168   : > { %26016 = vst [vmem:[#allocation11_spill] sm:$0xff] %v20965_v46  ;;  %v20969_v0 = vpop.f32.mrf.mxu0 }
 0x169   : > { %v17848_v54 = vpop.f32.mrf.mxu1 }
 0x16a   : > { %v17802_v26 = vpop.f32.mrf.mxu0  ;;  %v20971_v27 = vadd.f32 %v17848_v54, %v1051_v25 }
 0x16b   : > { %v1079_v4 = vadd.f32 %v17802_v26, %v848_v13  ;;  %v20973_v41 = vpop.f32.mrf.mxu1 }
 0x16c   : > { %26017 = vst [vmem:[#allocation12_spill] sm:$0xff] %v20971_v27  ;;  %26018 = vst [vmem:[#allocation15_spill] sm:$0xff] %v20973_v41  ;;  %v20975_v9 = vpop.f32.mrf.mxu0 }
 0x16d   : > { %26019 = vst [vmem:[#allocation16_spill] sm:$0xff] %v20975_v9  ;;  %v17851_v51 = vpop.f32.mrf.mxu1 }
 0x16e   : > { %v17805_v14 = vpop.f32.mrf.mxu0  ;;  %v20977_v11 = vadd.f32 %v17851_v51, %v1065_v50 }
 0x16f   : > { %v1093_v35 = vadd.f32 %v17805_v14, %v20910_v24  ;;  %v20980_v2 = vpop.f32.mrf.mxu1 }
 0x170   : > { %26020 = vst [vmem:[#allocation20_spill] sm:$0xff] %v20977_v11  ;;  %26021 = vst [vmem:[#allocation21_spill] sm:$0xff] %v20980_v2  ;;  %v20982_v38 = vpop.f32.mrf.mxu0 }
 0x171   : > { %v17854_v22 = vpop.f32.mrf.mxu1 }
 0x172   : > { %v17808_v53 = vpop.f32.mrf.mxu0  ;;  %v20984_v61 = vadd.f32 %v17854_v22, %v1079_v4 }
 0x173   : > { %v1107_v13 = vadd.f32 %v17808_v53, %v20916_v33  ;;  %v20987_v55 = vpop.f32.mrf.mxu1 }
 0x174   : > { %26022 = vst [vmem:[#allocation24_spill] sm:$0xff] %v20984_v61  ;;  %26023 = vst [vmem:[#allocation26_spill] sm:$0xff] %v20987_v55  ;;  %v20989_v25 = vpop.f32.mrf.mxu0 }
 0x175   : > { %v17857_v18 = vpop.f32.mrf.mxu1 }
 0x176   : > { %v20991_v20 = vpop.f32.mrf.mxu0  ;;  %v20993_v60 = vadd.f32 %v17857_v18, %v1093_v35 }
 0x177   : > { %v20995_v24 = vpop.f32.mrf.mxu1 }
 0x178   : > { %v20997_v50 = vpop.f32.mrf.mxu0 }
 0x179   : > { %v17860_v57 = vpop.f32.mrf.mxu1 }
 0x17a   : > { %v17814_v54 = vpop.f32.mrf.mxu0  ;;  %v20999_v26 = vadd.f32 %v17860_v57, %v1107_v13 }
 0x17b   : > { %v21001_v4 = vpop.f32.mrf.mxu1 }
 0x17c   : > { %v1127_v33 = vpop.f32.mrf.mxu0 }
 0x17d   : > { %v21003_v51 = vpop.f32.mrf.mxu1 }
 0x17e   : > { %v21005_v14 = vpop.f32.mrf.mxu0 }
 0x17f   : > { %v21007_v22 = vpop.f32.mrf.mxu1 }
 0x180   : > { %v21009_v53 = vpop.f32.mrf.mxu0 }
 0x181   : > { %v17866_v35 = vpop.f32.mrf.mxu1 }
 0x182   : > { %v17820_v18 = vpop.f32.mrf.mxu0 }
 0x183   : > { %v1163_v6 = vadd.f32 %v17820_v18, %v20940_v39  ;;  %v21012_v59 = vpop.f32.mrf.mxu1 }
 0x184   : > { %v21014_v37 = vpop.f32.mrf.mxu0 }
 0x185   : > { %26024 = vst [vmem:[#allocation27_spill] sm:$0xff] %v21014_v37  ;;  %v21016_v13 = vpop.f32.mrf.mxu1 }
 0x186   : > { %v17823_v57 = vpop.f32.mrf.mxu0 }
 0x187   : > { %v1177_v12 = vadd.f32 %v17823_v57, %v932_v36  ;;  %v21018_v63 = vpop.f32.mrf.mxu1 }
 0x188   : > { %v21020_v1 = vpop.f32.mrf.mxu0 }
 0x189   : > { %26025 = vst [vmem:[#allocation28_spill] sm:$0xff] %v21020_v1  ;;  %v17872_v27 = vpop.f32.mrf.mxu1 }
 0x18a   : > { %v17826_v46 = vpop.f32.mrf.mxu0  ;;  %v21022_v11 = vadd.f32 %v17872_v27, %v1163_v6 }
 0x18b   : > { %v1191_v2 = vadd.f32 %v17826_v46, %v944_v56  ;;  %v21024_v41 = vpop.f32.mrf.mxu1 }
 0x18c   : > { %26026 = vst [vmem:[#allocation30_spill] sm:$0xff] %v21022_v11  ;;  %26027 = vst [vmem:[#allocation46_spill] sm:$0xff] %v21024_v41  ;;  %v21026_v39 = vpop.f32.mrf.mxu0 }
 0x18d   : > { %26028 = vst [vmem:[#allocation47_spill] sm:$0xff] %v21026_v39  ;;  %v17875_v18 = vpop.f32.mrf.mxu1 }
 0x18e   : > { %v21028_v61 = vpop.f32.mrf.mxu0  ;;  %v21030_v37 = vadd.f32 %v17875_v18, %v1177_v12 }
 0x18f   : > { %26029 = vst [vmem:[#allocation48_spill] sm:$0xff] %v21028_v61  ;;  %v21032_v55 = vpop.f32.mrf.mxu1  ;;  %v890_v61 = vadd.f32 %v20930_v42, %v20920_v29  ;;  %v854_v29 = vadd.f32 %v20912_v21, %v20904_v44  ;;  %v21108_v21 = vld [vmem:[#allocation2 + $0x80] sm:$0xff] }
 0x190   : > { %26030 = vst [vmem:[#allocation49_spill] sm:$0xff] %v21030_v37  ;;  %26031 = vst [vmem:[#allocation50_spill] sm:$0xff] %v21032_v55  ;;  %v21034_v36 = vpop.f32.mrf.mxu0 }
 0x191   : > { %26032 = vst [vmem:[#allocation51_spill] sm:$0xff] %v21034_v36  ;;  %v17878_v57 = vpop.f32.mrf.mxu1 }
 0x192   : > { %v21036_v1 = vadd.f32 %v17878_v57, %v1191_v2  ;;  %v21038_v9 = vpop.f32.mrf.mxu0 }
 0x193   : > { %26034 = vst [vmem:[#allocation53_spill] sm:$0xff] %v21038_v9  ;;  %v21040_v6 = vpop.f32.mrf.mxu1 }
 0x194   : > { %26033 = vst [vmem:[#allocation52_spill] sm:$0xff] %v21036_v1  ;;  %26035 = vst [vmem:[#allocation54_spill] sm:$0xff] %v21040_v6  ;;  %v21042_v56 = vpop.f32.mrf.mxu0 }
 0x195   : > { %26036 = vst [vmem:[#allocation55_spill] sm:$0xff] %v21042_v56  ;;  %v21044_v46 = vpop.f32.mrf.mxu1 }
 0x196   : > { %26037 = vst [vmem:[#allocation56_spill] sm:$0xff] %v21044_v46  ;;  %v21046_v27 = vpop.f32.mrf.mxu0 }
 0x197   : > { %26038 = vst [vmem:[#allocation57_spill] sm:$0xff] %v21046_v27  ;;  %v21048_v11 = vpop.f32.mrf.mxu1  ;;  %v1135_v27 = vadd.f32 %v17814_v54, %v20928_v5  ;;  %v866_v5 = vadd.f32 %v20918_v40, %v20908_v58  ;;  %v1926_v58 = vld [vmem:[#allocation2 + $0x98] sm:$0xff]  ;;  %v21116_v40 = vadd.f32 %v20947_v16, %v20938_v19  ;;  %v21126_v19 = vand.u32 4294901760, %v21108_v21 }
 0x198   : > { %26039 = vst [vmem:[#allocation58_spill] sm:$0xff] %v21048_v11  ;;  %v21050_v12 = vpop.f32.mrf.mxu0  ;;  %v21129_v16 = vsel %vm324_vm0, %v1926_v58, 0 }
 0x199   : > { %26040 = vst [vmem:[#allocation59_spill] sm:$0xff] %v21050_v12  ;;  %v21052_v18 = vpop.f32.mrf.mxu1  ;;  %26053 = vst [vmem:[#allocation72_spill] sm:$0xff] %v21126_v19 }
 0x19a   : > { %26041 = vst [vmem:[#allocation60_spill] sm:$0xff] %v21052_v18  ;;  %v21054_v41 = vpop.f32.mrf.mxu0 }
 0x19b   : > { %26042 = vst [vmem:[#allocation61_spill] sm:$0xff] %v21054_v41  ;;  %v21056_v2 = vpop.f32.mrf.mxu1  ;;  %v830_v41 = vadd.f32 %v20902_v47, %v20894_v45  ;;  %v1149_v47 = vadd.f32 %v21005_v14, %v20934_v10 }
 0x19c   : > { %26043 = vst [vmem:[#allocation62_spill] sm:$0xff] %v21056_v2  ;;  %v21058_v57 = vpop.f32.mrf.mxu0 }
 0x19d   : > { %26044 = vst [vmem:[#allocation63_spill] sm:$0xff] %v21058_v57  ;;  %v21060_v37 = vpop.f32.mrf.mxu1  ;;  %v1406_v10 = vadd.f32 %v21016_v13, %v1149_v47 }
 0x19e   : > { %26045 = vst [vmem:[#allocation64_spill] sm:$0xff] %v21060_v37  ;;  %v21062_v55 = vpop.f32.mrf.mxu0 }
 0x19f   : > { %v21064_v1 = vpop.f32.mrf.mxu1 }
 0x1a0   : > { %26046 = vst [vmem:[#allocation65_spill] sm:$0xff] %v21064_v1  ;;  %v21066_v6 = vpop.f32.mrf.mxu0 }
 0x1a1   : > { %26047 = vst [vmem:[#allocation66_spill] sm:$0xff] %v21066_v6  ;;  %v21068_v39 = vpop.f32.mrf.mxu1  ;;  %v1390_v6 = vadd.f32 %v17866_v35, %v1135_v27  ;;  %v21144_v27 = vadd.f32 %v20967_v62, %v20951_v52 }
 0x1a2   : > { %26048 = vst [vmem:[#allocation67_spill] sm:$0xff] %v21068_v39  ;;  %v21070_v11 = vpop.f32.mrf.mxu0 }
 0x1a3   : > { %v21072_v46 = vpop.f32.mrf.mxu1 }
 0x1a4   : > { %26049 = vst [vmem:[#allocation68_spill] sm:$0xff] %v21072_v46  ;;  %v21074_v18 = vpop.f32.mrf.mxu0  ;;  %v818_v46 = vadd.f32 %v20898_v48, %v20892_v31  ;;  %v878_v31 = vadd.f32 %v20924_v3, %v20914_v32  ;;  %v1121_v48 = vadd.f32 %v20991_v20, %v20922_v28  ;;  %v21112_v32 = vadd.f32 %v20942_v17, %v20932_v49 }
 0x1a5   : > { %v21076_v56 = vpop.f32.mrf.mxu1 }
 0x1a6   : > { %26050 = vst [vmem:[#allocation69_spill] sm:$0xff] %v21076_v56  ;;  %v17915_v2 = vpop.f32.mrf.mxu0  ;;  %v1128_v56 = vadd.f32 %v1127_v33, %v890_v61  ;;  %v1114_v28 = vadd.f32 %v20997_v50, %v878_v31  ;;  %v1374_v3 = vadd.f32 %v21003_v51, %v1121_v48  ;;  %v21133_v50 = vadd.f32 %v20957_v34, %v20944_v43 }
 0x1a7   : > { %v21078_v9 = vpop.f32.mrf.mxu1 }
 0x1a8   : > { %26051 = vst [vmem:[#allocation70_spill] sm:$0xff] %v21078_v9  ;;  %v1624_v36 = vpop.f32.mrf.mxu0  ;;  %v21093_v9 = vadd.f32 %v20906_v7, %v20900_v23  ;;  %v902_v23 = vadd.f32 %v20936_v8, %v20926_v30  ;;  %v1382_v7 = vadd.f32 %v21012_v59, %v1128_v56  ;;  %v1366_v49 = vadd.f32 %v21007_v22, %v1114_v28  ;;  %v26059_v47 = vld [vmem:[#allocation66_spill] sm:$0xff] }
 0x1a9   : > { %v21080_v37 = vpop.f32.mrf.mxu1  ;;  %v1631_v17 = vadd.f32 %v17915_v2, %v1374_v3  ;;  %v1100_v22 = vadd.f32 %v20989_v25, %v866_v5  ;;  %v1044_v56 = vadd.f32 %v20960_v15, %v818_v46  ;;  %v1619_v25 = vadd.f32 %v21070_v11, %v20999_v26 }
 0x1aa   : > { %v17918_v12 = vpop.f32.mrf.mxu0  ;;  %v1142_v59 = vadd.f32 %v21009_v53, %v902_v23  ;;  %v1625_v35 = vadd.f32 %v1624_v36, %v1366_v49  ;;  %v1086_v15 = vadd.f32 %v20982_v38, %v854_v29  ;;  %v26064_v49 = vld [vmem:[#allocation61_spill] sm:$0xff] }
 0x1ab   : > { %v21082_v1 = vpop.f32.mrf.mxu1  ;;  %v1643_v42 = vadd.f32 %v17918_v12, %v1390_v6  ;;  %v1836_v5 = vadd.f32 %v21080_v37, %v1619_v25  ;;  %v26055_v37 = vld [vmem:[#allocation16_spill] sm:$0xff]  ;;  %v26068_v25 = vld [vmem:[#allocation63_spill] sm:$0xff] }
 0x1ac   : > { %26052 = vst [vmem:[#allocation71_spill] sm:$0xff] %v21082_v1  ;;  %v1636_v39 = vpop.f32.mrf.mxu0  ;;  %v1398_v33 = vadd.f32 %v21018_v63, %v1142_v59  ;;  %v1334_v26 = vadd.f32 %v20995_v24, %v1086_v15  ;;  %v1072_v29 = vadd.f32 %v26055_v37, %v21093_v9  ;;  %v26061_v9 = vld [vmem:[#allocation26_spill] sm:$0xff]  ;;  %v26069_v15 = vld [vmem:[#allocation67_spill] sm:$0xff] }
 0x1ad   : > { %v17967_v57 = vpop.f32.mrf.mxu1  ;;  %v1637_v8 = vadd.f32 %v1636_v39, %v1382_v7 }
 0x1ae   : > { %v17921_v1 = vpop.f32.mrf.mxu0  ;;  %v1848_v13 = vadd.f32 %v17967_v57, %v1631_v17  ;;  %v1058_v57 = vadd.f32 %v20969_v0, %v830_v41  ;;  %v1607_v0 = vadd.f32 %v21062_v55, %v20993_v60  ;;  %v26058_v60 = vmov 0.0  }
 0x1af   : > { %v1841_v45 = vpop.f32.mrf.mxu1  ;;  %v1655_v51 = vadd.f32 %v17921_v1, %v1406_v10  ;;  %v1350_v1 = vadd.f32 %v21001_v4, %v1100_v22  ;;  %v1601_v7 = vadd.f32 %v26059_v47, %v1334_v26  ;;  %v1318_v3 = vadd.f32 %v26061_v9, %v1072_v29  ;;  %v26074_v9 = vld [vmem:[#allocation68_spill] sm:$0xff] }
 0x1b0   : > { %v1648_v44 = vpop.f32.mrf.mxu0  ;;  %v1842_v36 = vadd.f32 %v1841_v45, %v1625_v35  ;;  %v21159_v31 = vand.u32 4294901760, %v1848_v13  ;;  %v26066_v35 = vld [vmem:[#allocation15_spill] sm:$0xff] }
 0x1b1   : > { %v17970_v30 = vpop.f32.mrf.mxu1  ;;  %v1649_v43 = vadd.f32 %v1648_v44, %v1398_v33  ;;  %v1613_v62 = vadd.f32 %v21074_v18, %v1350_v1 }
 0x1b2   : > { %v21122_v61 = vpop.f32.mrf.mxu0  ;;  %v1860_v20 = vadd.f32 %v17970_v30, %v1643_v42  ;;  %26054 = vst [vmem:[#allocation73_spill] sm:$0xff] %v21159_v31  ;;  %v21180_v23 = vand.u32 4294901760, %v1842_v36  ;;  %v26060_v42 = vld [vmem:[#allocation69_spill] sm:$0xff]  ;;  %v21196_v30 = vand.u32 4294901760, %v1836_v5  ;;  %v21199_v59 = vsub.f32 %v1848_v13, %v21159_v31 }
 0x1b3   : > { %v1853_v54 = vpop.f32.mrf.mxu1  ;;  %v26056_v48 = vld [vmem:[#allocation71_spill] sm:$0xff]  ;;  %v1824_v44 = vadd.f32 %v26060_v42, %v1607_v0  ;;  %v1286_v13 = vadd.f32 %v26066_v35, %v1044_v56  ;;  %v26073_v42 = vld [vmem:[#allocation57_spill] sm:$0xff] }
 0x1b4   : > { %v21136_v14 = vpop.f32.mrf.mxu0  ;;  %v1854_v53 = vadd.f32 %v1853_v54, %v1637_v8  ;;  %v21139_v39 = vand.u32 4294901760, %v1860_v20  ;;  %v1830_v45 = vadd.f32 %v26056_v48, %v1613_v62  ;;  %26057 = vst [vmem:[#allocation16_spill] sm:$0xff] %v21180_v23  ;;  %26062 = vst [vmem:[#allocation71_spill] sm:$0xff] %v21196_v30  ;;  %v26065_v54 = vld [vmem:[#allocation70_spill] sm:$0xff]  ;;  %v21231_v26 = vsub.f32 %v1836_v5, %v21196_v30  ;;  %v26071_v48 = vld [vmem:[#allocation21_spill] sm:$0xff] }
 0x1b5   : > { %v17973_v6 = vpop.f32.mrf.mxu1  ;;  %v1818_v33 = vadd.f32 %v26065_v54, %v1601_v7  ;;  %v21227_v62 = vand.u32 4294901760, %v1824_v44  ;;  %v1302_v47 = vadd.f32 %v26071_v48, %v1058_v57  ;;  %v26072_v7 = vld [vmem:[#allocation20_spill] sm:$0xff]  ;;  %v26075_v35 = vld [vmem:[#allocation11_spill] sm:$0xff] }
 0x1b6   : > { %v21146_v34 = vpop.f32.mrf.mxu0  ;;  %v1872_v63 = vadd.f32 %v17973_v6, %v1655_v51  ;;  %v21151_v12 = vand.u32 4294901760, %v1854_v53  ;;  %v21162_v4 = vsub.f32 %v1860_v20, %v21139_v39  ;;  %v26063_v20 = vld [vmem:[#allocation24_spill] sm:$0xff]  ;;  %v21216_v6 = vand.u32 4294901760, %v1830_v45 }
 0x1b7   : > { %v1865_v2 = vpop.f32.mrf.mxu1  ;;  %v1595_v17 = vadd.f32 %v26064_v49, %v26063_v20  ;;  %26070 = vst [vmem:[#allocation69_spill] sm:$0xff] %v21227_v62  ;;  %v1583_v5 = vadd.f32 %v26073_v42, %v26072_v7  ;;  %v21247_v20 = vand.u32 4294901760, %v1818_v33 }
 0x1b8   : > { %v21155_v46 = vand.u32 4294901760, %v1872_v63  ;;  %v1866_v52 = vadd.f32 %v1865_v2, %v1649_v43  ;;  %v21172_v38 = vpop.f32.mrf.mxu0  ;;  %v21183_v24 = vsub.f32 %v1854_v53, %v21151_v12  ;;  %v25658_v10 = vand.u32 4294901760, %v21162_v4  ;;  %26067 = vst [vmem:[#allocation66_spill] sm:$0xff] %v21216_v6 }
 0x1b9   : > { %v21164_v11 = vpop.f32.mrf.mxu1  ;;  %v21219_v43 = vsub.f32 %v1842_v36, %v21180_v23  ;;  %v1589_v2 = vadd.f32 %v26068_v25, %v1318_v3  ;;  %v25661_v36 = vand.u32 4294901760, %v21199_v59  ;;  %v26076_v25 = vld [vmem:[#allocation48_spill] sm:$0xff] }
 0x1ba   : > { %v21170_v41 = vsub.f32 %v1872_v63, %v21155_v46  ;;  %v21174_v18 = vand.u32 4294901760, %v1866_v52  ;;  %1985 = vmatpush1.msra.mxu0 %v21155_v46  ;;  %v21212_v22 = vpop.f32.mrf.mxu0  ;;  %v25657_v63 = vand.u32 4294901760, %v21183_v24  ;;  %v2270_v0 = vsub.f32 %v21162_v4, %v25658_v10  ;;  %v26082_v10 = vld [vmem:[#allocation65_spill] sm:$0xff] }
 0x1bb   : > { %v21185_v55 = vpop.f32.mrf.mxu1  ;;  %1986 = vmatprep.subr.mxu0 %v26058_v60  ;;  %v1806_v3 = vadd.f32 %v26074_v9, %v1589_v2  ;;  %v25662_v54 = vand.u32 4294901760, %v21219_v43  ;;  %v1205_v2 = vadd.f32 %v26076_v25, %v26075_v35  ;;  %v21271_v9 = vsub.f32 %v1824_v44, %v21227_v62  ;;  %v26080_v25 = vld [vmem:[#allocation12_spill] sm:$0xff] }
 0x1bc   : > { %v25660_v58 = vand.u32 4294901760, %v21170_v41  ;;  %v21192_v28 = vsub.f32 %v1866_v52, %v21174_v18  ;;  %1988 = vmatpush1.msra.mxu0 %v21174_v18  ;;  %v1812_v52 = vadd.f32 %v26069_v15, %v1595_v17  ;;  %v21249_v49 = vpop.f32.mrf.mxu0  ;;  %v21253_v17 = vsub.f32 %v1830_v45, %v21216_v6  ;;  %v26077_v15 = vld [vmem:[#allocation59_spill] sm:$0xff] }
 0x1bd   : > { %v21202_v8 = vpop.f32.mrf.mxu1  ;;  %1989 = vmatprep.subr.mxu0 %v26058_v60  ;;  %v1577_v48 = vadd.f32 %v26077_v15, %v1302_v47  ;;  %v2271_v47 = vand.u32 4294901760, %v2270_v0  ;;  %v26081_v15 = vld [vmem:[#allocation53_spill] sm:$0xff]  ;;  %v21283_v44 = vand.u32 4294901760, %v1806_v3 }
 0x1be   : > { %v2256_v51 = vsub.f32 %v21170_v41, %v25660_v58  ;;  %v25659_v53 = vand.u32 4294901760, %v21192_v28  ;;  %1991 = vmatpush1.msra.mxu0 %v21139_v39  ;;  %v21265_v45 = vand.u32 4294901760, %v1812_v52  ;;  %v17933_v58 = vpop.f32.mrf.mxu0 }
 0x1bf   : > { %v21222_v1 = vpop.f32.mrf.mxu1  ;;  %1992 = vmatprep.subr.mxu0 %v26058_v60 }
 0x1c0   : > { %1994 = vmatpush1.msra.mxu0 %v21151_v12  ;;  %v2257_v56 = vand.u32 4294901760, %v2256_v51  ;;  %v2263_v29 = vsub.f32 %v21192_v28, %v25659_v53  ;;  %v2277_v51 = vsub.f32 %v21183_v24, %v25657_v63  ;;  %v2284_v63 = vsub.f32 %v21199_v59, %v25661_v36 }
 0x1c1   : > { %v21237_v37 = vpop.f32.mrf.mxu1  ;;  %1995 = vmatprep.subr.mxu0 %v26058_v60  ;;  %v1794_v53 = vadd.f32 %v26082_v10, %v1577_v48  ;;  %v2291_v10 = vsub.f32 %v21219_v43, %v25662_v54  ;;  %v26083_v48 = vld [vmem:[#allocation55_spill] sm:$0xff]  ;;  %v26087_v54 = vand.u32 4294901760, %v21231_v26 }
 0x1c2   : > { %1997 = vmatpush1.msra.mxu0 %v21159_v31  ;;  %2258 = vmatpush1.msra.mxu1 %v2257_v56  ;;  %v2264_v57 = vand.u32 4294901760, %v2263_v29  ;;  %v26078_v56 = vld [vmem:[#allocation64_spill] sm:$0xff]  ;;  %v21300_v29 = vsub.f32 %v1812_v52, %v21265_v45 }
 0x1c3   : > { %1998 = vmatprep.subr.mxu0 %v26058_v60  ;;  %2259 = vmatprep.subr.mxu1 %v26058_v60  ;;  %v1800_v7 = vadd.f32 %v26078_v56, %v1583_v5  ;;  %v21267_v42 = vpop.f32.mrf.mxu1  ;;  %v26079_v5 = vld [vmem:[#allocation51_spill] sm:$0xff]  ;;  %v1571_v56 = vadd.f32 %v26081_v15, %v26080_v25  ;;  %v26084_v25 = vld [vmem:[#allocation60_spill] sm:$0xff] }
 0x1c4   : > { %2000 = vmatpush1.msra.mxu0 %v21180_v23  ;;  %2265 = vmatpush1.msra.mxu1 %v2264_v57  ;;  %v1198_v35 = vadd.f32 %v26079_v5, %v21144_v27  ;;  %v21288_v57 = vsub.f32 %v1818_v33, %v21247_v20  ;;  %v2278_v27 = vand.u32 4294901760, %v2277_v51  ;;  %v1565_v5 = vadd.f32 %v26083_v48, %v1286_v13  ;;  %v26088_v48 = vld [vmem:[#allocation58_spill] sm:$0xff] }
 0x1c5   : > { %2001 = vmatprep.subr.mxu0 %v26058_v60  ;;  %2266 = vmatprep.subr.mxu1 %v26058_v60  ;;  %v1788_v15 = vadd.f32 %v26084_v25, %v1571_v56  ;;  %v21297_v36 = vand.u32 4294901760, %v1800_v7  ;;  %26085 = vst [vmem:[#allocation26_spill] sm:$0xff] %v21300_v29  ;;  %v17985_v33 = vpop.f32.mrf.mxu1  ;;  %v2298_v13 = vsub.f32 %v21231_v26, %v26087_v54  ;;  %v2285_v56 = vand.u32 4294901760, %v2284_v63  ;;  %v26089_v25 = vld [vmem:[#allocation62_spill] sm:$0xff] }
 0x1c6   : > { %2003 = vmatpush1.msra.mxu0 %v21196_v30  ;;  %2272 = vmatpush1.msra.mxu1 %v2271_v47  ;;  %v26086_v47 = vld [vmem:[#allocation56_spill] sm:$0xff]  ;;  %v1462_v52 = vadd.f32 %v26088_v48, %v1198_v35  ;;  %v1782_v30 = vadd.f32 %v26089_v25, %v1565_v5  ;;  %v21312_v23 = vand.u32 4294901760, %v1794_v53  ;;  %v2292_v63 = vand.u32 4294901760, %v2291_v10 }
 0x1c7   : > { %2004 = vmatprep.subr.mxu0 %v26058_v60  ;;  %2273 = vmatprep.subr.mxu1 %v26058_v60  ;;  %v1470_v51 = vadd.f32 %v26086_v47, %v1205_v2  ;;  %v1696_v2 = vpop.f32.mrf.mxu0  ;;  %v26090_v35 = vand.u32 4294901760, %v21253_v17  ;;  %v26091_v47 = vld [vmem:[#allocation47_spill] sm:$0xff]  ;;  %v21326_v48 = vand.u32 4294901760, %v1788_v15  ;;  %v21329_v25 = vsub.f32 %v1800_v7, %v21297_v36  ;;  %v1913_v54 = vpop.f32.mrf.mxu1 }
 0x1c8   : > { %2006 = vmatpush1.msra.mxu0 %v21216_v6  ;;  %2279 = vmatpush1.msra.mxu1 %v2278_v27  ;;  %v21315_v6 = vsub.f32 %v1806_v3, %v21283_v44  ;;  %v1184_v3 = vadd.f32 %v26091_v47, %v21133_v50  ;;  %v2299_v50 = vand.u32 4294901760, %v2298_v13  ;;  %v21339_v47 = vand.u32 4294901760, %v1782_v30 }
 0x1c9   : > { %2007 = vmatprep.subr.mxu0 %v26058_v60  ;;  %2280 = vmatprep.subr.mxu1 %v26058_v60  ;;  %v1703_v27 = vadd.f32 %v17933_v58, %v1470_v51  ;;  %v2305_v5 = vsub.f32 %v21253_v17, %v26090_v35  ;;  %v26092_v58 = vand.u32 4294901760, %v21271_v9  ;;  %v1697_v51 = vadd.f32 %v1696_v2, %v1462_v52  ;;  %v26093_v35 = vld [vmem:[#allocation54_spill] sm:$0xff] }
 0x1ca   : > { %2009 = vmatpush1.msra.mxu0 %v21227_v62  ;;  %2286 = vmatpush1.msra.mxu1 %v2285_v56  ;;  %v1446_v7 = vadd.f32 %v26093_v35, %v1184_v3  ;;  %26094 = vst [vmem:[#allocation24_spill] sm:$0xff] %v21339_v47  ;;  %v21342_v0 = vsub.f32 %v1794_v53, %v21312_v23  ;;  %v26096_v2 = vand.u32 4294901760, %v21288_v57  ;;  %v26097_v53 = vld [vmem:[#allocation28_spill] sm:$0xff]  ;;  %v25672_v35 = vand.u32 4294901760, %v21329_v25 }
 0x1cb   : > { %2010 = vmatprep.subr.mxu0 %v26058_v60  ;;  %2287 = vmatprep.subr.mxu1 %v26058_v60  ;;  %v2312_v10 = vsub.f32 %v21271_v9, %v26092_v58  ;;  %v1920_v56 = vadd.f32 %v17985_v33, %v1703_v27  ;;  %v26095_v58 = vld [vmem:[#allocation52_spill] sm:$0xff]  ;;  %v1914_v52 = vadd.f32 %v1913_v54, %v1697_v51  ;;  %v2306_v13 = vand.u32 4294901760, %v2305_v5 }
 0x1cc   : > { %2012 = vmatpush1.msra.mxu0 %v21247_v20  ;;  %2293 = vmatpush1.msra.mxu1 %v2292_v63  ;;  %v1691_v33 = vadd.f32 %v21212_v22, %v26095_v58  ;;  %v2319_v27 = vsub.f32 %v21288_v57, %v26096_v2  ;;  %v1170_v63 = vadd.f32 %v26097_v53, %v21116_v40  ;;  %v26098_v62 = vand.u32 4294901760, %v21300_v29 }
 0x1cd   : > { %2013 = vmatprep.subr.mxu0 %v26058_v60  ;;  %2294 = vmatprep.subr.mxu1 %v26058_v60  ;;  %v21356_v3 = vsub.f32 %v1788_v15, %v21326_v48  ;;  %v1685_v54 = vadd.f32 %v21249_v49, %v1446_v7  ;;  %v21366_v51 = vand.u32 4294901760, %v1920_v56  ;;  %v2313_v40 = vand.u32 4294901760, %v2312_v10  ;;  %v26100_v15 = vld [vmem:[#allocation50_spill] sm:$0xff]  ;;  %v26102_v7 = vld [vmem:[#allocation49_spill] sm:$0xff] }
 0x1ce   : > { %2015 = vmatpush1.msra.mxu0 %v21265_v45  ;;  %2300 = vmatpush1.msra.mxu1 %v2299_v50  ;;  %v2326_v22 = vsub.f32 %v21300_v29, %v26098_v62  ;;  %v1908_v5 = vadd.f32 %v21237_v37, %v1691_v33  ;;  %v1430_v50 = vadd.f32 %v26100_v15, %v1170_v63  ;;  %v25671_v62 = vand.u32 4294901760, %v21342_v0  ;;  %v1925_v15 = vld [vmem:[#allocation2 + $0x90] sm:$0xff] }
 0x1cf   : > { %2016 = vmatprep.subr.mxu0 %v26058_v60  ;;  %2301 = vmatprep.subr.mxu1 %v26058_v60  ;;  %26099 = vst [vmem:[#allocation61_spill] sm:$0xff] %v21366_v51  ;;  %v21371_v58 = vsub.f32 %v1782_v30, %v21339_v47  ;;  %v26101_v49 = vand.u32 4294901760, %v21315_v6  ;;  %v1679_v33 = vadd.f32 %v21146_v34, %v26102_v7  ;;  %v2320_v30 = vand.u32 4294901760, %v2319_v27 }
 0x1d0   : > { %2018 = vmatpush1.msra.mxu0 %v21283_v44  ;;  %2307 = vmatpush1.msra.mxu1 %v2306_v13  ;;  %v1902_v10 = vadd.f32 %v21267_v42, %v1685_v54  ;;  %v21382_v13 = vand.u32 4294901760, %v1914_v52  ;;  %v25673_v2 = vand.u32 4294901760, %v21356_v3  ;;  %v2340_v53 = vsub.f32 %v21329_v25, %v25672_v35  ;;  %v26110_v35 = vld [vmem:[#allocation30_spill] sm:$0xff] }
 0x1d1   : > { %2019 = vmatprep.subr.mxu0 %v26058_v60  ;;  %2308 = vmatprep.subr.mxu1 %v26058_v60  ;;  %v2333_v37 = vsub.f32 %v21315_v6, %v26101_v49  ;;  %v2327_v63 = vand.u32 4294901760, %v2326_v22  ;;  %v21393_v34 = vsub.f32 %v21108_v21, %v21126_v19  ;;  %v1673_v42 = vadd.f32 %v21172_v38, %v1430_v50  ;;  %v26106_v49 = vld [vmem:[#allocation27_spill] sm:$0xff] }
 0x1d2   : > { %2021 = vmatpush1.msra.mxu0 %v21297_v36  ;;  %26103 = vst [vmem:[#allocation70_spill] sm:$0xff] %v21382_v13  ;;  %2314 = vmatpush1.msra.mxu1 %v2313_v40  ;;  %v1896_v54 = vadd.f32 %v21202_v8, %v1679_v33  ;;  %v21397_v27 = vand.u32 4294901760, %v1908_v5  ;;  %v21400_v40 = vsub.f32 %v1920_v56, %v21366_v51  ;;  %v21412_v38 = vand.u32 4294901760, %v21129_v16  ;;  %v1928_v33 = vld [vmem:[#allocation2 + $0xa8] sm:$0xff] }
 0x1d3   : > { %2022 = vmatprep.subr.mxu0 %v26058_v60  ;;  %2315 = vmatprep.subr.mxu1 %v26058_v60  ;;  %26104 = vst [vmem:[#allocation15_spill] sm:$0xff] %v21393_v34  ;;  %v1156_v22 = vadd.f32 %v26106_v49, %v21112_v32  ;;  %v2347_v21 = vsub.f32 %v21342_v0, %v25671_v62  ;;  %v21415_v56 = vand.u32 4294901760, %v1902_v10  ;;  %v2334_v32 = vand.u32 4294901760, %v2333_v37 }
 0x1d4   : > { %2024 = vmatpush1.msra.mxu0 %v21312_v23  ;;  %26105 = vst [vmem:[#allocation63_spill] sm:$0xff] %v21397_v27  ;;  %2321 = vmatpush1.msra.mxu1 %v2320_v30  ;;  %26107 = vst [vmem:[#allocation67_spill] sm:$0xff] %v21412_v38  ;;  %v1890_v8 = vadd.f32 %v21222_v1, %v1673_v42  ;;  %v21418_v50 = vsub.f32 %v1914_v52, %v21382_v13  ;;  %v26109_v30 = vld [vmem:[#allocation46_spill] sm:$0xff]  ;;  %v21429_v1 = vand.u32 4294901760, %v1925_v15 }
 0x1d5   : > { %2025 = vmatprep.subr.mxu0 %v26058_v60  ;;  %2322 = vmatprep.subr.mxu1 %v26058_v60  ;;  %26108 = vst [vmem:[#allocation21_spill] sm:$0xff] %v21415_v56  ;;  %v1414_v49 = vadd.f32 %v26109_v30, %v1156_v22  ;;  %v2354_v62 = vsub.f32 %v21356_v3, %v25673_v2  ;;  %v21431_v52 = vand.u32 4294901760, %v1896_v54  ;;  %v2341_v42 = vand.u32 4294901760, %v2340_v53 }
 0x1d6   : > { %2027 = vmatpush1.msra.mxu0 %v21326_v48  ;;  %2328 = vmatpush1.msra.mxu1 %v2327_v63  ;;  %v1667_v7 = vadd.f32 %v21122_v61, %v26110_v35  ;;  %26111 = vst [vmem:[#allocation20_spill] sm:$0xff] %v21429_v1  ;;  %v21434_v37 = vsub.f32 %v1908_v5, %v21397_v27  ;;  %v25674_v63 = vand.u32 4294901760, %v21400_v40  ;;  %v26113_v35 = vand.u32 4294901760, %v21371_v58 }
 0x1d7   : > { %2028 = vmatprep.subr.mxu0 %v26058_v60  ;;  %2329 = vmatprep.subr.mxu1 %v26058_v60  ;;  %26112 = vst [vmem:[#allocation57_spill] sm:$0xff] %v21431_v52  ;;  %v1661_v22 = vadd.f32 %v21136_v14, %v1414_v49  ;;  %v1954_v5 = vsel %vm324_vm0, %v1928_v33, 0  ;;  %v21446_v2 = vand.u32 4294901760, %v1890_v8  ;;  %v25677_v53 = vand.u32 4294901760, %v21418_v50 }
 0x1d8   : > { %2030 = vmatpush1.msra.mxu0 %v21339_v47  ;;  %2335 = vmatpush1.msra.mxu1 %v2334_v32  ;;  %v1884_v61 = vadd.f32 %v21164_v11, %v1667_v7  ;;  %v2361_v30 = vsub.f32 %v21371_v58, %v26113_v35  ;;  %v21449_v32 = vsub.f32 %v1902_v10, %v21415_v56  ;;  %v2348_v14 = vand.u32 4294901760, %v2347_v21 }
 0x1d9   : > { %2047 = vmatprep.subr.mxu0 %v26058_v60  ;;  %2336 = vmatprep.subr.mxu1 %v26058_v60  ;;  %26114 = vst [vmem:[#allocation68_spill] sm:$0xff] %v21446_v2  ;;  %v1878_v11 = vadd.f32 %v21185_v55, %v1661_v22  ;;  %v21459_v33 = vsub.f32 %v21129_v16, %v21412_v38  ;;  %v2355_v55 = vand.u32 4294901760, %v2354_v62  ;;  %v1930_v22 = vld [vmem:[#allocation2 + $0xb8] sm:$0xff] }
 0x1da   : > { %2049 = vmatpush2.msra.mxu0 %v21366_v51  ;;  %2342 = vmatpush1.msra.mxu1 %v2341_v42  ;;  %v21462_v10 = vsub.f32 %v1896_v54, %v21431_v52  ;;  %v2384_v21 = vsub.f32 %v21400_v40, %v25674_v63  ;;  %v1927_v42 = vld [vmem:[#allocation2 + $0xa0] sm:$0xff]  ;;  %v21469_v35 = vand.u32 4294901760, %v1884_v61  ;;  %v21474_v16 = vsub.f32 %v1925_v15, %v21429_v1 }
 0x1db   : > { %2050 = vmatprep.subr.mxu0 %v26058_v60  ;;  %2343 = vmatprep.subr.mxu1 %v26058_v60  ;;  %26115 = vst [vmem:[#allocation11_spill] sm:$0xff] %v21459_v33  ;;  %v21476_v54 = vand.u32 4294901760, %v1954_v5  ;;  %v21479_v49 = vsub.f32 %v1890_v8, %v21446_v2  ;;  %v2362_v62 = vand.u32 4294901760, %v2361_v30  ;;  %v2391_v63 = vsub.f32 %v21418_v50, %v25677_v53  ;;  %v1929_v30 = vld [vmem:[#allocation2 + $0xb0] sm:$0xff] }
 0x1dc   : > { %2052 = vmatpush2.msra.mxu0 %v21382_v13  ;;  %2349 = vmatpush1.msra.mxu1 %v2348_v14  ;;  %26116 = vst [vmem:[#allocation48_spill] sm:$0xff] %v21469_v35  ;;  %26117 = vst [vmem:[#allocation59_spill] sm:$0xff] %v21474_v16  ;;  %v21486_v7 = vand.u32 4294901760, %v1878_v11  ;;  %v26120_v15 = vand.u32 4294901760, %v21393_v34  ;;  %v26122_v14 = vand.u32 4294901760, %v21434_v37  ;;  %v2385_v13 = vand.u32 4294901760, %v2384_v21 }
 0x1dd   : > { %2053 = vmatprep.subr.mxu0 %v26058_v60  ;;  %2350 = vmatprep.subr.mxu1 %v26058_v60  ;;  %26118 = vst [vmem:[#allocation64_spill] sm:$0xff] %v21476_v54  ;;  %v21503_v51 = vsub.f32 %v1884_v61, %v21469_v35  ;;  %v2392_v21 = vand.u32 4294901760, %v2391_v63  ;;  %v26127_v63 = vand.u32 4294901760, %v21462_v10  ;;  %v21533_v47 = vand.u32 4294901760, %v1929_v30 }
 0x1de   : > { %2055 = vmatpush2.msra.mxu0 %v21397_v27  ;;  %2356 = vmatpush1.msra.mxu1 %v2355_v55  ;;  %26119 = vst [vmem:[#allocation51_spill] sm:$0xff] %v21486_v7  ;;  %v2080_v8 = vsub.f32 %v21393_v34, %v26120_v15  ;;  %v21493_v27 = vand.u32 4294901760, %v1927_v42  ;;  %v1957_v55 = vsel %vm324_vm0, %v1930_v22, 0  ;;  %v2398_v53 = vsub.f32 %v21434_v37, %v26122_v14  ;;  %v1932_v34 = vld [vmem:[#allocation2 + $0xc8] sm:$0xff] }
 0x1df   : > { %2056 = vmatprep.subr.mxu0 %v26058_v60  ;;  %2357 = vmatprep.subr.mxu1 %v26058_v60  ;;  %26123 = vst [vmem:[#allocation53_spill] sm:$0xff] %v21503_v51  ;;  %v21509_v15 = vsub.f32 %v1954_v5, %v21476_v54  ;;  %v2412_v22 = vsub.f32 %v21462_v10, %v26127_v63  ;;  %v26128_v14 = vand.u32 4294901760, %v21459_v33  ;;  %26129 = vst [vmem:[#allocation60_spill] sm:$0xff] %v21533_v47 }
 0x1e0   : > { %2058 = vmatpush2.msra.mxu0 %v21415_v56  ;;  %26121 = vst [vmem:[#allocation12_spill] sm:$0xff] %v21493_v27  ;;  %2363 = vmatpush1.msra.mxu1 %v2362_v62  ;;  %v26125_v62 = vand.u32 4294901760, %v21449_v32  ;;  %v21516_v56 = vand.u32 4294901760, %v1957_v55  ;;  %v2081_v5 = vand.u32 4294901760, %v2080_v8  ;;  %v1960_v8 = vsel %vm324_vm0, %v1932_v34, 0 }
 0x1e1   : > { %2059 = vmatprep.subr.mxu0 %v26058_v60  ;;  %2380 = vmatprep.subr.mxu1 %v26058_v60  ;;  %26124 = vst [vmem:[#allocation65_spill] sm:$0xff] %v21509_v15  ;;  %v26131_v63 = vand.u32 4294901760, %v21474_v16  ;;  %v26135_v34 = vand.u32 4294901760, %v21509_v15 }
 0x1e2   : > { %2061 = vmatpush2.msra.mxu0 %v21431_v52  ;;  %2386 = vmatpush2.msra.mxu1 %v2385_v13  ;;  %v2405_v61 = vsub.f32 %v21449_v32, %v26125_v62  ;;  %26126 = vst [vmem:[#allocation55_spill] sm:$0xff] %v21516_v56  ;;  %v21519_v52 = vsub.f32 %v1878_v11, %v21486_v7  ;;  %v2399_v62 = vand.u32 4294901760, %v2398_v53 }
 0x1e3   : > { %2062 = vmatprep.subr.mxu0 %v26058_v60  ;;  %2387 = vmatprep.subr.mxu1 %v26058_v60  ;;  %v21524_v13 = vsub.f32 %v1927_v42, %v21493_v27  ;;  %v2089_v11 = vsub.f32 %v21459_v33, %v26128_v14  ;;  %v21548_v33 = vsub.f32 %v1957_v55, %v21516_v56  ;;  %v1934_v55 = vld [vmem:[#allocation2 + $0xd8] sm:$0xff] }
 0x1e4   : > { %2064 = vmatpush2.msra.mxu0 %v21446_v2  ;;  %2393 = vmatpush2.msra.mxu1 %v2392_v21  ;;  %v2406_v53 = vand.u32 4294901760, %v2405_v61  ;;  %v26130_v21 = vand.u32 4294901760, %v21479_v49  ;;  %v2095_v2 = vsub.f32 %v21474_v16, %v26131_v63  ;;  %v1931_v61 = vld [vmem:[#allocation2 + $0xc0] sm:$0xff]  ;;  %v21555_v42 = vsub.f32 %v1929_v30, %v21533_v47 }
 0x1e5   : > { %2065 = vmatprep.subr.mxu0 %v26058_v60  ;;  %2394 = vmatprep.subr.mxu1 %v26058_v60  ;;  %26132 = vst [vmem:[#allocation56_spill] sm:$0xff] %v21548_v33  ;;  %v21557_v63 = vand.u32 4294901760, %v1960_v8  ;;  %v26134_v16 = vand.u32 4294901760, %v21503_v51 }
 0x1e6   : > { %2067 = vmatpush2.msra.mxu0 %v21469_v35  ;;  %2400 = vmatpush2.msra.mxu1 %v2399_v62  ;;  %v2419_v14 = vsub.f32 %v21479_v49, %v26130_v21  ;;  %v2413_v62 = vand.u32 4294901760, %v2412_v22  ;;  %v2090_v21 = vand.u32 4294901760, %v2089_v11  ;;  %v2096_v22 = vand.u32 4294901760, %v2095_v2 }
 0x1e7   : > { %2068 = vmatprep.subr.mxu0 %v26058_v60  ;;  %2401 = vmatprep.subr.mxu1 %v26058_v60  ;;  %26133 = vst [vmem:[#allocation58_spill] sm:$0xff] %v21557_v63  ;;  %v2426_v35 = vsub.f32 %v21503_v51, %v26134_v16  ;;  %v26137_v16 = vand.u32 4294901760, %v21519_v52  ;;  %v26138_v51 = vand.u32 4294901760, %v21524_v13 }
 0x1e8   : > { %2070 = vmatpush2.msra.mxu0 %v21486_v7  ;;  %2407 = vmatpush2.msra.mxu1 %v2406_v53  ;;  %v2420_v30 = vand.u32 4294901760, %v2419_v14  ;;  %v21569_v53 = vand.u32 4294901760, %v1931_v61  ;;  %v21582_v14 = vsub.f32 %v1960_v8, %v21557_v63  ;;  %v1936_v8 = vld [vmem:[#allocation2 + $0xe8] sm:$0xff] }
 0x1e9   : > { %2082 = vmatmul.mubr.f32.vlgmr.msra.gmra.mxu0 %v2081_v5  ;;  %2408 = vmatprep.subr.mxu1 %v26058_v60  ;;  %v2104_v5 = vsub.f32 %v21509_v15, %v26135_v34  ;;  %v2433_v7 = vsub.f32 %v21519_v52, %v26137_v16  ;;  %v2110_v34 = vsub.f32 %v21524_v13, %v26138_v51  ;;  %v2427_v11 = vand.u32 4294901760, %v2426_v35  ;;  %v1933_v16 = vld [vmem:[#allocation2 + $0xd0] sm:$0xff] }
 0x1ea   : > { %2521 = vmatprep.subr.mxu0 %v26058_v60  ;;  %2414 = vmatpush2.msra.mxu1 %v2413_v62  ;;  %26136 = vst [vmem:[#allocation62_spill] sm:$0xff] %v21569_v53  ;;  %v1963_v62 = vsel %vm324_vm0, %v1934_v55, 0  ;;  %26139 = vst [vmem:[#allocation47_spill] sm:$0xff] %v21582_v14  ;;  %v26140_v51 = vand.u32 4294901760, %v21548_v33  ;;  %v21591_v55 = vsub.f32 %v1931_v61, %v21569_v53  ;;  %v21602_v61 = vand.u32 4294901760, %v1933_v16 }
 0x1eb   : > { %2524 = vmatpush1.msra.mxu0 %v21170_v41  ;;  %2415 = vmatprep.subr.mxu1 %v26058_v60  ;;  %v2105_v15 = vand.u32 4294901760, %v2104_v5  ;;  %v2434_v2 = vand.u32 4294901760, %v2433_v7  ;;  %v2111_v35 = vand.u32 4294901760, %v2110_v34  ;;  %v26143_v5 = vand.u32 4294901760, %v21555_v42 }
 0x1ec   : > { %2525 = vmatprep.subr.mxu0 %v26058_v60  ;;  %2091 = vmatprep.mubr.f32.mxu0 %v2090_v21  ;;  %v2119_v21 = vsub.f32 %v21548_v33, %v26140_v51  ;;  %26141 = vst [vmem:[#allocation54_spill] sm:$0xff] %v21591_v55  ;;  %v25706_v51 = vand.u32 4294901760, %v21582_v14  ;;  %26144 = vst [vmem:[#allocation28_spill] sm:$0xff] %v21602_v61  ;;  %v25711_v34 = vand.u32 4294901760, %v21591_v55 }
 0x1ed   : > { %2421 = vmatpush2.msra.mxu1 %v2420_v30  ;;  %2528 = vmatpush1.msra.mxu0 %v21192_v28  ;;  %v21593_v30 = vand.u32 4294901760, %v1963_v62 }
 0x1ee   : > { %2422 = vmatprep.subr.mxu1 %v26058_v60  ;;  %2097 = vmatmul.mubr.f32.gmra.mxu0 %v2096_v22  ;;  %v2125_v22 = vsub.f32 %v21555_v42, %v26143_v5  ;;  %v2120_v7 = vand.u32 4294901760, %v2119_v21  ;;  %v1935_v5 = vld [vmem:[#allocation2 + $0xe0] sm:$0xff]  ;;  %v21618_v21 = vsub.f32 %v1933_v16, %v21602_v61 }
 0x1ef   : > { %2529 = vmatprep.subr.mxu0 %v26058_v60  ;;  %26142 = vst [vmem:[#allocation52_spill] sm:$0xff] %v21593_v30  ;;  %2428 = vmatpush2.msra.mxu1 %v2427_v11  ;;  %v1966_v11 = vsel %vm324_vm0, %v1936_v8, 0  ;;  %v21609_v33 = vsub.f32 %v1963_v62, %v21593_v30  ;;  %v1938_v62 = vld [vmem:[#allocation2 + $0xf8] sm:$0xff] }
 0x1f0   : > { %2532 = vmatpush1.msra.mxu0 %v21162_v4  ;;  %2429 = vmatprep.subr.mxu1 %v26058_v60  ;;  %26146 = vst [vmem:[#allocation49_spill] sm:$0xff] %v21618_v21  ;;  %v21620_v8 = vand.u32 4294901760, %v1966_v11  ;;  %v1969_v16 = vsel %vm324_vm0, %v1938_v62, 0 }
 0x1f1   : > { %2533 = vmatprep.subr.mxu0 %v26058_v60  ;;  %2106 = vmatprep.mubr.f32.mxu0 %v2105_v15  ;;  %26145 = vst [vmem:[#allocation50_spill] sm:$0xff] %v21609_v33  ;;  %v2126_v15 = vand.u32 4294901760, %v2125_v22  ;;  %v26149_v62 = vand.u32 4294901760, %v21609_v33 }
 0x1f2   : > { %2435 = vmatpush2.msra.mxu1 %v2434_v2  ;;  %2536 = vmatpush1.msra.mxu0 %v21183_v24  ;;  %v2134_v2 = vsub.f32 %v21582_v14, %v25706_v51  ;;  %26147 = vst [vmem:[#allocation27_spill] sm:$0xff] %v21620_v8  ;;  %v21629_v51 = vand.u32 4294901760, %v1935_v5  ;;  %v21637_v14 = vsub.f32 %v1966_v11, %v21620_v8  ;;  %v1940_v11 = vld [vmem:[#allocation2 + $0x108] sm:$0xff] }
 0x1f3   : > { %2439 = vmatmul.mubr.f32.vlgmr.msra.gmra.mxu1 %v21126_v19  ;;  %2112 = vmatmul.mubr.f32.gmra.mxu0 %v2111_v35  ;;  %v2140_v35 = vsub.f32 %v21591_v55, %v25711_v34  ;;  %v1937_v34 = vld [vmem:[#allocation2 + $0xf0] sm:$0xff] }
 0x1f4   : > { %2537 = vmatprep.subr.mxu0 %v26058_v60  ;;  %2742 = vmatprep.subr.mxu1 %v26058_v60  ;;  %v2135_v19 = vand.u32 4294901760, %v2134_v2  ;;  %26148 = vst [vmem:[#allocation46_spill] sm:$0xff] %v21637_v14  ;;  %v21647_v2 = vsub.f32 %v1935_v5, %v21629_v51  ;;  %v1972_v5 = vsel %vm324_vm0, %v1940_v11, 0  ;;  %v26153_v11 = vand.u32 4294901760, %v21637_v14 }
 0x1f5   : > { %2540 = vmatpush1.msra.mxu0 %v21199_v59  ;;  %2744 = vmatpush1.msra.mxu1 %v21155_v46  ;;  %v2141_v22 = vand.u32 4294901760, %v2140_v35 }
 0x1f6   : > { %2541 = vmatprep.subr.mxu0 %v26058_v60  ;;  %2745 = vmatprep.subr.mxu1 %v26058_v60  ;;  %26150 = vst [vmem:[#allocation30_spill] sm:$0xff] %v21647_v2 }
 0x1f7   : > { %2121 = vmatprep.mubr.f32.mxu0 %v2120_v7  ;;  %2444 = vmatprep.mubr.f32.mxu1 %v21412_v38  ;;  %v21649_v7 = vand.u32 4294901760, %v1969_v16 }
 0x1f8   : > { %2544 = vmatpush1.msra.mxu0 %v21219_v43  ;;  %2747 = vmatpush1.msra.mxu1 %v21174_v18 }
 0x1f9   : > { %2127 = vmatmul.mubr.f32.gmra.mxu0 %v2126_v15  ;;  %2446 = vmatmul.mubr.f32.gmra.mxu1 %v21429_v1  ;;  %v2149_v15 = vsub.f32 %v21609_v33, %v26149_v62  ;;  %v26151_v1 = vand.u32 4294901760, %v21618_v21  ;;  %v21658_v62 = vand.u32 4294901760, %v1937_v34  ;;  %v21666_v55 = vsub.f32 %v1969_v16, %v21649_v7  ;;  %v1942_v16 = vld [vmem:[#allocation2 + $0x118] sm:$0xff] }
 0x1fa   : > { %2545 = vmatprep.subr.mxu0 %v26058_v60  ;;  %2748 = vmatprep.subr.mxu1 %v26058_v60 }
 0x1fb   : > { %2548 = vmatpush1.msra.mxu0 %v21231_v26  ;;  %2750 = vmatpush1.msra.mxu1 %v21139_v39  ;;  %v2155_v35 = vsub.f32 %v21618_v21, %v26151_v1  ;;  %v2150_v33 = vand.u32 4294901760, %v2149_v15  ;;  %26152 = vst [vmem:[#allocation74_spill] sm:$0xff] %v21666_v55  ;;  %v1939_v1 = vld [vmem:[#allocation2 + $0x100] sm:$0xff]  ;;  %v21676_v15 = vsub.f32 %v1937_v34, %v21658_v62  ;;  %v1975_v34 = vsel %vm324_vm0, %v1942_v16, 0 }
 0x1fc   : > { %2549 = vmatprep.subr.mxu0 %v26058_v60  ;;  %2751 = vmatprep.subr.mxu1 %v26058_v60  ;;  %v26160_v16 = vand.u32 4294901760, %v21666_v55 }
 0x1fd   : > { %2136 = vmatprep.mubr.f32.mxu0 %v2135_v19  ;;  %2451 = vmatprep.mubr.f32.mxu1 %v21476_v54  ;;  %v2156_v38 = vand.u32 4294901760, %v2155_v35  ;;  %26154 = vst [vmem:[#allocation75_spill] sm:$0xff] %v21676_v15  ;;  %v21678_v19 = vand.u32 4294901760, %v1972_v5 }
 0x1fe   : > { %2552 = vmatpush1.msra.mxu0 %v21253_v17  ;;  %2753 = vmatpush1.msra.mxu1 %v21151_v12 }
 0x1ff   : > { %2142 = vmatmul.mubr.f32.gmra.mxu0 %v2141_v22  ;;  %2453 = vmatmul.mubr.f32.gmra.mxu1 %v21493_v27  ;;  %v2164_v22 = vsub.f32 %v21637_v14, %v26153_v11  ;;  %26155 = vst [vmem:[#allocation76_spill] sm:$0xff] %v21678_v19  ;;  %v26156_v27 = vand.u32 4294901760, %v21647_v2  ;;  %v21687_v11 = vand.u32 4294901760, %v1939_v1  ;;  %v26158_v14 = vld [vmem:[#allocation16_spill] sm:$0xff] }
 0x200   : > { %2553 = vmatprep.subr.mxu0 %v26058_v60  ;;  %2754 = vmatprep.subr.mxu1 %v26058_v60 }
 0x201   : > { %2556 = vmatpush1.msra.mxu0 %v21271_v9  ;;  %2756 = vmatpush1.msra.mxu1 %v21159_v31  ;;  %v2170_v35 = vsub.f32 %v21647_v2, %v26156_v27  ;;  %26157 = vst [vmem:[#allocation77_spill] sm:$0xff] %v21687_v11  ;;  %v2165_v21 = vand.u32 4294901760, %v2164_v22  ;;  %v21695_v31 = vsub.f32 %v1972_v5, %v21678_v19  ;;  %v1941_v27 = vld [vmem:[#allocation2 + $0x110] sm:$0xff]  ;;  %v1944_v5 = vld [vmem:[#allocation2 + $0x128] sm:$0xff] }
 0x202   : > { %2557 = vmatprep.subr.mxu0 %v26058_v60  ;;  %2757 = vmatprep.subr.mxu1 %v26058_v60  ;;  %v21705_v22 = vsub.f32 %v1939_v1, %v21687_v11  ;;  %v1978_v1 = vsel %vm324_vm0, %v1944_v5, 0 }
 0x203   : > { %2151 = vmatprep.mubr.f32.mxu0 %v2150_v33  ;;  %2458 = vmatprep.mubr.f32.mxu1 %v21516_v56  ;;  %26159 = vst [vmem:[#allocation16_spill] sm:$0xff] %v21695_v31  ;;  %v2171_v54 = vand.u32 4294901760, %v2170_v35  ;;  %v21707_v33 = vand.u32 4294901760, %v1975_v34  ;;  %v26162_v56 = vld [vmem:[#allocation71_spill] sm:$0xff]  ;;  %v26166_v5 = vand.u32 4294901760, %v21695_v31 }
 0x204   : > { %2560 = vmatpush1.msra.mxu0 %v21288_v57  ;;  %2759 = vmatpush1.msra.mxu1 %v26158_v14 }
 0x205   : > { %2157 = vmatmul.mubr.f32.gmra.mxu0 %v2156_v38  ;;  %2460 = vmatmul.mubr.f32.gmra.mxu1 %v21533_v47  ;;  %v2179_v38 = vsub.f32 %v21666_v55, %v26160_v16  ;;  %26161 = vst [vmem:[#allocation78_spill] sm:$0xff] %v21707_v33  ;;  %v26163_v47 = vand.u32 4294901760, %v21676_v15  ;;  %v21716_v16 = vand.u32 4294901760, %v1941_v27  ;;  %v26165_v55 = vld [vmem:[#allocation66_spill] sm:$0xff] }
 0x206   : > { %2561 = vmatprep.subr.mxu0 %v26058_v60  ;;  %2760 = vmatprep.subr.mxu1 %v26058_v60 }
 0x207   : > { %2564 = vmatpush1.msra.mxu0 %v21300_v29  ;;  %2762 = vmatpush1.msra.mxu1 %v26162_v56  ;;  %v2185_v35 = vsub.f32 %v21676_v15, %v26163_v47  ;;  %26164 = vst [vmem:[#allocation79_spill] sm:$0xff] %v21716_v16  ;;  %v2180_v56 = vand.u32 4294901760, %v2179_v38  ;;  %v21724_v29 = vsub.f32 %v1975_v34, %v21707_v33  ;;  %v1943_v47 = vld [vmem:[#allocation2 + $0x120] sm:$0xff]  ;;  %v1946_v34 = vld [vmem:[#allocation2 + $0x138] sm:$0xff] }
 0x208   : > { %2565 = vmatprep.subr.mxu0 %v26058_v60  ;;  %2763 = vmatprep.subr.mxu1 %v26058_v60  ;;  %v21734_v38 = vsub.f32 %v1941_v27, %v21716_v16  ;;  %v1981_v27 = vsel %vm324_vm0, %v1946_v34, 0 }
 0x209   : > { %2166 = vmatprep.mubr.f32.mxu0 %v2165_v21  ;;  %2465 = vmatprep.mubr.f32.mxu1 %v21557_v63  ;;  %v2186_v2 = vand.u32 4294901760, %v2185_v35  ;;  %v21736_v21 = vand.u32 4294901760, %v1978_v1  ;;  %v26168_v63 = vld [vmem:[#allocation69_spill] sm:$0xff]  ;;  %v26171_v34 = vand.u32 4294901760, %v21724_v29 }
 0x20a   : > { %2568 = vmatpush1.msra.mxu0 %v21315_v6  ;;  %2765 = vmatpush1.msra.mxu1 %v26165_v55 }
 0x20b   : > { %2172 = vmatmul.mubr.f32.gmra.mxu0 %v2171_v54  ;;  %2467 = vmatmul.mubr.f32.gmra.mxu1 %v21569_v53  ;;  %v2194_v54 = vsub.f32 %v21695_v31, %v26166_v5  ;;  %26167 = vst [vmem:[#allocation66_spill] sm:$0xff] %v21736_v21  ;;  %v26169_v53 = vand.u32 4294901760, %v21705_v22  ;;  %v21745_v5 = vand.u32 4294901760, %v1943_v47 }
 0x20c   : > { %2569 = vmatprep.subr.mxu0 %v26058_v60  ;;  %2766 = vmatprep.subr.mxu1 %v26058_v60 }
 0x20d   : > { %2572 = vmatpush1.msra.mxu0 %v21329_v25  ;;  %2768 = vmatpush1.msra.mxu1 %v26168_v63  ;;  %v2200_v35 = vsub.f32 %v21705_v22, %v26169_v53  ;;  %26170 = vst [vmem:[#allocation80_spill] sm:$0xff] %v21745_v5  ;;  %v2195_v31 = vand.u32 4294901760, %v2194_v54  ;;  %v21753_v63 = vsub.f32 %v1978_v1, %v21736_v21  ;;  %v1945_v53 = vld [vmem:[#allocation2 + $0x130] sm:$0xff]  ;;  %v26173_v1 = vand.u32 4294901760, %v21734_v38 }
 0x20e   : > { %2573 = vmatprep.subr.mxu0 %v26058_v60  ;;  %2769 = vmatprep.subr.mxu1 %v26058_v60  ;;  %v21763_v54 = vsub.f32 %v1943_v47, %v21745_v5 }
 0x20f   : > { %2181 = vmatprep.mubr.f32.mxu0 %v2180_v56  ;;  %2472 = vmatprep.mubr.f32.mxu1 %v21593_v30  ;;  %v2201_v15 = vand.u32 4294901760, %v2200_v35  ;;  %v21765_v56 = vand.u32 4294901760, %v1981_v27  ;;  %v2215_v35 = vsub.f32 %v21734_v38, %v26173_v1  ;;  %v21774_v30 = vand.u32 4294901760, %v1945_v53 }
 0x210   : > { %2576 = vmatpush1.msra.mxu0 %v21342_v0  ;;  %2771 = vmatpush1.msra.mxu1 %v21247_v20 }
 0x211   : > { %2187 = vmatmul.mubr.f32.gmra.mxu0 %v2186_v2  ;;  %2474 = vmatmul.mubr.f32.gmra.mxu1 %v21602_v61  ;;  %v2209_v2 = vsub.f32 %v21724_v29, %v26171_v34  ;;  %26172 = vst [vmem:[#allocation81_spill] sm:$0xff] %v21765_v56  ;;  %v25755_v61 = vand.u32 4294901760, %v21753_v63  ;;  %26174 = vst [vmem:[#allocation82_spill] sm:$0xff] %v21774_v30  ;;  %v25752_v34 = vand.u32 4294901760, %v21763_v54  ;;  %v2216_v1 = vand.u32 4294901760, %v2215_v35 }
 0x212   : > { %2577 = vmatprep.subr.mxu0 %v26058_v60  ;;  %2772 = vmatprep.subr.mxu1 %v26058_v60 }
 0x213   : > { %2580 = vmatpush1.msra.mxu0 %v21356_v3  ;;  %2774 = vmatpush1.msra.mxu1 %v21265_v45  ;;  %v2210_v47 = vand.u32 4294901760, %v2209_v2 }
 0x214   : > { %2581 = vmatprep.subr.mxu0 %v26058_v60  ;;  %2775 = vmatprep.subr.mxu1 %v26058_v60 }
 0x215   : > { %2196 = vmatprep.mubr.f32.mxu0 %v2195_v31  ;;  %2479 = vmatprep.mubr.f32.mxu1 %v21620_v8  ;;  %v21781_v31 = vsub.f32 %v1981_v27, %v21765_v56  ;;  %v2224_v8 = vsub.f32 %v21753_v63, %v25755_v61  ;;  %v2230_v27 = vsub.f32 %v21763_v54, %v25752_v34  ;;  %v26183_v61 = vld [vmem:[#allocation57_spill] sm:$0xff] }
 0x216   : > { %2584 = vmatpush1.msra.mxu0 %v21371_v58  ;;  %2777 = vmatpush1.msra.mxu1 %v21283_v44 }
 0x217   : > { %2202 = vmatmul.mubr.f32.gmra.mxu0 %v2201_v15  ;;  %2481 = vmatmul.mubr.f32.gmra.mxu1 %v21629_v51  ;;  %v21791_v15 = vsub.f32 %v1945_v53, %v21774_v30  ;;  %v25753_v2 = vand.u32 4294901760, %v21781_v31  ;;  %v2225_v53 = vand.u32 4294901760, %v2224_v8 }
 0x218   : > { %2601 = vmatprep.subr.mxu0 %v26058_v60  ;;  %2778 = vmatprep.subr.mxu1 %v26058_v60 }
 0x219   : > { %2604 = vmatpush2.msra.mxu0 %v21400_v40  ;;  %2780 = vmatpush1.msra.mxu1 %v21297_v36  ;;  %v25754_v35 = vand.u32 4294901760, %v21791_v15  ;;  %v2239_v34 = vsub.f32 %v21781_v31, %v25753_v2  ;;  %v26176_v2 = vld [vmem:[#allocation61_spill] sm:$0xff] }
 0x21a   : > { %2605 = vmatprep.subr.mxu0 %v26058_v60  ;;  %2781 = vmatprep.subr.mxu1 %v26058_v60 }
 0x21b   : > { %2211 = vmatprep.mubr.f32.mxu0 %v2210_v47  ;;  %2486 = vmatprep.mubr.f32.mxu1 %v21649_v7  ;;  %v2231_v47 = vand.u32 4294901760, %v2230_v27  ;;  %v2245_v8 = vsub.f32 %v21791_v15, %v25754_v35  ;;  %v2240_v27 = vand.u32 4294901760, %v2239_v34  ;;  %v26177_v34 = vld [vmem:[#allocation70_spill] sm:$0xff]  ;;  %v26182_v35 = vld [vmem:[#allocation15_spill] sm:$0xff] }
 0x21c   : > { %2608 = vmatpush2.msra.mxu0 %v21418_v50  ;;  %2783 = vmatpush1.msra.mxu1 %v21312_v23 }
 0x21d   : > { %2217 = vmatmul.mubr.f32.gmra.mxu0 %v2216_v1  ;;  %2488 = vmatmul.mubr.f32.gmra.mxu1 %v21658_v62  ;;  %v26175_v1 = vld [vmem:[#allocation24_spill] sm:$0xff] }
 0x21e   : > { %2609 = vmatprep.subr.mxu0 %v26058_v60  ;;  %2784 = vmatprep.subr.mxu1 %v26058_v60 }
 0x21f   : > { %2612 = vmatpush2.msra.mxu0 %v21434_v37  ;;  %2786 = vmatpush1.msra.mxu1 %v21326_v48 }
 0x220   : > { %2613 = vmatprep.subr.mxu0 %v26058_v60  ;;  %2787 = vmatprep.subr.mxu1 %v26058_v60 }
 0x221   : > { %2226 = vmatprep.mubr.f32.mxu0 %v2225_v53  ;;  %2493 = vmatprep.mubr.f32.mxu1 %v21678_v19  ;;  %v2246_v53 = vand.u32 4294901760, %v2245_v8  ;;  %v26179_v8 = vld [vmem:[#allocation63_spill] sm:$0xff]  ;;  %v26195_v19 = vand.u32 4294901760, %v26182_v35 }
 0x222   : > { %2616 = vmatpush2.msra.mxu0 %v21449_v32  ;;  %2789 = vmatpush1.msra.mxu1 %v26175_v1 }
 0x223   : > { %2232 = vmatmul.mubr.f32.gmra.mxu0 %v2231_v47  ;;  %2495 = vmatmul.mubr.f32.gmra.mxu1 %v21687_v11  ;;  %v26178_v47 = vld [vmem:[#allocation53_spill] sm:$0xff]  ;;  %v26188_v11 = vld [vmem:[#allocation59_spill] sm:$0xff] }
 0x224   : > { %2617 = vmatprep.subr.mxu0 %v26058_v60  ;;  %2806 = vmatprep.subr.mxu1 %v26058_v60 }
 0x225   : > { %2620 = vmatpush2.msra.mxu0 %v21462_v10  ;;  %2808 = vmatpush2.msra.mxu1 %v26176_v2 }
 0x226   : > { %2621 = vmatprep.subr.mxu0 %v26058_v60  ;;  %2809 = vmatprep.subr.mxu1 %v26058_v60 }
 0x227   : > { %2241 = vmatprep.mubr.f32.mxu0 %v2240_v27  ;;  %2500 = vmatprep.mubr.f32.mxu1 %v21707_v33  ;;  %v26180_v27 = vld [vmem:[#allocation40_spill] sm:$0xff] }
 0x228   : > { %2624 = vmatpush2.msra.mxu0 %v21479_v49  ;;  %2811 = vmatpush2.msra.mxu1 %v26177_v34  ;;  %v26186_v33 = vld [vmem:[#allocation68_spill] sm:$0xff] }
 0x229   : > { %2247 = vmatmul.mubr.f32.gmra.mxu0 %v2246_v53  ;;  %2502 = vmatmul.mubr.f32.gmra.mxu1 %v21716_v16  ;;  %v26181_v53 = vld [vmem:[#allocation21_spill] sm:$0xff]  ;;  %v26184_v16 = vand.u32 4294901760, %v21170_v41  ;;  %v26189_v41 = vld [vmem:[#allocation48_spill] sm:$0xff] }
 0x22a   : > { %2625 = vmatprep.subr.mxu0 %v26058_v60  ;;  %2812 = vmatprep.subr.mxu1 %v26058_v60 }
 0x22b   : > { %2628 = vmatpush2.msra.mxu0 %v26178_v47  ;;  %2814 = vmatpush2.msra.mxu1 %v26179_v8 }
 0x22c   : > { %2629 = vmatprep.subr.mxu0 %v26058_v60  ;;  %2815 = vmatprep.subr.mxu1 %v26058_v60 }
 0x22d   : > { %2507 = vmatprep.mubr.f32.mxu1 %v21736_v21  ;;  %2632 = vmatpush2.msra.mxu0 %v21519_v52  ;;  %v26185_v21 = vld [vmem:[#allocation11_spill] sm:$0xff] }
 0x22e   : > { %2635 = vmatprep.mubr.f32.mxu0 %v26180_v27  ;;  %2817 = vmatpush2.msra.mxu1 %v26181_v53 }
 0x22f   : > { %2638 = vmatmul.mubr.f32.vlgmr.msra.gmra.mxu0 %v26182_v35  ;;  %2509 = vmatmul.mubr.f32.gmra.mxu1 %v21745_v5  ;;  %v26187_v5 = vand.u32 4294901760, %v21192_v28  ;;  %v26192_v28 = vld [vmem:[#allocation51_spill] sm:$0xff]  ;;  %v26208_v35 = vld [vmem:[#allocation73_spill] sm:$0xff] }
 0x230   : > { %2818 = vmatprep.subr.mxu1 %v26058_v60  ;;  %2963 = vmatprep.subr.mxu0 %v26058_v60 }
 0x231   : > { %2820 = vmatpush2.msra.mxu1 %v26183_v61  ;;  %2967 = vmatpush1.msra.mxu0 %v26184_v16  ;;  %v26190_v16 = vand.u32 4294901760, %v21162_v4  ;;  %v26196_v4 = vand.u32 4294901760, %v21199_v59  ;;  %v26200_v59 = vand.u32 4294901760, %v26188_v11 }
 0x232   : > { %2821 = vmatprep.subr.mxu1 %v26058_v60  ;;  %2968 = vmatprep.subr.mxu0 %v26058_v60 }
 0x233   : > { %2514 = vmatprep.mubr.f32.mxu1 %v21765_v56  ;;  %2644 = vmatprep.mubr.f32.mxu0 %v26185_v21  ;;  %v26191_v56 = vld [vmem:[#allocation65_spill] sm:$0xff] }
 0x234   : > { %2823 = vmatpush2.msra.mxu1 %v26186_v33  ;;  %2972 = vmatpush1.msra.mxu0 %v26187_v5  ;;  %v26193_v5 = vand.u32 4294901760, %v26180_v27  ;;  %v26214_v27 = vld [vmem:[#allocation26_spill] sm:$0xff] }
 0x235   : > { %2516 = vmatmul.mubr.f32.gmra.mxu1 %v21774_v30  ;;  %2647 = vmatmul.mubr.f32.gmra.mxu0 %v26188_v11  ;;  %v26194_v30 = vand.u32 4294901760, %v21183_v24  ;;  %v26197_v24 = vld [vmem:[#allocation56_spill] sm:$0xff]  ;;  %v26204_v11 = vand.u32 4294901760, %v21253_v17  ;;  %v26209_v17 = vld [vmem:[#allocation50_spill] sm:$0xff] }
 0x236   : > { %2824 = vmatprep.subr.mxu1 %v26058_v60  ;;  %2973 = vmatprep.subr.mxu0 %v26058_v60 }
 0x237   : > { %2826 = vmatpush2.msra.mxu1 %v26189_v41  ;;  %2977 = vmatpush1.msra.mxu0 %v26190_v16  ;;  %v26215_v16 = vand.u32 4294901760, %v26214_v27 }
 0x238   : > { %2827 = vmatprep.subr.mxu1 %v26058_v60  ;;  %2978 = vmatprep.subr.mxu0 %v26058_v60 }
 0x239   : > { %2653 = vmatprep.mubr.f32.mxu0 %v26191_v56  ;;  %2829 = vmatpush2.msra.mxu1 %v26192_v28 }
 0x23a   : > { %2833 = vmatprep.mubr.f32.mxu1 %v26193_v5  ;;  %2982 = vmatpush1.msra.mxu0 %v26194_v30  ;;  %v26198_v30 = vand.u32 4294901760, %v26185_v21  ;;  %v26205_v21 = vld [vmem:[#allocation54_spill] sm:$0xff]  ;;  %v26216_v5 = vld [vmem:[#allocation71_spill] sm:$0xff] }
 0x23b   : > { %2837 = vmatmul.mubr.f32.vlgmr.msra.gmra.mxu1 %v26195_v19  ;;  %2656 = vmatmul.mubr.f32.gmra.mxu0 %v21524_v13  ;;  %v26199_v19 = vand.u32 4294901760, %v21219_v43  ;;  %v26202_v43 = vld [vmem:[#allocation47_spill] sm:$0xff] }
 0x23c   : > { %2983 = vmatprep.subr.mxu0 %v26058_v60  ;;  %3184 = vmatprep.subr.mxu1 %v26058_v60 }
 0x23d   : > { %2987 = vmatpush1.msra.mxu0 %v26196_v4  ;;  %3186 = vmatpush1.msra.mxu1 %v21155_v46  ;;  %v26201_v46 = vand.u32 4294901760, %v21231_v26  ;;  %v26206_v26 = vand.u32 4294901760, %v21524_v13  ;;  %v26211_v13 = vand.u32 4294901760, %v21288_v57  ;;  %v26217_v57 = vld [vmem:[#allocation46_spill] sm:$0xff] }
 0x23e   : > { %2988 = vmatprep.subr.mxu0 %v26058_v60  ;;  %3187 = vmatprep.subr.mxu1 %v26058_v60  ;;  %v26220_v4 = vld [vmem:[#allocation30_spill] sm:$0xff] }
 0x23f   : > { %2662 = vmatprep.mubr.f32.mxu0 %v26197_v24  ;;  %2844 = vmatprep.mubr.f32.mxu1 %v26198_v30  ;;  %v26222_v30 = vand.u32 4294901760, %v21329_v25 }
 0x240   : > { %2992 = vmatpush1.msra.mxu0 %v26199_v19  ;;  %3189 = vmatpush1.msra.mxu1 %v21174_v18  ;;  %v26203_v18 = vand.u32 4294901760, %v26191_v56  ;;  %v26212_v56 = vld [vmem:[#allocation49_spill] sm:$0xff] }
 0x241   : > { %2665 = vmatmul.mubr.f32.gmra.mxu0 %v21555_v42  ;;  %2848 = vmatmul.mubr.f32.gmra.mxu1 %v26200_v59  ;;  %v26223_v19 = vld [vmem:[#allocation69_spill] sm:$0xff]  ;;  %v26226_v59 = vand.u32 4294901760, %v21342_v0  ;;  %v26228_v25 = vand.u32 4294901760, %v26212_v56  ;;  %v26230_v0 = vld [vmem:[#allocation16_spill] sm:$0xff] }
 0x242   : > { %2993 = vmatprep.subr.mxu0 %v26058_v60  ;;  %3190 = vmatprep.subr.mxu1 %v26058_v60 }
 0x243   : > { %2997 = vmatpush1.msra.mxu0 %v26201_v46  ;;  %3192 = vmatpush1.msra.mxu1 %v21139_v39  ;;  %v26207_v39 = vand.u32 4294901760, %v21271_v9  ;;  %v26213_v9 = vand.u32 4294901760, %v21555_v42  ;;  %v26219_v42 = vand.u32 4294901760, %v21315_v6  ;;  %v26224_v6 = vld [vmem:[#allocation74_spill] sm:$0xff]  ;;  %v26227_v46 = vld [vmem:[#allocation75_spill] sm:$0xff] }
 0x244   : > { %2998 = vmatprep.subr.mxu0 %v26058_v60  ;;  %3193 = vmatprep.subr.mxu1 %v26058_v60 }
 0x245   : > { %2671 = vmatprep.mubr.f32.mxu0 %v26202_v43  ;;  %2855 = vmatprep.mubr.f32.mxu1 %v26203_v18  ;;  %v26232_v18 = vand.u32 4294901760, %v21371_v58  ;;  %v26236_v58 = vand.u32 4294901760, %v21418_v50  ;;  %v26240_v50 = vand.u32 4294901760, %v21449_v32  ;;  %v26243_v32 = vand.u32 4294901760, %v21724_v29 }
 0x246   : > { %3002 = vmatpush1.msra.mxu0 %v26204_v11  ;;  %3195 = vmatpush1.msra.mxu1 %v21151_v12  ;;  %v26210_v12 = vand.u32 4294901760, %v26197_v24  ;;  %v26221_v24 = vand.u32 4294901760, %v26205_v21  ;;  %v26264_v11 = vld [vmem:[#allocation27_spill] sm:$0xff] }
 0x247   : > { %2674 = vmatmul.mubr.f32.gmra.mxu0 %v26205_v21  ;;  %2859 = vmatmul.mubr.f32.gmra.mxu1 %v26206_v26  ;;  %v26265_v21 = vld [vmem:[#allocation76_spill] sm:$0xff]  ;;  %v26266_v26 = vld [vmem:[#allocation77_spill] sm:$0xff] }
 0x248   : > { %3003 = vmatprep.subr.mxu0 %v26058_v60  ;;  %3196 = vmatprep.subr.mxu1 %v26058_v60 }
 0x249   : > { %3007 = vmatpush1.msra.mxu0 %v26207_v39  ;;  %3198 = vmatpush1.msra.mxu1 %v26208_v35  ;;  %v26267_v39 = vld [vmem:[#allocation78_spill] sm:$0xff]  ;;  %v26268_v35 = vld [vmem:[#allocation79_spill] sm:$0xff] }
 0x24a   : > { %3008 = vmatprep.subr.mxu0 %v26058_v60  ;;  %3199 = vmatprep.subr.mxu1 %v26058_v60 }
 0x24b   : > { %2680 = vmatprep.mubr.f32.mxu0 %v26209_v17  ;;  %2866 = vmatprep.mubr.f32.mxu1 %v26210_v12  ;;  %v26270_v12 = vld [vmem:[#allocation80_spill] sm:$0xff] }
 0x24c   : > { %3012 = vmatpush1.msra.mxu0 %v26211_v13  ;;  %3201 = vmatpush1.msra.mxu1 %v26158_v14  ;;  %v26218_v14 = vand.u32 4294901760, %v26202_v43  ;;  %v26229_v43 = vand.u32 4294901760, %v21356_v3  ;;  %v26233_v3 = vand.u32 4294901760, %v26220_v4  ;;  %v26271_v13 = vld [vmem:[#allocation81_spill] sm:$0xff] }
 0x24d   : > { %2683 = vmatmul.mubr.f32.gmra.mxu0 %v26212_v56  ;;  %2870 = vmatmul.mubr.f32.gmra.mxu1 %v26213_v9 }
 0x24e   : > { %3013 = vmatprep.subr.mxu0 %v26058_v60  ;;  %3202 = vmatprep.subr.mxu1 %v26058_v60 }
 0x24f   : > { %3017 = vmatpush1.msra.mxu0 %v26215_v16  ;;  %3204 = vmatpush1.msra.mxu1 %v26216_v5 }
 0x250   : > { %3018 = vmatprep.subr.mxu0 %v26058_v60  ;;  %3205 = vmatprep.subr.mxu1 %v26058_v60 }
 0x251   : > { %2689 = vmatprep.mubr.f32.mxu0 %v26217_v57  ;;  %2877 = vmatprep.mubr.f32.mxu1 %v26218_v14 }
 0x252   : > { %3022 = vmatpush1.msra.mxu0 %v26219_v42  ;;  %3207 = vmatpush1.msra.mxu1 %v26165_v55  ;;  %v26225_v55 = vand.u32 4294901760, %v26209_v17  ;;  %v26269_v17 = vld [vmem:[#allocation66_spill] sm:$0xff]  ;;  %v3360_v42 = vld [vmem:[#allocation2 + $0x170] sm:$0xff] }
 0x253   : > { %2692 = vmatmul.mubr.f32.gmra.mxu0 %v26220_v4  ;;  %2881 = vmatmul.mubr.f32.gmra.mxu1 %v26221_v24  ;;  %v22093_v4 = vand.u32 4294901760, %v3360_v42 }
 0x254   : > { %3023 = vmatprep.subr.mxu0 %v26058_v60  ;;  %3208 = vmatprep.subr.mxu1 %v26058_v60 }
 0x255   : > { %3027 = vmatpush1.msra.mxu0 %v26222_v30  ;;  %3210 = vmatpush1.msra.mxu1 %v26223_v19  ;;  %v3359_v30 = vld [vmem:[#allocation2 + $0x160] sm:$0xff] }
 0x256   : > { %3028 = vmatprep.subr.mxu0 %v26058_v60  ;;  %3211 = vmatprep.subr.mxu1 %v26058_v60 }
 0x257   : > { %2698 = vmatprep.mubr.f32.mxu0 %v26224_v6  ;;  %2888 = vmatprep.mubr.f32.mxu1 %v26225_v55  ;;  %v22099_v55 = vand.u32 4294901760, %v3359_v30 }
 0x258   : > { %3032 = vmatpush1.msra.mxu0 %v26226_v59  ;;  %3213 = vmatpush1.msra.mxu1 %v21247_v20  ;;  %v26231_v20 = vand.u32 4294901760, %v26217_v57 }
 0x259   : > { %2701 = vmatmul.mubr.f32.gmra.mxu0 %v26227_v46  ;;  %2892 = vmatmul.mubr.f32.gmra.mxu1 %v26228_v25  ;;  %v3358_v25 = vld [vmem:[#allocation2 + $0x150] sm:$0xff] }
 0x25a   : > { %3033 = vmatprep.subr.mxu0 %v26058_v60  ;;  %3214 = vmatprep.subr.mxu1 %v26058_v60 }
 0x25b   : > { %3037 = vmatpush1.msra.mxu0 %v26229_v43  ;;  %3216 = vmatpush1.msra.mxu1 %v21265_v45  ;;  %v26234_v45 = vand.u32 4294901760, %v21400_v40  ;;  %v26237_v40 = vand.u32 4294901760, %v26227_v46 }
 0x25c   : > { %3038 = vmatprep.subr.mxu0 %v26058_v60  ;;  %3217 = vmatprep.subr.mxu1 %v26058_v60 }
 0x25d   : > { %2707 = vmatprep.mubr.f32.mxu0 %v26230_v0  ;;  %2899 = vmatprep.mubr.f32.mxu1 %v26231_v20  ;;  %v22108_v20 = vsub.f32 %v3359_v30, %v22099_v55 }
 0x25e   : > { %3042 = vmatpush1.msra.mxu0 %v26232_v18  ;;  %3219 = vmatpush1.msra.mxu1 %v21283_v44  ;;  %v26235_v44 = vand.u32 4294901760, %v26224_v6  ;;  %v22097_v6 = vsub.f32 %v3360_v42, %v22093_v4  ;;  %v22110_v18 = vand.u32 4294901760, %v3358_v25 }
 0x25f   : > { %2710 = vmatmul.mubr.f32.gmra.mxu0 %v21705_v22  ;;  %2903 = vmatmul.mubr.f32.gmra.mxu1 %v26233_v3  ;;  %v3357_v3 = vld [vmem:[#allocation2 + $0x140] sm:$0xff] }
 0x260   : > { %3059 = vmatprep.subr.mxu0 %v26058_v60  ;;  %3220 = vmatprep.subr.mxu1 %v26058_v60 }
 0x261   : > { %3063 = vmatpush2.msra.mxu0 %v26234_v45  ;;  %3222 = vmatpush1.msra.mxu1 %v21297_v36  ;;  %v26238_v36 = vand.u32 4294901760, %v21434_v37  ;;  %v26241_v37 = vand.u32 4294901760, %v21705_v22  ;;  %v26244_v22 = vand.u32 4294901760, %v21479_v49  ;;  %v26248_v49 = vand.u32 4294901760, %v21519_v52  ;;  %v26253_v52 = vld [vmem:[#allocation67_spill] sm:$0xff] }
 0x262   : > { %3064 = vmatprep.subr.mxu0 %v26058_v60  ;;  %3223 = vmatprep.subr.mxu1 %v26058_v60 }
 0x263   : > { %2716 = vmatprep.mubr.f32.mxu0 %v21724_v29  ;;  %2910 = vmatprep.mubr.f32.mxu1 %v26235_v44  ;;  %v26247_v29 = vand.u32 4294901760, %v21753_v63  ;;  %v22117_v44 = vand.u32 4294901760, %v22108_v20 }
 0x264   : > { %3068 = vmatpush2.msra.mxu0 %v26236_v58  ;;  %3225 = vmatpush1.msra.mxu1 %v21312_v23  ;;  %v26239_v23 = vand.u32 4294901760, %v26230_v0  ;;  %v22105_v0 = vand.u32 4294901760, %v22097_v6  ;;  %v22120_v58 = vsub.f32 %v3358_v25, %v22110_v18 }
 0x265   : > { %2719 = vmatmul.mubr.f32.gmra.mxu0 %v21734_v38  ;;  %2914 = vmatmul.mubr.f32.gmra.mxu1 %v26237_v40  ;;  %v22122_v40 = vand.u32 4294901760, %v3357_v3 }
 0x266   : > { %3069 = vmatprep.subr.mxu0 %v26058_v60  ;;  %3226 = vmatprep.subr.mxu1 %v26058_v60  ;;  %v3615_v45 = vsub.f32 %v22097_v6, %v22105_v0 }
 0x267   : > { %3073 = vmatpush2.msra.mxu0 %v26238_v36  ;;  %3228 = vmatpush1.msra.mxu1 %v21326_v48  ;;  %v26242_v48 = vand.u32 4294901760, %v21462_v10  ;;  %v26245_v10 = vand.u32 4294901760, %v21734_v38  ;;  %v26249_v38 = vld [vmem:[#allocation38_spill] sm:$0xff] }
 0x268   : > { %3074 = vmatprep.subr.mxu0 %v26058_v60  ;;  %3229 = vmatprep.subr.mxu1 %v26058_v60 }
 0x269   : > { %2725 = vmatprep.mubr.f32.mxu0 %v21753_v63  ;;  %2921 = vmatprep.mubr.f32.mxu1 %v26239_v23  ;;  %v26254_v63 = vld [vmem:[#allocation20_spill] sm:$0xff] }
 0x26a   : > { %3078 = vmatpush2.msra.mxu0 %v26240_v50  ;;  %3231 = vmatpush1.msra.mxu1 %v26175_v1  ;;  %v26250_v1 = vld [vmem:[#allocation72_spill] sm:$0xff]  ;;  %v3616_v50 = vand.u32 4294901760, %v3615_v45 }
 0x26b   : > { %2728 = vmatmul.mubr.f32.gmra.mxu0 %v21763_v54  ;;  %2925 = vmatmul.mubr.f32.gmra.mxu1 %v26241_v37  ;;  %v3622_v37 = vsub.f32 %v22108_v20, %v22117_v44 }
 0x26c   : > { %3079 = vmatprep.subr.mxu0 %v26058_v60  ;;  %3248 = vmatprep.subr.mxu1 %v26058_v60 }
 0x26d   : > { %3083 = vmatpush2.msra.mxu0 %v26242_v48  ;;  %3250 = vmatpush2.msra.mxu1 %v26176_v2  ;;  %v26246_v2 = vand.u32 4294901760, %v26178_v47  ;;  %v26252_v47 = vand.u32 4294901760, %v21781_v31  ;;  %v22129_v48 = vand.u32 4294901760, %v22120_v58 }
 0x26e   : > { %3084 = vmatprep.subr.mxu0 %v26058_v60  ;;  %3251 = vmatprep.subr.mxu1 %v26058_v60 }
 0x26f   : > { %2734 = vmatprep.mubr.f32.mxu0 %v21781_v31  ;;  %2932 = vmatprep.mubr.f32.mxu1 %v26243_v32  ;;  %v26259_v31 = vld [vmem:[#allocation60_spill] sm:$0xff]  ;;  %v22132_v32 = vsub.f32 %v3357_v3, %v22122_v40 }
 0x270   : > { %3088 = vmatpush2.msra.mxu0 %v26244_v22  ;;  %3253 = vmatpush2.msra.mxu1 %v26177_v34  ;;  %v26251_v34 = vand.u32 4294901760, %v21763_v54  ;;  %v26256_v54 = vld [vmem:[#allocation64_spill] sm:$0xff] }
 0x271   : > { %2737 = vmatmul.mubr.f32.gmra.mxu0 %v21791_v15  ;;  %2936 = vmatmul.mubr.f32.gmra.mxu1 %v26245_v10 }
 0x272   : > { %3089 = vmatprep.subr.mxu0 %v26058_v60  ;;  %3254 = vmatprep.subr.mxu1 %v26058_v60 }
 0x273   : > { %3093 = vmatpush2.msra.mxu0 %v26246_v2  ;;  %3256 = vmatpush2.msra.mxu1 %v26179_v8  ;;  %v26255_v8 = vand.u32 4294901760, %v21791_v15  ;;  %v26260_v15 = vld [vmem:[#allocation58_spill] sm:$0xff] }
 0x274   : > { %3094 = vmatprep.subr.mxu0 %v26058_v60  ;;  %3257 = vmatprep.subr.mxu1 %v26058_v60 }
 0x275   : > { %2943 = vmatprep.mubr.f32.mxu1 %v26247_v29  ;;  %3098 = vmatpush2.msra.mxu0 %v26248_v49  ;;  %v3623_v29 = vand.u32 4294901760, %v3622_v37  ;;  %v3629_v49 = vsub.f32 %v22120_v58, %v22129_v48 }
 0x276   : > { %3100 = vmatprep.mubr.f32.mxu0 %v26249_v38  ;;  %3259 = vmatpush2.msra.mxu1 %v26181_v53  ;;  %v26261_v53 = vld [vmem:[#allocation62_spill] sm:$0xff] }
 0x277   : > { %3102 = vmatmul.mubr.f32.vlgmr.msra.gmra.mxu0 %v26250_v1  ;;  %2947 = vmatmul.mubr.f32.gmra.mxu1 %v26251_v34 }
 0x278   : > { %3260 = vmatprep.subr.mxu1 %v26058_v60  ;;  %2954 = vmatprep.mubr.f32.mxu1 %v26252_v47 }
 0x279   : > { %3262 = vmatpush2.msra.mxu1 %v26183_v61  ;;  %3107 = vmatprep.mubr.f32.mxu0 %v26253_v52  ;;  %v26257_v61 = vld [vmem:[#allocation12_spill] sm:$0xff] }
 0x27a   : > { %3263 = vmatprep.subr.mxu1 %v26058_v60  ;;  %17986 = vmatprep.subr.mxu0 %v22093_v4 }
 0x27b   : > { %3265 = vmatpush2.msra.mxu1 %v26186_v33  ;;  %3109 = vmatmul.mubr.f32.gmra.mxu0 %v26254_v63  ;;  %v26258_v33 = vld [vmem:[#allocation55_spill] sm:$0xff] }
 0x27c   : > { %2958 = vmatmul.mubr.f32.gmra.mxu1 %v26255_v8  ;;  %3266 = vmatprep.subr.mxu1 %v26058_v60 }
 0x27d   : > { %3268 = vmatpush2.msra.mxu1 %v26189_v41  ;;  %3114 = vmatprep.mubr.f32.mxu0 %v26256_v54  ;;  %v26262_v41 = vld [vmem:[#allocation52_spill] sm:$0xff] }
 0x27e   : > { %3269 = vmatprep.subr.mxu1 %v26058_v60  ;;  %3273 = vmatprep.mubr.f32.mxu1 %v26249_v38  ;;  %v22141_v38 = vand.u32 4294901760, %v22132_v32 }
 0x27f   : > { %3271 = vmatpush2.msra.mxu1 %v26192_v28  ;;  %3116 = vmatmul.mubr.f32.gmra.mxu0 %v26257_v61  ;;  %v26263_v28 = vld [vmem:[#allocation28_spill] sm:$0xff] }
 0x280   : > { %3275 = vmatmul.mubr.f32.vlgmr.msra.gmra.mxu1 %v26250_v1  ;;  %3121 = vmatprep.mubr.f32.mxu0 %v26258_v33  ;;  %v3630_v1 = vand.u32 4294901760, %v3629_v49  ;;  %v3636_v34 = vsub.f32 %v22132_v32, %v22141_v38 }
 0x281   : > { %3280 = vmatprep.mubr.f32.mxu1 %v26253_v52  ;;  %17987 = vmatpush3.msra.mxu0 %v22093_v4 }
 0x282   : > { %17988 = vmatprep.subr.mxu0 %v22099_v55  ;;  %18012 = vmatprep.subr.mxu1 %v3616_v50 }
 0x283   : > { %3123 = vmatmul.mubr.f32.gmra.mxu0 %v26259_v31  ;;  %18013 = vmatpush3.msra.mxu1 %v3616_v50 }
 0x284   : > { %3282 = vmatmul.mubr.f32.gmra.mxu1 %v26254_v63  ;;  %3128 = vmatprep.mubr.f32.mxu0 %v26260_v15  ;;  %v3637_v63 = vand.u32 4294901760, %v3636_v34 }
 0x285   : > { %3287 = vmatprep.mubr.f32.mxu1 %v26256_v54  ;;  %17989 = vmatpush3.msra.mxu0 %v22099_v55 }
 0x286   : > { %17990 = vmatprep.subr.mxu0 %v22110_v18  ;;  %18014 = vmatprep.subr.mxu1 %v3623_v29 }
 0x287   : > { %3130 = vmatmul.mubr.f32.gmra.mxu0 %v26261_v53  ;;  %18015 = vmatpush3.msra.mxu1 %v3623_v29 }
 0x288   : > { %3289 = vmatmul.mubr.f32.gmra.mxu1 %v26257_v61  ;;  %3135 = vmatprep.mubr.f32.mxu0 %v26262_v41 }
 0x289   : > { %3294 = vmatprep.mubr.f32.mxu1 %v26258_v33  ;;  %17991 = vmatpush3.msra.mxu0 %v22110_v18 }
 0x28a   : > { %17992 = vmatprep.subr.mxu0 %v22122_v40  ;;  %18016 = vmatprep.subr.mxu1 %v3630_v1 }
 0x28b   : > { %3137 = vmatmul.mubr.f32.gmra.mxu0 %v26263_v28  ;;  %18017 = vmatpush3.msra.mxu1 %v3630_v1 }
 0x28c   : > { %3296 = vmatmul.mubr.f32.gmra.mxu1 %v26259_v31  ;;  %3142 = vmatprep.mubr.f32.mxu0 %v26264_v11 }
 0x28d   : > { %3301 = vmatprep.mubr.f32.mxu1 %v26260_v15  ;;  %17993 = vmatpush3.msra.mxu0 %v22122_v40 }
 0x28e   : > { %18038 = vmatprep.subr.mxu0 %v22097_v6  ;;  %18018 = vmatprep.subr.mxu1 %v3637_v63 }
 0x28f   : > { %3144 = vmatmul.mubr.f32.gmra.mxu0 %v21629_v51  ;;  %18019 = vmatpush3.msra.mxu1 %v3637_v63 }
 0x290   : > { %3303 = vmatmul.mubr.f32.gmra.mxu1 %v26261_v53  ;;  %3149 = vmatprep.mubr.f32.mxu0 %v21649_v7 }
 0x291   : > { %3308 = vmatprep.mubr.f32.mxu1 %v26262_v41  ;;  %18064 = vmatprep.subr.mxu1 %v22093_v4 }
 0x293   : > { %3151 = vmatmul.mubr.f32.gmra.mxu0 %v21658_v62 }
 0x294   : > { %3310 = vmatmul.mubr.f32.gmra.mxu1 %v26263_v28  ;;  %3156 = vmatprep.mubr.f32.mxu0 %v26265_v21 }
 0x295   : > { %3315 = vmatprep.mubr.f32.mxu1 %v26264_v11 }
 0x297   : > { %3158 = vmatmul.mubr.f32.gmra.mxu0 %v26266_v26 }
 0x298   : > { %3317 = vmatmul.mubr.f32.gmra.mxu1 %v21629_v51  ;;  %3163 = vmatprep.mubr.f32.mxu0 %v26267_v39  ;;  %v26272_v51 = vld [vmem:[#allocation82_spill] sm:$0xff] }
 0x299   : > { %3322 = vmatprep.mubr.f32.mxu1 %v21649_v7 }
 0x29b   : > { %3165 = vmatmul.mubr.f32.gmra.mxu0 %v26268_v35 }
 0x29c   : > { %3324 = vmatmul.mubr.f32.gmra.mxu1 %v21658_v62  ;;  %3170 = vmatprep.mubr.f32.mxu0 %v26269_v17 }
 0x29d   : > { %3329 = vmatprep.mubr.f32.mxu1 %v26265_v21 }
 0x29f   : > { %3172 = vmatmul.mubr.f32.gmra.mxu0 %v26270_v12 }
 0x2a0   : > { %3331 = vmatmul.mubr.f32.gmra.mxu1 %v26266_v26  ;;  %3177 = vmatprep.mubr.f32.mxu0 %v26271_v13 }
 0x2a1   : > { %3336 = vmatprep.mubr.f32.mxu1 %v26267_v39 }
 0x2a3   : > { %3179 = vmatmul.mubr.f32.gmra.mxu0 %v26272_v51 }
 0x2a4   : > { %3338 = vmatmul.mubr.f32.gmra.mxu1 %v26268_v35 }
 0x2a5   : > { %3343 = vmatprep.mubr.f32.mxu1 %v26269_v17 }
 0x2a8   : > { %3345 = vmatmul.mubr.f32.gmra.mxu1 %v26270_v12 }
 0x2a9   : > { %3350 = vmatprep.mubr.f32.mxu1 %v26271_v13  ;;  %v2083_v7 = vpop.f32.mrf.mxu0 }
 0x2ab   : > { %v2085_v62 = vpop.f32.mrf.mxu0 }
 0x2ac   : > { %3352 = vmatmul.mubr.f32.gmra.mxu1 %v26272_v51 }
 0x2ae   : > { %v2098_v56 = vpop.f32.mrf.mxu0 }
 0x2b0   : > { %v2100_v9 = vpop.f32.mrf.mxu0 }
 0x2b3   : > { %v2440_v27 = vpop.f32.mrf.mxu1  ;;  %v2113_v16 = vpop.f32.mrf.mxu0 }
 0x2b4   : > { %v22091_v5 = vadd.f32 %v2440_v27, %v2083_v7 }
 0x2b5   : > { %v2442_v57 = vpop.f32.mrf.mxu1  ;;  %v2115_v14 = vpop.f32.mrf.mxu0 }
 0x2b9   : > { %v2128_v24 = vpop.f32.mrf.mxu0  ;;  %v2447_v19 = vpop.f32.mrf.mxu1 }
 0x2ba   : > { %v22101_v59 = vadd.f32 %v2447_v19, %v2098_v56 }
 0x2bb   : > { %v2130_v46 = vpop.f32.mrf.mxu0  ;;  %v2449_v43 = vpop.f32.mrf.mxu1 }
 0x2bf   : > { %v2143_v36 = vpop.f32.mrf.mxu0  ;;  %v2454_v23 = vpop.f32.mrf.mxu1 }
 0x2c0   : > { %v22135_v22 = vadd.f32 %v2454_v23, %v2113_v16 }
 0x2c1   : > { %v2145_v10 = vpop.f32.mrf.mxu0  ;;  %v2456_v2 = vpop.f32.mrf.mxu1 }
 0x2c5   : > { %v2158_v47 = vpop.f32.mrf.mxu0  ;;  %v2461_v52 = vpop.f32.mrf.mxu1 }
 0x2c6   : > { %v2462_v8 = vadd.f32 %v2461_v52, %v2128_v24 }
 0x2c7   : > { %v2160_v54 = vpop.f32.mrf.mxu0  ;;  %v2463_v61 = vpop.f32.mrf.mxu1 }
 0x2cb   : > { %v2173_v33 = vpop.f32.mrf.mxu0  ;;  %v2468_v31 = vpop.f32.mrf.mxu1 }
 0x2cc   : > { %v2469_v15 = vadd.f32 %v2468_v31, %v2143_v36 }
 0x2cd   : > { %v2175_v53 = vpop.f32.mrf.mxu0  ;;  %v2470_v41 = vpop.f32.mrf.mxu1 }
 0x2d1   : > { %v2188_v28 = vpop.f32.mrf.mxu0  ;;  %v2475_v11 = vpop.f32.mrf.mxu1 }
 0x2d2   : > { %v2476_v21 = vadd.f32 %v2475_v11, %v2158_v47 }
 0x2d3   : > { %v2190_v26 = vpop.f32.mrf.mxu0  ;;  %v2477_v39 = vpop.f32.mrf.mxu1 }
 0x2d7   : > { %v2203_v35 = vpop.f32.mrf.mxu0  ;;  %v2482_v17 = vpop.f32.mrf.mxu1 }
 0x2d8   : > { %v22147_v12 = vadd.f32 %v2482_v17, %v2173_v33 }
 0x2d9   : > { %v2205_v13 = vpop.f32.mrf.mxu0  ;;  %v2484_v51 = vpop.f32.mrf.mxu1 }
 0x2dd   : > { %v2218_v7 = vpop.f32.mrf.mxu0  ;;  %v2489_v62 = vpop.f32.mrf.mxu1 }
 0x2de   : > { %v22149_v56 = vadd.f32 %v2489_v62, %v2188_v28 }
 0x2df   : > { %v2220_v9 = vpop.f32.mrf.mxu0  ;;  %v2491_v27 = vpop.f32.mrf.mxu1 }
 0x2e3   : > { %v2233_v16 = vpop.f32.mrf.mxu0  ;;  %v2496_v57 = vpop.f32.mrf.mxu1 }
 0x2e4   : > { %v22151_v14 = vadd.f32 %v2496_v57, %v2203_v35 }
 0x2e5   : > { %v2235_v42 = vpop.f32.mrf.mxu0  ;;  %v2498_v24 = vpop.f32.mrf.mxu1 }
 0x2e9   : > { %v2248_v30 = vpop.f32.mrf.mxu0  ;;  %v2503_v19 = vpop.f32.mrf.mxu1 }
 0x2ea   : > { %v22153_v46 = vadd.f32 %v2503_v19, %v2218_v7 }
 0x2eb   : > { %v2250_v25 = vpop.f32.mrf.mxu0  ;;  %v2505_v43 = vpop.f32.mrf.mxu1 }
 0x2ef   : > { %v2639_v3 = vpop.f32.mrf.mxu0  ;;  %v2510_v45 = vpop.f32.mrf.mxu1 }
 0x2f0   : > { %v2640_v36 = vadd.f32 %v2639_v3, %v22091_v5  ;;  %v22156_v23 = vadd.f32 %v2510_v45, %v2233_v16 }
 0x2f1   : > { %v2641_v50 = vpop.f32.mrf.mxu0  ;;  %v2512_v37 = vpop.f32.mrf.mxu1 }
 0x2f5   : > { %v2517_v10 = vpop.f32.mrf.mxu1  ;;  %v2648_v29 = vpop.f32.mrf.mxu0 }
 0x2f6   : > { %v22158_v2 = vadd.f32 %v2517_v10, %v2248_v30  ;;  %v2649_v49 = vadd.f32 %v2648_v29, %v22101_v59 }
 0x2f7   : > { %v2519_v1 = vpop.f32.mrf.mxu1  ;;  %v2650_v34 = vpop.f32.mrf.mxu0 }
 0x2fb   : > { %v2838_v47 = vpop.f32.mrf.mxu1  ;;  %v2657_v52 = vpop.f32.mrf.mxu0 }
 0x2fc   : > { %v2839_v63 = vadd.f32 %v2838_v47, %v2640_v36  ;;  %v22162_v54 = vadd.f32 %v2657_v52, %v22135_v22 }
 0x2fd   : > { %v2840_v61 = vpop.f32.mrf.mxu1  ;;  %v2659_v5 = vpop.f32.mrf.mxu0 }
 0x301   : > { %v2666_v33 = vpop.f32.mrf.mxu0  ;;  %v2849_v53 = vpop.f32.mrf.mxu1 }
 0x302   : > { %v22164_v31 = vadd.f32 %v2666_v33, %v2462_v8 }
 0x303   : > { %v2668_v41 = vpop.f32.mrf.mxu0  ;;  %v2851_v28 = vpop.f32.mrf.mxu1 }
 0x307   : > { %v2675_v11 = vpop.f32.mrf.mxu0  ;;  %v2860_v59 = vpop.f32.mrf.mxu1 }
 0x308   : > { %v22166_v26 = vadd.f32 %v2675_v11, %v2469_v15 }
 0x309   : > { %v2677_v39 = vpop.f32.mrf.mxu0  ;;  %v2862_v35 = vpop.f32.mrf.mxu1 }
 0x30d   : > { %v2684_v17 = vpop.f32.mrf.mxu0  ;;  %v2871_v51 = vpop.f32.mrf.mxu1 }
 0x30e   : > { %v22168_v13 = vadd.f32 %v2684_v17, %v2476_v21 }
 0x30f   : > { %v2686_v22 = vpop.f32.mrf.mxu0  ;;  %v2873_v7 = vpop.f32.mrf.mxu1 }
 0x310   : > { %v2850_v7 = vadd.f32 %v2849_v53, %v2649_v49 }
 0x313   : > { %v22170_v62 = vpop.f32.mrf.mxu0  ;;  %v22172_v9 = vpop.f32.mrf.mxu1 }
 0x315   : > { %v2695_v8 = vpop.f32.mrf.mxu0  ;;  %v2884_v27 = vpop.f32.mrf.mxu1 }
 0x319   : > { %v22174_v16 = vpop.f32.mrf.mxu0  ;;  %v22176_v57 = vpop.f32.mrf.mxu1 }
 0x31b   : > { %v2704_v15 = vpop.f32.mrf.mxu0  ;;  %v2895_v42 = vpop.f32.mrf.mxu1 }
 0x31f   : > { %v22178_v24 = vpop.f32.mrf.mxu0  ;;  %v22180_v30 = vpop.f32.mrf.mxu1 }
 0x321   : > { %v2713_v21 = vpop.f32.mrf.mxu0  ;;  %v2906_v19 = vpop.f32.mrf.mxu1 }
 0x325   : > { %v22182_v25 = vpop.f32.mrf.mxu0  ;;  %v22184_v43 = vpop.f32.mrf.mxu1 }
 0x327   : > { %v2722_v3 = vpop.f32.mrf.mxu0  ;;  %v2917_v45 = vpop.f32.mrf.mxu1 }
 0x32b   : > { %v22186_v36 = vpop.f32.mrf.mxu0  ;;  %v22188_v50 = vpop.f32.mrf.mxu1 }
 0x32d   : > { %v2731_v37 = vpop.f32.mrf.mxu0  ;;  %v2928_v10 = vpop.f32.mrf.mxu1 }
 0x32e   : > { %v2861_v37 = vadd.f32 %v2860_v59, %v22162_v54  ;;  %v2872_v54 = vadd.f32 %v2871_v51, %v22164_v31 }
 0x331   : > { %v22190_v29 = vpop.f32.mrf.mxu0  ;;  %v22192_v1 = vpop.f32.mrf.mxu1 }
 0x333   : > { %v2740_v34 = vpop.f32.mrf.mxu0  ;;  %v2939_v47 = vpop.f32.mrf.mxu1 }
 0x337   : > { %v3103_v52 = vpop.f32.mrf.mxu0  ;;  %v22194_v61 = vpop.f32.mrf.mxu1 }
 0x338   : > { %v3104_v35 = vadd.f32 %v3103_v52, %v2839_v63 }
 0x339   : > { %v3105_v5 = vpop.f32.mrf.mxu0  ;;  %v2950_v33 = vpop.f32.mrf.mxu1 }
 0x33b   : > { %v3110_v41 = vpop.f32.mrf.mxu0 }
 0x33c   : > { %v22196_v28 = vpop.f32.mrf.mxu1  ;;  %v3111_v42 = vadd.f32 %v3110_v41, %v2850_v7 }
 0x33d   : > { %v3112_v11 = vpop.f32.mrf.mxu0 }
 0x33e   : > { %v2961_v39 = vpop.f32.mrf.mxu1 }
 0x33f   : > { %v3117_v17 = vpop.f32.mrf.mxu0 }
 0x340   : > { %v3276_v22 = vpop.f32.mrf.mxu1  ;;  %v3118_v53 = vadd.f32 %v3117_v17, %v2861_v37 }
 0x341   : > { %v22198_v8 = vadd.f32 %v3276_v22, %v3104_v35  ;;  %v3119_v27 = vpop.f32.mrf.mxu0 }
 0x342   : > { %v3278_v15 = vpop.f32.mrf.mxu1 }
 0x343   : > { %26273 = vst [vmem:[#allocation24_spill] sm:$0xff] %v22198_v8  ;;  %v3363_v21 = vsel %vm3361_vm1, %v22198_v8, 0  ;;  %v3124_v19 = vpop.f32.mrf.mxu0 }
 0x344   : > { %v22202_v3 = vand.u32 4294901760, %v3363_v21  ;;  %v3283_v45 = vpop.f32.mrf.mxu1  ;;  %v3125_v22 = vadd.f32 %v3124_v19, %v2872_v54 }
 0x345   : > { %v22205_v10 = vadd.f32 %v3283_v45, %v3111_v42  ;;  %v3126_v63 = vpop.f32.mrf.mxu0 }
 0x346   : > { %26274 = vst [vmem:[#allocation61_spill] sm:$0xff] %v22202_v3  ;;  %v22208_v34 = vsub.f32 %v3363_v21, %v22202_v3  ;;  %v3285_v49 = vpop.f32.mrf.mxu1  ;;  %18020 = vmatprep.mubr.f32.mxu1 %v22202_v3  ;;  %v2883_v21 = vadd.f32 %v22172_v9, %v22166_v26 }
 0x347   : > { %26275 = vst [vmem:[#allocation70_spill] sm:$0xff] %v22205_v10  ;;  %v3366_v47 = vsel %vm3361_vm1, %v22205_v10, 0  ;;  %v3131_v52 = vpop.f32.mrf.mxu0 }
 0x348   : > { %26276 = vst [vmem:[#allocation53_spill] sm:$0xff] %v22208_v34  ;;  %v22213_v5 = vand.u32 4294901760, %v3366_v47  ;;  %v3290_v33 = vpop.f32.mrf.mxu1  ;;  %v22216_v41 = vand.u32 4294901760, %v22208_v34 }
 0x349   : > { %v22219_v59 = vadd.f32 %v3290_v33, %v3118_v53  ;;  %v3133_v11 = vpop.f32.mrf.mxu0  ;;  %v3132_v53 = vadd.f32 %v3131_v52, %v2883_v21  ;;  %v2694_v21 = vadd.f32 %v22170_v62, %v22147_v12 }
 0x34a   : > { %26277 = vst [vmem:[#allocation63_spill] sm:$0xff] %v22213_v5  ;;  %26278 = vst [vmem:[#allocation40_spill] sm:$0xff] %v22216_v41  ;;  %v22222_v39 = vsub.f32 %v3366_v47, %v22213_v5  ;;  %v3292_v35 = vpop.f32.mrf.mxu1  ;;  %18021 = vmatmul.mubr.f32.vlgmr.msra.gmra.mxu1 %v22213_v5  ;;  %v3470_v17 = vsub.f32 %v22208_v34, %v22216_v41 }
 0x34b   : > { %26279 = vst [vmem:[#allocation21_spill] sm:$0xff] %v22219_v59  ;;  %v3369_v7 = vsel %vm3361_vm1, %v22219_v59, 0  ;;  %v3138_v27 = vpop.f32.mrf.mxu0  ;;  %18065 = vmatpush3.msra.mxu1 %v22093_v4  ;;  %v2894_v35 = vadd.f32 %v22176_v57, %v22168_v13  ;;  %v2905_v12 = vadd.f32 %v22180_v30, %v2694_v21 }
 0x34c   : > { %26280 = vst [vmem:[#allocation15_spill] sm:$0xff] %v22222_v39  ;;  %v22231_v31 = vand.u32 4294901760, %v22222_v39  ;;  %v22233_v51 = vand.u32 4294901760, %v3369_v7  ;;  %v3297_v15 = vpop.f32.mrf.mxu1  ;;  %v22235_v42 = vand.u32 4294901760, %v3470_v17  ;;  %18066 = vmatprep.subr.mxu1 %v22099_v55 }
 0x34d   : > { %v22240_v19 = vadd.f32 %v3297_v15, %v3125_v22  ;;  %v3140_v45 = vpop.f32.mrf.mxu0  ;;  %18067 = vmatpush3.msra.mxu1 %v22099_v55  ;;  %v3139_v13 = vadd.f32 %v3138_v27, %v2894_v35 }
 0x34e   : > { %26281 = vst [vmem:[#allocation57_spill] sm:$0xff] %v22231_v31  ;;  %26282 = vst [vmem:[#allocation11_spill] sm:$0xff] %v22233_v51  ;;  %v3480_v37 = vsub.f32 %v22222_v39, %v22231_v31  ;;  %v22246_v63 = vsub.f32 %v3369_v7, %v22233_v51  ;;  %v3299_v49 = vpop.f32.mrf.mxu1  ;;  %17994 = vmatprep.mubr.f32.mxu0 %v22235_v42  ;;  %18023 = vmatprep.mubr.f32.mxu1 %v22233_v51 }
 0x34f   : > { %26283 = vst [vmem:[#allocation68_spill] sm:$0xff] %v22235_v42  ;;  %26284 = vst [vmem:[#allocation59_spill] sm:$0xff] %v22240_v19  ;;  %v3372_v26 = vsel %vm3361_vm1, %v22240_v19, 0  ;;  %v3145_v9 = vpop.f32.mrf.mxu0  ;;  %18068 = vmatprep.subr.mxu1 %v22110_v18 }
 0x350   : > { %26285 = vst [vmem:[#allocation48_spill] sm:$0xff] %v22246_v63  ;;  %v22253_v47 = vand.u32 4294901760, %v3480_v37  ;;  %v22255_v33 = vand.u32 4294901760, %v3372_v26  ;;  %v3304_v54 = vpop.f32.mrf.mxu1  ;;  %v22258_v11 = vand.u32 4294901760, %v22246_v63  ;;  %18069 = vmatpush3.msra.mxu1 %v22110_v18  ;;  %v3146_v30 = vadd.f32 %v3145_v9, %v2905_v12 }
 0x351   : > { %v22263_v52 = vadd.f32 %v3304_v54, %v3132_v53  ;;  %v3147_v17 = vpop.f32.mrf.mxu0  ;;  %18070 = vmatprep.subr.mxu1 %v22122_v40 }
 0x352   : > { %26286 = vst [vmem:[#allocation65_spill] sm:$0xff] %v22253_v47  ;;  %26287 = vst [vmem:[#allocation51_spill] sm:$0xff] %v22255_v33  ;;  %v22267_v22 = vsub.f32 %v3372_v26, %v22255_v33  ;;  %v3306_v7 = vpop.f32.mrf.mxu1  ;;  %17995 = vmatmul.mubr.f32.vlgmr.msra.gmra.mxu0 %v22253_v47  ;;  %18024 = vmatmul.mubr.f32.gmra.mxu1 %v22255_v33  ;;  %v3490_v15 = vsub.f32 %v22246_v63, %v22258_v11 }
 0x353   : > { %26288 = vst [vmem:[#allocation56_spill] sm:$0xff] %v22258_v11  ;;  %26289 = vst [vmem:[#allocation47_spill] sm:$0xff] %v22263_v52  ;;  %v3375_v57 = vsel %vm3361_vm1, %v22263_v52, 0  ;;  %v3152_v45 = vpop.f32.mrf.mxu0  ;;  %18039 = vmatpush3.msra.mxu0 %v22097_v6  ;;  %18071 = vmatpush3.msra.mxu1 %v22122_v40  ;;  %v2703_v17 = vadd.f32 %v22174_v16, %v22149_v56 }
 0x354   : > { %26290 = vst [vmem:[#allocation54_spill] sm:$0xff] %v22267_v22  ;;  %v22280_v37 = vand.u32 4294901760, %v22267_v22  ;;  %v22282_v49 = vand.u32 4294901760, %v3375_v57  ;;  %v3311_v53 = vpop.f32.mrf.mxu1  ;;  %v22284_v26 = vand.u32 4294901760, %v3490_v15  ;;  %18040 = vmatprep.subr.mxu0 %v22108_v20  ;;  %18116 = vmatprep.subr.mxu1 %v22093_v4 }
 0x355   : > { %v22289_v62 = vadd.f32 %v3311_v53, %v3139_v13  ;;  %v3154_v27 = vpop.f32.mrf.mxu0  ;;  %18041 = vmatpush3.msra.mxu0 %v22108_v20  ;;  %v2916_v53 = vadd.f32 %v22184_v43, %v2703_v17 }
 0x356   : > { %26291 = vst [vmem:[#allocation73_spill] sm:$0xff] %v22280_v37  ;;  %26292 = vst [vmem:[#allocation50_spill] sm:$0xff] %v22282_v49  ;;  %v22293_v6 = vsub.f32 %v3375_v57, %v22282_v49  ;;  %v3313_v54 = vpop.f32.mrf.mxu1  ;;  %17997 = vmatprep.mubr.f32.mxu0 %v22284_v26  ;;  %18026 = vmatprep.mubr.f32.mxu1 %v22282_v49  ;;  %v3500_v35 = vsub.f32 %v22267_v22, %v22280_v37 }
 0x357   : > { %26293 = vst [vmem:[#allocation49_spill] sm:$0xff] %v22284_v26  ;;  %26294 = vst [vmem:[#allocation26_spill] sm:$0xff] %v22289_v62  ;;  %v3378_v7 = vsel %vm3361_vm1, %v22289_v62, 0  ;;  %v3159_v15 = vpop.f32.mrf.mxu0  ;;  %18042 = vmatprep.subr.mxu0 %v22120_v58  ;;  %v3153_v43 = vadd.f32 %v3152_v45, %v2916_v53 }
 0x358   : > { %26295 = vst [vmem:[#allocation71_spill] sm:$0xff] %v22293_v6  ;;  %v22304_v20 = vand.u32 4294901760, %v3378_v7  ;;  %v3318_v21 = vpop.f32.mrf.mxu1  ;;  %v22306_v13 = vand.u32 4294901760, %v3500_v35  ;;  %v22309_v57 = vand.u32 4294901760, %v22293_v6  ;;  %18043 = vmatpush3.msra.mxu0 %v22120_v58  ;;  %v2712_v58 = vadd.f32 %v22178_v24, %v22151_v14 }
 0x359   : > { %v22313_v56 = vadd.f32 %v3318_v21, %v3146_v30  ;;  %v3161_v16 = vpop.f32.mrf.mxu0  ;;  %18044 = vmatprep.subr.mxu0 %v22132_v32 }
 0x35a   : > { %26296 = vst [vmem:[#allocation46_spill] sm:$0xff] %v22304_v20  ;;  %26297 = vst [vmem:[#allocation30_spill] sm:$0xff] %v22306_v13  ;;  %v22317_v9 = vsub.f32 %v3378_v7, %v22304_v20  ;;  %v3320_v12 = vpop.f32.mrf.mxu1  ;;  %17998 = vmatmul.mubr.f32.gmra.mxu0 %v22306_v13  ;;  %18027 = vmatmul.mubr.f32.gmra.mxu1 %v22304_v20  ;;  %v3510_v27 = vsub.f32 %v22293_v6, %v22309_v57 }
 0x35b   : > { %26298 = vst [vmem:[#allocation69_spill] sm:$0xff] %v22309_v57  ;;  %26299 = vst [vmem:[#allocation74_spill] sm:$0xff] %v22313_v56  ;;  %v3381_v54 = vsel %vm3361_vm1, %v22313_v56, 0  ;;  %v3166_v35 = vpop.f32.mrf.mxu0  ;;  %18045 = vmatpush3.msra.mxu0 %v22132_v32  ;;  %v2927_v16 = vadd.f32 %v22188_v50, %v2712_v58  ;;  %v2721_v12 = vadd.f32 %v22182_v25, %v22153_v46 }
 0x35c   : > { %26300 = vst [vmem:[#allocation75_spill] sm:$0xff] %v22317_v9  ;;  %v22329_v17 = vand.u32 4294901760, %v22317_v9  ;;  %v22331_v30 = vand.u32 4294901760, %v3381_v54  ;;  %v3325_v7 = vpop.f32.mrf.mxu1  ;;  %v22333_v21 = vand.u32 4294901760, %v3510_v27  ;;  %18090 = vmatprep.subr.mxu0 %v22105_v0 }
 0x35d   : > { %v22337_v14 = vadd.f32 %v3325_v7, %v3153_v43  ;;  %v3168_v24 = vpop.f32.mrf.mxu0  ;;  %v3160_v27 = vadd.f32 %v3159_v15, %v2927_v16  ;;  %v2730_v16 = vadd.f32 %v22186_v36, %v22156_v23 }
 0x35e   : > { %26301 = vst [vmem:[#allocation16_spill] sm:$0xff] %v22329_v17  ;;  %26302 = vst [vmem:[#allocation38_spill] sm:$0xff] %v22331_v30  ;;  %v22340_v45 = vsub.f32 %v3381_v54, %v22331_v30  ;;  %v3327_v53 = vpop.f32.mrf.mxu1  ;;  %18000 = vmatprep.mubr.f32.mxu0 %v22333_v21  ;;  %18029 = vmatprep.mubr.f32.mxu1 %v22331_v30  ;;  %v3520_v32 = vsub.f32 %v22317_v9, %v22329_v17 }
 0x35f   : > { %26303 = vst [vmem:[#allocation72_spill] sm:$0xff] %v22333_v21  ;;  %26304 = vst [vmem:[#allocation67_spill] sm:$0xff] %v22337_v14  ;;  %v3384_v50 = vsel %vm3361_vm1, %v22337_v14, 0  ;;  %v3173_v58 = vpop.f32.mrf.mxu0  ;;  %v2938_v53 = vadd.f32 %v22192_v1, %v2721_v12 }
 0x360   : > { %26305 = vst [vmem:[#allocation20_spill] sm:$0xff] %v22340_v45  ;;  %v22350_v43 = vand.u32 4294901760, %v3384_v50  ;;  %v3332_v54 = vpop.f32.mrf.mxu1  ;;  %v22352_v7 = vand.u32 4294901760, %v3520_v32  ;;  %v22355_v24 = vand.u32 4294901760, %v22340_v45 }
 0x361   : > { %v22358_v56 = vadd.f32 %v3332_v54, %v3160_v27  ;;  %v3175_v52 = vpop.f32.mrf.mxu0  ;;  %v3167_v32 = vadd.f32 %v3166_v35, %v2938_v53  ;;  %v2739_v53 = vadd.f32 %v22190_v29, %v22158_v2 }
 0x362   : > { %26306 = vst [vmem:[#allocation64_spill] sm:$0xff] %v22350_v43  ;;  %26307 = vst [vmem:[#allocation12_spill] sm:$0xff] %v22352_v7  ;;  %v22361_v46 = vsub.f32 %v3384_v50, %v22350_v43  ;;  %v3334_v25 = vpop.f32.mrf.mxu1  ;;  %18001 = vmatmul.mubr.f32.gmra.mxu0 %v22352_v7  ;;  %18030 = vmatmul.mubr.f32.gmra.mxu1 %v22350_v43  ;;  %v3530_v15 = vsub.f32 %v22340_v45, %v22355_v24 }
 0x363   : > { %26308 = vst [vmem:[#allocation55_spill] sm:$0xff] %v22355_v24  ;;  %26309 = vst [vmem:[#allocation60_spill] sm:$0xff] %v22358_v56  ;;  %v3387_v1 = vsel %vm3361_vm1, %v22358_v56, 0  ;;  %v3180_v12 = vpop.f32.mrf.mxu0  ;;  %v2949_v25 = vadd.f32 %v22194_v61, %v2730_v16 }
 0x364   : > { %26310 = vst [vmem:[#allocation58_spill] sm:$0xff] %v22361_v46  ;;  %v22372_v52 = vand.u32 4294901760, %v22361_v46  ;;  %v22374_v27 = vand.u32 4294901760, %v3387_v1  ;;  %v3339_v50 = vpop.f32.mrf.mxu1  ;;  %v22376_v54 = vand.u32 4294901760, %v3530_v15 }
 0x365   : > { %v22379_v14 = vadd.f32 %v3339_v50, %v3167_v32  ;;  %v3182_v62 = vpop.f32.mrf.mxu0  ;;  %v3174_v15 = vadd.f32 %v3173_v58, %v2949_v25  ;;  %v2960_v50 = vadd.f32 %v22196_v28, %v2739_v53 }
 0x366   : > { %26311 = vst [vmem:[#allocation62_spill] sm:$0xff] %v22372_v52  ;;  %26312 = vst [vmem:[#allocation52_spill] sm:$0xff] %v22374_v27  ;;  %v22382_v23 = vsub.f32 %v3387_v1, %v22374_v27  ;;  %v3341_v36 = vpop.f32.mrf.mxu1  ;;  %18003 = vmatprep.mubr.f32.mxu0 %v22376_v54  ;;  %18032 = vmatprep.mubr.f32.mxu1 %v22374_v27  ;;  %v3540_v35 = vsub.f32 %v22361_v46, %v22372_v52 }
 0x367   : > { %26313 = vst [vmem:[#allocation28_spill] sm:$0xff] %v22376_v54  ;;  %26314 = vst [vmem:[#allocation27_spill] sm:$0xff] %v22379_v14  ;;  %v3390_v61 = vsel %vm3361_vm1, %v22379_v14, 0  ;;  %v3181_v58 = vadd.f32 %v3180_v12, %v2960_v50 }
 0x368   : > { %26315 = vst [vmem:[#allocation76_spill] sm:$0xff] %v22382_v23  ;;  %v22392_v16 = vand.u32 4294901760, %v3390_v61  ;;  %v3346_v62 = vpop.f32.mrf.mxu1  ;;  %v22394_v32 = vand.u32 4294901760, %v3540_v35  ;;  %v22397_v1 = vand.u32 4294901760, %v22382_v23 }
 0x369   : > { %v22400_v36 = vadd.f32 %v3346_v62, %v3174_v15 }
 0x36a   : > { %26316 = vst [vmem:[#allocation77_spill] sm:$0xff] %v22392_v16  ;;  %26317 = vst [vmem:[#allocation78_spill] sm:$0xff] %v22394_v32  ;;  %v22403_v56 = vsub.f32 %v3390_v61, %v22392_v16  ;;  %v3348_v2 = vpop.f32.mrf.mxu1  ;;  %18004 = vmatmul.mubr.f32.gmra.mxu0 %v22394_v32  ;;  %18033 = vmatmul.mubr.f32.gmra.mxu1 %v22392_v16  ;;  %v3550_v29 = vsub.f32 %v22382_v23, %v22397_v1 }
 0x36b   : > { %26318 = vst [vmem:[#allocation79_spill] sm:$0xff] %v22397_v1  ;;  %26319 = vst [vmem:[#allocation66_spill] sm:$0xff] %v22400_v36  ;;  %v3393_v25 = vsel %vm3361_vm1, %v22400_v36, 0 }
 0x36c   : > { %26320 = vst [vmem:[#allocation80_spill] sm:$0xff] %v22403_v56  ;;  %v22412_v35 = vand.u32 4294901760, %v22403_v56  ;;  %v22414_v28 = vand.u32 4294901760, %v3393_v25  ;;  %v3353_v53 = vpop.f32.mrf.mxu1  ;;  %v22416_v15 = vand.u32 4294901760, %v3550_v29 }
 0x36d   : > { %v22418_v61 = vadd.f32 %v3353_v53, %v3181_v58 }
 0x36e   : > { %26321 = vst [vmem:[#allocation81_spill] sm:$0xff] %v22412_v35  ;;  %26322 = vst [vmem:[#allocation82_spill] sm:$0xff] %v22414_v28  ;;  %v22421_v62 = vsub.f32 %v3393_v25, %v22414_v28  ;;  %v3355_v2 = vpop.f32.mrf.mxu1  ;;  %18006 = vmatprep.mubr.f32.mxu0 %v22416_v15  ;;  %18035 = vmatprep.mubr.f32.mxu1 %v22414_v28  ;;  %v3560_v12 = vsub.f32 %v22403_v56, %v22412_v35 }
 0x36f   : > { %26323 = vst [vmem:[#allocation83_spill] sm:$0xff] %v22416_v15  ;;  %26324 = vst [vmem:[#allocation84_spill] sm:$0xff] %v22418_v61  ;;  %v3396_v50 = vsel %vm3361_vm1, %v22418_v61, 0 }
 0x370   : > { %26325 = vst [vmem:[#allocation85_spill] sm:$0xff] %v22421_v62  ;;  %v22429_v36 = vand.u32 4294901760, %v3396_v50  ;;  %v22431_v29 = vand.u32 4294901760, %v3560_v12  ;;  %v22434_v58 = vand.u32 4294901760, %v22421_v62 }
 0x372   : > { %26326 = vst [vmem:[#allocation86_spill] sm:$0xff] %v22429_v36  ;;  %26327 = vst [vmem:[#allocation87_spill] sm:$0xff] %v22431_v29  ;;  %v22437_v25 = vsub.f32 %v3396_v50, %v22429_v36  ;;  %18007 = vmatmul.mubr.f32.gmra.mxu0 %v22431_v29  ;;  %18036 = vmatmul.mubr.f32.gmra.mxu1 %v22429_v36  ;;  %v3570_v53 = vsub.f32 %v22421_v62, %v22434_v58 }
 0x373   : > { %26328 = vst [vmem:[#allocation88_spill] sm:$0xff] %v22434_v58  ;;  %18072 = vmatprep.mubr.f32.mxu1 %v22216_v41 }
 0x374   : > { %26329 = vst [vmem:[#allocation89_spill] sm:$0xff] %v22437_v25  ;;  %v22445_v2 = vand.u32 4294901760, %v22437_v25  ;;  %v22447_v12 = vand.u32 4294901760, %v3570_v53 }
 0x376   : > { %26330 = vst [vmem:[#allocation90_spill] sm:$0xff] %v22445_v2  ;;  %26331 = vst [vmem:[#allocation91_spill] sm:$0xff] %v22447_v12  ;;  %18009 = vmatprep.mubr.f32.mxu0 %v22447_v12  ;;  %18073 = vmatmul.mubr.f32.vlgmr.msra.gmra.mxu1 %v22231_v31  ;;  %v3580_v50 = vsub.f32 %v22437_v25, %v22445_v2 }
 0x377   : > { %18075 = vmatprep.mubr.f32.mxu1 %v22258_v11  ;;  %18117 = vmatpush3.msra.mxu1 %v22093_v4  ;;  %v4356_v4 = vld [vmem:[#allocation2 + $0x180] sm:$0xff] }
 0x378   : > { %v22455_v61 = vand.u32 4294901760, %v3580_v50  ;;  %18118 = vmatprep.subr.mxu1 %v22099_v55 }
 0x379   : > { %18119 = vmatpush3.msra.mxu1 %v22099_v55  ;;  %v4382_v55 = vsel %vm4380_vm2, %v4356_v4, 0 }
 0x37a   : > { %26332 = vst [vmem:[#allocation92_spill] sm:$0xff] %v22455_v61  ;;  %18010 = vmatmul.mubr.f32.gmra.mxu0 %v22455_v61  ;;  %18076 = vmatmul.mubr.f32.gmra.mxu1 %v22280_v37 }
 0x37b   : > { %18046 = vmatprep.mubr.f32.mxu0 %v22208_v34  ;;  %18078 = vmatprep.mubr.f32.mxu1 %v22309_v57 }
 0x37c   : > { %18120 = vmatprep.subr.mxu1 %v22110_v18 }
 0x37d   : > { %18121 = vmatpush3.msra.mxu1 %v22110_v18 }
 0x37e   : > { %18047 = vmatmul.mubr.f32.vlgmr.msra.gmra.mxu0 %v22222_v39  ;;  %18079 = vmatmul.mubr.f32.gmra.mxu1 %v22329_v17 }
 0x37f   : > { %18049 = vmatprep.mubr.f32.mxu0 %v22246_v63  ;;  %18081 = vmatprep.mubr.f32.mxu1 %v22355_v24 }
 0x380   : > { %18091 = vmatpush3.msra.mxu0 %v22105_v0  ;;  %18122 = vmatprep.subr.mxu1 %v22122_v40  ;;  %v22517_v0 = vand.u32 4294901760, %v4382_v55 }
 0x381   : > { %18092 = vmatprep.subr.mxu0 %v22117_v44  ;;  %18123 = vmatpush3.msra.mxu1 %v22122_v40 }
 0x382   : > { %18050 = vmatmul.mubr.f32.gmra.mxu0 %v22267_v22  ;;  %18082 = vmatmul.mubr.f32.gmra.mxu1 %v22372_v52  ;;  %26333 = vst [vmem:[#allocation93_spill] sm:$0xff] %v22517_v0  ;;  %v22520_v18 = vsub.f32 %v4382_v55, %v22517_v0 }
 0x383   : > { %18052 = vmatprep.mubr.f32.mxu0 %v22293_v6  ;;  %18084 = vmatprep.mubr.f32.mxu1 %v22397_v1 }
 0x384   : > { %18093 = vmatpush3.msra.mxu0 %v22117_v44  ;;  %26334 = vst [vmem:[#allocation94_spill] sm:$0xff] %v22520_v18  ;;  %v25785_v44 = vand.u32 4294901760, %v22520_v18 }
 0x385   : > { %18094 = vmatprep.subr.mxu0 %v22129_v48 }
 0x386   : > { %18053 = vmatmul.mubr.f32.gmra.mxu0 %v22317_v9  ;;  %18085 = vmatmul.mubr.f32.gmra.mxu1 %v22412_v35  ;;  %v4533_v40 = vsub.f32 %v22520_v18, %v25785_v44 }
 0x387   : > { %18055 = vmatprep.mubr.f32.mxu0 %v22340_v45  ;;  %18087 = vmatprep.mubr.f32.mxu1 %v22434_v58 }
 0x388   : > { %18095 = vmatpush3.msra.mxu0 %v22129_v48  ;;  %v4534_v48 = vand.u32 4294901760, %v4533_v40 }
 0x389   : > { %18096 = vmatprep.subr.mxu0 %v22141_v38 }
 0x38a   : > { %18056 = vmatmul.mubr.f32.gmra.mxu0 %v22361_v46  ;;  %18088 = vmatmul.mubr.f32.gmra.mxu1 %v22445_v2 }
 0x38b   : > { %18058 = vmatprep.mubr.f32.mxu0 %v22382_v23  ;;  %18124 = vmatprep.mubr.f32.mxu1 %v22202_v3 }
 0x38c   : > { %18097 = vmatpush3.msra.mxu0 %v22141_v38 }
 0x38e   : > { %18059 = vmatmul.mubr.f32.gmra.mxu0 %v22403_v56  ;;  %18125 = vmatmul.mubr.f32.vlgmr.msra.gmra.mxu1 %v22213_v5 }
 0x38f   : > { %18061 = vmatprep.mubr.f32.mxu0 %v22421_v62  ;;  %18127 = vmatprep.mubr.f32.mxu1 %v22233_v51 }
 0x392   : > { %18062 = vmatmul.mubr.f32.gmra.mxu0 %v22437_v25  ;;  %18128 = vmatmul.mubr.f32.gmra.mxu1 %v22255_v33 }
 0x393   : > { %18098 = vmatprep.mubr.f32.mxu0 %v22202_v3  ;;  %18130 = vmatprep.mubr.f32.mxu1 %v22282_v49 }
 0x396   : > { %18099 = vmatmul.mubr.f32.vlgmr.msra.gmra.mxu0 %v22213_v5  ;;  %18131 = vmatmul.mubr.f32.gmra.mxu1 %v22304_v20 }
 0x397   : > { %18101 = vmatprep.mubr.f32.mxu0 %v22233_v51  ;;  %18133 = vmatprep.mubr.f32.mxu1 %v22331_v30 }
 0x39a   : > { %18102 = vmatmul.mubr.f32.gmra.mxu0 %v22255_v33  ;;  %18134 = vmatmul.mubr.f32.gmra.mxu1 %v22350_v43 }
 0x39b   : > { %18104 = vmatprep.mubr.f32.mxu0 %v22282_v49  ;;  %18136 = vmatprep.mubr.f32.mxu1 %v22374_v27 }
 0x39e   : > { %18105 = vmatmul.mubr.f32.gmra.mxu0 %v22304_v20  ;;  %18137 = vmatmul.mubr.f32.gmra.mxu1 %v22392_v16 }
 0x39f   : > { %18107 = vmatprep.mubr.f32.mxu0 %v22331_v30  ;;  %18139 = vmatprep.mubr.f32.mxu1 %v22414_v28 }
 0x3a2   : > { %18108 = vmatmul.mubr.f32.gmra.mxu0 %v22350_v43  ;;  %18140 = vmatmul.mubr.f32.gmra.mxu1 %v22429_v36 }
 0x3a3   : > { %18110 = vmatprep.mubr.f32.mxu0 %v22374_v27  ;;  %18226 = vmatprep.mubr.f32.mxu1 %v22517_v0 }
 0x3a6   : > { %18111 = vmatmul.mubr.f32.gmra.mxu0 %v22392_v16 }
 0x3a7   : > { %18113 = vmatprep.mubr.f32.mxu0 %v22414_v28 }
 0x3aa   : > { %18114 = vmatmul.mubr.f32.gmra.mxu0 %v22429_v36 }
 0x3ab   : > { %18166 = vmatprep.mubr.f32.mxu0 %v4534_v48 }
 0x40a   : > { %v18022_v38 = vpop.f32.mrf.mxu1 }
 0x40c   : > { %v22529_v4 = vpop.f32.mrf.mxu1 }
 0x412   : > { %v17996_v53 = vpop.f32.mrf.mxu0  ;;  %v18025_v55 = vpop.f32.mrf.mxu1 }
 0x413   : > { %v22527_v50 = vadd.f32 %v18022_v38, %v17996_v53 }
 0x414   : > { %v22531_v14 = vpop.f32.mrf.mxu0  ;;  %v22535_v8 = vpop.f32.mrf.mxu1 }
 0x41a   : > { %v17999_v59 = vpop.f32.mrf.mxu0  ;;  %v18028_v10 = vpop.f32.mrf.mxu1 }
 0x41b   : > { %v22533_v19 = vadd.f32 %v18025_v55, %v17999_v59 }
 0x41c   : > { %v22537_v60 = vpop.f32.mrf.mxu0  ;;  %v22541_v48 = vpop.f32.mrf.mxu1 }
 0x422   : > { %v18002_v44 = vpop.f32.mrf.mxu0  ;;  %v18031_v38 = vpop.f32.mrf.mxu1 }
 0x423   : > { %v22539_v40 = vadd.f32 %v18028_v10, %v18002_v44 }
 0x424   : > { %v3710_v53 = vpop.f32.mrf.mxu1  ;;  %v3513_v2 = vpop.f32.mrf.mxu0 }
 0x42a   : > { %v18034_v58 = vpop.f32.mrf.mxu1  ;;  %v18005_v35 = vpop.f32.mrf.mxu0 }
 0x42b   : > { %v3717_v13 = vadd.f32 %v18031_v38, %v18005_v35 }
 0x42c   : > { %v3722_v1 = vpop.f32.mrf.mxu1  ;;  %v3533_v52 = vpop.f32.mrf.mxu0 }
 0x42d   : > { %v3711_v42 = vadd.f32 %v3710_v53, %v3533_v52 }
 0x432   : > { %v18037_v25 = vpop.f32.mrf.mxu1  ;;  %v18008_v59 = vpop.f32.mrf.mxu0 }
 0x433   : > { %v3729_v26 = vadd.f32 %v18034_v58, %v18008_v59  ;;  %v4357_v58 = vld [vmem:[#allocation2 + $0x190] sm:$0xff] }
 0x434   : > { %v3734_v55 = vpop.f32.mrf.mxu1  ;;  %v3553_v62 = vpop.f32.mrf.mxu0 }
 0x435   : > { %v3723_v0 = vadd.f32 %v3722_v1, %v3553_v62 }
 0x436   : > { %v22543_v24 = vpop.f32.mrf.mxu1 }
 0x437   : > { %26335 = vst [vmem:[#allocation95_spill] sm:$0xff] %v22543_v24 }
 0x438   : > { %v22545_v17 = vpop.f32.mrf.mxu1 }
 0x439   : > { %26336 = vst [vmem:[#allocation96_spill] sm:$0xff] %v22545_v17 }
 0x43a   : > { %v18011_v56 = vpop.f32.mrf.mxu0  ;;  %v22547_v10 = vpop.f32.mrf.mxu1 }
 0x43b   : > { %v3741_v17 = vadd.f32 %v18037_v25, %v18011_v56 }
 0x43c   : > { %v3573_v44 = vpop.f32.mrf.mxu0  ;;  %v22549_v57 = vpop.f32.mrf.mxu1 }
 0x43d   : > { %v3735_v24 = vadd.f32 %v3734_v55, %v3573_v44 }
 0x43e   : > { %v22551_v23 = vpop.f32.mrf.mxu0  ;;  %v18080_v37 = vpop.f32.mrf.mxu1  ;;  %v26352_v59 = vld [vmem:[#allocation95_spill] sm:$0xff] }
 0x440   : > { %v22553_v46 = vpop.f32.mrf.mxu0  ;;  %v22555_v11 = vpop.f32.mrf.mxu1 }
 0x441   : > { %26337 = vst [vmem:[#allocation97_spill] sm:$0xff] %v22553_v46 }
 0x442   : > { %v18051_v45 = vpop.f32.mrf.mxu0  ;;  %v18083_v31 = vpop.f32.mrf.mxu1 }
 0x444   : > { %v22557_v9 = vpop.f32.mrf.mxu0  ;;  %v4022_v41 = vpop.f32.mrf.mxu1 }
 0x446   : > { %v18054_v6 = vpop.f32.mrf.mxu0  ;;  %v18086_v36 = vpop.f32.mrf.mxu1 }
 0x448   : > { %v3848_v22 = vpop.f32.mrf.mxu0  ;;  %v4038_v28 = vpop.f32.mrf.mxu1 }
 0x44a   : > { %v18057_v63 = vpop.f32.mrf.mxu0  ;;  %v18089_v16 = vpop.f32.mrf.mxu1 }
 0x44b   : > { %v3870_v18 = vadd.f32 %v18057_v63, %v3717_v13 }
 0x44c   : > { %v3862_v39 = vpop.f32.mrf.mxu0  ;;  %v4054_v27 = vpop.f32.mrf.mxu1 }
 0x44e   : > { %v18060_v34 = vpop.f32.mrf.mxu0  ;;  %v22559_v43 = vpop.f32.mrf.mxu1 }
 0x44f   : > { %26338 = vst [vmem:[#allocation98_spill] sm:$0xff] %v22559_v43 }
 0x450   : > { %v3876_v61 = vpop.f32.mrf.mxu0  ;;  %v22561_v30 = vpop.f32.mrf.mxu1 }
 0x451   : > { %26339 = vst [vmem:[#allocation99_spill] sm:$0xff] %v22561_v30  ;;  %v3884_v30 = vadd.f32 %v18060_v34, %v3729_v26 }
 0x452   : > { %v18063_v12 = vpop.f32.mrf.mxu0  ;;  %v22563_v20 = vpop.f32.mrf.mxu1 }
 0x453   : > { %26340 = vst [vmem:[#allocation100_spill] sm:$0xff] %v22563_v20  ;;  %v3699_v20 = vadd.f32 %v22541_v48, %v3513_v2  ;;  %v3898_v46 = vadd.f32 %v18063_v12, %v3741_v17  ;;  %v4047_v35 = vadd.f32 %v18086_v36, %v3884_v30  ;;  %v4385_v17 = vsel %vm4380_vm2, %v4357_v58, 0  ;;  %v4358_v2 = vld [vmem:[#allocation2 + $0x1a0] sm:$0xff] }
 0x454   : > { %v3890_v29 = vpop.f32.mrf.mxu0  ;;  %v22565_v49 = vpop.f32.mrf.mxu1  ;;  %v26349_v12 = vld [vmem:[#allocation97_spill] sm:$0xff]  ;;  %v4388_v58 = vsel %vm4380_vm2, %v4358_v2, 0 }
 0x455   : > { %26341 = vst [vmem:[#allocation101_spill] sm:$0xff] %v22565_v49  ;;  %v3849_v38 = vadd.f32 %v3848_v22, %v3699_v20  ;;  %v3891_v52 = vadd.f32 %v3890_v29, %v3735_v24  ;;  %v4063_v22 = vadd.f32 %v18089_v16, %v3898_v46 }
 0x456   : > { %v22567_v15 = vpop.f32.mrf.mxu0  ;;  %v22569_v33 = vpop.f32.mrf.mxu1 }
 0x457   : > { %26342 = vst [vmem:[#allocation102_spill] sm:$0xff] %v22567_v15  ;;  %26343 = vst [vmem:[#allocation103_spill] sm:$0xff] %v22569_v33  ;;  %v3863_v15 = vadd.f32 %v3862_v39, %v3711_v42  ;;  %v4031_v33 = vadd.f32 %v18083_v31, %v3870_v18  ;;  %v3687_v39 = vadd.f32 %v22535_v8, %v22537_v60 }
 0x458   : > { %v22571_v32 = vpop.f32.mrf.mxu0  ;;  %v22573_v51 = vpop.f32.mrf.mxu1  ;;  %v3842_v42 = vadd.f32 %v18051_v45, %v22533_v19  ;;  %v3675_v19 = vadd.f32 %v22529_v4, %v22531_v14 }
 0x459   : > { %26344 = vst [vmem:[#allocation104_spill] sm:$0xff] %v22571_v32  ;;  %26345 = vst [vmem:[#allocation105_spill] sm:$0xff] %v22573_v51  ;;  %v3877_v32 = vadd.f32 %v3876_v61, %v3723_v0  ;;  %v3856_v51 = vadd.f32 %v18054_v6, %v22539_v40  ;;  %v4023_v26 = vadd.f32 %v4022_v41, %v3863_v15 }
 0x45a   : > { %v18103_v54 = vpop.f32.mrf.mxu0  ;;  %v18135_v5 = vpop.f32.mrf.mxu1  ;;  %v3835_v20 = vadd.f32 %v22557_v9, %v3687_v39  ;;  %v4007_v41 = vadd.f32 %v22555_v11, %v3849_v38  ;;  %v3821_v0 = vadd.f32 %v26349_v12, %v3675_v19  ;;  %v26358_v19 = vld [vmem:[#allocation98_spill] sm:$0xff] }
 0x45b   : > { %v4039_v56 = vadd.f32 %v4038_v28, %v3877_v32  ;;  %v4015_v61 = vadd.f32 %v18080_v37, %v3856_v51  ;;  %v4055_v32 = vadd.f32 %v4054_v27, %v3891_v52  ;;  %v3999_v37 = vadd.f32 %v22547_v10, %v3842_v42  ;;  %v26353_v10 = vld [vmem:[#allocation100_spill] sm:$0xff] }
 0x45c   : > { %v22575_v7 = vpop.f32.mrf.mxu0  ;;  %v4322_v3 = vpop.f32.mrf.mxu1  ;;  %v3991_v16 = vadd.f32 %v22549_v57, %v3835_v20  ;;  %v26356_v42 = vld [vmem:[#allocation101_spill] sm:$0xff] }
 0x45d   : > { %26346 = vst [vmem:[#allocation106_spill] sm:$0xff] %v22575_v7  ;;  %v4164_v27 = vadd.f32 %v18103_v54, %v3999_v37 }
 0x45e   : > { %v18106_v21 = vpop.f32.mrf.mxu0  ;;  %v18138_v43 = vpop.f32.mrf.mxu1  ;;  %v26348_v15 = vld [vmem:[#allocation103_spill] sm:$0xff] }
 0x45f   : > { %v4176_v24 = vadd.f32 %v18106_v21, %v4015_v61  ;;  %v4305_v44 = vadd.f32 %v26353_v10, %v4164_v27 }
 0x460   : > { %v4169_v47 = vpop.f32.mrf.mxu0  ;;  %v4334_v1 = vpop.f32.mrf.mxu1  ;;  %v26357_v20 = vld [vmem:[#allocation104_spill] sm:$0xff] }
 0x461   : > { %v4170_v45 = vadd.f32 %v4169_v47, %v4007_v41  ;;  %v4317_v62 = vadd.f32 %v26348_v15, %v4176_v24  ;;  %v22660_v41 = vand.u32 4294901760, %v4305_v44  ;;  %v26360_v15 = vld [vmem:[#allocation99_spill] sm:$0xff] }
 0x462   : > { %v18109_v49 = vpop.f32.mrf.mxu0 }
 0x463   : > { %v4188_v34 = vadd.f32 %v18109_v49, %v4031_v33  ;;  %v18141_v33 = vpop.f32.mrf.mxu1  ;;  %v22697_v2 = vsub.f32 %v4305_v44, %v22660_v41 }
 0x464   : > { %v4181_v7 = vpop.f32.mrf.mxu0  ;;  %v26350_v18 = vld [vmem:[#allocation106_spill] sm:$0xff] }
 0x465   : > { %v4182_v31 = vadd.f32 %v4181_v7, %v4023_v26  ;;  %v4329_v28 = vadd.f32 %v18135_v5, %v4188_v34  ;;  %v22590_v7 = vand.u32 4294901760, %v4385_v17  ;;  %v3828_v5 = vadd.f32 %v22551_v23, %v22527_v50  ;;  %v4346_v14 = vpop.f32.mrf.mxu1  ;;  %v26351_v23 = vld [vmem:[#allocation105_spill] sm:$0xff]  ;;  %v4359_v34 = vld [vmem:[#allocation2 + $0x1b0] sm:$0xff]  ;;  %v26354_v26 = vld [vmem:[#allocation102_spill] sm:$0xff] }
 0x466   : > { %v18112_v63 = vpop.f32.mrf.mxu0  ;;  %v4158_v4 = vadd.f32 %v26350_v18, %v3991_v16  ;;  %v4311_v54 = vadd.f32 %v26351_v23, %v4170_v45  ;;  %v4361_v16 = vld [vmem:[#allocation2 + $0x1d0] sm:$0xff] }
 0x467   : > { %v4200_v13 = vadd.f32 %v18112_v63, %v4047_v35  ;;  %26347 = vst [vmem:[#allocation107_spill] sm:$0xff] %v22590_v7  ;;  %v4323_v9 = vadd.f32 %v4322_v3, %v4182_v31  ;;  %v22598_v29 = vand.u32 4294901760, %v4329_v28  ;;  %v22609_v57 = vsub.f32 %v4385_v17, %v22590_v7 }
 0x468   : > { %v4193_v6 = vpop.f32.mrf.mxu0  ;;  %v3983_v55 = vadd.f32 %v26352_v59, %v3828_v5  ;;  %v22624_v35 = vand.u32 4294901760, %v4317_v62  ;;  %v4299_v61 = vadd.f32 %v26356_v42, %v4158_v4  ;;  %v4397_v59 = vsel %vm4380_vm2, %v4361_v16, 0 }
 0x469   : > { %v4341_v30 = vadd.f32 %v18138_v43, %v4200_v13  ;;  %v4194_v36 = vadd.f32 %v4193_v6, %v4039_v56  ;;  %v22611_v50 = vand.u32 4294901760, %v4323_v9  ;;  %v22629_v38 = vsub.f32 %v4329_v28, %v22598_v29  ;;  %v26355_v56 = vld [vmem:[#allocation96_spill] sm:$0xff] }
 0x46a   : > { %v18115_v49 = vpop.f32.mrf.mxu0  ;;  %v4152_v13 = vadd.f32 %v26354_v26, %v3983_v55  ;;  %v3975_v39 = vadd.f32 %v26355_v56, %v3821_v0  ;;  %v22644_v6 = vand.u32 4294901760, %v4311_v54  ;;  %v22676_v45 = vand.u32 4294901760, %v4299_v61  ;;  %v4362_v26 = vld [vmem:[#allocation2 + $0x1e0] sm:$0xff] }
 0x46b   : > { %v22585_v60 = vand.u32 4294901760, %v4341_v30  ;;  %v4335_v8 = vadd.f32 %v4334_v1, %v4194_v36  ;;  %v4212_v51 = vadd.f32 %v18115_v49, %v4063_v22  ;;  %v22648_v17 = vsub.f32 %v4323_v9, %v22611_v50  ;;  %v4360_v22 = vld [vmem:[#allocation2 + $0x1c0] sm:$0xff] }
 0x46c   : > { %v4205_v43 = vpop.f32.mrf.mxu0  ;;  %v4146_v24 = vadd.f32 %v26357_v20, %v3975_v39  ;;  %v4391_v49 = vsel %vm4380_vm2, %v4359_v34, 0  ;;  %v4293_v37 = vadd.f32 %v26358_v19, %v4152_v13  ;;  %v4394_v9 = vsel %vm4380_vm2, %v4360_v22, 0 }
 0x46d   : > { %v22592_v21 = vand.u32 4294901760, %v4335_v8  ;;  %v4353_v11 = vadd.f32 %v18141_v33, %v4212_v51  ;;  %v4206_v46 = vadd.f32 %v4205_v43, %v4055_v32  ;;  %v22601_v47 = vsub.f32 %v4341_v30, %v22585_v60 }
 0x46e   : > { %v22663_v33 = vsub.f32 %v4317_v62, %v22624_v35  ;;  %v22673_v51 = vand.u32 4294901760, %v22629_v38  ;;  %v22679_v43 = vand.u32 4294901760, %v4388_v58  ;;  %v22689_v27 = vand.u32 4294901760, %v22648_v17 }
 0x46f   : > { %v22603_v25 = vand.u32 4294901760, %v4353_v11  ;;  %v4347_v3 = vadd.f32 %v4346_v14, %v4206_v46  ;;  %v22614_v40 = vsub.f32 %v4335_v8, %v22592_v21  ;;  %v22639_v63 = vand.u32 4294901760, %v22601_v47 }
 0x470   : > { %26359 = vst [vmem:[#allocation103_spill] sm:$0xff] %v22679_v43  ;;  %v4287_v62 = vadd.f32 %v26360_v15, %v4146_v24  ;;  %v25851_v14 = vand.u32 4294901760, %v22609_v57  ;;  %v4810_v0 = vsub.f32 %v22629_v38, %v22673_v51  ;;  %v22703_v18 = vand.u32 4294901760, %v22663_v33 }
 0x471   : > { %v22617_v48 = vsub.f32 %v4353_v11, %v22603_v25  ;;  %v22619_v53 = vand.u32 4294901760, %v4347_v3  ;;  %18142 = vmatprep.subr.mxu0 %v22603_v25  ;;  %v22657_v36 = vand.u32 4294901760, %v22614_v40  ;;  %v4796_v8 = vsub.f32 %v22601_v47, %v22639_v63 }
 0x472   : > { %18143 = vmatpush3.msra.mxu0 %v22603_v25  ;;  %v22683_v11 = vsub.f32 %v4311_v54, %v22644_v6  ;;  %26362 = vst [vmem:[#allocation106_spill] sm:$0xff] %v22703_v18  ;;  %v22705_v4 = vand.u32 4294901760, %v4293_v37  ;;  %v22709_v23 = vsub.f32 %v4388_v58, %v22679_v43  ;;  %v22711_v54 = vand.u32 4294901760, %v4394_v9 }
 0x473   : > { %v22632_v52 = vsub.f32 %v4347_v3, %v22619_v53  ;;  %18144 = vmatprep.subr.mxu0 %v22619_v53  ;;  %v22636_v1 = vand.u32 4294901760, %v22617_v48  ;;  %v4803_v5 = vsub.f32 %v22614_v40, %v22657_v36  ;;  %v22694_v3 = vand.u32 4294901760, %v4391_v49 }
 0x474   : > { %18145 = vmatpush3.msra.mxu0 %v22619_v53  ;;  %v4797_v12 = vand.u32 4294901760, %v4796_v8  ;;  %26363 = vst [vmem:[#allocation105_spill] sm:$0xff] %v22711_v54  ;;  %v22715_v55 = vsub.f32 %v4299_v61, %v22676_v45  ;;  %v4817_v44 = vsub.f32 %v22648_v17, %v22689_v27  ;;  %v22721_v34 = vand.u32 4294901760, %v22683_v11 }
 0x475   : > { %18146 = vmatprep.subr.mxu0 %v22585_v60  ;;  %v4782_v31 = vsub.f32 %v22617_v48, %v22636_v1  ;;  %v22654_v30 = vand.u32 4294901760, %v22632_v52  ;;  %26361 = vst [vmem:[#allocation97_spill] sm:$0xff] %v22694_v3  ;;  %v4804_v10 = vand.u32 4294901760, %v4803_v5  ;;  %v22723_v58 = vand.u32 4294901760, %v4287_v62 }
 0x476   : > { %18147 = vmatpush3.msra.mxu0 %v22585_v60  ;;  %26364 = vst [vmem:[#allocation95_spill] sm:$0xff] %v22721_v34  ;;  %v22727_v13 = vsub.f32 %v4391_v49, %v22694_v3  ;;  %v4811_v56 = vand.u32 4294901760, %v4810_v0  ;;  %v4824_v39 = vsub.f32 %v22663_v33, %v22703_v18  ;;  %v22733_v42 = vand.u32 4294901760, %v22697_v2  ;;  %v4368_v18 = vld [vmem:[#allocation2 + $0x240] sm:$0xff] }
 0x477   : > { %18148 = vmatprep.subr.mxu0 %v22592_v21  ;;  %v4783_v32 = vand.u32 4294901760, %v4782_v31  ;;  %v4789_v28 = vsub.f32 %v22632_v52, %v22654_v30  ;;  %v22735_v61 = vand.u32 4294901760, %v4397_v59  ;;  %v4363_v31 = vld [vmem:[#allocation2 + $0x1f0] sm:$0xff]  ;;  %v22738_v22 = vsub.f32 %v4293_v37, %v22705_v4 }
 0x478   : > { %18149 = vmatpush3.msra.mxu0 %v22592_v21  ;;  %26365 = vst [vmem:[#allocation100_spill] sm:$0xff] %v22733_v42  ;;  %v4543_v20 = vsub.f32 %v22609_v57, %v25851_v14  ;;  %v25850_v24 = vand.u32 4294901760, %v22709_v23  ;;  %v4400_v49 = vsel %vm4380_vm2, %v4362_v26, 0  ;;  %v22750_v8 = vand.u32 4294901760, %v22715_v55 }
 0x479   : > { %18150 = vmatprep.subr.mxu0 %v22598_v29  ;;  %18202 = vmatprep.subr.mxu1 %v4783_v32  ;;  %v4790_v46 = vand.u32 4294901760, %v4789_v28  ;;  %26366 = vst [vmem:[#allocation102_spill] sm:$0xff] %v22735_v61  ;;  %v4831_v28 = vsub.f32 %v22683_v11, %v22721_v34  ;;  %v22753_v19 = vsub.f32 %v4394_v9, %v22711_v54  ;;  %v4403_v5 = vsel %vm4380_vm2, %v4363_v31, 0  ;;  %v4365_v31 = vld [vmem:[#allocation2 + $0x210] sm:$0xff]  ;;  %v4366_v34 = vld [vmem:[#allocation2 + $0x220] sm:$0xff] }
 0x47a   : > { %18151 = vmatpush3.msra.mxu0 %v22598_v29  ;;  %18203 = vmatpush3.msra.mxu1 %v4783_v32  ;;  %v4818_v32 = vand.u32 4294901760, %v4817_v44  ;;  %26367 = vst [vmem:[#allocation96_spill] sm:$0xff] %v22750_v8  ;;  %v22756_v37 = vsub.f32 %v4287_v62, %v22723_v58  ;;  %v4825_v16 = vand.u32 4294901760, %v4824_v39  ;;  %v4838_v15 = vsub.f32 %v22697_v2, %v22733_v42  ;;  %v4364_v62 = vld [vmem:[#allocation2 + $0x200] sm:$0xff] }
 0x47b   : > { %18152 = vmatprep.subr.mxu0 %v22611_v50  ;;  %18204 = vmatprep.subr.mxu1 %v4790_v46  ;;  %v22765_v9 = vsub.f32 %v4397_v59, %v22735_v61  ;;  %v4544_v0 = vand.u32 4294901760, %v4543_v20  ;;  %v22774_v44 = vand.u32 4294901760, %v22738_v22  ;;  %v4832_v26 = vand.u32 4294901760, %v4831_v28 }
 0x47c   : > { %18153 = vmatpush3.msra.mxu0 %v22611_v50  ;;  %18205 = vmatpush3.msra.mxu1 %v4790_v46  ;;  %v25852_v46 = vand.u32 4294901760, %v22727_v13  ;;  %v4845_v59 = vsub.f32 %v22715_v55, %v22750_v8  ;;  %v22780_v39 = vand.u32 4294901760, %v4403_v5  ;;  %v4406_v28 = vsel %vm4380_vm2, %v4364_v62, 0 }
 0x47d   : > { %18154 = vmatprep.subr.mxu0 %v22624_v35  ;;  %18206 = vmatprep.subr.mxu1 %v4797_v12  ;;  %26369 = vst [vmem:[#allocation104_spill] sm:$0xff] %v22774_v44  ;;  %v4409_v8 = vsel %vm4380_vm2, %v4365_v31, 0  ;;  %v26372_v42 = vand.u32 4294901760, %v22753_v19 }
 0x47e   : > { %18155 = vmatpush3.msra.mxu0 %v22624_v35  ;;  %18207 = vmatpush3.msra.mxu1 %v4797_v12  ;;  %v22767_v12 = vand.u32 4294901760, %v4400_v49  ;;  %26370 = vst [vmem:[#allocation98_spill] sm:$0xff] %v22780_v39  ;;  %v4563_v20 = vsub.f32 %v22727_v13, %v25852_v46  ;;  %v4852_v46 = vsub.f32 %v22738_v22, %v22774_v44  ;;  %v4846_v62 = vand.u32 4294901760, %v4845_v59 }
 0x47f   : > { %18156 = vmatprep.subr.mxu0 %v22644_v6  ;;  %18208 = vmatprep.subr.mxu1 %v4804_v10  ;;  %v22803_v14 = vsub.f32 %v4403_v5, %v22780_v39  ;;  %v26374_v59 = vand.u32 4294901760, %v22765_v9  ;;  %v22815_v31 = vand.u32 4294901760, %v4409_v8 }
 0x480   : > { %18157 = vmatpush3.msra.mxu0 %v22644_v6  ;;  %18209 = vmatpush3.msra.mxu1 %v4804_v10  ;;  %26368 = vst [vmem:[#allocation101_spill] sm:$0xff] %v22767_v12  ;;  %v4553_v10 = vsub.f32 %v22709_v23, %v25850_v24  ;;  %v4839_v24 = vand.u32 4294901760, %v4838_v15  ;;  %v4573_v15 = vsub.f32 %v22753_v19, %v26372_v42 }
 0x481   : > { %18158 = vmatprep.subr.mxu0 %v22660_v41  ;;  %18210 = vmatprep.subr.mxu1 %v4811_v56  ;;  %v4583_v42 = vsub.f32 %v22765_v9, %v26374_v59 }
 0x482   : > { %18159 = vmatpush3.msra.mxu0 %v22660_v41  ;;  %18211 = vmatpush3.msra.mxu1 %v4811_v56  ;;  %v22793_v56 = vsub.f32 %v4400_v49, %v22767_v12  ;;  %v22805_v49 = vand.u32 4294901760, %v4406_v28 }
 0x483   : > { %18160 = vmatprep.subr.mxu0 %v22676_v45  ;;  %18212 = vmatprep.subr.mxu1 %v4818_v32 }
 0x484   : > { %18161 = vmatpush3.msra.mxu0 %v22676_v45  ;;  %18213 = vmatpush3.msra.mxu1 %v4818_v32  ;;  %v22787_v32 = vand.u32 4294901760, %v22756_v37  ;;  %26373 = vst [vmem:[#allocation108_spill] sm:$0xff] %v22805_v49  ;;  %v22822_v44 = vsub.f32 %v4406_v28, %v22805_v49 }
 0x485   : > { %18162 = vmatprep.subr.mxu0 %v22705_v4  ;;  %18214 = vmatprep.subr.mxu1 %v4825_v16 }
 0x486   : > { %18163 = vmatpush3.msra.mxu0 %v22705_v4  ;;  %18215 = vmatpush3.msra.mxu1 %v4825_v16  ;;  %26371 = vst [vmem:[#allocation99_spill] sm:$0xff] %v22787_v32  ;;  %v4554_v16 = vand.u32 4294901760, %v4553_v10  ;;  %v4564_v10 = vand.u32 4294901760, %v4563_v20  ;;  %v4412_v20 = vsel %vm4380_vm2, %v4366_v34, 0  ;;  %v26375_v34 = vand.u32 4294901760, %v22793_v56 }
 0x487   : > { %18164 = vmatprep.subr.mxu0 %v22723_v58  ;;  %18216 = vmatprep.subr.mxu1 %v4832_v26 }
 0x488   : > { %18165 = vmatpush3.msra.mxu0 %v22723_v58  ;;  %18217 = vmatpush3.msra.mxu1 %v4832_v26  ;;  %v4859_v26 = vsub.f32 %v22756_v37, %v22787_v32  ;;  %v4574_v32 = vand.u32 4294901760, %v4573_v15 }
 0x489   : > { %18167 = vmatmul.mubr.f32.vlgmr.msra.gmra.mxu0 %v4544_v0  ;;  %18218 = vmatprep.subr.mxu1 %v4839_v24  ;;  %v4367_v0 = vld [vmem:[#allocation2 + $0x230] sm:$0xff] }
 0x48a   : > { %18262 = vmatprep.subr.mxu0 %v22617_v48  ;;  %18219 = vmatpush3.msra.mxu1 %v4839_v24  ;;  %v4853_v24 = vand.u32 4294901760, %v4852_v46  ;;  %v4415_v59 = vsel %vm4380_vm2, %v4367_v0, 0  ;;  %v4860_v5 = vand.u32 4294901760, %v4859_v26  ;;  %v4584_v46 = vand.u32 4294901760, %v4583_v42  ;;  %v4370_v42 = vld [vmem:[#allocation2 + $0x260] sm:$0xff] }
 0x48b   : > { %18263 = vmatpush3.msra.mxu0 %v22617_v48  ;;  %18220 = vmatprep.subr.mxu1 %v4846_v62  ;;  %v25867_v48 = vand.u32 4294901760, %v22803_v14  ;;  %v22835_v28 = vand.u32 4294901760, %v4415_v59  ;;  %v4418_v26 = vsel %vm4380_vm2, %v4368_v18, 0 }
 0x48c   : > { %18264 = vmatprep.subr.mxu0 %v22632_v52  ;;  %18169 = vmatprep.mubr.f32.mxu0 %v4554_v16  ;;  %v22830_v16 = vsub.f32 %v4409_v8, %v22815_v31  ;;  %v4369_v8 = vld [vmem:[#allocation2 + $0x250] sm:$0xff] }
 0x48d   : > { %18221 = vmatpush3.msra.mxu1 %v4846_v62  ;;  %18265 = vmatpush3.msra.mxu0 %v22632_v52  ;;  %v4593_v52 = vsub.f32 %v22793_v56, %v26375_v34  ;;  %v22832_v62 = vand.u32 4294901760, %v4412_v20  ;;  %v4603_v15 = vsub.f32 %v22803_v14, %v25867_v48  ;;  %v22852_v18 = vsub.f32 %v4415_v59, %v22835_v28  ;;  %v4373_v48 = vld [vmem:[#allocation2 + $0x290] sm:$0xff] }
 0x48e   : > { %18170 = vmatmul.mubr.f32.gmra.mxu0 %v4564_v10  ;;  %18222 = vmatprep.subr.mxu1 %v4853_v24  ;;  %v25866_v10 = vand.u32 4294901760, %v22822_v44  ;;  %v25865_v0 = vand.u32 4294901760, %v22830_v16  ;;  %v4424_v59 = vsel %vm4380_vm2, %v4370_v42, 0  ;;  %v4374_v42 = vld [vmem:[#allocation2 + $0x2a0] sm:$0xff] }
 0x48f   : > { %18266 = vmatprep.subr.mxu0 %v22601_v47  ;;  %18223 = vmatpush3.msra.mxu1 %v4853_v24  ;;  %26376 = vst [vmem:[#allocation109_spill] sm:$0xff] %v22852_v18  ;;  %v4371_v24 = vld [vmem:[#allocation2 + $0x270] sm:$0xff] }
 0x490   : > { %18267 = vmatpush3.msra.mxu0 %v22601_v47  ;;  %18224 = vmatprep.subr.mxu1 %v4860_v5  ;;  %v4594_v47 = vand.u32 4294901760, %v4593_v52 }
 0x491   : > { %18268 = vmatprep.subr.mxu0 %v22614_v40  ;;  %18172 = vmatprep.mubr.f32.mxu0 %v4574_v32  ;;  %v22847_v32 = vsub.f32 %v4412_v20, %v22832_v62  ;;  %v4613_v20 = vsub.f32 %v22822_v44, %v25866_v10  ;;  %v22880_v10 = vand.u32 4294901760, %v4424_v59 }
 0x492   : > { %18225 = vmatpush3.msra.mxu1 %v4860_v5  ;;  %18269 = vmatpush3.msra.mxu0 %v22614_v40  ;;  %v22854_v5 = vand.u32 4294901760, %v4418_v26  ;;  %v4421_v40 = vsel %vm4380_vm2, %v4369_v8, 0  ;;  %v4372_v8 = vld [vmem:[#allocation2 + $0x280] sm:$0xff] }
 0x493   : > { %18173 = vmatmul.mubr.f32.gmra.mxu0 %v4584_v46  ;;  %18227 = vmatmul.mubr.f32.vlgmr.msra.gmra.mxu1 %v22590_v7  ;;  %v4604_v46 = vand.u32 4294901760, %v4603_v15  ;;  %v25870_v34 = vand.u32 4294901760, %v22847_v32  ;;  %v22870_v52 = vand.u32 4294901760, %v4421_v40  ;;  %v4427_v15 = vsel %vm4380_vm2, %v4371_v24, 0 }
 0x494   : > { %18270 = vmatprep.subr.mxu0 %v22629_v38  ;;  %18322 = vmatprep.subr.mxu1 %v22603_v25  ;;  %v22884_v24 = vand.u32 4294901760, %v4427_v15 }
 0x495   : > { %18271 = vmatpush3.msra.mxu0 %v22629_v38  ;;  %18323 = vmatpush3.msra.mxu1 %v22603_v25  ;;  %v4623_v38 = vsub.f32 %v22830_v16, %v25865_v0  ;;  %v4614_v0 = vand.u32 4294901760, %v4613_v20  ;;  %v22893_v20 = vsub.f32 %v4421_v40, %v22870_v52 }
 0x496   : > { %18272 = vmatprep.subr.mxu0 %v22648_v17  ;;  %18324 = vmatprep.subr.mxu1 %v22619_v53  ;;  %v22911_v7 = vsub.f32 %v4427_v15, %v22884_v24 }
 0x497   : > { %18175 = vmatprep.mubr.f32.mxu0 %v4594_v47  ;;  %18229 = vmatprep.mubr.f32.mxu1 %v22679_v43  ;;  %v22877_v47 = vsub.f32 %v4418_v26, %v22854_v5  ;;  %v4624_v26 = vand.u32 4294901760, %v4623_v38  ;;  %26378 = vst [vmem:[#allocation111_spill] sm:$0xff] %v22893_v20  ;;  %v4433_v38 = vsel %vm4380_vm2, %v4373_v48, 0  ;;  %v4375_v43 = vld [vmem:[#allocation2 + $0x2b0] sm:$0xff] }
 0x498   : > { %18273 = vmatpush3.msra.mxu0 %v22648_v17  ;;  %18325 = vmatpush3.msra.mxu1 %v22619_v53  ;;  %v4430_v17 = vsel %vm4380_vm2, %v4372_v8, 0 }
 0x499   : > { %26377 = vst [vmem:[#allocation110_spill] sm:$0xff] %v22877_v47  ;;  %18176 = vmatmul.mubr.f32.gmra.mxu0 %v4604_v46  ;;  %18230 = vmatmul.mubr.f32.gmra.mxu1 %v22694_v3  ;;  %v4633_v46 = vsub.f32 %v22847_v32, %v25870_v34  ;;  %v26379_v3 = vand.u32 4294901760, %v22852_v18  ;;  %v22904_v34 = vsub.f32 %v4424_v59, %v22880_v10  ;;  %v22906_v40 = vand.u32 4294901760, %v4430_v17 }
 0x49a   : > { %18274 = vmatprep.subr.mxu0 %v22663_v33  ;;  %18326 = vmatprep.subr.mxu1 %v22585_v60  ;;  %v22916_v59 = vand.u32 4294901760, %v4433_v38 }
 0x49b   : > { %18275 = vmatpush3.msra.mxu0 %v22663_v33  ;;  %18327 = vmatpush3.msra.mxu1 %v22585_v60  ;;  %v4643_v8 = vsub.f32 %v22852_v18, %v26379_v3  ;;  %v4436_v3 = vsel %vm4380_vm2, %v4374_v42, 0  ;;  %v4376_v33 = vld [vmem:[#allocation2 + $0x2c0] sm:$0xff]  ;;  %v4634_v48 = vand.u32 4294901760, %v4633_v46  ;;  %v4439_v42 = vsel %vm4380_vm2, %v4375_v43, 0 }
 0x49c   : > { %18276 = vmatprep.subr.mxu0 %v22683_v11  ;;  %18328 = vmatprep.subr.mxu1 %v22592_v21  ;;  %v22928_v46 = vsub.f32 %v4430_v17, %v22906_v40  ;;  %v26382_v43 = vand.u32 4294901760, %v22904_v34 }
 0x49d   : > { %18178 = vmatprep.mubr.f32.mxu0 %v4614_v0  ;;  %18232 = vmatprep.mubr.f32.mxu1 %v22711_v54  ;;  %v26380_v54 = vand.u32 4294901760, %v22877_v47  ;;  %v22930_v0 = vand.u32 4294901760, %v4436_v3 }
 0x49e   : > { %18277 = vmatpush3.msra.mxu0 %v22683_v11  ;;  %18329 = vmatpush3.msra.mxu1 %v22592_v21  ;;  %v4644_v11 = vand.u32 4294901760, %v4643_v8  ;;  %v4377_v8 = vld [vmem:[#allocation2 + $0x2d0] sm:$0xff] }
 0x49f   : > { %18179 = vmatmul.mubr.f32.gmra.mxu0 %v4624_v26  ;;  %18233 = vmatmul.mubr.f32.gmra.mxu1 %v22735_v61  ;;  %v4653_v15 = vsub.f32 %v22877_v47, %v26380_v54  ;;  %v4442_v61 = vsel %vm4380_vm2, %v4376_v33, 0  ;;  %v4378_v54 = vld [vmem:[#allocation2 + $0x2e0] sm:$0xff]  ;;  %v22941_v26 = vsub.f32 %v4433_v38, %v22916_v59  ;;  %v22943_v47 = vand.u32 4294901760, %v4439_v42 }
 0x4a0   : > { %18278 = vmatprep.subr.mxu0 %v22697_v2  ;;  %18330 = vmatprep.subr.mxu1 %v22598_v29  ;;  %v22947_v18 = vand.u32 4294901760, %v4442_v61 }
 0x4a1   : > { %18279 = vmatpush3.msra.mxu0 %v22697_v2  ;;  %18331 = vmatpush3.msra.mxu1 %v22598_v29  ;;  %v26381_v2 = vand.u32 4294901760, %v22893_v20  ;;  %v4654_v33 = vand.u32 4294901760, %v4653_v15 }
 0x4a2   : > { %18280 = vmatprep.subr.mxu0 %v22715_v55  ;;  %18332 = vmatprep.subr.mxu1 %v22611_v50  ;;  %v22975_v38 = vsub.f32 %v4442_v61, %v22947_v18 }
 0x4a3   : > { %18181 = vmatprep.mubr.f32.mxu0 %v4634_v48  ;;  %18235 = vmatprep.mubr.f32.mxu1 %v22767_v12  ;;  %v4663_v17 = vsub.f32 %v22893_v20, %v26381_v2  ;;  %v4445_v48 = vsel %vm4380_vm2, %v4377_v8, 0  ;;  %v4673_v2 = vsub.f32 %v22904_v34, %v26382_v43  ;;  %v22956_v12 = vsub.f32 %v4436_v3, %v22930_v0  ;;  %v4379_v20 = vld [vmem:[#allocation2 + $0x2f0] sm:$0xff] }
 0x4a4   : > { %18281 = vmatpush3.msra.mxu0 %v22715_v55  ;;  %18333 = vmatpush3.msra.mxu1 %v22611_v50  ;;  %v4448_v55 = vsel %vm4380_vm2, %v4378_v54, 0  ;;  %v22968_v3 = vsub.f32 %v4439_v42, %v22943_v47  ;;  %v22970_v54 = vand.u32 4294901760, %v4445_v48  ;;  %v26384_v42 = vand.u32 4294901760, %v22928_v46 }
 0x4a5   : > { %18182 = vmatmul.mubr.f32.gmra.mxu0 %v4644_v11  ;;  %18236 = vmatmul.mubr.f32.gmra.mxu1 %v22780_v39  ;;  %v26383_v11 = vand.u32 4294901760, %v22911_v7  ;;  %v4664_v8 = vand.u32 4294901760, %v4663_v17  ;;  %v4674_v17 = vand.u32 4294901760, %v4673_v2  ;;  %v25891_v39 = vand.u32 4294901760, %v22956_v12 }
 0x4a6   : > { %18282 = vmatprep.subr.mxu0 %v22738_v22  ;;  %18334 = vmatprep.subr.mxu1 %v22624_v35  ;;  %v4693_v43 = vsub.f32 %v22928_v46, %v26384_v42  ;;  %v25892_v2 = vand.u32 4294901760, %v22968_v3 }
 0x4a7   : > { %v4683_v15 = vsub.f32 %v22911_v7, %v26383_v11  ;;  %18283 = vmatpush3.msra.mxu0 %v22738_v22  ;;  %18335 = vmatpush3.msra.mxu1 %v22624_v35  ;;  %v22977_v11 = vand.u32 4294901760, %v4448_v55  ;;  %v4451_v22 = vsel %vm4380_vm2, %v4379_v20, 0  ;;  %v26385_v20 = vand.u32 4294901760, %v22941_v26 }
 0x4a8   : > { %18284 = vmatprep.subr.mxu0 %v22756_v37  ;;  %18336 = vmatprep.subr.mxu1 %v22644_v6  ;;  %v22995_v42 = vand.u32 4294901760, %v4451_v22 }
 0x4a9   : > { %18184 = vmatprep.mubr.f32.mxu0 %v4654_v33  ;;  %18238 = vmatprep.mubr.f32.mxu1 %v22805_v49  ;;  %v4684_v61 = vand.u32 4294901760, %v4683_v15  ;;  %v4703_v33 = vsub.f32 %v22941_v26, %v26385_v20  ;;  %v22993_v49 = vsub.f32 %v4445_v48, %v22970_v54  ;;  %v23001_v15 = vsub.f32 %v4448_v55, %v22977_v11 }
 0x4aa   : > { %18285 = vmatpush3.msra.mxu0 %v22756_v37  ;;  %18337 = vmatpush3.msra.mxu1 %v22644_v6  ;;  %v4713_v48 = vsub.f32 %v22956_v12, %v25891_v39  ;;  %v4723_v55 = vsub.f32 %v22968_v3, %v25892_v2 }
 0x4ab   : > { %18185 = vmatmul.mubr.f32.gmra.mxu0 %v4664_v8  ;;  %18239 = vmatmul.mubr.f32.gmra.mxu1 %v22815_v31  ;;  %v4694_v8 = vand.u32 4294901760, %v4693_v43  ;;  %v4704_v20 = vand.u32 4294901760, %v4703_v33  ;;  %v25893_v37 = vand.u32 4294901760, %v22993_v49  ;;  %v23015_v43 = vsub.f32 %v4451_v22, %v22995_v42 }
 0x4ac   : > { %18338 = vmatprep.subr.mxu1 %v22660_v41  ;;  %18382 = vmatprep.subr.mxu0 %v22636_v1  ;;  %v4714_v33 = vand.u32 4294901760, %v4713_v48  ;;  %v4724_v22 = vand.u32 4294901760, %v4723_v55 }
 0x4ad   : > { %18339 = vmatpush3.msra.mxu1 %v22660_v41  ;;  %18187 = vmatprep.mubr.f32.mxu0 %v4674_v17  ;;  %v26386_v17 = vand.u32 4294901760, %v22975_v38  ;;  %v4743_v2 = vsub.f32 %v22993_v49, %v25893_v37 }
 0x4ae   : > { %18340 = vmatprep.subr.mxu1 %v22676_v45  ;;  %18241 = vmatprep.mubr.f32.mxu1 %v22832_v62 }
 0x4af   : > { %18341 = vmatpush3.msra.mxu1 %v22676_v45  ;;  %18188 = vmatmul.mubr.f32.gmra.mxu0 %v4684_v61  ;;  %v4733_v39 = vsub.f32 %v22975_v38, %v26386_v17  ;;  %v4752_v61 = vand.u32 4294901760, %v23001_v15  ;;  %v4762_v17 = vand.u32 4294901760, %v23015_v43 }
 0x4b0   : > { %18242 = vmatmul.mubr.f32.gmra.mxu1 %v22835_v28  ;;  %18342 = vmatprep.subr.mxu1 %v22705_v4 }
 0x4b1   : > { %18343 = vmatpush3.msra.mxu1 %v22705_v4  ;;  %18190 = vmatprep.mubr.f32.mxu0 %v4694_v8  ;;  %v4734_v8 = vand.u32 4294901760, %v4733_v39  ;;  %v4753_v48 = vsub.f32 %v23001_v15, %v4752_v61  ;;  %v4763_v55 = vsub.f32 %v23015_v43, %v4762_v17 }
 0x4b2   : > { %18344 = vmatprep.subr.mxu1 %v22723_v58  ;;  %18244 = vmatprep.mubr.f32.mxu1 %v22854_v5 }
 0x4b3   : > { %18345 = vmatpush3.msra.mxu1 %v22723_v58  ;;  %18191 = vmatmul.mubr.f32.gmra.mxu0 %v4704_v20  ;;  %v4744_v20 = vand.u32 4294901760, %v4743_v2  ;;  %v4754_v37 = vand.u32 4294901760, %v4753_v48  ;;  %v4764_v39 = vand.u32 4294901760, %v4763_v55  ;;  %v26387_v2 = vld [vmem:[#allocation94_spill] sm:$0xff]  ;;  %v26412_v48 = vand.u32 4294901760, %v22911_v7  ;;  %v6136_v55 = vld [vmem:[#allocation2 + $0x310] sm:$0xff] }
 0x4b4   : > { %18245 = vmatmul.mubr.f32.gmra.mxu1 %v22870_v52  ;;  %18442 = vmatprep.subr.mxu1 %v22603_v25 }
 0x4b5   : > { %18193 = vmatprep.mubr.f32.mxu0 %v4714_v33  ;;  %18247 = vmatprep.mubr.f32.mxu1 %v22880_v10 }
 0x4b7   : > { %18194 = vmatmul.mubr.f32.gmra.mxu0 %v4724_v22  ;;  %v26405_v22 = vld [vmem:[#allocation111_spill] sm:$0xff] }
 0x4b8   : > { %18248 = vmatmul.mubr.f32.gmra.mxu1 %v22884_v24  ;;  %18196 = vmatprep.mubr.f32.mxu0 %v4734_v8  ;;  %v26411_v8 = vand.u32 4294901760, %v22904_v34 }
 0x4b9   : > { %18250 = vmatprep.mubr.f32.mxu1 %v22906_v40 }
 0x4bb   : > { %18197 = vmatmul.mubr.f32.gmra.mxu0 %v4744_v20 }
 0x4bc   : > { %18251 = vmatmul.mubr.f32.gmra.mxu1 %v22916_v59  ;;  %18199 = vmatprep.mubr.f32.mxu0 %v4754_v37  ;;  %v26401_v37 = vand.u32 4294901760, %v22803_v14 }
 0x4bd   : > { %18253 = vmatprep.mubr.f32.mxu1 %v22930_v0 }
 0x4bf   : > { %18200 = vmatmul.mubr.f32.gmra.mxu0 %v4764_v39  ;;  %v6135_v39 = vld [vmem:[#allocation2 + $0x300] sm:$0xff] }
 0x4c0   : > { %18254 = vmatmul.mubr.f32.gmra.mxu1 %v22943_v47  ;;  %18286 = vmatprep.mubr.f32.mxu0 %v26387_v2 }
 0x4c1   : > { %18256 = vmatprep.mubr.f32.mxu1 %v22947_v18 }
 0x4c3   : > { %18287 = vmatmul.mubr.f32.vlgmr.msra.gmra.mxu0 %v22609_v57 }
 0x4c4   : > { %18257 = vmatmul.mubr.f32.gmra.mxu1 %v22970_v54  ;;  %18383 = vmatpush3.msra.mxu0 %v22636_v1  ;;  %v26388_v1 = vand.u32 4294901760, %v26387_v2  ;;  %v26415_v2 = vand.u32 4294901760, %v22956_v12 }
 0x4c5   : > { %18384 = vmatprep.subr.mxu0 %v22654_v30  ;;  %18259 = vmatprep.mubr.f32.mxu1 %v22977_v11 }
 0x4c6   : > { %18385 = vmatpush3.msra.mxu0 %v22654_v30  ;;  %18289 = vmatprep.mubr.f32.mxu0 %v22709_v23  ;;  %v26389_v30 = vand.u32 4294901760, %v22609_v57  ;;  %v26393_v57 = vld [vmem:[#allocation95_spill] sm:$0xff] }
 0x4c7   : > { %18386 = vmatprep.subr.mxu0 %v22639_v63  ;;  %18290 = vmatmul.mubr.f32.gmra.mxu0 %v22727_v13 }
 0x4c8   : > { %18260 = vmatmul.mubr.f32.gmra.mxu1 %v22995_v42  ;;  %18387 = vmatpush3.msra.mxu0 %v22639_v63  ;;  %v26390_v63 = vand.u32 4294901760, %v22709_v23 }
 0x4c9   : > { %18388 = vmatprep.subr.mxu0 %v22657_v36  ;;  %18292 = vmatprep.mubr.f32.mxu0 %v22753_v19 }
 0x4ca   : > { %18389 = vmatpush3.msra.mxu0 %v22657_v36  ;;  %18346 = vmatprep.mubr.f32.mxu1 %v26388_v1  ;;  %v26391_v36 = vld [vmem:[#allocation106_spill] sm:$0xff] }
 0x4cb   : > { %18390 = vmatprep.subr.mxu0 %v22673_v51  ;;  %18293 = vmatmul.mubr.f32.gmra.mxu0 %v22765_v9 }
 0x4cc   : > { %18347 = vmatmul.mubr.f32.vlgmr.msra.gmra.mxu1 %v26389_v30  ;;  %18391 = vmatpush3.msra.mxu0 %v22673_v51  ;;  %v26395_v51 = vld [vmem:[#allocation100_spill] sm:$0xff]  ;;  %v26416_v30 = vand.u32 4294901760, %v22968_v3 }
 0x4cd   : > { %18443 = vmatpush3.msra.mxu1 %v22603_v25  ;;  %18392 = vmatprep.subr.mxu0 %v22689_v27  ;;  %v26392_v25 = vand.u32 4294901760, %v22727_v13  ;;  %v26398_v13 = vand.u32 4294901760, %v22793_v56 }
 0x4ce   : > { %18444 = vmatprep.subr.mxu1 %v22619_v53  ;;  %18393 = vmatpush3.msra.mxu0 %v22689_v27  ;;  %v6138_v27 = vld [vmem:[#allocation2 + $0x330] sm:$0xff] }
 0x4cf   : > { %18445 = vmatpush3.msra.mxu1 %v22619_v53  ;;  %18295 = vmatprep.mubr.f32.mxu0 %v22793_v56  ;;  %v26394_v53 = vand.u32 4294901760, %v22753_v19  ;;  %v23098_v23 = vand.u32 4294901760, %v6138_v27  ;;  %v26399_v19 = vld [vmem:[#allocation104_spill] sm:$0xff]  ;;  %v26403_v56 = vld [vmem:[#allocation110_spill] sm:$0xff] }
 0x4d0   : > { %18349 = vmatprep.mubr.f32.mxu1 %v26390_v63  ;;  %18394 = vmatprep.subr.mxu0 %v26391_v36  ;;  %v26418_v63 = vand.u32 4294901760, %v22975_v38 }
 0x4d1   : > { %18446 = vmatprep.subr.mxu1 %v22585_v60  ;;  %18296 = vmatmul.mubr.f32.gmra.mxu0 %v22803_v14  ;;  %v26404_v14 = vand.u32 4294901760, %v22822_v44 }
 0x4d2   : > { %18350 = vmatmul.mubr.f32.gmra.mxu1 %v26392_v25  ;;  %18395 = vmatpush3.msra.mxu0 %v26391_v36  ;;  %v26419_v25 = vld [vmem:[#allocation107_spill] sm:$0xff] }
 0x4d3   : > { %18447 = vmatpush3.msra.mxu1 %v22585_v60  ;;  %18396 = vmatprep.subr.mxu0 %v26393_v57  ;;  %v26396_v60 = vand.u32 4294901760, %v22765_v9  ;;  %v23110_v9 = vsub.f32 %v6138_v27, %v23098_v23  ;;  %v26422_v27 = vld [vmem:[#allocation97_spill] sm:$0xff] }
 0x4d4   : > { %18448 = vmatprep.subr.mxu1 %v22592_v21  ;;  %18397 = vmatpush3.msra.mxu0 %v26393_v57 }
 0x4d5   : > { %18449 = vmatpush3.msra.mxu1 %v22592_v21  ;;  %18298 = vmatprep.mubr.f32.mxu0 %v22822_v44  ;;  %v26397_v21 = vld [vmem:[#allocation96_spill] sm:$0xff]  ;;  %v23122_v33 = vand.u32 4294901760, %v23110_v9 }
 0x4d6   : > { %18352 = vmatprep.mubr.f32.mxu1 %v26394_v53  ;;  %18398 = vmatprep.subr.mxu0 %v26395_v51  ;;  %v26420_v53 = vand.u32 4294901760, %v22993_v49 }
 0x4d7   : > { %18450 = vmatprep.subr.mxu1 %v22598_v29  ;;  %18299 = vmatmul.mubr.f32.gmra.mxu0 %v22830_v16  ;;  %v6356_v44 = vsub.f32 %v23110_v9, %v23122_v33 }
 0x4d8   : > { %18353 = vmatmul.mubr.f32.gmra.mxu1 %v26396_v60  ;;  %18399 = vmatpush3.msra.mxu0 %v26395_v51 }
 0x4d9   : > { %18451 = vmatpush3.msra.mxu1 %v22598_v29  ;;  %18400 = vmatprep.subr.mxu0 %v26397_v21  ;;  %v26400_v29 = vld [vmem:[#allocation109_spill] sm:$0xff] }
 0x4da   : > { %18452 = vmatprep.subr.mxu1 %v22611_v50  ;;  %18401 = vmatpush3.msra.mxu0 %v26397_v21  ;;  %v26424_v21 = vld [vmem:[#allocation102_spill] sm:$0xff] }
 0x4db   : > { %18453 = vmatpush3.msra.mxu1 %v22611_v50  ;;  %18301 = vmatprep.mubr.f32.mxu0 %v22847_v32  ;;  %v26402_v50 = vld [vmem:[#allocation99_spill] sm:$0xff] }
 0x4dc   : > { %18355 = vmatprep.mubr.f32.mxu1 %v26398_v13  ;;  %18402 = vmatprep.subr.mxu0 %v26399_v19 }
 0x4dd   : > { %18454 = vmatprep.subr.mxu1 %v22624_v35  ;;  %18302 = vmatmul.mubr.f32.gmra.mxu0 %v26400_v29 }
 0x4de   : > { %18356 = vmatmul.mubr.f32.gmra.mxu1 %v26401_v37  ;;  %18403 = vmatpush3.msra.mxu0 %v26399_v19  ;;  %v26426_v19 = vld [vmem:[#allocation98_spill] sm:$0xff]  ;;  %v26427_v37 = vld [vmem:[#allocation108_spill] sm:$0xff] }
 0x4df   : > { %18455 = vmatpush3.msra.mxu1 %v22624_v35  ;;  %18404 = vmatprep.subr.mxu0 %v26402_v50  ;;  %v26406_v35 = vand.u32 4294901760, %v22830_v16  ;;  %v26409_v16 = vand.u32 4294901760, %v26403_v56 }
 0x4e0   : > { %18456 = vmatprep.subr.mxu1 %v22644_v6  ;;  %18405 = vmatpush3.msra.mxu0 %v26402_v50  ;;  %v26444_v50 = vld [vmem:[#allocation91_spill] sm:$0xff] }
 0x4e1   : > { %18457 = vmatpush3.msra.mxu1 %v22644_v6  ;;  %18304 = vmatprep.mubr.f32.mxu0 %v26403_v56  ;;  %v26407_v6 = vand.u32 4294901760, %v22847_v32  ;;  %v6357_v32 = vand.u32 4294901760, %v6356_v44  ;;  %v26445_v56 = vld [vmem:[#allocation38_spill] sm:$0xff]  ;;  %v26450_v44 = vld [vmem:[#allocation15_spill] sm:$0xff] }
 0x4e2   : > { %18358 = vmatprep.mubr.f32.mxu1 %v26404_v14  ;;  %18458 = vmatprep.subr.mxu1 %v22660_v41  ;;  %v26446_v14 = vld [vmem:[#allocation92_spill] sm:$0xff] }
 0x4e3   : > { %18305 = vmatmul.mubr.f32.gmra.mxu0 %v26405_v22  ;;  %18359 = vmatmul.mubr.f32.gmra.mxu1 %v26406_v35  ;;  %v26448_v35 = vld [vmem:[#allocation53_spill] sm:$0xff] }
 0x4e4   : > { %18459 = vmatpush3.msra.mxu1 %v22660_v41  ;;  %18307 = vmatprep.mubr.f32.mxu0 %v22904_v34  ;;  %v26408_v41 = vand.u32 4294901760, %v26400_v29  ;;  %v26414_v34 = vand.u32 4294901760, %v22941_v26 }
 0x4e5   : > { %18460 = vmatprep.subr.mxu1 %v22676_v45  ;;  %18361 = vmatprep.mubr.f32.mxu1 %v26407_v6  ;;  %v26449_v6 = vld [vmem:[#allocation52_spill] sm:$0xff] }
 0x4e6   : > { %18461 = vmatpush3.msra.mxu1 %v22676_v45  ;;  %18502 = vmatprep.subr.mxu0 %v23098_v23  ;;  %v26410_v45 = vand.u32 4294901760, %v26405_v22  ;;  %v26447_v22 = vld [vmem:[#allocation64_spill] sm:$0xff] }
 0x4e7   : > { %18462 = vmatprep.subr.mxu1 %v22705_v4  ;;  %18308 = vmatmul.mubr.f32.gmra.mxu0 %v22911_v7  ;;  %v23169_v7 = vand.u32 4294901760, %v6136_v55 }
 0x4e8   : > { %18362 = vmatmul.mubr.f32.gmra.mxu1 %v26408_v41  ;;  %18310 = vmatprep.mubr.f32.mxu0 %v22928_v46  ;;  %v26451_v41 = vld [vmem:[#allocation77_spill] sm:$0xff] }
 0x4e9   : > { %18463 = vmatpush3.msra.mxu1 %v22705_v4  ;;  %18364 = vmatprep.mubr.f32.mxu1 %v26409_v16  ;;  %v6137_v4 = vld [vmem:[#allocation2 + $0x320] sm:$0xff]  ;;  %v26452_v16 = vld [vmem:[#allocation48_spill] sm:$0xff] }
 0x4ea   : > { %18464 = vmatprep.subr.mxu1 %v22723_v58  ;;  %v23161_v20 = vand.u32 4294901760, %v6137_v4 }
 0x4eb   : > { %18465 = vmatpush3.msra.mxu1 %v22723_v58  ;;  %18311 = vmatmul.mubr.f32.gmra.mxu0 %v22941_v26  ;;  %v26413_v58 = vand.u32 4294901760, %v22928_v46  ;;  %v23175_v46 = vand.u32 4294901760, %v6135_v39  ;;  %v26417_v26 = vld [vmem:[#allocation93_spill] sm:$0xff] }
 0x4ec   : > { %18365 = vmatmul.mubr.f32.gmra.mxu1 %v26410_v45  ;;  %18313 = vmatprep.mubr.f32.mxu0 %v22956_v12  ;;  %v23172_v1 = vsub.f32 %v6137_v4, %v23161_v20  ;;  %v23183_v12 = vsub.f32 %v6136_v55, %v23169_v7  ;;  %v26454_v45 = vld [vmem:[#allocation54_spill] sm:$0xff]  ;;  %v26456_v4 = vld [vmem:[#allocation71_spill] sm:$0xff] }
 0x4ed   : > { %18367 = vmatprep.mubr.f32.mxu1 %v26411_v8  ;;  %18528 = vmatprep.subr.mxu1 %v6357_v32  ;;  %v23190_v57 = vsub.f32 %v6135_v39, %v23175_v46  ;;  %v26455_v8 = vld [vmem:[#allocation86_spill] sm:$0xff]  ;;  %v26458_v55 = vld [vmem:[#allocation75_spill] sm:$0xff]  ;;  %v26460_v39 = vld [vmem:[#allocation20_spill] sm:$0xff] }
 0x4ee   : > { %v23186_v36 = vand.u32 4294901760, %v23172_v1 }
 0x4ef   : > { %18314 = vmatmul.mubr.f32.gmra.mxu0 %v22968_v3  ;;  %v26421_v3 = vld [vmem:[#allocation103_spill] sm:$0xff] }
 0x4f0   : > { %18368 = vmatmul.mubr.f32.gmra.mxu1 %v26412_v48  ;;  %18316 = vmatprep.mubr.f32.mxu0 %v22975_v38  ;;  %v23199_v38 = vand.u32 4294901760, %v23183_v12  ;;  %v6363_v51 = vsub.f32 %v23172_v1, %v23186_v36  ;;  %v26457_v48 = vld [vmem:[#allocation40_spill] sm:$0xff] }
 0x4f1   : > { %18370 = vmatprep.mubr.f32.mxu1 %v26413_v58 }
 0x4f2   : > { %v6364_v60 = vand.u32 4294901760, %v6363_v51 }
 0x4f3   : > { %18317 = vmatmul.mubr.f32.gmra.mxu0 %v22993_v49  ;;  %v23206_v49 = vand.u32 4294901760, %v23190_v57 }
 0x4f4   : > { %18371 = vmatmul.mubr.f32.gmra.mxu1 %v26414_v34  ;;  %18319 = vmatprep.mubr.f32.mxu0 %v23001_v15  ;;  %v26423_v15 = vld [vmem:[#allocation105_spill] sm:$0xff] }
 0x4f5   : > { %18373 = vmatprep.mubr.f32.mxu1 %v26415_v2  ;;  %v6377_v13 = vsub.f32 %v23190_v57, %v23206_v49  ;;  %v26461_v2 = vld [vmem:[#allocation56_spill] sm:$0xff] }
 0x4f7   : > { %18320 = vmatmul.mubr.f32.gmra.mxu0 %v23015_v43  ;;  %v26425_v43 = vld [vmem:[#allocation101_spill] sm:$0xff]  ;;  %v6378_v29 = vand.u32 4294901760, %v6377_v13 }
 0x4f8   : > { %18374 = vmatmul.mubr.f32.gmra.mxu1 %v26416_v30  ;;  %18406 = vmatprep.mubr.f32.mxu0 %v26417_v26  ;;  %v26462_v30 = vld [vmem:[#allocation58_spill] sm:$0xff] }
 0x4f9   : > { %18376 = vmatprep.mubr.f32.mxu1 %v26418_v63  ;;  %v26464_v63 = vld [vmem:[#allocation76_spill] sm:$0xff] }
 0x4fb   : > { %18407 = vmatmul.mubr.f32.vlgmr.msra.gmra.mxu0 %v26419_v25 }
 0x4fc   : > { %18377 = vmatmul.mubr.f32.gmra.mxu1 %v26420_v53  ;;  %18409 = vmatprep.mubr.f32.mxu0 %v26421_v3  ;;  %v26468_v53 = vld [vmem:[#allocation85_spill] sm:$0xff] }
 0x4fd   : > { %18379 = vmatprep.mubr.f32.mxu1 %v4752_v61  ;;  %18503 = vmatpush3.msra.mxu0 %v23098_v23  ;;  %v6370_v61 = vsub.f32 %v23183_v12, %v23199_v38 }
 0x4fe   : > { %18504 = vmatprep.subr.mxu0 %v23161_v20 }
 0x4ff   : > { %18410 = vmatmul.mubr.f32.gmra.mxu0 %v26422_v27 }
 0x500   : > { %18380 = vmatmul.mubr.f32.gmra.mxu1 %v4762_v17  ;;  %18412 = vmatprep.mubr.f32.mxu0 %v26423_v15  ;;  %v6371_v17 = vand.u32 4294901760, %v6370_v61 }
 0x501   : > { %18466 = vmatprep.mubr.f32.mxu1 %v26417_v26  ;;  %18505 = vmatpush3.msra.mxu0 %v23161_v20  ;;  %v26463_v26 = vld [vmem:[#allocation73_spill] sm:$0xff] }
 0x502   : > { %18506 = vmatprep.subr.mxu0 %v23169_v7 }
 0x503   : > { %18413 = vmatmul.mubr.f32.gmra.mxu0 %v26424_v21 }
 0x504   : > { %18467 = vmatmul.mubr.f32.vlgmr.msra.gmra.mxu1 %v26419_v25  ;;  %18415 = vmatprep.mubr.f32.mxu0 %v26425_v43 }
 0x505   : > { %18469 = vmatprep.mubr.f32.mxu1 %v26421_v3  ;;  %18529 = vmatpush3.msra.mxu1 %v6357_v32  ;;  %v26453_v32 = vld [vmem:[#allocation82_spill] sm:$0xff] }
 0x506   : > { %18530 = vmatprep.subr.mxu1 %v6364_v60  ;;  %18507 = vmatpush3.msra.mxu0 %v23169_v7 }
 0x507   : > { %18416 = vmatmul.mubr.f32.gmra.mxu0 %v26426_v19  ;;  %18531 = vmatpush3.msra.mxu1 %v6364_v60 }
 0x508   : > { %18470 = vmatmul.mubr.f32.gmra.mxu1 %v26422_v27  ;;  %18418 = vmatprep.mubr.f32.mxu0 %v26427_v37 }
 0x509   : > { %18472 = vmatprep.mubr.f32.mxu1 %v26423_v15  ;;  %18532 = vmatprep.subr.mxu1 %v6371_v17  ;;  %v26472_v15 = vld [vmem:[#allocation79_spill] sm:$0xff] }
 0x50a   : > { %18533 = vmatpush3.msra.mxu1 %v6371_v17  ;;  %18508 = vmatprep.subr.mxu0 %v23175_v46  ;;  %v26473_v17 = vld [vmem:[#allocation81_spill] sm:$0xff] }
 0x50b   : > { %18419 = vmatmul.mubr.f32.gmra.mxu0 %v22815_v31  ;;  %18534 = vmatprep.subr.mxu1 %v6378_v29 }
 0x50c   : > { %18473 = vmatmul.mubr.f32.gmra.mxu1 %v26424_v21  ;;  %18421 = vmatprep.mubr.f32.mxu0 %v22832_v62 }
 0x50d   : > { %18475 = vmatprep.mubr.f32.mxu1 %v26425_v43  ;;  %18509 = vmatpush3.msra.mxu0 %v23175_v46 }
 0x50e   : > { %18535 = vmatpush3.msra.mxu1 %v6378_v29  ;;  %18554 = vmatprep.subr.mxu0 %v23110_v9 }
 0x50f   : > { %18422 = vmatmul.mubr.f32.gmra.mxu0 %v22835_v28  ;;  %18580 = vmatprep.subr.mxu1 %v23098_v23 }
 0x510   : > { %18476 = vmatmul.mubr.f32.gmra.mxu1 %v26426_v19  ;;  %18424 = vmatprep.mubr.f32.mxu0 %v22854_v5 }
 0x511   : > { %18478 = vmatprep.mubr.f32.mxu1 %v26427_v37  ;;  %v26475_v37 = vld [vmem:[#allocation90_spill] sm:$0xff] }
 0x513   : > { %18425 = vmatmul.mubr.f32.gmra.mxu0 %v22870_v52 }
 0x514   : > { %18479 = vmatmul.mubr.f32.gmra.mxu1 %v22815_v31  ;;  %18427 = vmatprep.mubr.f32.mxu0 %v22880_v10  ;;  %v26428_v31 = vld [vmem:[#allocation68_spill] sm:$0xff] }
 0x515   : > { %18481 = vmatprep.mubr.f32.mxu1 %v22832_v62  ;;  %v26429_v62 = vld [vmem:[#allocation65_spill] sm:$0xff] }
 0x517   : > { %18428 = vmatmul.mubr.f32.gmra.mxu0 %v22884_v24 }
 0x518   : > { %18482 = vmatmul.mubr.f32.gmra.mxu1 %v22835_v28  ;;  %18430 = vmatprep.mubr.f32.mxu0 %v22906_v40  ;;  %v26430_v28 = vld [vmem:[#allocation49_spill] sm:$0xff] }
 0x519   : > { %18484 = vmatprep.mubr.f32.mxu1 %v22854_v5  ;;  %v26432_v5 = vld [vmem:[#allocation72_spill] sm:$0xff] }
 0x51b   : > { %18431 = vmatmul.mubr.f32.gmra.mxu0 %v22916_v59 }
 0x51c   : > { %18485 = vmatmul.mubr.f32.gmra.mxu1 %v22870_v52  ;;  %18433 = vmatprep.mubr.f32.mxu0 %v22930_v0  ;;  %v26433_v52 = vld [vmem:[#allocation61_spill] sm:$0xff] }
 0x51d   : > { %18487 = vmatprep.mubr.f32.mxu1 %v22880_v10  ;;  %v26431_v10 = vld [vmem:[#allocation30_spill] sm:$0xff] }
 0x51f   : > { %18434 = vmatmul.mubr.f32.gmra.mxu0 %v22943_v47 }
 0x520   : > { %18488 = vmatmul.mubr.f32.gmra.mxu1 %v22884_v24  ;;  %18436 = vmatprep.mubr.f32.mxu0 %v22947_v18  ;;  %v26436_v24 = vld [vmem:[#allocation28_spill] sm:$0xff] }
 0x521   : > { %18490 = vmatprep.mubr.f32.mxu1 %v22906_v40  ;;  %v26437_v40 = vld [vmem:[#allocation11_spill] sm:$0xff] }
 0x523   : > { %18437 = vmatmul.mubr.f32.gmra.mxu0 %v22970_v54 }
 0x524   : > { %18491 = vmatmul.mubr.f32.gmra.mxu1 %v22916_v59  ;;  %18439 = vmatprep.mubr.f32.mxu0 %v22977_v11  ;;  %v26439_v59 = vld [vmem:[#allocation51_spill] sm:$0xff] }
 0x525   : > { %18493 = vmatprep.mubr.f32.mxu1 %v22930_v0  ;;  %v26438_v0 = vld [vmem:[#allocation78_spill] sm:$0xff] }
 0x527   : > { %18440 = vmatmul.mubr.f32.gmra.mxu0 %v22995_v42 }
 0x528   : > { %18494 = vmatmul.mubr.f32.gmra.mxu1 %v22943_v47  ;;  %18510 = vmatprep.mubr.f32.mxu0 %v26428_v31  ;;  %v26435_v47 = vld [vmem:[#allocation63_spill] sm:$0xff] }
 0x529   : > { %18496 = vmatprep.mubr.f32.mxu1 %v22947_v18  ;;  %v26434_v18 = vld [vmem:[#allocation12_spill] sm:$0xff] }
 0x52b   : > { %18511 = vmatmul.mubr.f32.vlgmr.msra.gmra.mxu0 %v26429_v62 }
 0x52c   : > { %18497 = vmatmul.mubr.f32.gmra.mxu1 %v22970_v54  ;;  %18513 = vmatprep.mubr.f32.mxu0 %v26430_v28  ;;  %v26440_v54 = vld [vmem:[#allocation83_spill] sm:$0xff] }
 0x52d   : > { %18499 = vmatprep.mubr.f32.mxu1 %v22977_v11  ;;  %18555 = vmatpush3.msra.mxu0 %v23110_v9  ;;  %v26441_v11 = vld [vmem:[#allocation50_spill] sm:$0xff] }
 0x52e   : > { %18556 = vmatprep.subr.mxu0 %v23172_v1  ;;  %v26443_v9 = vld [vmem:[#allocation46_spill] sm:$0xff] }
 0x52f   : > { %18514 = vmatmul.mubr.f32.gmra.mxu0 %v26431_v10 }
 0x530   : > { %18500 = vmatmul.mubr.f32.gmra.mxu1 %v22995_v42  ;;  %18516 = vmatprep.mubr.f32.mxu0 %v26432_v5  ;;  %v26442_v42 = vld [vmem:[#allocation87_spill] sm:$0xff] }
 0x531   : > { %18536 = vmatprep.mubr.f32.mxu1 %v26433_v52  ;;  %18557 = vmatpush3.msra.mxu0 %v23172_v1 }
 0x532   : > { %18558 = vmatprep.subr.mxu0 %v23183_v12 }
 0x533   : > { %18517 = vmatmul.mubr.f32.gmra.mxu0 %v26434_v18 }
 0x534   : > { %18537 = vmatmul.mubr.f32.vlgmr.msra.gmra.mxu1 %v26435_v47  ;;  %18519 = vmatprep.mubr.f32.mxu0 %v26436_v24 }
 0x535   : > { %18539 = vmatprep.mubr.f32.mxu1 %v26437_v40  ;;  %18581 = vmatpush3.msra.mxu1 %v23098_v23 }
 0x536   : > { %18582 = vmatprep.subr.mxu1 %v23161_v20  ;;  %18559 = vmatpush3.msra.mxu0 %v23183_v12 }
 0x537   : > { %18520 = vmatmul.mubr.f32.gmra.mxu0 %v26438_v0  ;;  %18583 = vmatpush3.msra.mxu1 %v23161_v20 }
 0x538   : > { %18540 = vmatmul.mubr.f32.gmra.mxu1 %v26439_v59  ;;  %18522 = vmatprep.mubr.f32.mxu0 %v26440_v54 }
 0x539   : > { %18542 = vmatprep.mubr.f32.mxu1 %v26441_v11  ;;  %18560 = vmatprep.subr.mxu0 %v23190_v57 }
 0x53a   : > { %18561 = vmatpush3.msra.mxu0 %v23190_v57  ;;  %18584 = vmatprep.subr.mxu1 %v23169_v7  ;;  %v26467_v57 = vld [vmem:[#allocation16_spill] sm:$0xff] }
 0x53b   : > { %18523 = vmatmul.mubr.f32.gmra.mxu0 %v26442_v42  ;;  %18585 = vmatpush3.msra.mxu1 %v23169_v7 }
 0x53c   : > { %18543 = vmatmul.mubr.f32.gmra.mxu1 %v26443_v9  ;;  %18525 = vmatprep.mubr.f32.mxu0 %v26444_v50 }
 0x53d   : > { %18545 = vmatprep.mubr.f32.mxu1 %v26445_v56  ;;  %18586 = vmatprep.subr.mxu1 %v23175_v46 }
 0x53e   : > { %18587 = vmatpush3.msra.mxu1 %v23175_v46  ;;  %18606 = vmatprep.subr.mxu0 %v23122_v33 }
 0x53f   : > { %18526 = vmatmul.mubr.f32.gmra.mxu0 %v26446_v14  ;;  %18632 = vmatprep.subr.mxu1 %v23098_v23 }
 0x540   : > { %18546 = vmatmul.mubr.f32.gmra.mxu1 %v26447_v22  ;;  %18562 = vmatprep.mubr.f32.mxu0 %v26448_v35 }
 0x541   : > { %18548 = vmatprep.mubr.f32.mxu1 %v26449_v6 }
 0x543   : > { %18563 = vmatmul.mubr.f32.vlgmr.msra.gmra.mxu0 %v26450_v44 }
 0x544   : > { %18549 = vmatmul.mubr.f32.gmra.mxu1 %v26451_v41  ;;  %18565 = vmatprep.mubr.f32.mxu0 %v26452_v16 }
 0x545   : > { %18551 = vmatprep.mubr.f32.mxu1 %v26453_v32  ;;  %18607 = vmatpush3.msra.mxu0 %v23122_v33  ;;  %v26459_v33 = vld [vmem:[#allocation57_spill] sm:$0xff] }
 0x546   : > { %18608 = vmatprep.subr.mxu0 %v23186_v36 }
 0x547   : > { %18566 = vmatmul.mubr.f32.gmra.mxu0 %v26454_v45 }
 0x548   : > { %18552 = vmatmul.mubr.f32.gmra.mxu1 %v26455_v8  ;;  %18568 = vmatprep.mubr.f32.mxu0 %v26456_v4 }
 0x549   : > { %18588 = vmatprep.mubr.f32.mxu1 %v26457_v48  ;;  %18609 = vmatpush3.msra.mxu0 %v23186_v36  ;;  %v18168_v58 = vpop.f32.mrf.mxu0  ;;  %v26465_v36 = vld [vmem:[#allocation69_spill] sm:$0xff] }
 0x54a   : > { %18610 = vmatprep.subr.mxu0 %v23199_v38 }
 0x54b   : > { %18569 = vmatmul.mubr.f32.gmra.mxu0 %v26458_v55  ;;  %v23316_v34 = vpop.f32.mrf.mxu0 }
 0x54c   : > { %18589 = vmatmul.mubr.f32.vlgmr.msra.gmra.mxu1 %v26459_v33  ;;  %18571 = vmatprep.mubr.f32.mxu0 %v26460_v39  ;;  %v26478_v33 = vmov 0.0  }
 0x54d   : > { %18591 = vmatprep.mubr.f32.mxu1 %v26461_v2  ;;  %18633 = vmatpush3.msra.mxu1 %v23098_v23  ;;  %v26466_v23 = vld [vmem:[#allocation80_spill] sm:$0xff]  ;;  %243 = vst [vmem:[%s23424_s28] sm:$0xff] %v26478_v33 }
 0x54e   : > { %18634 = vmatprep.subr.mxu1 %v23161_v20  ;;  %18611 = vmatpush3.msra.mxu0 %v23199_v38  ;;  %v18171_v1 = vpop.f32.mrf.mxu0  ;;  %v26469_v38 = vld [vmem:[#allocation55_spill] sm:$0xff] }
 0x54f   : > { %18572 = vmatmul.mubr.f32.gmra.mxu0 %v26462_v30  ;;  %18635 = vmatpush3.msra.mxu1 %v23161_v20 }
 0x550   : > { %18592 = vmatmul.mubr.f32.gmra.mxu1 %v26463_v26  ;;  %18574 = vmatprep.mubr.f32.mxu0 %v26464_v63  ;;  %v23328_v12 = vpop.f32.mrf.mxu0 }
 0x551   : > { %18594 = vmatprep.mubr.f32.mxu1 %v26465_v36  ;;  %18612 = vmatprep.subr.mxu0 %v23206_v49 }
 0x552   : > { %18613 = vmatpush3.msra.mxu0 %v23206_v49  ;;  %18636 = vmatprep.subr.mxu1 %v23169_v7  ;;  %v26470_v49 = vld [vmem:[#allocation89_spill] sm:$0xff] }
 0x553   : > { %18575 = vmatmul.mubr.f32.gmra.mxu0 %v26466_v23  ;;  %18637 = vmatpush3.msra.mxu1 %v23169_v7  ;;  %v18174_v25 = vpop.f32.mrf.mxu0  ;;  %v18228_v20 = vpop.f32.mrf.mxu1  ;;  %v26471_v7 = vld [vmem:[#allocation62_spill] sm:$0xff] }
 0x554   : > { %18595 = vmatmul.mubr.f32.gmra.mxu1 %v26467_v57  ;;  %18577 = vmatprep.mubr.f32.mxu0 %v26468_v53  ;;  %v23338_v3 = vadd.f32 %v18228_v20, %v18168_v58 }
 0x555   : > { %18597 = vmatprep.mubr.f32.mxu1 %v26469_v38  ;;  %18638 = vmatprep.subr.mxu1 %v23175_v46  ;;  %v23342_v51 = vpop.f32.mrf.mxu0  ;;  %v23344_v27 = vpop.f32.mrf.mxu1 }
 0x556   : > { %18639 = vmatpush3.msra.mxu1 %v23175_v46  ;;  %v26474_v46 = vld [vmem:[#allocation88_spill] sm:$0xff] }
 0x557   : > { %18578 = vmatmul.mubr.f32.gmra.mxu0 %v26470_v49 }
 0x558   : > { %18598 = vmatmul.mubr.f32.gmra.mxu1 %v26471_v7  ;;  %18614 = vmatprep.mubr.f32.mxu0 %v26433_v52 }
 0x559   : > { %18600 = vmatprep.mubr.f32.mxu1 %v26472_v15  ;;  %v18177_v61 = vpop.f32.mrf.mxu0  ;;  %v18231_v60 = vpop.f32.mrf.mxu1 }
 0x55a   : > { %v23351_v21 = vadd.f32 %v18231_v60, %v18171_v1 }
 0x55b   : > { %18615 = vmatmul.mubr.f32.vlgmr.msra.gmra.mxu0 %v26435_v47  ;;  %v23354_v13 = vpop.f32.mrf.mxu0  ;;  %v23356_v43 = vpop.f32.mrf.mxu1 }
 0x55c   : > { %18601 = vmatmul.mubr.f32.gmra.mxu1 %v26473_v17  ;;  %18617 = vmatprep.mubr.f32.mxu0 %v26437_v40 }
 0x55d   : > { %18603 = vmatprep.mubr.f32.mxu1 %v26474_v46 }
 0x55f   : > { %18618 = vmatmul.mubr.f32.gmra.mxu0 %v26439_v59  ;;  %v18180_v19 = vpop.f32.mrf.mxu0  ;;  %v18234_v29 = vpop.f32.mrf.mxu1 }
 0x560   : > { %18604 = vmatmul.mubr.f32.gmra.mxu1 %v26475_v37  ;;  %18620 = vmatprep.mubr.f32.mxu0 %v26441_v11  ;;  %v23364_v31 = vadd.f32 %v18234_v29, %v18174_v25 }
 0x561   : > { %18640 = vmatprep.mubr.f32.mxu1 %v26433_v52  ;;  %v23367_v62 = vpop.f32.mrf.mxu0  ;;  %v23369_v28 = vpop.f32.mrf.mxu1 }
 0x563   : > { %18621 = vmatmul.mubr.f32.gmra.mxu0 %v26443_v9 }
 0x564   : > { %18641 = vmatmul.mubr.f32.vlgmr.msra.gmra.mxu1 %v26435_v47  ;;  %18623 = vmatprep.mubr.f32.mxu0 %v26445_v56 }
 0x565   : > { %18643 = vmatprep.mubr.f32.mxu1 %v26437_v40  ;;  %v18183_v10 = vpop.f32.mrf.mxu0  ;;  %v18237_v5 = vpop.f32.mrf.mxu1 }
 0x566   : > { %v23375_v18 = vadd.f32 %v18237_v5, %v18177_v61 }
 0x567   : > { %18624 = vmatmul.mubr.f32.gmra.mxu0 %v26447_v22  ;;  %v23378_v24 = vpop.f32.mrf.mxu0  ;;  %v23380_v52 = vpop.f32.mrf.mxu1 }
 0x568   : > { %18644 = vmatmul.mubr.f32.gmra.mxu1 %v26439_v59  ;;  %18626 = vmatprep.mubr.f32.mxu0 %v26449_v6 }
 0x569   : > { %18646 = vmatprep.mubr.f32.mxu1 %v26441_v11 }
 0x56b   : > { %18627 = vmatmul.mubr.f32.gmra.mxu0 %v26451_v41  ;;  %v18186_v47 = vpop.f32.mrf.mxu0  ;;  %v18240_v40 = vpop.f32.mrf.mxu1 }
 0x56c   : > { %18647 = vmatmul.mubr.f32.gmra.mxu1 %v26443_v9  ;;  %18629 = vmatprep.mubr.f32.mxu0 %v26453_v32  ;;  %v23388_v0 = vadd.f32 %v18240_v40, %v18180_v19 }
 0x56d   : > { %18649 = vmatprep.mubr.f32.mxu1 %v26445_v56  ;;  %v23391_v54 = vpop.f32.mrf.mxu0  ;;  %v23393_v42 = vpop.f32.mrf.mxu1 }
 0x56f   : > { %18630 = vmatmul.mubr.f32.gmra.mxu0 %v26455_v8  ;;  %v18189_v59 = vpop.f32.mrf.mxu0 }
 0x570   : > { %18650 = vmatmul.mubr.f32.gmra.mxu1 %v26447_v22  ;;  %v18243_v11 = vpop.f32.mrf.mxu1 }
 0x571   : > { %18652 = vmatprep.mubr.f32.mxu1 %v26449_v6  ;;  %v23398_v9 = vadd.f32 %v18243_v11, %v18183_v10  ;;  %v23400_v50 = vpop.f32.mrf.mxu0 }
 0x572   : > { %v23402_v14 = vpop.f32.mrf.mxu1 }
 0x573   : > { %v18192_v56 = vpop.f32.mrf.mxu0 }
 0x574   : > { %18653 = vmatmul.mubr.f32.gmra.mxu1 %v26451_v41  ;;  %v18246_v35 = vpop.f32.mrf.mxu1 }
 0x575   : > { %18655 = vmatprep.mubr.f32.mxu1 %v26453_v32  ;;  %v23406_v44 = vadd.f32 %v18246_v35, %v18186_v47  ;;  %v23408_v16 = vpop.f32.mrf.mxu0 }
 0x576   : > { %v23410_v22 = vpop.f32.mrf.mxu1 }
 0x577   : > { %v18195_v6 = vpop.f32.mrf.mxu0 }
 0x578   : > { %18656 = vmatmul.mubr.f32.gmra.mxu1 %v26455_v8  ;;  %v18249_v45 = vpop.f32.mrf.mxu1 }
 0x579   : > { %v23414_v4 = vadd.f32 %v18249_v45, %v18189_v59  ;;  %v23416_v48 = vpop.f32.mrf.mxu0 }
 0x57a   : > { %v23419_v41 = vpop.f32.mrf.mxu1 }
 0x57b   : > { %26476 = vst [vmem:[#allocation94_spill] sm:$0xff] %v23414_v4  ;;  %v18198_v58 = vpop.f32.mrf.mxu0 }
 0x57c   : > { %v18252_v32 = vpop.f32.mrf.mxu1 }
 0x57d   : > { %v23426_v55 = vadd.f32 %v18252_v32, %v18192_v56  ;;  %v23428_v8 = vpop.f32.mrf.mxu0 }
 0x57e   : > { %v23432_v39 = vpop.f32.mrf.mxu1 }
 0x57f   : > { %26477 = vst [vmem:[#allocation106_spill] sm:$0xff] %v23426_v55  ;;  %v18201_v2 = vpop.f32.mrf.mxu0 }
 0x580   : > { %v18255_v1 = vpop.f32.mrf.mxu1 }
 0x581   : > { %v23434_v30 = vadd.f32 %v18255_v1, %v18195_v6  ;;  %v23436_v26 = vpop.f32.mrf.mxu0 }
 0x582   : > { %v23438_v63 = vpop.f32.mrf.mxu1 }
 0x583   : > { %26479 = vst [vmem:[#allocation95_spill] sm:$0xff] %v23434_v30  ;;  %v18288_v36 = vpop.f32.mrf.mxu0 }
 0x584   : > { %v18258_v23 = vpop.f32.mrf.mxu1 }
 0x585   : > { %v23440_v25 = vadd.f32 %v18258_v23, %v18198_v58  ;;  %v5131_v20 = vpop.f32.mrf.mxu0 }
 0x586   : > { %v23442_v57 = vpop.f32.mrf.mxu1 }
 0x587   : > { %26480 = vst [vmem:[#allocation100_spill] sm:$0xff] %v23440_v25  ;;  %v18291_v53 = vpop.f32.mrf.mxu0 }
 0x588   : > { %v18261_v38 = vpop.f32.mrf.mxu1 }
 0x589   : > { %v23444_v49 = vadd.f32 %v18261_v38, %v18201_v2  ;;  %v23446_v7 = vpop.f32.mrf.mxu0 }
 0x58a   : > { %v23448_v15 = vpop.f32.mrf.mxu1 }
 0x58b   : > { %26481 = vst [vmem:[#allocation96_spill] sm:$0xff] %v23444_v49  ;;  %v23450_v61 = vpop.f32.mrf.mxu0 }
 0x58c   : > { %v18348_v60 = vpop.f32.mrf.mxu1 }
 0x58d   : > { %v23452_v17 = vpop.f32.mrf.mxu0 }
 0x58e   : > { %v5377_v46 = vpop.f32.mrf.mxu1 }
 0x591   : > { %v23454_v19 = vpop.f32.mrf.mxu0 }
 0x592   : > { %v18351_v29 = vpop.f32.mrf.mxu1 }
 0x593   : > { %v23456_v37 = vpop.f32.mrf.mxu0 }
 0x594   : > { %v23458_v10 = vpop.f32.mrf.mxu1 }
 0x597   : > { %v23460_v5 = vpop.f32.mrf.mxu0 }
 0x598   : > { %v23462_v47 = vpop.f32.mrf.mxu1 }
 0x599   : > { %v23464_v40 = vpop.f32.mrf.mxu0 }
 0x59a   : > { %v23466_v59 = vpop.f32.mrf.mxu1 }
 0x59d   : > { %v23468_v11 = vpop.f32.mrf.mxu0 }
 0x59e   : > { %v23470_v56 = vpop.f32.mrf.mxu1 }
 0x59f   : > { %v23472_v35 = vpop.f32.mrf.mxu0 }
 0x5a0   : > { %v23474_v6 = vpop.f32.mrf.mxu1 }
 0x5a3   : > { %v23476_v45 = vpop.f32.mrf.mxu0  ;;  %v23478_v58 = vpop.f32.mrf.mxu1 }
 0x5a4   : > { %26482 = vst [vmem:[#allocation104_spill] sm:$0xff] %v23476_v45  ;;  %26483 = vst [vmem:[#allocation109_spill] sm:$0xff] %v23478_v58 }
 0x5a5   : > { %v23480_v32 = vpop.f32.mrf.mxu0  ;;  %v23482_v2 = vpop.f32.mrf.mxu1 }
 0x5a6   : > { %26484 = vst [vmem:[#allocation99_spill] sm:$0xff] %v23480_v32  ;;  %26485 = vst [vmem:[#allocation110_spill] sm:$0xff] %v23482_v2 }
 0x5a7   : > { %v23484_v1 = vpop.f32.mrf.mxu0 }
 0x5a8   : > { %26486 = vst [vmem:[#allocation111_spill] sm:$0xff] %v23484_v1  ;;  %v23486_v23 = vpop.f32.mrf.mxu1 }
 0x5a9   : > { %26487 = vst [vmem:[#allocation93_spill] sm:$0xff] %v23486_v23  ;;  %v23488_v38 = vpop.f32.mrf.mxu0 }
 0x5aa   : > { %26488 = vst [vmem:[#allocation107_spill] sm:$0xff] %v23488_v38  ;;  %v23490_v33 = vpop.f32.mrf.mxu1 }
 0x5ab   : > { %26489 = vst [vmem:[#allocation103_spill] sm:$0xff] %v23490_v33  ;;  %v23492_v49 = vpop.f32.mrf.mxu0 }
 0x5ac   : > { %26490 = vst [vmem:[#allocation97_spill] sm:$0xff] %v23492_v49  ;;  %v23494_v25 = vpop.f32.mrf.mxu1 }
 0x5ad   : > { %26491 = vst [vmem:[#allocation105_spill] sm:$0xff] %v23494_v25  ;;  %v23496_v30 = vpop.f32.mrf.mxu0 }
 0x5ae   : > { %26492 = vst [vmem:[#allocation102_spill] sm:$0xff] %v23496_v30  ;;  %v23498_v55 = vpop.f32.mrf.mxu1 }
 0x5af   : > { %26493 = vst [vmem:[#allocation101_spill] sm:$0xff] %v23498_v55  ;;  %v23500_v4 = vpop.f32.mrf.mxu0 }
 0x5b0   : > { %26494 = vst [vmem:[#allocation98_spill] sm:$0xff] %v23500_v4  ;;  %v23502_v32 = vpop.f32.mrf.mxu1 }
 0x5b1   : > { %26495 = vst [vmem:[#allocation108_spill] sm:$0xff] %v23502_v32  ;;  %v23504_v2 = vpop.f32.mrf.mxu0 }
 0x5b2   : > { %26496 = vst [vmem:[#allocation68_spill] sm:$0xff] %v23504_v2  ;;  %v23506_v1 = vpop.f32.mrf.mxu1 }
 0x5b3   : > { %26497 = vst [vmem:[#allocation65_spill] sm:$0xff] %v23506_v1  ;;  %v23508_v23 = vpop.f32.mrf.mxu0 }
 0x5b4   : > { %26498 = vst [vmem:[#allocation49_spill] sm:$0xff] %v23508_v23  ;;  %v23510_v38 = vpop.f32.mrf.mxu1  ;;  %v4898_v23 = vadd.f32 %v23344_v27, %v23316_v34  ;;  %v4946_v34 = vadd.f32 %v23393_v42, %v23367_v62 }
 0x5b5   : > { %26499 = vst [vmem:[#allocation30_spill] sm:$0xff] %v23510_v38  ;;  %v23512_v33 = vpop.f32.mrf.mxu0 }
 0x5b6   : > { %26500 = vst [vmem:[#allocation72_spill] sm:$0xff] %v23512_v33  ;;  %v23514_v49 = vpop.f32.mrf.mxu1  ;;  %v5139_v33 = vadd.f32 %v18288_v36, %v23338_v3  ;;  %v5153_v3 = vadd.f32 %v18291_v53, %v23351_v21 }
 0x5b7   : > { %26501 = vst [vmem:[#allocation61_spill] sm:$0xff] %v23514_v49  ;;  %v23516_v25 = vpop.f32.mrf.mxu0 }
 0x5b8   : > { %26502 = vst [vmem:[#allocation12_spill] sm:$0xff] %v23516_v25  ;;  %v23518_v30 = vpop.f32.mrf.mxu1  ;;  %v5132_v25 = vadd.f32 %v5131_v20, %v4898_v23  ;;  %v4958_v20 = vadd.f32 %v23402_v14, %v23378_v24  ;;  %v5402_v62 = vadd.f32 %v18351_v29, %v5153_v3  ;;  %v23561_v24 = vadd.f32 %v23438_v63, %v23416_v48  ;;  %v7097_v29 = vld [vmem:[#allocation2 + $0x340] sm:$0xff] }
 0x5b9   : > { %26503 = vst [vmem:[#allocation63_spill] sm:$0xff] %v23518_v30  ;;  %v23520_v55 = vpop.f32.mrf.mxu0  ;;  %v5386_v30 = vadd.f32 %v18348_v60, %v5139_v33  ;;  %v5167_v14 = vadd.f32 %v23450_v61, %v23364_v31  ;;  %v5195_v31 = vadd.f32 %v23460_v5, %v23388_v0  ;;  %v5188_v60 = vadd.f32 %v23464_v40, %v4946_v34 }
 0x5ba   : > { %26504 = vst [vmem:[#allocation28_spill] sm:$0xff] %v23520_v55  ;;  %v23522_v4 = vpop.f32.mrf.mxu1  ;;  %v4910_v55 = vadd.f32 %v23356_v43, %v23328_v12  ;;  %v5378_v27 = vadd.f32 %v5377_v46, %v5132_v25  ;;  %v23548_v12 = vadd.f32 %v23410_v22, %v23391_v54  ;;  %v23565_v54 = vadd.f32 %v23442_v57, %v23428_v8 }
 0x5bb   : > { %26505 = vst [vmem:[#allocation11_spill] sm:$0xff] %v23522_v4  ;;  %v18408_v32 = vpop.f32.mrf.mxu0  ;;  %v5181_v8 = vadd.f32 %v23454_v19, %v23375_v18  ;;  %v5209_v18 = vadd.f32 %v23468_v11, %v23398_v9  ;;  %v26511_v11 = vld [vmem:[#allocation13_spill] sm:$0xff] }
 0x5bc   : > { %v23524_v2 = vpop.f32.mrf.mxu1  ;;  %v5675_v36 = vadd.f32 %v18408_v32, %v5386_v30  ;;  %v5146_v21 = vadd.f32 %v23446_v7, %v4910_v55  ;;  %v26508_v55 = vld [vmem:[#allocation10_spill] sm:$0xff]  ;;  %v26509_v7 = vld [vmem:[#allocation9_spill] sm:$0xff]  ;;  %v5202_v32 = vadd.f32 %v23472_v35, %v4958_v20 }
 0x5bd   : > { %26506 = vst [vmem:[#allocation78_spill] sm:$0xff] %v23524_v2  ;;  %v5668_v1 = vpop.f32.mrf.mxu0  ;;  %v4922_v2 = vadd.f32 %v23369_v28, %v23342_v51  ;;  %v23552_v51 = vadd.f32 %v23419_v41, %v23400_v50  ;;  %v23569_v50 = vadd.f32 %v23448_v15, %v23436_v26  ;;  %v5418_v26 = vadd.f32 %v23462_v47, %v5167_v14  ;;  %v26510_v47 = vld [vmem:[#allocation14_spill] sm:$0xff] }
 0x5be   : > { %v23526_v58 = vpop.f32.mrf.mxu1  ;;  %v5669_v28 = vadd.f32 %v5668_v1, %v5378_v27  ;;  %v5394_v22 = vadd.f32 %v23458_v10, %v5146_v21  ;;  %v26512_v27 = vld [vmem:[#allocation104_spill] sm:$0xff]  ;;  %v26514_v20 = vld [vmem:[#allocation18_spill] sm:$0xff] }
 0x5bf   : > { %26507 = vst [vmem:[#allocation51_spill] sm:$0xff] %v23526_v58  ;;  %v18411_v49 = vpop.f32.mrf.mxu0  ;;  %v4934_v58 = vadd.f32 %v23380_v52, %v23354_v13  ;;  %v23556_v13 = vadd.f32 %v23432_v39, %v23408_v16  ;;  %v5160_v63 = vadd.f32 %v23452_v17, %v4922_v2 }
 0x5c0   : > { %v23531_v38 = vpop.f32.mrf.mxu1  ;;  %v5687_v41 = vadd.f32 %v18411_v49, %v5402_v62 }
 0x5c1   : > { %v5680_v45 = vpop.f32.mrf.mxu0  ;;  %v5174_v25 = vadd.f32 %v23456_v37, %v4934_v58  ;;  %v5410_v17 = vadd.f32 %v23466_v59, %v5160_v63  ;;  %v7104_v59 = vsel %vm4380_vm2, %v7097_v29, 0 }
 0x5c2   : > { %v23539_v4 = vpop.f32.mrf.mxu1  ;;  %v5681_v53 = vadd.f32 %v5680_v45, %v5394_v22  ;;  %v5434_v45 = vadd.f32 %v23470_v56, %v5181_v8  ;;  %v23596_v21 = vand.u32 4294901760, %v7104_v59 }
 0x5c3   : > { %v18414_v33 = vpop.f32.mrf.mxu0  ;;  %v5426_v40 = vadd.f32 %v23474_v6, %v5174_v25 }
 0x5c4   : > { %v18468_v43 = vpop.f32.mrf.mxu1  ;;  %v5699_v46 = vadd.f32 %v18414_v33, %v5418_v26  ;;  %26513 = vst [vmem:[#allocation83_spill] sm:$0xff] %v23596_v21  ;;  %18715 = vmatprep.mubr.f32.mxu1 %v23596_v21 }
 0x5c5   : > { %v5896_v52 = vadd.f32 %v18468_v43, %v5675_v36  ;;  %v5692_v42 = vpop.f32.mrf.mxu0  ;;  %v5223_v36 = vadd.f32 %v26512_v27, %v23406_v44  ;;  %v23603_v44 = vsub.f32 %v7104_v59, %v23596_v21 }
 0x5c6   : > { %v5889_v16 = vpop.f32.mrf.mxu1  ;;  %v5693_v1 = vadd.f32 %v5692_v42, %v5410_v17  ;;  %v26515_v42 = vld [vmem:[#allocation109_spill] sm:$0xff] }
 0x5c7   : > { %v6032_v39 = vsub.f32 %v26508_v55, %v5896_v52  ;;  %v5890_v30 = vadd.f32 %v5889_v16, %v5669_v28  ;;  %v18417_v48 = vpop.f32.mrf.mxu0  ;;  %v5450_v14 = vadd.f32 %v26515_v42, %v5195_v31  ;;  %v26516_v16 = vld [vmem:[#allocation110_spill] sm:$0xff]  ;;  %26517 = vst [vmem:[#allocation50_spill] sm:$0xff] %v23603_v44  ;;  %v26527_v42 = vld [vmem:[#allocation105_spill] sm:$0xff] }
 0x5c8   : > { %v18471_v57 = vpop.f32.mrf.mxu1  ;;  %v5711_v33 = vadd.f32 %v18417_v48, %v5434_v45  ;;  %v5442_v22 = vadd.f32 %v26516_v16, %v5188_v60  ;;  %v26518_v48 = vld [vmem:[#allocation17_spill] sm:$0xff]  ;;  %v26519_v60 = vld [vmem:[#allocation22_spill] sm:$0xff] }
 0x5c9   : > { %v6031_v49 = vsub.f32 %v26509_v7, %v5890_v30  ;;  %v5908_v15 = vadd.f32 %v18471_v57, %v5687_v41  ;;  %v5704_v61 = vpop.f32.mrf.mxu0  ;;  %v6056_v37 = vand.u32 2147483647, %v6032_v39  ;;  %v25894_v7 = vand.u32 4294901760, %v23603_v44 }
 0x5ca   : > { %v5901_v19 = vpop.f32.mrf.mxu1  ;;  %v5705_v39 = vadd.f32 %v5704_v61, %v5426_v40  ;;  %v26520_v61 = vld [vmem:[#allocation93_spill] sm:$0xff]  ;;  %v26522_v40 = vld [vmem:[#allocation19_spill] sm:$0xff] }
 0x5cb   : > { %v6055_v10 = vand.u32 2147483647, %v6031_v49  ;;  %v6034_v58 = vsub.f32 %v26510_v47, %v5908_v15  ;;  %v5902_v0 = vadd.f32 %v5901_v19, %v5681_v53  ;;  %v18420_v5 = vpop.f32.mrf.mxu0  ;;  %v6080_v35 = vsel %vm324_vm0, %v6056_v37, 0.0  ;;  %v26521_v37 = vld [vmem:[#allocation103_spill] sm:$0xff] }
 0x5cc   : > { %v18474_v2 = vpop.f32.mrf.mxu1  ;;  %v5723_v31 = vadd.f32 %v18420_v5, %v5450_v14  ;;  %v5466_v29 = vadd.f32 %v26520_v61, %v5209_v18  ;;  %v5482_v14 = vadd.f32 %v26527_v42, %v5223_v36  ;;  %v26530_v36 = vld [vmem:[#allocation31_spill] sm:$0xff]  ;;  %v26532_v61 = vld [vmem:[#allocation106_spill] sm:$0xff] }
 0x5cd   : > { %v6079_v9 = vsel %vm324_vm0, %v6055_v10, 0.0  ;;  %v6033_v23 = vsub.f32 %v26511_v11, %v5902_v0  ;;  %v5920_v34 = vadd.f32 %v18474_v2, %v5699_v46  ;;  %v5716_v3 = vpop.f32.mrf.mxu0  ;;  %v6058_v43 = vand.u32 2147483647, %v6034_v58  ;;  %v26541_v42 = vld [vmem:[#allocation30_spill] sm:$0xff] }
 0x5ce   : > { %v5913_v56 = vpop.f32.mrf.mxu1  ;;  %v6081_v41 = vadd.f32 %v6080_v35, %v6079_v9  ;;  %v5458_v10 = vadd.f32 %v26521_v37, %v5202_v32  ;;  %v7201_v0 = vsub.f32 %v23603_v44, %v25894_v7  ;;  %v5717_v5 = vadd.f32 %v5716_v3, %v5442_v22  ;;  %v26524_v3 = vld [vmem:[#allocation99_spill] sm:$0xff] }
 0x5cf   : > { %v6057_v6 = vand.u32 2147483647, %v6033_v23  ;;  %v6036_v62 = vsub.f32 %v26514_v20, %v5920_v34  ;;  %v5914_v28 = vadd.f32 %v5913_v56, %v5693_v1  ;;  %v18423_v52 = vpop.f32.mrf.mxu0  ;;  %v6084_v26 = vsel %vm324_vm0, %v6058_v43, 0.0  ;;  %v26525_v20 = vld [vmem:[#allocation94_spill] sm:$0xff] }
 0x5d0   : > { %v18477_v55 = vpop.f32.mrf.mxu1  ;;  %v5735_v11 = vadd.f32 %v18423_v52, %v5466_v29  ;;  %v7202_v18 = vand.u32 4294901760, %v7201_v0  ;;  %v26533_v29 = vld [vmem:[#allocation97_spill] sm:$0xff] }
 0x5d1   : > { %v6082_v30 = vsel %vm324_vm0, %v6057_v6, 0.0  ;;  %v6035_v63 = vsub.f32 %v26518_v48, %v5914_v28  ;;  %v5932_v8 = vadd.f32 %v18477_v55, %v5711_v33  ;;  %v5728_v25 = vpop.f32.mrf.mxu0  ;;  %v6060_v49 = vand.u32 2147483647, %v6036_v62  ;;  %v26523_v33 = vld [vmem:[#allocation25_spill] sm:$0xff]  ;;  %v26526_v62 = vld [vmem:[#allocation111_spill] sm:$0xff] }
 0x5d2   : > { %v6083_v57 = vadd.f32 %v6082_v30, %v6081_v41  ;;  %v5925_v53 = vpop.f32.mrf.mxu1  ;;  %v5216_v6 = vadd.f32 %v26524_v3, %v23548_v12  ;;  %v5237_v28 = vadd.f32 %v26526_v62, %v26525_v20  ;;  %18682 = vmatprep.mubr.f32.mxu0 %v7202_v18  ;;  %v5729_v22 = vadd.f32 %v5728_v25, %v5458_v10  ;;  %v26528_v55 = vld [vmem:[#allocation23_spill] sm:$0xff]  ;;  %v26534_v10 = vld [vmem:[#allocation108_spill] sm:$0xff]  ;;  %v26540_v62 = vld [vmem:[#allocation98_spill] sm:$0xff] }
 0x5d3   : > { %v6059_v15 = vand.u32 2147483647, %v6035_v63  ;;  %v6038_v17 = vsub.f32 %v26519_v60, %v5932_v8  ;;  %v5926_v46 = vadd.f32 %v5925_v53, %v5705_v39  ;;  %v18426_v19 = vpop.f32.mrf.mxu0  ;;  %v6088_v32 = vsel %vm324_vm0, %v6060_v49, 0.0  ;;  %v26529_v63 = vld [vmem:[#allocation101_spill] sm:$0xff]  ;;  %v26531_v25 = vld [vmem:[#allocation107_spill] sm:$0xff] }
 0x5d4   : > { %v6085_v47 = vadd.f32 %v6084_v26, %v6083_v57  ;;  %v18480_v58 = vpop.f32.mrf.mxu1  ;;  %v5474_v8 = vadd.f32 %v26529_v63, %v5216_v6  ;;  %v5747_v57 = vadd.f32 %v18426_v19, %v5482_v14  ;;  %v5251_v37 = vadd.f32 %v26533_v29, %v26532_v61  ;;  %v26539_v20 = vld [vmem:[#allocation95_spill] sm:$0xff]  ;;  %v26543_v63 = vld [vmem:[#allocation61_spill] sm:$0xff] }
 0x5d5   : > { %v6086_v45 = vsel %vm324_vm0, %v6059_v15, 0.0  ;;  %v6037_v2 = vsub.f32 %v26522_v40, %v5926_v46  ;;  %v5944_v59 = vadd.f32 %v18480_v58, %v5723_v31  ;;  %v5740_v1 = vpop.f32.mrf.mxu0  ;;  %v6062_v23 = vand.u32 2147483647, %v6038_v17  ;;  %v26547_v61 = vld [vmem:[#allocation49_spill] sm:$0xff] }
 0x5d6   : > { %v6087_v9 = vadd.f32 %v6086_v45, %v6085_v47  ;;  %v5937_v34 = vpop.f32.mrf.mxu1  ;;  %v5230_v46 = vadd.f32 %v26531_v25, %v23552_v51  ;;  %v5498_v47 = vadd.f32 %v26534_v10, %v5237_v28  ;;  %v26535_v45 = vld [vmem:[#allocation29_spill] sm:$0xff]  ;;  %v5265_v28 = vadd.f32 %v26540_v62, %v26539_v20  ;;  %v26555_v62 = vld [vmem:[#allocation78_spill] sm:$0xff] }
 0x5d7   : > { %v6061_v27 = vand.u32 2147483647, %v6037_v2  ;;  %v6040_v43 = vsub.f32 %v26523_v33, %v5944_v59  ;;  %v5938_v56 = vadd.f32 %v5937_v34, %v5717_v5  ;;  %v18429_v35 = vpop.f32.mrf.mxu0  ;;  %v6092_v26 = vsel %vm324_vm0, %v6062_v23, 0.0  ;;  %v26537_v33 = vld [vmem:[#allocation33_spill] sm:$0xff] }
 0x5d8   : > { %v6089_v16 = vadd.f32 %v6088_v32, %v6087_v9  ;;  %v18483_v52 = vpop.f32.mrf.mxu1  ;;  %v5741_v5 = vadd.f32 %v5740_v1, %v5474_v8  ;;  %v26536_v9 = vld [vmem:[#allocation65_spill] sm:$0xff]  ;;  %v5759_v34 = vadd.f32 %v18429_v35, %v5498_v47  ;;  %v26538_v1 = vld [vmem:[#allocation102_spill] sm:$0xff]  ;;  %v5514_v14 = vadd.f32 %v26541_v42, %v5251_v37  ;;  %v26548_v37 = vld [vmem:[#allocation63_spill] sm:$0xff] }
 0x5d9   : > { %v6090_v41 = vsel %vm324_vm0, %v6061_v27, 0.0  ;;  %v6039_v39 = vsub.f32 %v26528_v55, %v5938_v56  ;;  %v5956_v30 = vadd.f32 %v18483_v52, %v5735_v11  ;;  %v5752_v48 = vpop.f32.mrf.mxu0  ;;  %v6064_v53 = vand.u32 2147483647, %v6040_v43 }
 0x5da   : > { %v6091_v12 = vadd.f32 %v6090_v41, %v6089_v16  ;;  %v5949_v31 = vpop.f32.mrf.mxu1  ;;  %v5490_v11 = vadd.f32 %v26536_v9, %v5230_v46  ;;  %v5244_v6 = vadd.f32 %v26538_v1, %v23556_v13  ;;  %v26542_v41 = vld [vmem:[#allocation32_spill] sm:$0xff]  ;;  %v5530_v10 = vadd.f32 %v26548_v37, %v5265_v28 }
 0x5db   : > { %v6063_v49 = vand.u32 2147483647, %v6039_v39  ;;  %v6042_v15 = vsub.f32 %v26530_v36, %v5956_v30  ;;  %v5950_v60 = vadd.f32 %v5949_v31, %v5729_v22  ;;  %v18432_v17 = vpop.f32.mrf.mxu0  ;;  %v6096_v32 = vsel %vm324_vm0, %v6064_v53, 0.0  ;;  %v26546_v46 = vld [vmem:[#allocation100_spill] sm:$0xff] }
 0x5dc   : > { %v6093_v58 = vadd.f32 %v6092_v26, %v6091_v12  ;;  %v18486_v0 = vpop.f32.mrf.mxu1  ;;  %v5753_v35 = vadd.f32 %v5752_v48, %v5490_v11  ;;  %v5506_v8 = vadd.f32 %v26543_v63, %v5244_v6  ;;  %v5771_v13 = vadd.f32 %v18432_v17, %v5514_v14  ;;  %v26545_v48 = vld [vmem:[#allocation68_spill] sm:$0xff] }
 0x5dd   : > { %v6094_v19 = vsel %vm324_vm0, %v6063_v49, 0.0  ;;  %v6041_v40 = vsub.f32 %v26535_v45, %v5950_v60  ;;  %v5968_v2 = vadd.f32 %v18486_v0, %v5747_v57  ;;  %v5764_v59 = vpop.f32.mrf.mxu0  ;;  %v6066_v18 = vand.u32 2147483647, %v6042_v15  ;;  %v26544_v49 = vld [vmem:[#allocation35_spill] sm:$0xff]  ;;  %v26553_v1 = vld [vmem:[#allocation96_spill] sm:$0xff] }
 0x5de   : > { %v6095_v23 = vadd.f32 %v6094_v19, %v6093_v58  ;;  %v5961_v51 = vpop.f32.mrf.mxu1  ;;  %v5258_v25 = vadd.f32 %v26545_v48, %v23561_v24  ;;  %v5279_v29 = vadd.f32 %v26547_v61, %v26546_v46  ;;  %v5765_v0 = vadd.f32 %v5764_v59, %v5506_v8  ;;  %v26552_v59 = vld [vmem:[#allocation72_spill] sm:$0xff] }
 0x5df   : > { %v6065_v27 = vand.u32 2147483647, %v6041_v40  ;;  %v6044_v43 = vsub.f32 %v26537_v33, %v5968_v2  ;;  %v5962_v56 = vadd.f32 %v5961_v51, %v5741_v5  ;;  %v18435_v3 = vpop.f32.mrf.mxu0  ;;  %v6100_v26 = vsel %vm324_vm0, %v6066_v18, 0.0  ;;  %v26549_v5 = vld [vmem:[#allocation34_spill] sm:$0xff]  ;;  %v26550_v2 = vld [vmem:[#allocation11_spill] sm:$0xff]  ;;  %v26554_v6 = vld [vmem:[#allocation12_spill] sm:$0xff] }
 0x5e0   : > { %v6097_v16 = vadd.f32 %v6096_v32, %v6095_v23  ;;  %v18489_v52 = vpop.f32.mrf.mxu1  ;;  %v5522_v9 = vadd.f32 %v26550_v2, %v5258_v25  ;;  %v5783_v23 = vadd.f32 %v18435_v3, %v5530_v10  ;;  %v26551_v32 = vld [vmem:[#allocation37_spill] sm:$0xff]  ;;  %v5293_v20 = vadd.f32 %v26554_v6, %v26553_v1 }
 0x5e1   : > { %v6098_v22 = vsel %vm324_vm0, %v6065_v27, 0.0  ;;  %v6043_v55 = vsub.f32 %v26542_v41, %v5962_v56  ;;  %v5980_v39 = vadd.f32 %v18489_v52, %v5759_v34  ;;  %v5776_v30 = vpop.f32.mrf.mxu0  ;;  %v6068_v31 = vand.u32 2147483647, %v6044_v43  ;;  %v26556_v52 = vld [vmem:[#allocation36_spill] sm:$0xff] }
 0x5e2   : > { %v6099_v12 = vadd.f32 %v6098_v22, %v6097_v16  ;;  %v5973_v57 = vpop.f32.mrf.mxu1  ;;  %v5272_v56 = vadd.f32 %v26552_v59, %v23565_v54  ;;  %v5546_v28 = vadd.f32 %v26555_v62, %v5279_v29  ;;  %v5777_v3 = vadd.f32 %v5776_v30, %v5522_v9  ;;  %v26559_v30 = vld [vmem:[#allocation28_spill] sm:$0xff]  ;;  %v26560_v29 = vld [vmem:[#allocation39_spill] sm:$0xff] }
 0x5e3   : > { %v6067_v53 = vand.u32 2147483647, %v6043_v55  ;;  %v6046_v36 = vsub.f32 %v26544_v49, %v5980_v39  ;;  %v5974_v15 = vadd.f32 %v5973_v57, %v5753_v35  ;;  %v18438_v60 = vpop.f32.mrf.mxu0  ;;  %v6104_v18 = vsel %vm324_vm0, %v6068_v31, 0.0  ;;  %v26557_v55 = vld [vmem:[#allocation51_spill] sm:$0xff]  ;;  %v26558_v57 = vld [vmem:[#allocation41_spill] sm:$0xff] }
 0x5e4   : > { %v6101_v47 = vadd.f32 %v6100_v26, %v6099_v12  ;;  %v18492_v58 = vpop.f32.mrf.mxu1  ;;  %v5538_v39 = vadd.f32 %v26557_v55, %v5272_v56  ;;  %v5795_v54 = vadd.f32 %v18438_v60, %v5546_v28  ;;  %v26563_v56 = vld [vmem:[#allocation45_spill] sm:$0xff] }
 0x5e5   : > { %v6102_v17 = vsel %vm324_vm0, %v6067_v53, 0.0  ;;  %v6045_v19 = vsub.f32 %v26549_v5, %v5974_v15  ;;  %v5992_v45 = vadd.f32 %v18492_v58, %v5771_v13  ;;  %v5788_v40 = vpop.f32.mrf.mxu0  ;;  %v6070_v34 = vand.u32 2147483647, %v6046_v36 }
 0x5e6   : > { %v6103_v11 = vadd.f32 %v6102_v17, %v6101_v47  ;;  %v5985_v24 = vpop.f32.mrf.mxu1  ;;  %v5286_v36 = vadd.f32 %v26559_v30, %v23569_v50  ;;  %v5562_v15 = vadd.f32 %v23531_v38, %v5293_v20  ;;  %v5789_v46 = vadd.f32 %v5788_v40, %v5538_v39  ;;  %v26561_v38 = vld [vmem:[#allocation43_spill] sm:$0xff] }
 0x5e7   : > { %v6069_v51 = vand.u32 2147483647, %v6045_v19  ;;  %v6048_v27 = vsub.f32 %v26551_v32, %v5992_v45  ;;  %v5986_v33 = vadd.f32 %v5985_v24, %v5765_v0  ;;  %v18441_v43 = vpop.f32.mrf.mxu0  ;;  %v6108_v63 = vsel %vm324_vm0, %v6070_v34, 0.0  ;;  %v26562_v24 = vld [vmem:[#allocation42_spill] sm:$0xff] }
 0x5e8   : > { %v6105_v42 = vadd.f32 %v6104_v18, %v6103_v11  ;;  %v18495_v14 = vpop.f32.mrf.mxu1  ;;  %v5554_v47 = vadd.f32 %v23539_v4, %v5286_v36  ;;  %v5807_v0 = vadd.f32 %v18441_v43, %v5562_v15 }
 0x5e9   : > { %v6106_v16 = vsel %vm324_vm0, %v6069_v51, 0.0  ;;  %v6047_v35 = vsub.f32 %v26556_v52, %v5986_v33  ;;  %v6004_v22 = vadd.f32 %v18495_v14, %v5783_v23  ;;  %v5800_v41 = vpop.f32.mrf.mxu0  ;;  %v6072_v12 = vand.u32 2147483647, %v6048_v27  ;;  %v26564_v14 = vld [vmem:[#allocation44_spill] sm:$0xff] }
 0x5ea   : > { %v6107_v8 = vadd.f32 %v6106_v16, %v6105_v42  ;;  %v5997_v26 = vpop.f32.mrf.mxu1  ;;  %v5801_v23 = vadd.f32 %v5800_v41, %v5554_v47 }
 0x5eb   : > { %v6071_v13 = vand.u32 2147483647, %v6047_v35  ;;  %v6050_v31 = vsub.f32 %v26558_v57, %v6004_v22  ;;  %v5998_v53 = vadd.f32 %v5997_v26, %v5777_v3  ;;  %v18512_v49 = vpop.f32.mrf.mxu0  ;;  %v6112_v50 = vsel %vm324_vm0, %v6072_v12, 0.0 }
 0x5ec   : > { %v6109_v48 = vadd.f32 %v6108_v63, %v6107_v8  ;;  %v18498_v25 = vpop.f32.mrf.mxu1 }
 0x5ed   : > { %v6110_v61 = vsel %vm324_vm0, %v6071_v13, 0.0  ;;  %v6049_v37 = vsub.f32 %v26560_v29, %v5998_v53  ;;  %v6016_v60 = vadd.f32 %v18498_v25, %v5795_v54  ;;  %v23675_v10 = vpop.f32.mrf.mxu0  ;;  %v6074_v17 = vand.u32 2147483647, %v6050_v31 }
 0x5ee   : > { %v6111_v58 = vadd.f32 %v6110_v61, %v6109_v48  ;;  %v6009_v5 = vpop.f32.mrf.mxu1 }
 0x5ef   : > { %v6073_v19 = vand.u32 2147483647, %v6049_v37  ;;  %v6052_v45 = vsub.f32 %v26561_v38, %v6016_v60  ;;  %v6010_v2 = vadd.f32 %v6009_v5, %v5789_v46  ;;  %v18515_v40 = vpop.f32.mrf.mxu0  ;;  %v6116_v32 = vsel %vm324_vm0, %v6074_v17, 0.0 }
 0x5f0   : > { %v6113_v9 = vadd.f32 %v6112_v50, %v6111_v58  ;;  %v18501_v11 = vpop.f32.mrf.mxu1 }
 0x5f1   : > { %v6114_v34 = vsel %vm324_vm0, %v6073_v19, 0.0  ;;  %v6051_v18 = vsub.f32 %v26562_v24, %v6010_v2  ;;  %v6028_v51 = vadd.f32 %v18501_v11, %v5807_v0  ;;  %v23682_v4 = vpop.f32.mrf.mxu0  ;;  %v6076_v43 = vand.u32 2147483647, %v6052_v45 }
 0x5f2   : > { %v6115_v27 = vadd.f32 %v6114_v34, %v6113_v9  ;;  %v6021_v33 = vpop.f32.mrf.mxu1 }
 0x5f3   : > { %v6075_v59 = vand.u32 2147483647, %v6051_v18  ;;  %v6054_v1 = vsub.f32 %v26563_v56, %v6028_v51  ;;  %v6022_v6 = vadd.f32 %v6021_v33, %v5801_v23  ;;  %v18518_v20 = vpop.f32.mrf.mxu0  ;;  %v6120_v41 = vsel %vm324_vm0, %v6076_v43, 0.0 }
 0x5f4   : > { %v6117_v62 = vadd.f32 %v6116_v32, %v6115_v27  ;;  %v18538_v28 = vpop.f32.mrf.mxu1 }
 0x5f5   : > { %v6118_v42 = vsel %vm324_vm0, %v6075_v59, 0.0  ;;  %v6053_v3 = vsub.f32 %v26564_v14, %v6022_v6  ;;  %v23688_v16 = vadd.f32 %v18538_v28, %v18512_v49  ;;  %v23690_v52 = vpop.f32.mrf.mxu0  ;;  %v6078_v55 = vand.u32 2147483647, %v6054_v1 }
 0x5f6   : > { %v6119_v35 = vadd.f32 %v6118_v42, %v6117_v62  ;;  %v23692_v22 = vpop.f32.mrf.mxu1 }
 0x5f7   : > { %v6077_v39 = vand.u32 2147483647, %v6053_v3  ;;  %v23695_v63 = vpop.f32.mrf.mxu0  ;;  %v6124_v53 = vsel %vm324_vm0, %v6078_v55, 0.0 }
 0x5f8   : > { %v6121_v8 = vadd.f32 %v6120_v41, %v6119_v35  ;;  %v18541_v54 = vpop.f32.mrf.mxu1 }
 0x5f9   : > { %v6122_v26 = vsel %vm324_vm0, %v6077_v39, 0.0  ;;  %v23698_v12 = vadd.f32 %v18541_v54, %v18515_v40  ;;  %v23700_v13 = vpop.f32.mrf.mxu0  ;;  %vm15379_vm0 = vcmask 15360  }
 0x5fa   : > { %v6123_v57 = vadd.f32 %v6122_v26, %v6121_v8  ;;  %v23702_v31 = vpop.f32.mrf.mxu1 }
 0x5fb   : > { %v18524_v49 = vpop.f32.mrf.mxu0 }
 0x5fc   : > { %v6125_v30 = vadd.f32 %v6124_v53, %v6123_v57  ;;  %v18544_v36 = vpop.f32.mrf.mxu1 }
 0x5fd   : > { %v23705_v15 = vadd.f32 %v18544_v36, %v18518_v20  ;;  %v23707_v48 = vpop.f32.mrf.mxu0 }
 0x5fe   : > { %v6126_v25 = vrot.slane %v6125_v30, 4  ;;  %v23709_v46 = vpop.f32.mrf.mxu1 }
 0x5ff   : > { %v23711_v61 = vpop.f32.mrf.mxu0 }
 0x600   : > { %v6127_v29 = vadd.f32 %v6126_v25, %v6125_v30  ;;  %v18547_v37 = vpop.f32.mrf.mxu1 }
 0x601   : > { %v23713_v60 = vpop.f32.mrf.mxu0 }
 0x602   : > { %v6128_v47 = vrot.slane %v6127_v29, 2  ;;  %v6451_v58 = vpop.f32.mrf.mxu1 }
 0x603   : > { %v23715_v0 = vpop.f32.mrf.mxu0 }
 0x604   : > { %v6129_v17 = vadd.f32 %v6128_v47, %v6127_v29  ;;  %v18550_v5 = vpop.f32.mrf.mxu1 }
 0x605   : > { %v23717_v50 = vpop.f32.mrf.mxu0 }
 0x606   : > { %v6130_v19 = vrot.slane %v6129_v17, 1  ;;  %v6463_v38 = vpop.f32.mrf.mxu1 }
 0x607   : > { %v23719_v45 = vpop.f32.mrf.mxu0 }
 0x608   : > { %v6131_v2 = vadd.f32 %v6130_v19, %v6129_v17  ;;  %v18553_v40 = vpop.f32.mrf.mxu1  ;;  %v7098_v17 = vld [vmem:[#allocation2 + $0x350] sm:$0xff] }
 0x609   : > { %v23721_v9 = vpop.f32.mrf.mxu0  ;;  %v23755_v7 = vsel %vm4380_vm2, %v7098_v17, 0  ;;  %v6416_v17 = vadd.f32 %v23692_v22, %v23675_v10 }
 0x60a   : > { %v6132_v11 = vmul.f32 4.0690105e-05, %v6131_v2  ;;  %v6475_v23 = vpop.f32.mrf.mxu1  ;;  %26573 = vst [vmem:[#allocation15_spill] sm:$0xff] %v23755_v7 }
 0x60b   : > { %v18570_v34 = vpop.f32.mrf.mxu0 }
 0x60c   : > { %6134 = vst.msk [vmem:[%s23424_s28] sm:$0x1] %vm6133_vm3, %v6132_v11  ;;  %v23724_v24 = vpop.f32.mrf.mxu1  ;;  %v6470_v11 = vadd.f32 %v18550_v5, %v18524_v49  ;;  %vm16340_vm3 = vcmask 27648  }
 0x60d   : > { %v23726_v18 = vpop.f32.mrf.mxu0 }
 0x60e   : > { %v23728_v51 = vpop.f32.mrf.mxu1 }
 0x60f   : > { %26565 = vst [vmem:[#allocation87_spill] sm:$0xff] %v23728_v51  ;;  %v18573_v32 = vpop.f32.mrf.mxu0 }
 0x610   : > { %v23730_v27 = vpop.f32.mrf.mxu1 }
 0x611   : > { %v6603_v33 = vpop.f32.mrf.mxu0 }
 0x612   : > { %v23732_v43 = vpop.f32.mrf.mxu1 }
 0x613   : > { %v18576_v59 = vpop.f32.mrf.mxu0 }
 0x614   : > { %v18596_v56 = vpop.f32.mrf.mxu1 }
 0x615   : > { %v6617_v1 = vpop.f32.mrf.mxu0 }
 0x616   : > { %v23734_v6 = vpop.f32.mrf.mxu1 }
 0x617   : > { %v18579_v20 = vpop.f32.mrf.mxu0 }
 0x618   : > { %v18599_v62 = vpop.f32.mrf.mxu1 }
 0x619   : > { %v6631_v28 = vpop.f32.mrf.mxu0 }
 0x61a   : > { %v6763_v42 = vpop.f32.mrf.mxu1 }
 0x61b   : > { %v23736_v14 = vpop.f32.mrf.mxu0 }
 0x61c   : > { %26566 = vst [vmem:[#allocation46_spill] sm:$0xff] %v23736_v14  ;;  %v18602_v3 = vpop.f32.mrf.mxu1  ;;  %v6452_v14 = vadd.f32 %v6451_v58, %v23700_v13 }
 0x61d   : > { %v23738_v35 = vpop.f32.mrf.mxu0 }
 0x61e   : > { %26567 = vst [vmem:[#allocation91_spill] sm:$0xff] %v23738_v35  ;;  %v6779_v41 = vpop.f32.mrf.mxu1  ;;  %v6464_v35 = vadd.f32 %v6463_v38, %v23707_v48  ;;  %v6476_v48 = vadd.f32 %v6475_v23, %v23713_v60 }
 0x61f   : > { %v23740_v55 = vpop.f32.mrf.mxu0 }
 0x620   : > { %v18605_v39 = vpop.f32.mrf.mxu1  ;;  %v6618_v49 = vadd.f32 %v6617_v1, %v6464_v35 }
 0x621   : > { %v23742_v8 = vpop.f32.mrf.mxu0 }
 0x622   : > { %26568 = vst [vmem:[#allocation38_spill] sm:$0xff] %v23742_v8  ;;  %v6795_v54 = vpop.f32.mrf.mxu1 }
 0x623   : > { %v18622_v26 = vpop.f32.mrf.mxu0 }
 0x624   : > { %v23744_v57 = vpop.f32.mrf.mxu1 }
 0x625   : > { %26569 = vst [vmem:[#allocation92_spill] sm:$0xff] %v23744_v57  ;;  %v23746_v53 = vpop.f32.mrf.mxu0  ;;  %v6458_v57 = vadd.f32 %v18547_v37, %v23695_v63  ;;  %v6428_v63 = vadd.f32 %v23702_v31, %v23682_v4  ;;  %v6604_v37 = vadd.f32 %v6603_v33, %v6452_v14 }
 0x626   : > { %v23748_v30 = vpop.f32.mrf.mxu1 }
 0x627   : > { %26570 = vst [vmem:[#allocation64_spill] sm:$0xff] %v23748_v30  ;;  %v18625_v36 = vpop.f32.mrf.mxu0  ;;  %v6625_v30 = vadd.f32 %v18576_v59, %v6470_v11  ;;  %v6611_v8 = vadd.f32 %v18573_v32, %v6458_v57  ;;  %v6780_v11 = vadd.f32 %v6779_v41, %v6618_v49  ;;  %v6632_v32 = vadd.f32 %v6631_v28, %v6476_v48 }
 0x628   : > { %v23750_v25 = vpop.f32.mrf.mxu1  ;;  %v6764_v1 = vadd.f32 %v6763_v42, %v6604_v37  ;;  %v26577_v37 = vld [vmem:[#allocation46_spill] sm:$0xff] }
 0x629   : > { %26571 = vst [vmem:[#allocation53_spill] sm:$0xff] %v23750_v25  ;;  %v6922_v29 = vpop.f32.mrf.mxu0  ;;  %v23761_v25 = vand.u32 4294901760, %v23755_v7  ;;  %v6788_v5 = vadd.f32 %v18602_v3, %v6625_v30  ;;  %v6772_v59 = vadd.f32 %v18599_v62, %v6611_v8  ;;  %v6796_v33 = vadd.f32 %v6795_v54, %v6632_v32 }
 0x62a   : > { %v23752_v47 = vpop.f32.mrf.mxu1 }
 0x62b   : > { %26572 = vst [vmem:[#allocation52_spill] sm:$0xff] %v23752_v47  ;;  %v18628_v19 = vpop.f32.mrf.mxu0  ;;  %v6482_v47 = vadd.f32 %v18553_v40, %v23711_v61  ;;  %v6440_v61 = vadd.f32 %v23709_v46, %v23690_v52  ;;  %v6597_v40 = vadd.f32 %v18570_v34, %v23705_v15  ;;  %v6929_v3 = vadd.f32 %v18625_v36, %v6772_v59 }
 0x62c   : > { %v18648_v2 = vpop.f32.mrf.mxu1  ;;  %v6941_v7 = vadd.f32 %v18628_v19, %v6788_v5  ;;  %v6569_v15 = vadd.f32 %v23715_v0, %v23688_v16  ;;  %v6583_v46 = vadd.f32 %v23719_v45, %v23698_v12 }
 0x62d   : > { %v6934_v21 = vpop.f32.mrf.mxu0  ;;  %v6639_v58 = vadd.f32 %v18579_v20, %v6482_v47  ;;  %v6590_v60 = vadd.f32 %v23726_v18, %v6440_v61  ;;  %v6756_v23 = vadd.f32 %v18596_v56, %v6597_v40  ;;  %v6923_v20 = vadd.f32 %v6922_v29, %v6764_v1  ;;  %v26579_v1 = vld [vmem:[#allocation91_spill] sm:$0xff] }
 0x62e   : > { %v7051_v44 = vpop.f32.mrf.mxu1  ;;  %v6935_v4 = vadd.f32 %v6934_v21, %v6780_v11  ;;  %v6724_v19 = vadd.f32 %v23724_v24, %v6569_v15 }
 0x62f   : > { %v18631_v38 = vpop.f32.mrf.mxu0  ;;  %v6804_v22 = vadd.f32 %v18605_v39, %v6639_v58  ;;  %v6748_v21 = vadd.f32 %v23734_v6, %v6590_v60  ;;  %v6740_v39 = vadd.f32 %v23730_v27, %v6583_v46 }
 0x630   : > { %v18651_v51 = vpop.f32.mrf.mxu1 }
 0x631   : > { %v6946_v62 = vpop.f32.mrf.mxu0  ;;  %v6953_v35 = vadd.f32 %v18631_v38, %v6804_v22  ;;  %v7070_v41 = vadd.f32 %v18651_v51, %v6929_v3  ;;  %v6576_v51 = vadd.f32 %v23721_v9, %v6428_v63  ;;  %v6911_v54 = vadd.f32 %v23746_v53, %v6748_v21  ;;  %v26576_v63 = vld [vmem:[#allocation87_spill] sm:$0xff]  ;;  %v26580_v22 = vld [vmem:[#allocation92_spill] sm:$0xff] }
 0x632   : > { %v7063_v13 = vpop.f32.mrf.mxu1  ;;  %v6947_v18 = vadd.f32 %v6946_v62, %v6796_v33  ;;  %v6905_v9 = vadd.f32 %v23740_v55, %v6740_v39  ;;  %v6893_v38 = vadd.f32 %v26577_v37, %v6724_v19  ;;  %v26581_v62 = vld [vmem:[#allocation64_spill] sm:$0xff] }
 0x633   : > { %v7064_v56 = vadd.f32 %v7063_v13, %v6923_v20  ;;  %v23785_v0 = vand.u32 4294901760, %v7070_v41  ;;  %v6732_v30 = vadd.f32 %v23732_v43, %v6576_v51  ;;  %v7052_v36 = vadd.f32 %v7051_v44, %v6911_v54  ;;  %v26575_v43 = vld [vmem:[#allocation53_spill] sm:$0xff]  ;;  %v26578_v13 = vld [vmem:[#allocation52_spill] sm:$0xff] }
 0x634   : > { %v18654_v10 = vpop.f32.mrf.mxu1  ;;  %v7046_v49 = vadd.f32 %v26575_v43, %v6905_v9  ;;  %v7034_v3 = vadd.f32 %v26580_v22, %v6893_v38 }
 0x635   : > { %v7082_v31 = vadd.f32 %v18654_v10, %v6941_v7  ;;  %v6917_v7 = vadd.f32 %v18622_v26, %v6756_v23  ;;  %v6562_v26 = vadd.f32 %v23717_v50, %v6416_v17  ;;  %v23795_v27 = vand.u32 4294901760, %v7064_v56  ;;  %v26574_v50 = vld [vmem:[#allocation38_spill] sm:$0xff] }
 0x636   : > { %v7075_v14 = vpop.f32.mrf.mxu1  ;;  %v23813_v44 = vsub.f32 %v7070_v41, %v23785_v0  ;;  %v23828_v59 = vand.u32 4294901760, %v7052_v36  ;;  %v23872_v21 = vand.u32 4294901760, %v7034_v3 }
 0x637   : > { %v23773_v8 = vand.u32 4294901760, %v7082_v31  ;;  %v7076_v52 = vadd.f32 %v7075_v14, %v6935_v4  ;;  %v7058_v57 = vadd.f32 %v18648_v2, %v6917_v7  ;;  %v6899_v2 = vadd.f32 %v26574_v50, %v6732_v30  ;;  %v26582_v7 = vld [vmem:[#allocation15_spill] sm:$0xff]  ;;  %v7099_v50 = vld [vmem:[#allocation2 + $0x360] sm:$0xff] }
 0x638   : > { %v18657_v34 = vpop.f32.mrf.mxu1  ;;  %v6716_v48 = vadd.f32 %v26576_v63, %v6562_v26  ;;  %v23832_v11 = vsub.f32 %v7064_v56, %v23795_v27  ;;  %v23845_v4 = vand.u32 4294901760, %v7046_v49  ;;  %v23857_v20 = vand.u32 4294901760, %v23813_v44 }
 0x639   : > { %v23780_v28 = vand.u32 4294901760, %v7076_v52  ;;  %v7094_v42 = vadd.f32 %v18657_v34, %v6953_v35  ;;  %v23788_v12 = vsub.f32 %v7082_v31, %v23773_v8  ;;  %v23809_v55 = vand.u32 4294901760, %v7058_v57 }
 0x63a   : > { %v7087_v16 = vpop.f32.mrf.mxu1  ;;  %v7040_v58 = vadd.f32 %v26578_v13, %v6899_v2  ;;  %v6887_v10 = vadd.f32 %v26579_v1, %v6716_v48  ;;  %v23864_v41 = vsub.f32 %v7052_v36, %v23828_v59  ;;  %v23870_v46 = vand.u32 4294901760, %v23832_v11  ;;  %v7100_v2 = vld [vmem:[#allocation2 + $0x370] sm:$0xff] }
 0x63b   : > { %v23790_v45 = vand.u32 4294901760, %v7094_v42  ;;  %v7088_v6 = vadd.f32 %v7087_v16, %v6947_v18  ;;  %v23798_v53 = vsub.f32 %v7076_v52, %v23780_v28  ;;  %v23823_v24 = vand.u32 4294901760, %v23788_v12 }
 0x63c   : > { %v23848_v31 = vsub.f32 %v7058_v57, %v23809_v55  ;;  %v7028_v14 = vadd.f32 %v26581_v62, %v6887_v10  ;;  %v23860_v35 = vand.u32 4294901760, %v7040_v58  ;;  %v23877_v34 = vsub.f32 %v26582_v7, %v23761_v25  ;;  %v7101_v10 = vld [vmem:[#allocation2 + $0x380] sm:$0xff] }
 0x63d   : > { %v23801_v29 = vsub.f32 %v7094_v42, %v23790_v45  ;;  %v23803_v47 = vand.u32 4294901760, %v7088_v6  ;;  %18658 = vmatprep.subr.mxu0 %v23790_v45  ;;  %v23841_v32 = vand.u32 4294901760, %v23798_v53  ;;  %v7284_v33 = vsub.f32 %v23788_v12, %v23823_v24 }
 0x63e   : > { %18659 = vmatpush3.msra.mxu0 %v23790_v45  ;;  %v23880_v18 = vsub.f32 %v7046_v49, %v23845_v4  ;;  %v7298_v42 = vsub.f32 %v23813_v44, %v23857_v20  ;;  %v23886_v51 = vand.u32 4294901760, %v23848_v31  ;;  %v23888_v39 = vand.u32 4294901760, %v7028_v14 }
 0x63f   : > { %v23816_v5 = vsub.f32 %v7088_v6, %v23803_v47  ;;  %18660 = vmatprep.subr.mxu0 %v23803_v47  ;;  %v23820_v17 = vand.u32 4294901760, %v23801_v29  ;;  %v7291_v15 = vsub.f32 %v23798_v53, %v23841_v32  ;;  %v7285_v56 = vand.u32 4294901760, %v7284_v33  ;;  %v7102_v33 = vld [vmem:[#allocation2 + $0x390] sm:$0xff] }
 0x640   : > { %18661 = vmatpush3.msra.mxu0 %v23803_v47  ;;  %v23892_v54 = vsub.f32 %v7040_v58, %v23860_v35  ;;  %v7305_v16 = vsub.f32 %v23832_v11, %v23870_v46  ;;  %v23898_v6 = vand.u32 4294901760, %v23864_v41  ;;  %v7210_v26 = vand.u32 4294901760, %v23877_v34 }
 0x641   : > { %18662 = vmatprep.subr.mxu0 %v23773_v8  ;;  %v7270_v61 = vsub.f32 %v23801_v29, %v23820_v17  ;;  %v23838_v40 = vand.u32 4294901760, %v23816_v5  ;;  %v7292_v57 = vand.u32 4294901760, %v7291_v15  ;;  %v23903_v30 = vsub.f32 %v7034_v3, %v23872_v21 }
 0x642   : > { %18663 = vmatpush3.msra.mxu0 %v23773_v8  ;;  %v7299_v9 = vand.u32 4294901760, %v7298_v42  ;;  %v7312_v36 = vsub.f32 %v23848_v31, %v23886_v51  ;;  %v23909_v19 = vand.u32 4294901760, %v23880_v18  ;;  %v23913_v43 = vsub.f32 %v7028_v14, %v23888_v39 }
 0x643   : > { %18664 = vmatprep.subr.mxu0 %v23780_v28  ;;  %v7271_v60 = vand.u32 4294901760, %v7270_v61  ;;  %v7277_v23 = vsub.f32 %v23816_v5, %v23838_v40  ;;  %v7306_v49 = vand.u32 4294901760, %v7305_v16  ;;  %v7319_v63 = vsub.f32 %v23864_v41, %v23898_v6 }
 0x644   : > { %18665 = vmatpush3.msra.mxu0 %v23780_v28  ;;  %v23919_v48 = vand.u32 4294901760, %v23892_v54  ;;  %v7211_v37 = vsub.f32 %v23877_v34, %v7210_v26  ;;  %v7110_v38 = vsel %vm4380_vm2, %v7099_v50, 0  ;;  %v7313_v13 = vand.u32 4294901760, %v7312_v36 }
 0x645   : > { %18666 = vmatprep.subr.mxu0 %v23785_v0  ;;  %18691 = vmatprep.subr.mxu1 %v7271_v60  ;;  %v7278_v52 = vand.u32 4294901760, %v7277_v23  ;;  %v7326_v58 = vsub.f32 %v23880_v18, %v23909_v19  ;;  %v23930_v61 = vand.u32 4294901760, %v23903_v30  ;;  %v7113_v1 = vsel %vm4380_vm2, %v7100_v2, 0 }
 0x646   : > { %18667 = vmatpush3.msra.mxu0 %v23785_v0  ;;  %18692 = vmatpush3.msra.mxu1 %v7271_v60  ;;  %v7320_v22 = vand.u32 4294901760, %v7319_v63  ;;  %v7333_v3 = vsub.f32 %v23892_v54, %v23919_v48  ;;  %v23938_v60 = vand.u32 4294901760, %v23913_v43  ;;  %v23940_v23 = vand.u32 4294901760, %v7110_v38 }
 0x647   : > { %18668 = vmatprep.subr.mxu0 %v23795_v27  ;;  %18693 = vmatprep.subr.mxu1 %v7278_v52  ;;  %v7212_v62 = vand.u32 4294901760, %v7211_v37  ;;  %v23943_v14 = vand.u32 4294901760, %v7113_v1  ;;  %v7340_v15 = vsub.f32 %v23903_v30, %v23930_v61  ;;  %v7116_v7 = vsel %vm4380_vm2, %v7101_v10, 0 }
 0x648   : > { %18669 = vmatpush3.msra.mxu0 %v23795_v27  ;;  %18694 = vmatpush3.msra.mxu1 %v7278_v52  ;;  %v7327_v52 = vand.u32 4294901760, %v7326_v58  ;;  %v7334_v42 = vand.u32 4294901760, %v7333_v3  ;;  %v23955_v16 = vsub.f32 %v7110_v38, %v23940_v23  ;;  %v23960_v36 = vand.u32 4294901760, %v7116_v7 }
 0x649   : > { %18670 = vmatprep.subr.mxu0 %v23809_v55  ;;  %18695 = vmatprep.subr.mxu1 %v7285_v56  ;;  %v7341_v50 = vand.u32 4294901760, %v7340_v15 }
 0x64a   : > { %18671 = vmatpush3.msra.mxu0 %v23809_v55  ;;  %18696 = vmatpush3.msra.mxu1 %v7285_v56  ;;  %v7119_v56 = vsel %vm4380_vm2, %v7102_v33, 0  ;;  %v7220_v63 = vand.u32 4294901760, %v23955_v16  ;;  %vm15842_vm2 = vcmask 1045504  }
 0x64b   : > { %18672 = vmatprep.subr.mxu0 %v23828_v59  ;;  %18697 = vmatprep.subr.mxu1 %v7292_v57  ;;  %v23963_v2 = vand.u32 4294901760, %v7119_v56 }
 0x64c   : > { %18673 = vmatpush3.msra.mxu0 %v23828_v59  ;;  %18698 = vmatpush3.msra.mxu1 %v7292_v57  ;;  %v7347_v57 = vsub.f32 %v23913_v43, %v23938_v60 }
 0x64d   : > { %18674 = vmatprep.subr.mxu0 %v23845_v4  ;;  %18699 = vmatprep.subr.mxu1 %v7299_v9  ;;  %v23975_v38 = vsub.f32 %v7119_v56, %v23963_v2 }
 0x64e   : > { %18675 = vmatpush3.msra.mxu0 %v23845_v4  ;;  %18700 = vmatpush3.msra.mxu1 %v7299_v9  ;;  %v23958_v9 = vsub.f32 %v7113_v1, %v23943_v14 }
 0x64f   : > { %18676 = vmatprep.subr.mxu0 %v23860_v35  ;;  %18701 = vmatprep.subr.mxu1 %v7306_v49 }
 0x650   : > { %18677 = vmatpush3.msra.mxu0 %v23860_v35  ;;  %18702 = vmatpush3.msra.mxu1 %v7306_v49  ;;  %v7348_v49 = vand.u32 4294901760, %v7347_v57  ;;  %v7230_v37 = vand.u32 4294901760, %v23958_v9 }
 0x651   : > { %18678 = vmatprep.subr.mxu0 %v23872_v21  ;;  %18703 = vmatprep.subr.mxu1 %v7313_v13 }
 0x652   : > { %18679 = vmatpush3.msra.mxu0 %v23872_v21  ;;  %18704 = vmatpush3.msra.mxu1 %v7313_v13 }
 0x653   : > { %18680 = vmatprep.subr.mxu0 %v23888_v39  ;;  %18705 = vmatprep.subr.mxu1 %v7320_v22 }
 0x654   : > { %18681 = vmatpush3.msra.mxu0 %v23888_v39  ;;  %18706 = vmatpush3.msra.mxu1 %v7320_v22 }
 0x655   : > { %18707 = vmatprep.subr.mxu1 %v7327_v52  ;;  %18724 = vmatprep.subr.mxu0 %v23801_v29 }
 0x656   : > { %18683 = vmatmul.mubr.f32.vlgmr.msra.gmra.mxu0 %v7212_v62  ;;  %18708 = vmatpush3.msra.mxu1 %v7327_v52 }
 0x657   : > { %18725 = vmatpush3.msra.mxu0 %v23801_v29  ;;  %18709 = vmatprep.subr.mxu1 %v7334_v42  ;;  %v23971_v29 = vsub.f32 %v7116_v7, %v23960_v36 }
 0x658   : > { %18726 = vmatprep.subr.mxu0 %v23816_v5  ;;  %18710 = vmatpush3.msra.mxu1 %v7334_v42 }
 0x659   : > { %18727 = vmatpush3.msra.mxu0 %v23816_v5  ;;  %18711 = vmatprep.subr.mxu1 %v7341_v50  ;;  %v7221_v5 = vsub.f32 %v23955_v16, %v7220_v63  ;;  %v7240_v13 = vand.u32 4294901760, %v23971_v29 }
 0x65a   : > { %18728 = vmatprep.subr.mxu0 %v23788_v12  ;;  %18712 = vmatpush3.msra.mxu1 %v7341_v50 }
 0x65b   : > { %18729 = vmatpush3.msra.mxu0 %v23788_v12  ;;  %18713 = vmatprep.subr.mxu1 %v7348_v49  ;;  %v7231_v12 = vsub.f32 %v23958_v9, %v7230_v37  ;;  %v7222_v58 = vand.u32 4294901760, %v7221_v5 }
 0x65c   : > { %18730 = vmatprep.subr.mxu0 %v23798_v53  ;;  %18714 = vmatpush3.msra.mxu1 %v7348_v49 }
 0x65d   : > { %18731 = vmatpush3.msra.mxu0 %v23798_v53  ;;  %18716 = vmatmul.mubr.f32.vlgmr.msra.gmra.mxu1 %v23761_v25  ;;  %v7250_v53 = vand.u32 4294901760, %v23975_v38  ;;  %v7232_v1 = vand.u32 4294901760, %v7231_v12 }
 0x65e   : > { %18732 = vmatprep.subr.mxu0 %v23813_v44  ;;  %18757 = vmatprep.subr.mxu1 %v23790_v45 }
 0x65f   : > { %18733 = vmatpush3.msra.mxu0 %v23813_v44  ;;  %18758 = vmatpush3.msra.mxu1 %v23790_v45  ;;  %v7241_v44 = vsub.f32 %v23971_v29, %v7240_v13 }
 0x660   : > { %18734 = vmatprep.subr.mxu0 %v23832_v11  ;;  %18759 = vmatprep.subr.mxu1 %v23803_v47 }
 0x661   : > { %18735 = vmatpush3.msra.mxu0 %v23832_v11  ;;  %18760 = vmatpush3.msra.mxu1 %v23803_v47  ;;  %v7251_v11 = vsub.f32 %v23975_v38, %v7250_v53  ;;  %v7242_v10 = vand.u32 4294901760, %v7241_v44 }
 0x662   : > { %18736 = vmatprep.subr.mxu0 %v23848_v31  ;;  %18761 = vmatprep.subr.mxu1 %v23773_v8 }
 0x663   : > { %18737 = vmatpush3.msra.mxu0 %v23848_v31  ;;  %18762 = vmatpush3.msra.mxu1 %v23773_v8  ;;  %v7252_v31 = vand.u32 4294901760, %v7251_v11 }
 0x664   : > { %18738 = vmatprep.subr.mxu0 %v23864_v41  ;;  %18763 = vmatprep.subr.mxu1 %v23780_v28 }
 0x665   : > { %18685 = vmatprep.mubr.f32.mxu0 %v7222_v58  ;;  %18739 = vmatpush3.msra.mxu0 %v23864_v41  ;;  %v26583_v41 = vld [vmem:[#allocation50_spill] sm:$0xff] }
 0x666   : > { %18764 = vmatpush3.msra.mxu1 %v23780_v28  ;;  %18686 = vmatmul.mubr.f32.gmra.mxu0 %v7232_v1 }
 0x667   : > { %18740 = vmatprep.subr.mxu0 %v23880_v18  ;;  %18765 = vmatprep.subr.mxu1 %v23785_v0 }
 0x668   : > { %18741 = vmatpush3.msra.mxu0 %v23880_v18  ;;  %18766 = vmatpush3.msra.mxu1 %v23785_v0 }
 0x669   : > { %18742 = vmatprep.subr.mxu0 %v23892_v54  ;;  %18767 = vmatprep.subr.mxu1 %v23795_v27 }
 0x66a   : > { %18688 = vmatprep.mubr.f32.mxu0 %v7242_v10  ;;  %18743 = vmatpush3.msra.mxu0 %v23892_v54 }
 0x66b   : > { %18768 = vmatpush3.msra.mxu1 %v23795_v27  ;;  %18689 = vmatmul.mubr.f32.gmra.mxu0 %v7252_v31 }
 0x66c   : > { %18718 = vmatprep.mubr.f32.mxu1 %v23940_v23  ;;  %18744 = vmatprep.subr.mxu0 %v23903_v30 }
 0x66d   : > { %18769 = vmatprep.subr.mxu1 %v23809_v55  ;;  %18719 = vmatmul.mubr.f32.gmra.mxu1 %v23943_v14 }
 0x66e   : > { %18745 = vmatpush3.msra.mxu0 %v23903_v30  ;;  %18770 = vmatpush3.msra.mxu1 %v23809_v55 }
 0x66f   : > { %18746 = vmatprep.subr.mxu0 %v23913_v43  ;;  %18771 = vmatprep.subr.mxu1 %v23828_v59 }
 0x670   : > { %18747 = vmatpush3.msra.mxu0 %v23913_v43  ;;  %18748 = vmatprep.mubr.f32.mxu0 %v26583_v41 }
 0x671   : > { %18772 = vmatpush3.msra.mxu1 %v23828_v59  ;;  %18721 = vmatprep.mubr.f32.mxu1 %v23960_v36 }
 0x672   : > { %18749 = vmatmul.mubr.f32.vlgmr.msra.gmra.mxu0 %v23877_v34  ;;  %18773 = vmatprep.subr.mxu1 %v23845_v4 }
 0x673   : > { %18790 = vmatprep.subr.mxu0 %v23820_v17  ;;  %18722 = vmatmul.mubr.f32.gmra.mxu1 %v23963_v2 }
 0x674   : > { %18774 = vmatpush3.msra.mxu1 %v23845_v4  ;;  %18791 = vmatpush3.msra.mxu0 %v23820_v17  ;;  %v26584_v17 = vand.u32 4294901760, %v26583_v41 }
 0x675   : > { %18775 = vmatprep.subr.mxu1 %v23860_v35  ;;  %18792 = vmatprep.subr.mxu0 %v23838_v40 }
 0x676   : > { %18751 = vmatprep.mubr.f32.mxu0 %v23955_v16  ;;  %18776 = vmatpush3.msra.mxu1 %v23860_v35 }
 0x677   : > { %18793 = vmatpush3.msra.mxu0 %v23838_v40  ;;  %18777 = vmatprep.subr.mxu1 %v23872_v21 }
 0x678   : > { %18752 = vmatmul.mubr.f32.gmra.mxu0 %v23958_v9  ;;  %18794 = vmatprep.subr.mxu0 %v23823_v24 }
 0x679   : > { %18778 = vmatpush3.msra.mxu1 %v23872_v21  ;;  %18795 = vmatpush3.msra.mxu0 %v23823_v24 }
 0x67a   : > { %18779 = vmatprep.subr.mxu1 %v23888_v39  ;;  %18796 = vmatprep.subr.mxu0 %v23841_v32 }
 0x67b   : > { %18754 = vmatprep.mubr.f32.mxu0 %v23971_v29  ;;  %18780 = vmatpush3.msra.mxu1 %v23888_v39 }
 0x67c   : > { %18781 = vmatprep.mubr.f32.mxu1 %v26584_v17  ;;  %18797 = vmatpush3.msra.mxu0 %v23841_v32 }
 0x67d   : > { %18755 = vmatmul.mubr.f32.gmra.mxu0 %v23975_v38  ;;  %18782 = vmatmul.mubr.f32.vlgmr.msra.gmra.mxu1 %v7210_v26 }
 0x67e   : > { %18798 = vmatprep.subr.mxu0 %v23857_v20  ;;  %18823 = vmatprep.subr.mxu1 %v23790_v45 }
 0x67f   : > { %18799 = vmatpush3.msra.mxu0 %v23857_v20  ;;  %18824 = vmatpush3.msra.mxu1 %v23790_v45  ;;  %v7925_v45 = vld [vmem:[#allocation2 + $0x3a0] sm:$0xff] }
 0x680   : > { %18800 = vmatprep.subr.mxu0 %v23870_v46  ;;  %18825 = vmatprep.subr.mxu1 %v23803_v47 }
 0x681   : > { %18784 = vmatprep.mubr.f32.mxu1 %v7220_v63  ;;  %18801 = vmatpush3.msra.mxu0 %v23870_v46 }
 0x682   : > { %18826 = vmatpush3.msra.mxu1 %v23803_v47  ;;  %18802 = vmatprep.subr.mxu0 %v23886_v51  ;;  %v24121_v47 = vand.u32 4294901760, %v7925_v45 }
 0x683   : > { %18785 = vmatmul.mubr.f32.gmra.mxu1 %v7230_v37  ;;  %18827 = vmatprep.subr.mxu1 %v23773_v8 }
 0x684   : > { %18803 = vmatpush3.msra.mxu0 %v23886_v51  ;;  %18828 = vmatpush3.msra.mxu1 %v23773_v8  ;;  %v26585_v8 = vld [vmem:[#allocation83_spill] sm:$0xff] }
 0x685   : > { %18804 = vmatprep.subr.mxu0 %v23898_v6  ;;  %18829 = vmatprep.subr.mxu1 %v23780_v28 }
 0x686   : > { %18787 = vmatprep.mubr.f32.mxu1 %v7240_v13  ;;  %18805 = vmatpush3.msra.mxu0 %v23898_v6 }
 0x687   : > { %18830 = vmatpush3.msra.mxu1 %v23780_v28  ;;  %18806 = vmatprep.subr.mxu0 %v23909_v19  ;;  %v7926_v28 = vld [vmem:[#allocation2 + $0x3b0] sm:$0xff] }
 0x688   : > { %18788 = vmatmul.mubr.f32.gmra.mxu1 %v7250_v53  ;;  %18831 = vmatprep.subr.mxu1 %v23785_v0 }
 0x689   : > { %18807 = vmatpush3.msra.mxu0 %v23909_v19  ;;  %18832 = vmatpush3.msra.mxu1 %v23785_v0  ;;  %v24116_v0 = vand.u32 4294901760, %v7926_v28 }
 0x68a   : > { %18808 = vmatprep.subr.mxu0 %v23919_v48  ;;  %18833 = vmatprep.subr.mxu1 %v23795_v27 }
 0x68b   : > { %18809 = vmatpush3.msra.mxu0 %v23919_v48  ;;  %18834 = vmatpush3.msra.mxu1 %v23795_v27  ;;  %v24119_v27 = vsub.f32 %v7926_v28, %v24116_v0 }
 0x68c   : > { %18810 = vmatprep.subr.mxu0 %v23930_v61  ;;  %18835 = vmatprep.subr.mxu1 %v23809_v55 }
 0x68d   : > { %18811 = vmatpush3.msra.mxu0 %v23930_v61  ;;  %18836 = vmatpush3.msra.mxu1 %v23809_v55  ;;  %v24129_v55 = vsub.f32 %v7925_v45, %v24121_v47 }
 0x68e   : > { %18812 = vmatprep.subr.mxu0 %v23938_v60  ;;  %18837 = vmatprep.subr.mxu1 %v23828_v59 }
 0x68f   : > { %18813 = vmatpush3.msra.mxu0 %v23938_v60  ;;  %18814 = vmatprep.mubr.f32.mxu0 %v26585_v8 }
 0x690   : > { %18838 = vmatpush3.msra.mxu1 %v23828_v59  ;;  %18815 = vmatmul.mubr.f32.vlgmr.msra.gmra.mxu0 %v23761_v25  ;;  %v24136_v59 = vand.u32 4294901760, %v24129_v55 }
 0x691   : > { %18839 = vmatprep.subr.mxu1 %v23845_v4  ;;  %18817 = vmatprep.mubr.f32.mxu0 %v23940_v23 }
 0x692   : > { %18840 = vmatpush3.msra.mxu1 %v23845_v4  ;;  %18847 = vmatprep.mubr.f32.mxu1 %v26585_v8  ;;  %v8112_v32 = vsub.f32 %v24129_v55, %v24136_v59 }
 0x693   : > { %18841 = vmatprep.subr.mxu1 %v23860_v35  ;;  %18856 = vmatprep.subr.mxu0 %v24116_v0 }
 0x694   : > { %18842 = vmatpush3.msra.mxu1 %v23860_v35  ;;  %18818 = vmatmul.mubr.f32.gmra.mxu0 %v23943_v14  ;;  %v8113_v4 = vand.u32 4294901760, %v8112_v32 }
 0x695   : > { %18843 = vmatprep.subr.mxu1 %v23872_v21  ;;  %18820 = vmatprep.mubr.f32.mxu0 %v23960_v36 }
 0x696   : > { %18844 = vmatpush3.msra.mxu1 %v23872_v21  ;;  %18857 = vmatpush3.msra.mxu0 %v24116_v0 }
 0x697   : > { %18845 = vmatprep.subr.mxu1 %v23888_v39  ;;  %18858 = vmatprep.subr.mxu0 %v24121_v47 }
 0x698   : > { %18846 = vmatpush3.msra.mxu1 %v23888_v39  ;;  %18821 = vmatmul.mubr.f32.gmra.mxu0 %v23963_v2 }
 0x699   : > { %18848 = vmatmul.mubr.f32.vlgmr.msra.gmra.mxu1 %v23761_v25  ;;  %v24126_v25 = vand.u32 4294901760, %v24119_v27  ;;  %18859 = vmatpush3.msra.mxu0 %v24121_v47 }
 0x69a   : > { %18850 = vmatprep.mubr.f32.mxu1 %v23940_v23  ;;  %18882 = vmatprep.subr.mxu0 %v24119_v27 }
 0x69b   : > { %v8105_v24 = vsub.f32 %v24119_v27, %v24126_v25 }
 0x69d   : > { %18851 = vmatmul.mubr.f32.gmra.mxu1 %v23943_v14  ;;  %v8106_v40 = vand.u32 4294901760, %v8105_v24 }
 0x69e   : > { %18853 = vmatprep.mubr.f32.mxu1 %v23960_v36 }
 0x69f   : > { %18869 = vmatprep.subr.mxu1 %v8106_v40 }
 0x6a0   : > { %18870 = vmatpush3.msra.mxu1 %v8106_v40 }
 0x6a1   : > { %18854 = vmatmul.mubr.f32.gmra.mxu1 %v23963_v2  ;;  %18871 = vmatprep.subr.mxu1 %v8113_v4 }
 0x6a2   : > { %18872 = vmatpush3.msra.mxu1 %v8113_v4 }
 0x6a3   : > { %18895 = vmatprep.subr.mxu1 %v24116_v0 }
 0x716   : > { %v18684_v20 = vpop.f32.mrf.mxu0 }
 0x718   : > { %v7204_v35 = vpop.f32.mrf.mxu0 }
 0x71d   : > { %v18717_v34 = vpop.f32.mrf.mxu1 }
 0x71e   : > { %v7392_v52 = vadd.f32 %v18717_v34, %v18684_v20 }
 0x71f   : > { %v7385_v51 = vpop.f32.mrf.mxu1 }
 0x720   : > { %v7386_v56 = vadd.f32 %v7385_v51, %v7204_v35 }
 0x726   : > { %v18687_v46 = vpop.f32.mrf.mxu0 }
 0x728   : > { %v7224_v21 = vpop.f32.mrf.mxu0 }
 0x72b   : > { %v18690_v18 = vpop.f32.mrf.mxu0 }
 0x72d   : > { %v18720_v39 = vpop.f32.mrf.mxu1  ;;  %v7244_v54 = vpop.f32.mrf.mxu0 }
 0x72e   : > { %v7404_v16 = vadd.f32 %v18720_v39, %v18687_v46 }
 0x72f   : > { %v7397_v6 = vpop.f32.mrf.mxu1 }
 0x730   : > { %v7398_v49 = vadd.f32 %v7397_v6, %v7224_v21 }
 0x732   : > { %v18750_v26 = vpop.f32.mrf.mxu0 }
 0x733   : > { %v18723_v30 = vpop.f32.mrf.mxu1  ;;  %v7519_v42 = vadd.f32 %v18750_v26, %v7392_v52 }
 0x734   : > { %v7511_v19 = vpop.f32.mrf.mxu0  ;;  %v7416_v38 = vadd.f32 %v18723_v30, %v18690_v18 }
 0x735   : > { %v7409_v43 = vpop.f32.mrf.mxu1  ;;  %v7512_v9 = vadd.f32 %v7511_v19, %v7386_v56 }
 0x736   : > { %v7410_v1 = vadd.f32 %v7409_v43, %v7244_v54 }
 0x738   : > { %v18753_v48 = vpop.f32.mrf.mxu0 }
 0x739   : > { %v7533_v63 = vadd.f32 %v18753_v48, %v7404_v16 }
 0x73a   : > { %v7525_v22 = vpop.f32.mrf.mxu0 }
 0x73b   : > { %v7526_v12 = vadd.f32 %v7525_v22, %v7398_v49 }
 0x73d   : > { %v18783_v61 = vpop.f32.mrf.mxu1  ;;  %v18756_v60 = vpop.f32.mrf.mxu0 }
 0x73e   : > { %v7640_v36 = vadd.f32 %v18783_v61, %v7519_v42  ;;  %v7547_v44 = vadd.f32 %v18756_v60, %v7416_v38 }
 0x73f   : > { %v7631_v3 = vpop.f32.mrf.mxu1  ;;  %v7539_v33 = vpop.f32.mrf.mxu0 }
 0x740   : > { %v7632_v37 = vadd.f32 %v7631_v3, %v7512_v9  ;;  %v7540_v28 = vadd.f32 %v7539_v33, %v7410_v1 }
 0x743   : > { %v18786_v23 = vpop.f32.mrf.mxu1 }
 0x744   : > { %v7656_v13 = vadd.f32 %v18786_v23, %v7533_v63 }
 0x745   : > { %v7647_v62 = vpop.f32.mrf.mxu1 }
 0x746   : > { %v7648_v31 = vadd.f32 %v7647_v62, %v7526_v12 }
 0x748   : > { %v18789_v7 = vpop.f32.mrf.mxu1 }
 0x749   : > { %v7672_v40 = vadd.f32 %v18789_v7, %v7547_v44 }
 0x74a   : > { %v7663_v50 = vpop.f32.mrf.mxu1 }
 0x74b   : > { %v7664_v18 = vadd.f32 %v7663_v50, %v7540_v28 }
 0x750   : > { %v18816_v14 = vpop.f32.mrf.mxu0 }
 0x751   : > { %v7785_v29 = vadd.f32 %v18816_v14, %v7640_v36 }
 0x752   : > { %v7778_v15 = vpop.f32.mrf.mxu0 }
 0x753   : > { %v7779_v53 = vadd.f32 %v7778_v15, %v7632_v37 }
 0x754   : > { %v18819_v57 = vpop.f32.mrf.mxu0 }
 0x755   : > { %v7797_v41 = vadd.f32 %v18819_v57, %v7656_v13 }
 0x756   : > { %v7790_v2 = vpop.f32.mrf.mxu0 }
 0x757   : > { %v7791_v32 = vadd.f32 %v7790_v2, %v7648_v31 }
 0x758   : > { %v18822_v11 = vpop.f32.mrf.mxu0 }
 0x759   : > { %v18849_v5 = vpop.f32.mrf.mxu1  ;;  %v7809_v51 = vadd.f32 %v18822_v11, %v7672_v40 }
 0x75a   : > { %v24142_v58 = vadd.f32 %v18849_v5, %v7785_v29  ;;  %v7802_v46 = vpop.f32.mrf.mxu0 }
 0x75b   : > { %v7891_v10 = vpop.f32.mrf.mxu1  ;;  %v7803_v43 = vadd.f32 %v7802_v46, %v7664_v18 }
 0x75c   : > { %26586 = vst [vmem:[#allocation77_spill] sm:$0xff] %v24142_v58  ;;  %v7932_v17 = vsel %vm7927_vm4, %v24142_v58, 0  ;;  %v24146_v8 = vadd.f32 %v7891_v10, %v7779_v53 }
 0x75d   : > { %v24148_v45 = vand.u32 4294901760, %v7932_v17  ;;  %v18852_v24 = vpop.f32.mrf.mxu1 }
 0x75e   : > { %26587 = vst [vmem:[#allocation48_spill] sm:$0xff] %v24146_v8  ;;  %v7929_v4 = vsel %vm7927_vm4, %v24146_v8, 0  ;;  %v24152_v20 = vadd.f32 %v18852_v24, %v7797_v41 }
 0x75f   : > { %v24155_v35 = vsub.f32 %v7932_v17, %v24148_v45  ;;  %v24157_v21 = vand.u32 4294901760, %v7929_v4  ;;  %v7903_v34 = vpop.f32.mrf.mxu1 }
 0x760   : > { %26588 = vst [vmem:[#allocation82_spill] sm:$0xff] %v24152_v20  ;;  %v7938_v39 = vsel %vm7927_vm4, %v24152_v20, 0  ;;  %v24161_v54 = vadd.f32 %v7903_v34, %v7791_v32 }
 0x761   : > { %26589 = vst [vmem:[#allocation54_spill] sm:$0xff] %v24155_v35  ;;  %v24164_v6 = vand.u32 4294901760, %v24155_v35  ;;  %v24167_v26 = vsub.f32 %v7929_v4, %v24157_v21  ;;  %v24169_v30 = vand.u32 4294901760, %v7938_v39  ;;  %v18855_v19 = vpop.f32.mrf.mxu1  ;;  %18873 = vmatprep.mubr.f32.mxu1 %v24157_v21 }
 0x762   : > { %26590 = vst [vmem:[#allocation86_spill] sm:$0xff] %v24161_v54  ;;  %v7935_v48 = vsel %vm7927_vm4, %v24161_v54, 0  ;;  %v24174_v61 = vadd.f32 %v18855_v19, %v7809_v51  ;;  %18874 = vmatmul.mubr.f32.vlgmr.msra.gmra.mxu1 %v24148_v45  ;;  %v8621_v54 = vld [vmem:[#allocation2 + $0x3d0] sm:$0xff] }
 0x763   : > { %26591 = vst [vmem:[#allocation71_spill] sm:$0xff] %v24164_v6  ;;  %26592 = vst [vmem:[#allocation40_spill] sm:$0xff] %v24169_v30  ;;  %v24178_v22 = vsub.f32 %v7938_v39, %v24169_v30  ;;  %v24180_v3 = vand.u32 4294901760, %v7935_v48  ;;  %v7915_v60 = vpop.f32.mrf.mxu1  ;;  %v24183_v23 = vand.u32 4294901760, %v24167_v26  ;;  %18896 = vmatpush3.msra.mxu1 %v24116_v0  ;;  %v8026_v33 = vsub.f32 %v24155_v35, %v24164_v6 }
 0x764   : > { %26593 = vst [vmem:[#allocation75_spill] sm:$0xff] %v24174_v61  ;;  %v7944_v62 = vsel %vm7927_vm4, %v24174_v61, 0  ;;  %v24190_v14 = vadd.f32 %v7915_v60, %v7803_v43  ;;  %18897 = vmatprep.subr.mxu1 %v24121_v47 }
 0x765   : > { %26594 = vst [vmem:[#allocation57_spill] sm:$0xff] %v24178_v22  ;;  %26595 = vst [vmem:[#allocation20_spill] sm:$0xff] %v24183_v23  ;;  %v24194_v52 = vand.u32 4294901760, %v24178_v22  ;;  %v24197_v15 = vsub.f32 %v7935_v48, %v24180_v3  ;;  %v24199_v7 = vand.u32 4294901760, %v7944_v62  ;;  %18876 = vmatprep.mubr.f32.mxu1 %v24180_v3  ;;  %18898 = vmatpush3.msra.mxu1 %v24121_v47  ;;  %v24217_v36 = vand.u32 4294901760, %v8026_v33 }
 0x766   : > { %26596 = vst [vmem:[#allocation56_spill] sm:$0xff] %v24190_v14  ;;  %v7941_v56 = vsel %vm7927_vm4, %v24190_v14, 0  ;;  %18877 = vmatmul.mubr.f32.gmra.mxu1 %v24169_v30  ;;  %v8016_v42 = vsub.f32 %v24167_v26, %v24183_v23  ;;  %18921 = vmatprep.subr.mxu1 %v24116_v0 }
 0x767   : > { %26597 = vst [vmem:[#allocation58_spill] sm:$0xff] %v24194_v52  ;;  %26598 = vst [vmem:[#allocation73_spill] sm:$0xff] %v24197_v15  ;;  %v24210_v57 = vsub.f32 %v7944_v62, %v24199_v7  ;;  %v24212_v16 = vand.u32 4294901760, %v7941_v56  ;;  %v24215_v9 = vand.u32 4294901760, %v24197_v15  ;;  %v8046_v37 = vsub.f32 %v24178_v22, %v24194_v52 }
 0x768   : > { %26599 = vst [vmem:[#allocation76_spill] sm:$0xff] %v24199_v7  ;;  %v24219_v50 = vand.u32 4294901760, %v8016_v42 }
 0x769   : > { %26600 = vst [vmem:[#allocation69_spill] sm:$0xff] %v24210_v57  ;;  %26601 = vst [vmem:[#allocation80_spill] sm:$0xff] %v24212_v16  ;;  %v24222_v2 = vand.u32 4294901760, %v24210_v57  ;;  %v24225_v49 = vsub.f32 %v7941_v56, %v24212_v16  ;;  %18879 = vmatprep.mubr.f32.mxu1 %v24212_v16  ;;  %v8036_v63 = vsub.f32 %v24197_v15, %v24215_v9  ;;  %v24243_v5 = vand.u32 4294901760, %v8046_v37 }
 0x76a   : > { %26602 = vst [vmem:[#allocation16_spill] sm:$0xff] %v24215_v9  ;;  %18860 = vmatprep.mubr.f32.mxu0 %v24219_v50  ;;  %18880 = vmatmul.mubr.f32.gmra.mxu1 %v24199_v7 }
 0x76b   : > { %26603 = vst [vmem:[#allocation85_spill] sm:$0xff] %v24222_v2  ;;  %26604 = vst [vmem:[#allocation55_spill] sm:$0xff] %v24225_v49  ;;  %18861 = vmatmul.mubr.f32.vlgmr.msra.gmra.mxu0 %v24217_v36  ;;  %18899 = vmatprep.mubr.f32.mxu1 %v24183_v23  ;;  %v24236_v29 = vand.u32 4294901760, %v8036_v63  ;;  %v24239_v38 = vand.u32 4294901760, %v24225_v49  ;;  %v8066_v13 = vsub.f32 %v24210_v57, %v24222_v2 }
 0x76c   : > { %18883 = vmatpush3.msra.mxu0 %v24119_v27 }
 0x76d   : > { %26605 = vst [vmem:[#allocation89_spill] sm:$0xff] %v24239_v38  ;;  %18863 = vmatprep.mubr.f32.mxu0 %v24236_v29  ;;  %v8056_v12 = vsub.f32 %v24225_v49, %v24239_v38  ;;  %18884 = vmatprep.subr.mxu0 %v24129_v55  ;;  %v24259_v53 = vand.u32 4294901760, %v8066_v13 }
 0x76e   : > { %18900 = vmatmul.mubr.f32.vlgmr.msra.gmra.mxu1 %v24164_v6  ;;  %18885 = vmatpush3.msra.mxu0 %v24129_v55  ;;  %v8637_v6 = vsel %vm8632_vm5, %v8621_v54, 0 }
 0x76f   : > { %18864 = vmatmul.mubr.f32.gmra.mxu0 %v24243_v5  ;;  %18902 = vmatprep.mubr.f32.mxu1 %v24215_v9  ;;  %v24254_v27 = vand.u32 4294901760, %v8056_v12 }
 0x770   : > { %18922 = vmatpush3.msra.mxu1 %v24116_v0  ;;  %18908 = vmatprep.subr.mxu0 %v24126_v25  ;;  %v8620_v0 = vld [vmem:[#allocation2 + $0x3c0] sm:$0xff] }
 0x771   : > { %18866 = vmatprep.mubr.f32.mxu0 %v24254_v27  ;;  %18923 = vmatprep.subr.mxu1 %v24121_v47 }
 0x772   : > { %18903 = vmatmul.mubr.f32.gmra.mxu1 %v24194_v52 }
 0x773   : > { %18867 = vmatmul.mubr.f32.gmra.mxu0 %v24259_v53  ;;  %18905 = vmatprep.mubr.f32.mxu1 %v24239_v38 }
 0x774   : > { %18886 = vmatprep.mubr.f32.mxu0 %v24167_v26  ;;  %18924 = vmatpush3.msra.mxu1 %v24121_v47  ;;  %v8634_v47 = vsel %vm8632_vm5, %v8620_v0, 0 }
 0x776   : > { %18906 = vmatmul.mubr.f32.gmra.mxu1 %v24222_v2 }
 0x777   : > { %18887 = vmatmul.mubr.f32.vlgmr.msra.gmra.mxu0 %v24155_v35  ;;  %18925 = vmatprep.mubr.f32.mxu1 %v24157_v21 }
 0x778   : > { %18889 = vmatprep.mubr.f32.mxu0 %v24197_v15  ;;  %18909 = vmatpush3.msra.mxu0 %v24126_v25  ;;  %v24289_v25 = vand.u32 4294901760, %v8634_v47 }
 0x779   : > { %18910 = vmatprep.subr.mxu0 %v24136_v59 }
 0x77a   : > { %18926 = vmatmul.mubr.f32.vlgmr.msra.gmra.mxu1 %v24148_v45  ;;  %18911 = vmatpush3.msra.mxu0 %v24136_v59  ;;  %v24292_v55 = vsub.f32 %v8634_v47, %v24289_v25 }
 0x77b   : > { %18890 = vmatmul.mubr.f32.gmra.mxu0 %v24178_v22  ;;  %18928 = vmatprep.mubr.f32.mxu1 %v24180_v3 }
 0x77c   : > { %18892 = vmatprep.mubr.f32.mxu0 %v24225_v49  ;;  %v25900_v59 = vand.u32 4294901760, %v24292_v55 }
 0x77e   : > { %18929 = vmatmul.mubr.f32.gmra.mxu1 %v24169_v30  ;;  %v8743_v1 = vsub.f32 %v24292_v55, %v25900_v59 }
 0x77f   : > { %18893 = vmatmul.mubr.f32.gmra.mxu0 %v24210_v57  ;;  %18931 = vmatprep.mubr.f32.mxu1 %v24212_v16 }
 0x780   : > { %18912 = vmatprep.mubr.f32.mxu0 %v24157_v21  ;;  %v8744_v44 = vand.u32 4294901760, %v8743_v1 }
 0x782   : > { %18932 = vmatmul.mubr.f32.gmra.mxu1 %v24199_v7 }
 0x783   : > { %18913 = vmatmul.mubr.f32.vlgmr.msra.gmra.mxu0 %v24148_v45  ;;  %18976 = vmatprep.mubr.f32.mxu1 %v24289_v25 }
 0x784   : > { %18915 = vmatprep.mubr.f32.mxu0 %v24180_v3 }
 0x787   : > { %18916 = vmatmul.mubr.f32.gmra.mxu0 %v24169_v30 }
 0x788   : > { %18918 = vmatprep.mubr.f32.mxu0 %v24212_v16 }
 0x78b   : > { %18919 = vmatmul.mubr.f32.gmra.mxu0 %v24199_v7 }
 0x78c   : > { %18946 = vmatprep.mubr.f32.mxu0 %v8744_v44 }
 0x822   : > { %v18875_v11 = vpop.f32.mrf.mxu1 }
 0x824   : > { %v8150_v10 = vpop.f32.mrf.mxu1 }
 0x826   : > { %v18878_v31 = vpop.f32.mrf.mxu1 }
 0x828   : > { %v8162_v41 = vpop.f32.mrf.mxu1 }
 0x82a   : > { %v18881_v17 = vpop.f32.mrf.mxu1 }
 0x82b   : > { %v18862_v28 = vpop.f32.mrf.mxu0 }
 0x82c   : > { %v8174_v24 = vpop.f32.mrf.mxu1  ;;  %v8157_v13 = vadd.f32 %v18875_v11, %v18862_v28  ;;  %v8622_v28 = vld [vmem:[#allocation2 + $0x3e0] sm:$0xff] }
 0x82d   : > { %v8019_v40 = vpop.f32.mrf.mxu0 }
 0x82e   : > { %v18901_v32 = vpop.f32.mrf.mxu1  ;;  %v8151_v44 = vadd.f32 %v8150_v10, %v8019_v40  ;;  %v8623_v40 = vld [vmem:[#allocation2 + $0x3f0] sm:$0xff] }
 0x82f   : > { %v18865_v4 = vpop.f32.mrf.mxu0 }
 0x830   : > { %v8366_v46 = vpop.f32.mrf.mxu1  ;;  %v8169_v12 = vadd.f32 %v18878_v31, %v18865_v4 }
 0x831   : > { %v8039_v34 = vpop.f32.mrf.mxu0 }
 0x832   : > { %v18904_v18 = vpop.f32.mrf.mxu1  ;;  %v8163_v47 = vadd.f32 %v8162_v41, %v8039_v34 }
 0x833   : > { %v18868_v51 = vpop.f32.mrf.mxu0 }
 0x834   : > { %v8382_v39 = vpop.f32.mrf.mxu1  ;;  %v8181_v20 = vadd.f32 %v18881_v17, %v18868_v51  ;;  %v24300_v17 = vand.u32 4294901760, %v8637_v6 }
 0x835   : > { %v8059_v19 = vpop.f32.mrf.mxu0 }
 0x836   : > { %v18907_v43 = vpop.f32.mrf.mxu1  ;;  %v8175_v38 = vadd.f32 %v8174_v24, %v8059_v19 }
 0x837   : > { %v18888_v48 = vpop.f32.mrf.mxu0 }
 0x838   : > { %v8398_v60 = vpop.f32.mrf.mxu1  ;;  %v8264_v59 = vadd.f32 %v18888_v48, %v8157_v13 }
 0x839   : > { %v8256_v33 = vpop.f32.mrf.mxu0 }
 0x83a   : > { %v18927_v56 = vpop.f32.mrf.mxu1  ;;  %v8257_v58 = vadd.f32 %v8256_v33, %v8151_v44  ;;  %v8375_v31 = vadd.f32 %v18901_v32, %v8264_v59  ;;  %v8643_v59 = vsel %vm8632_vm5, %v8623_v40, 0 }
 0x83b   : > { %v18891_v62 = vpop.f32.mrf.mxu0  ;;  %v24313_v13 = vand.u32 4294901760, %v8643_v59 }
 0x83c   : > { %v8586_v63 = vpop.f32.mrf.mxu1  ;;  %v8278_v1 = vadd.f32 %v18891_v62, %v8169_v12  ;;  %v8367_v48 = vadd.f32 %v8366_v46, %v8257_v58 }
 0x83d   : > { %v8270_v42 = vpop.f32.mrf.mxu0 }
 0x83e   : > { %v18930_v14 = vpop.f32.mrf.mxu1  ;;  %v8271_v8 = vadd.f32 %v8270_v42, %v8163_v47  ;;  %v8391_v9 = vadd.f32 %v18904_v18, %v8278_v1 }
 0x83f   : > { %v18894_v37 = vpop.f32.mrf.mxu0 }
 0x840   : > { %v8292_v52 = vadd.f32 %v18894_v37, %v8181_v20  ;;  %v8598_v57 = vpop.f32.mrf.mxu1  ;;  %v8383_v10 = vadd.f32 %v8382_v39, %v8271_v8  ;;  %v8640_v20 = vsel %vm8632_vm5, %v8622_v28, 0  ;;  %v24307_v39 = vsub.f32 %v8637_v6, %v24300_v17 }
 0x841   : > { %v8284_v0 = vpop.f32.mrf.mxu0 }
 0x842   : > { %v8285_v41 = vadd.f32 %v8284_v0, %v8175_v38  ;;  %v8407_v24 = vadd.f32 %v18907_v43, %v8292_v52  ;;  %v18933_v18 = vpop.f32.mrf.mxu1  ;;  %v8625_v52 = vld [vmem:[#allocation2 + $0x410] sm:$0xff]  ;;  %v25913_v1 = vand.u32 4294901760, %v24307_v39 }
 0x843   : > { %v18914_v61 = vpop.f32.mrf.mxu0  ;;  %v8649_v0 = vsel %vm8632_vm5, %v8625_v52, 0 }
 0x844   : > { %v8490_v34 = vadd.f32 %v18914_v61, %v8375_v31  ;;  %v8399_v38 = vadd.f32 %v8398_v60, %v8285_v41  ;;  %v8624_v61 = vld [vmem:[#allocation2 + $0x400] sm:$0xff]  ;;  %v8610_v12 = vpop.f32.mrf.mxu1  ;;  %v24345_v40 = vand.u32 4294901760, %v8649_v0 }
 0x845   : > { %v8483_v2 = vpop.f32.mrf.mxu0  ;;  %v8626_v41 = vld [vmem:[#allocation2 + $0x420] sm:$0xff] }
 0x846   : > { %v8484_v54 = vadd.f32 %v8483_v2, %v8367_v48  ;;  %v8593_v58 = vadd.f32 %v18927_v56, %v8490_v34 }
 0x847   : > { %v18917_v11 = vpop.f32.mrf.mxu0 }
 0x848   : > { %v8502_v4 = vadd.f32 %v18917_v11, %v8391_v9  ;;  %v8587_v37 = vadd.f32 %v8586_v63, %v8484_v54  ;;  %v24322_v47 = vand.u32 4294901760, %v8593_v58 }
 0x849   : > { %v8495_v62 = vpop.f32.mrf.mxu0 }
 0x84a   : > { %v8605_v51 = vadd.f32 %v18930_v14, %v8502_v4  ;;  %v8496_v33 = vadd.f32 %v8495_v62, %v8383_v10  ;;  %v24309_v14 = vand.u32 4294901760, %v8640_v20  ;;  %v24339_v4 = vand.u32 4294901760, %v8587_v37 }
 0x84b   : > { %v18920_v19 = vpop.f32.mrf.mxu0  ;;  %v24343_v10 = vsub.f32 %v8643_v59, %v24313_v13 }
 0x84c   : > { %v24304_v32 = vand.u32 4294901760, %v8605_v51  ;;  %v8599_v9 = vadd.f32 %v8598_v57, %v8496_v33  ;;  %v8514_v8 = vadd.f32 %v18920_v19, %v8407_v24  ;;  %v8646_v57 = vsel %vm8632_vm5, %v8624_v61, 0 }
 0x84d   : > { %v8507_v46 = vpop.f32.mrf.mxu0  ;;  %v24326_v44 = vsub.f32 %v8640_v20, %v24309_v14  ;;  %v24337_v28 = vand.u32 4294901760, %v8646_v57  ;;  %v24358_v33 = vsub.f32 %v8593_v58, %v24322_v47  ;;  %v8753_v24 = vsub.f32 %v24307_v39, %v25913_v1 }
 0x84e   : > { %v24311_v43 = vand.u32 4294901760, %v8599_v9  ;;  %v8617_v2 = vadd.f32 %v18933_v18, %v8514_v8  ;;  %v8508_v42 = vadd.f32 %v8507_v46, %v8399_v38  ;;  %v24317_v60 = vsub.f32 %v8605_v51, %v24304_v32  ;;  %v8627_v51 = vld [vmem:[#allocation2 + $0x430] sm:$0xff]  ;;  %v8628_v8 = vld [vmem:[#allocation2 + $0x440] sm:$0xff] }
 0x84f   : > { %v25914_v20 = vand.u32 4294901760, %v24326_v44  ;;  %v8652_v18 = vsel %vm8632_vm5, %v8626_v41, 0  ;;  %v24379_v38 = vsub.f32 %v8587_v37, %v24339_v4  ;;  %v24384_v58 = vsub.f32 %v8649_v0, %v24345_v40 }
 0x850   : > { %v24319_v56 = vand.u32 4294901760, %v8617_v2  ;;  %v8611_v6 = vadd.f32 %v8610_v12, %v8508_v42  ;;  %v24329_v63 = vsub.f32 %v8599_v9, %v24311_v43  ;;  %v24355_v62 = vand.u32 4294901760, %v24317_v60  ;;  %v8629_v12 = vld [vmem:[#allocation2 + $0x450] sm:$0xff] }
 0x851   : > { %v24376_v9 = vsub.f32 %v8646_v57, %v24337_v28  ;;  %v8655_v46 = vsel %vm8632_vm5, %v8627_v51, 0  ;;  %v24392_v37 = vand.u32 4294901760, %v8652_v18  ;;  %v8754_v57 = vand.u32 4294901760, %v8753_v24  ;;  %v8630_v24 = vld [vmem:[#allocation2 + $0x460] sm:$0xff] }
 0x852   : > { %v24332_v31 = vsub.f32 %v8617_v2, %v24319_v56  ;;  %v24334_v11 = vand.u32 4294901760, %v8611_v6  ;;  %18934 = vmatprep.subr.mxu0 %v24319_v56  ;;  %v24373_v59 = vand.u32 4294901760, %v24329_v63  ;;  %v8898_v42 = vsub.f32 %v24317_v60, %v24355_v62 }
 0x853   : > { %18935 = vmatpush3.msra.mxu0 %v24319_v56  ;;  %v24399_v0 = vand.u32 4294901760, %v24358_v33  ;;  %v8658_v41 = vsel %vm8632_vm5, %v8628_v8, 0  ;;  %v24406_v61 = vand.u32 4294901760, %v8655_v46  ;;  %v24413_v8 = vand.u32 4294901760, %v24379_v38 }
 0x854   : > { %v24348_v34 = vsub.f32 %v8611_v6, %v24334_v11  ;;  %18936 = vmatprep.subr.mxu0 %v24334_v11  ;;  %v24352_v48 = vand.u32 4294901760, %v24332_v31  ;;  %v8763_v6 = vsub.f32 %v24326_v44, %v25914_v20  ;;  %v26606_v20 = vand.u32 4294901760, %v24343_v10 }
 0x855   : > { %18937 = vmatpush3.msra.mxu0 %v24334_v11  ;;  %v8899_v49 = vand.u32 4294901760, %v8898_v42  ;;  %v24419_v7 = vsub.f32 %v8652_v18, %v24392_v37  ;;  %v24421_v22 = vand.u32 4294901760, %v8658_v41  ;;  %v8912_v16 = vsub.f32 %v24358_v33, %v24399_v0 }
 0x856   : > { %18938 = vmatprep.subr.mxu0 %v24304_v32  ;;  %v8884_v54 = vsub.f32 %v24332_v31, %v24352_v48  ;;  %v24370_v19 = vand.u32 4294901760, %v24348_v34  ;;  %v8773_v23 = vsub.f32 %v24343_v10, %v26606_v20  ;;  %v8764_v20 = vand.u32 4294901760, %v8763_v6 }
 0x857   : > { %18939 = vmatpush3.msra.mxu0 %v24304_v32  ;;  %v26607_v1 = vand.u32 4294901760, %v24376_v9  ;;  %v24431_v15 = vsub.f32 %v8655_v46, %v24406_v61 }
 0x858   : > { %18940 = vmatprep.subr.mxu0 %v24311_v43  ;;  %v8885_v52 = vand.u32 4294901760, %v8884_v54  ;;  %v8891_v2 = vsub.f32 %v24348_v34, %v24370_v19  ;;  %v8905_v54 = vsub.f32 %v24329_v63, %v24373_v59  ;;  %v8774_v6 = vand.u32 4294901760, %v8773_v23 }
 0x859   : > { %18941 = vmatpush3.msra.mxu0 %v24311_v43  ;;  %v8783_v18 = vsub.f32 %v24376_v9, %v26607_v1  ;;  %v8913_v23 = vand.u32 4294901760, %v8912_v16  ;;  %v26609_v16 = vand.u32 4294901760, %v24419_v7 }
 0x85a   : > { %18942 = vmatprep.subr.mxu0 %v24322_v47  ;;  %18964 = vmatprep.subr.mxu1 %v8885_v52  ;;  %v8892_v51 = vand.u32 4294901760, %v8891_v2  ;;  %v8661_v2 = vsel %vm8632_vm5, %v8629_v12, 0  ;;  %v8664_v12 = vsel %vm8632_vm5, %v8630_v24, 0  ;;  %v8906_v42 = vand.u32 4294901760, %v8905_v54 }
 0x85b   : > { %18943 = vmatpush3.msra.mxu0 %v24322_v47  ;;  %18965 = vmatpush3.msra.mxu1 %v8885_v52  ;;  %v8631_v52 = vld [vmem:[#allocation2 + $0x470] sm:$0xff]  ;;  %v24433_v30 = vand.u32 4294901760, %v8661_v2  ;;  %v26608_v54 = vand.u32 4294901760, %v24384_v58  ;;  %v24445_v24 = vsub.f32 %v8658_v41, %v24421_v22  ;;  %v24447_v35 = vand.u32 4294901760, %v8664_v12 }
 0x85c   : > { %18944 = vmatprep.subr.mxu0 %v24339_v4  ;;  %18966 = vmatprep.subr.mxu1 %v8892_v51 }
 0x85d   : > { %18945 = vmatpush3.msra.mxu0 %v24339_v4  ;;  %18967 = vmatpush3.msra.mxu1 %v8892_v51  ;;  %v8919_v51 = vsub.f32 %v24379_v38, %v24413_v8  ;;  %v8793_v1 = vsub.f32 %v24384_v58, %v26608_v54 }
 0x85e   : > { %18947 = vmatmul.mubr.f32.vlgmr.msra.gmra.mxu0 %v8754_v57  ;;  %18968 = vmatprep.subr.mxu1 %v8899_v49  ;;  %v8667_v57 = vsel %vm8632_vm5, %v8631_v52, 0  ;;  %v24453_v52 = vsub.f32 %v8661_v2, %v24433_v30 }
 0x85f   : > { %18994 = vmatprep.subr.mxu0 %v24332_v31  ;;  %18969 = vmatpush3.msra.mxu1 %v8899_v49  ;;  %v8784_v49 = vand.u32 4294901760, %v8783_v18  ;;  %v24455_v54 = vand.u32 4294901760, %v8667_v57  ;;  %v8920_v41 = vand.u32 4294901760, %v8919_v51  ;;  %v8794_v46 = vand.u32 4294901760, %v8793_v1 }
 0x860   : > { %18995 = vmatpush3.msra.mxu0 %v24332_v31  ;;  %18970 = vmatprep.subr.mxu1 %v8906_v42  ;;  %v8812_v31 = vand.u32 4294901760, %v24431_v15  ;;  %v8832_v18 = vand.u32 4294901760, %v24453_v52 }
 0x861   : > { %18996 = vmatprep.subr.mxu0 %v24348_v34  ;;  %18949 = vmatprep.mubr.f32.mxu0 %v8764_v20  ;;  %v8803_v20 = vsub.f32 %v24419_v7, %v26609_v16  ;;  %v9710_v16 = vld [vmem:[#allocation2 + $0x490] sm:$0xff] }
 0x862   : > { %18971 = vmatpush3.msra.mxu1 %v8906_v42  ;;  %18997 = vmatpush3.msra.mxu0 %v24348_v34  ;;  %v8822_v34 = vand.u32 4294901760, %v24445_v24  ;;  %v24463_v42 = vsub.f32 %v8664_v12, %v24447_v35  ;;  %v8813_v2 = vsub.f32 %v24431_v15, %v8812_v31 }
 0x863   : > { %18950 = vmatmul.mubr.f32.gmra.mxu0 %v8774_v6  ;;  %18972 = vmatprep.subr.mxu1 %v8913_v23  ;;  %v24472_v6 = vsub.f32 %v8667_v57, %v24455_v54 }
 0x864   : > { %18998 = vmatprep.subr.mxu0 %v24317_v60  ;;  %18973 = vmatpush3.msra.mxu1 %v8913_v23  ;;  %v8823_v12 = vsub.f32 %v24445_v24, %v8822_v34  ;;  %v8842_v51 = vand.u32 4294901760, %v24463_v42  ;;  %v8814_v57 = vand.u32 4294901760, %v8813_v2  ;;  %v26611_v2 = vand.u32 4294901760, %v24307_v39 }
 0x865   : > { %18999 = vmatpush3.msra.mxu0 %v24317_v60  ;;  %18974 = vmatprep.subr.mxu1 %v8920_v41  ;;  %v8804_v60 = vand.u32 4294901760, %v8803_v20  ;;  %v8852_v1 = vand.u32 4294901760, %v24472_v6  ;;  %v24525_v20 = vand.u32 4294901760, %v9710_v16 }
 0x866   : > { %19000 = vmatprep.subr.mxu0 %v24329_v63  ;;  %18952 = vmatprep.mubr.f32.mxu0 %v8784_v49 }
 0x867   : > { %18975 = vmatpush3.msra.mxu1 %v8920_v41  ;;  %19001 = vmatpush3.msra.mxu0 %v24329_v63  ;;  %v8833_v63 = vsub.f32 %v24453_v52, %v8832_v18  ;;  %v8853_v49 = vsub.f32 %v24472_v6, %v8852_v1 }
 0x868   : > { %18953 = vmatmul.mubr.f32.gmra.mxu0 %v8794_v46  ;;  %18977 = vmatmul.mubr.f32.vlgmr.msra.gmra.mxu1 %v24300_v17  ;;  %v8824_v46 = vand.u32 4294901760, %v8823_v12 }
 0x869   : > { %19002 = vmatprep.subr.mxu0 %v24358_v33  ;;  %19024 = vmatprep.subr.mxu1 %v24319_v56  ;;  %v8834_v23 = vand.u32 4294901760, %v8833_v63 }
 0x86a   : > { %19003 = vmatpush3.msra.mxu0 %v24358_v33  ;;  %19025 = vmatpush3.msra.mxu1 %v24319_v56  ;;  %v8843_v33 = vsub.f32 %v24463_v42, %v8842_v51 }
 0x86b   : > { %19004 = vmatprep.subr.mxu0 %v24379_v38  ;;  %19026 = vmatprep.subr.mxu1 %v24334_v11 }
 0x86c   : > { %18955 = vmatprep.mubr.f32.mxu0 %v8804_v60  ;;  %18979 = vmatprep.mubr.f32.mxu1 %v24309_v14  ;;  %v8844_v41 = vand.u32 4294901760, %v8843_v33 }
 0x86d   : > { %19005 = vmatpush3.msra.mxu0 %v24379_v38  ;;  %19027 = vmatpush3.msra.mxu1 %v24334_v11  ;;  %v8854_v38 = vand.u32 4294901760, %v8853_v49 }
 0x86e   : > { %18956 = vmatmul.mubr.f32.gmra.mxu0 %v8814_v57  ;;  %18980 = vmatmul.mubr.f32.gmra.mxu1 %v24313_v13 }
 0x86f   : > { %19028 = vmatprep.subr.mxu1 %v24304_v32  ;;  %19054 = vmatprep.subr.mxu0 %v24352_v48 }
 0x870   : > { %19029 = vmatpush3.msra.mxu1 %v24304_v32  ;;  %18958 = vmatprep.mubr.f32.mxu0 %v8824_v46 }
 0x871   : > { %19030 = vmatprep.subr.mxu1 %v24311_v43  ;;  %18982 = vmatprep.mubr.f32.mxu1 %v24337_v28 }
 0x872   : > { %19031 = vmatpush3.msra.mxu1 %v24311_v43  ;;  %18959 = vmatmul.mubr.f32.gmra.mxu0 %v8834_v23 }
 0x873   : > { %18983 = vmatmul.mubr.f32.gmra.mxu1 %v24345_v40  ;;  %19032 = vmatprep.subr.mxu1 %v24322_v47 }
 0x874   : > { %19033 = vmatpush3.msra.mxu1 %v24322_v47  ;;  %18961 = vmatprep.mubr.f32.mxu0 %v8844_v41 }
 0x875   : > { %19034 = vmatprep.subr.mxu1 %v24339_v4  ;;  %18985 = vmatprep.mubr.f32.mxu1 %v24392_v37 }
 0x876   : > { %19035 = vmatpush3.msra.mxu1 %v24339_v4  ;;  %18962 = vmatmul.mubr.f32.gmra.mxu0 %v8854_v38 }
 0x877   : > { %18986 = vmatmul.mubr.f32.gmra.mxu1 %v24406_v61  ;;  %19084 = vmatprep.subr.mxu1 %v24319_v56 }
 0x878   : > { %18988 = vmatprep.mubr.f32.mxu1 %v24421_v22  ;;  %19006 = vmatprep.mubr.f32.mxu0 %v24292_v55 }
 0x87a   : > { %19007 = vmatmul.mubr.f32.vlgmr.msra.gmra.mxu0 %v24307_v39  ;;  %v26612_v39 = vand.u32 4294901760, %v24326_v44 }
 0x87b   : > { %18989 = vmatmul.mubr.f32.gmra.mxu1 %v24433_v30  ;;  %19055 = vmatpush3.msra.mxu0 %v24352_v48  ;;  %v26610_v48 = vand.u32 4294901760, %v24292_v55 }
 0x87c   : > { %19056 = vmatprep.subr.mxu0 %v24370_v19  ;;  %18991 = vmatprep.mubr.f32.mxu1 %v24447_v35 }
 0x87d   : > { %19057 = vmatpush3.msra.mxu0 %v24370_v19  ;;  %19009 = vmatprep.mubr.f32.mxu0 %v24326_v44  ;;  %v24537_v19 = vsub.f32 %v9710_v16, %v24525_v20 }
 0x87e   : > { %19058 = vmatprep.subr.mxu0 %v24355_v62  ;;  %19010 = vmatmul.mubr.f32.gmra.mxu0 %v24343_v10 }
 0x87f   : > { %18992 = vmatmul.mubr.f32.gmra.mxu1 %v24455_v54  ;;  %19059 = vmatpush3.msra.mxu0 %v24355_v62  ;;  %v24549_v55 = vand.u32 4294901760, %v24537_v19  ;;  %v9709_v62 = vld [vmem:[#allocation2 + $0x480] sm:$0xff] }
 0x880   : > { %19060 = vmatprep.subr.mxu0 %v24373_v59  ;;  %19012 = vmatprep.mubr.f32.mxu0 %v24376_v9 }
 0x881   : > { %19061 = vmatpush3.msra.mxu0 %v24373_v59  ;;  %19036 = vmatprep.mubr.f32.mxu1 %v26610_v48  ;;  %v9870_v44 = vsub.f32 %v24537_v19, %v24549_v55  ;;  %v24566_v59 = vand.u32 4294901760, %v9709_v62 }
 0x882   : > { %19062 = vmatprep.subr.mxu0 %v24399_v0  ;;  %19013 = vmatmul.mubr.f32.gmra.mxu0 %v24384_v58 }
 0x883   : > { %19037 = vmatmul.mubr.f32.vlgmr.msra.gmra.mxu1 %v26611_v2  ;;  %19063 = vmatpush3.msra.mxu0 %v24399_v0 }
 0x884   : > { %19085 = vmatpush3.msra.mxu1 %v24319_v56  ;;  %19064 = vmatprep.subr.mxu0 %v24413_v8  ;;  %v26613_v56 = vand.u32 4294901760, %v24343_v10  ;;  %v26616_v10 = vand.u32 4294901760, %v24419_v7 }
 0x885   : > { %19086 = vmatprep.subr.mxu1 %v24334_v11  ;;  %19065 = vmatpush3.msra.mxu0 %v24413_v8 }
 0x886   : > { %19087 = vmatpush3.msra.mxu1 %v24334_v11  ;;  %19015 = vmatprep.mubr.f32.mxu0 %v24419_v7  ;;  %v26614_v11 = vand.u32 4294901760, %v24376_v9  ;;  %v9871_v9 = vand.u32 4294901760, %v9870_v44 }
 0x887   : > { %19039 = vmatprep.mubr.f32.mxu1 %v26612_v39  ;;  %19088 = vmatprep.subr.mxu1 %v24304_v32 }
 0x888   : > { %19016 = vmatmul.mubr.f32.gmra.mxu0 %v24431_v15  ;;  %19040 = vmatmul.mubr.f32.gmra.mxu1 %v26613_v56 }
 0x889   : > { %19089 = vmatpush3.msra.mxu1 %v24304_v32  ;;  %19018 = vmatprep.mubr.f32.mxu0 %v24445_v24  ;;  %v26615_v32 = vand.u32 4294901760, %v24384_v58 }
 0x88a   : > { %19090 = vmatprep.subr.mxu1 %v24311_v43  ;;  %19042 = vmatprep.mubr.f32.mxu1 %v26614_v11 }
 0x88b   : > { %19091 = vmatpush3.msra.mxu1 %v24311_v43  ;;  %19114 = vmatprep.subr.mxu0 %v24525_v20  ;;  %v9875_v43 = vsub.f32 %v9709_v62, %v24566_v59 }
 0x88c   : > { %19092 = vmatprep.subr.mxu1 %v24322_v47  ;;  %19019 = vmatmul.mubr.f32.gmra.mxu0 %v24453_v52 }
 0x88d   : > { %19043 = vmatmul.mubr.f32.gmra.mxu1 %v26615_v32  ;;  %19021 = vmatprep.mubr.f32.mxu0 %v24463_v42  ;;  %v24585_v7 = vand.u32 4294901760, %v9875_v43 }
 0x88e   : > { %19093 = vmatpush3.msra.mxu1 %v24322_v47  ;;  %19045 = vmatprep.mubr.f32.mxu1 %v26616_v10 }
 0x88f   : > { %19094 = vmatprep.subr.mxu1 %v24339_v4  ;;  %v9877_v15 = vsub.f32 %v9875_v43, %v24585_v7 }
 0x890   : > { %19095 = vmatpush3.msra.mxu1 %v24339_v4  ;;  %19022 = vmatmul.mubr.f32.gmra.mxu0 %v24472_v6 }
 0x891   : > { %19046 = vmatmul.mubr.f32.gmra.mxu1 %v8812_v31  ;;  %19066 = vmatprep.mubr.f32.mxu0 %v24289_v25  ;;  %v9878_v47 = vand.u32 4294901760, %v9877_v15 }
 0x892   : > { %19048 = vmatprep.mubr.f32.mxu1 %v8822_v34  ;;  %19127 = vmatprep.subr.mxu1 %v9871_v9 }
 0x894   : > { %19067 = vmatmul.mubr.f32.vlgmr.msra.gmra.mxu0 %v24300_v17 }
 0x895   : > { %19049 = vmatmul.mubr.f32.gmra.mxu1 %v8832_v18  ;;  %19069 = vmatprep.mubr.f32.mxu0 %v24309_v14 }
 0x896   : > { %19051 = vmatprep.mubr.f32.mxu1 %v8842_v51  ;;  %19115 = vmatpush3.msra.mxu0 %v24525_v20 }
 0x897   : > { %19116 = vmatprep.subr.mxu0 %v24566_v59 }
 0x898   : > { %19070 = vmatmul.mubr.f32.gmra.mxu0 %v24313_v13 }
 0x899   : > { %19052 = vmatmul.mubr.f32.gmra.mxu1 %v8852_v1  ;;  %19072 = vmatprep.mubr.f32.mxu0 %v24337_v28 }
 0x89a   : > { %19096 = vmatprep.mubr.f32.mxu1 %v24289_v25  ;;  %19117 = vmatpush3.msra.mxu0 %v24566_v59  ;;  %v26627_v25 = vld [vmem:[#allocation71_spill] sm:$0xff] }
 0x89b   : > { %19140 = vmatprep.subr.mxu0 %v24537_v19 }
 0x89c   : > { %19073 = vmatmul.mubr.f32.gmra.mxu0 %v24345_v40 }
 0x89d   : > { %19097 = vmatmul.mubr.f32.vlgmr.msra.gmra.mxu1 %v24300_v17  ;;  %19075 = vmatprep.mubr.f32.mxu0 %v24392_v37  ;;  %v26628_v17 = vld [vmem:[#allocation16_spill] sm:$0xff] }
 0x89e   : > { %19099 = vmatprep.mubr.f32.mxu1 %v24309_v14  ;;  %19128 = vmatpush3.msra.mxu1 %v9871_v9  ;;  %v26629_v14 = vld [vmem:[#allocation58_spill] sm:$0xff] }
 0x89f   : > { %19129 = vmatprep.subr.mxu1 %v9878_v47 }
 0x8a0   : > { %19076 = vmatmul.mubr.f32.gmra.mxu0 %v24406_v61  ;;  %19130 = vmatpush3.msra.mxu1 %v9878_v47 }
 0x8a1   : > { %19100 = vmatmul.mubr.f32.gmra.mxu1 %v24313_v13  ;;  %19078 = vmatprep.mubr.f32.mxu0 %v24421_v22  ;;  %v26630_v13 = vld [vmem:[#allocation89_spill] sm:$0xff] }
 0x8a2   : > { %19102 = vmatprep.mubr.f32.mxu1 %v24337_v28  ;;  %19153 = vmatprep.subr.mxu1 %v24525_v20  ;;  %v26631_v28 = vld [vmem:[#allocation85_spill] sm:$0xff] }
 0x8a4   : > { %19079 = vmatmul.mubr.f32.gmra.mxu0 %v24433_v30 }
 0x8a5   : > { %19103 = vmatmul.mubr.f32.gmra.mxu1 %v24345_v40  ;;  %19081 = vmatprep.mubr.f32.mxu0 %v24447_v35 }
 0x8a6   : > { %19105 = vmatprep.mubr.f32.mxu1 %v24392_v37 }
 0x8a8   : > { %19082 = vmatmul.mubr.f32.gmra.mxu0 %v24455_v54 }
 0x8a9   : > { %19106 = vmatmul.mubr.f32.gmra.mxu1 %v24406_v61  ;;  %19118 = vmatprep.mubr.f32.mxu0 %v24219_v50  ;;  %v26622_v50 = vld [vmem:[#allocation76_spill] sm:$0xff] }
 0x8aa   : > { %19108 = vmatprep.mubr.f32.mxu1 %v24421_v22  ;;  %v26619_v22 = vld [vmem:[#allocation73_spill] sm:$0xff] }
 0x8ac   : > { %19119 = vmatmul.mubr.f32.vlgmr.msra.gmra.mxu0 %v24217_v36  ;;  %v26620_v36 = vld [vmem:[#allocation80_spill] sm:$0xff] }
 0x8ad   : > { %19109 = vmatmul.mubr.f32.gmra.mxu1 %v24433_v30  ;;  %19121 = vmatprep.mubr.f32.mxu0 %v24236_v29  ;;  %v26618_v30 = vld [vmem:[#allocation40_spill] sm:$0xff]  ;;  %v26623_v29 = vld [vmem:[#allocation55_spill] sm:$0xff] }
 0x8ae   : > { %19111 = vmatprep.mubr.f32.mxu1 %v24447_v35  ;;  %19141 = vmatpush3.msra.mxu0 %v24537_v19  ;;  %v26617_v35 = vld [vmem:[#allocation54_spill] sm:$0xff] }
 0x8af   : > { %19142 = vmatprep.subr.mxu0 %v9875_v43 }
 0x8b0   : > { %19122 = vmatmul.mubr.f32.gmra.mxu0 %v24243_v5  ;;  %v26624_v5 = vld [vmem:[#allocation20_spill] sm:$0xff] }
 0x8b1   : > { %19112 = vmatmul.mubr.f32.gmra.mxu1 %v24455_v54  ;;  %19124 = vmatprep.mubr.f32.mxu0 %v24254_v27  ;;  %v26625_v27 = vmov 0.0  }
 0x8b2   : > { %19131 = vmatprep.mubr.f32.mxu1 %v24157_v21  ;;  %19143 = vmatpush3.msra.mxu0 %v9875_v43 }
 0x8b3   : > { %19166 = vmatprep.subr.mxu0 %v24549_v55 }
 0x8b4   : > { %19125 = vmatmul.mubr.f32.gmra.mxu0 %v24259_v53  ;;  %v26626_v53 = vld [vmem:[#allocation69_spill] sm:$0xff] }
 0x8b5   : > { %19132 = vmatmul.mubr.f32.vlgmr.msra.gmra.mxu1 %v24148_v45  ;;  %19144 = vmatprep.mubr.f32.mxu0 %v24167_v26  ;;  %v26621_v26 = vld [vmem:[#allocation57_spill] sm:$0xff] }
 0x8b6   : > { %19134 = vmatprep.mubr.f32.mxu1 %v24180_v3  ;;  %19154 = vmatpush3.msra.mxu1 %v24525_v20 }
 0x8b7   : > { %19155 = vmatprep.subr.mxu1 %v24566_v59 }
 0x8b8   : > { %19145 = vmatmul.mubr.f32.vlgmr.msra.gmra.mxu0 %v26617_v35  ;;  %19156 = vmatpush3.msra.mxu1 %v24566_v59 }
 0x8b9   : > { %19135 = vmatmul.mubr.f32.gmra.mxu1 %v26618_v30  ;;  %19147 = vmatprep.mubr.f32.mxu0 %v26619_v22 }
 0x8ba   : > { %19137 = vmatprep.mubr.f32.mxu1 %v26620_v36  ;;  %19167 = vmatpush3.msra.mxu0 %v24549_v55 }
 0x8bb   : > { %19168 = vmatprep.subr.mxu0 %v24585_v7  ;;  %19179 = vmatprep.subr.mxu1 %v24525_v20 }
 0x8bc   : > { %19148 = vmatmul.mubr.f32.gmra.mxu0 %v26621_v26 }
 0x8bd   : > { %19138 = vmatmul.mubr.f32.gmra.mxu1 %v26622_v50  ;;  %19150 = vmatprep.mubr.f32.mxu0 %v26623_v29 }
 0x8be   : > { %19157 = vmatprep.mubr.f32.mxu1 %v26624_v5  ;;  %19169 = vmatpush3.msra.mxu0 %v24585_v7 }
 0x8bf   : > { %19192 = vmatprep.subr.mxu0 %v26625_v27 }
 0x8c0   : > { %19151 = vmatmul.mubr.f32.gmra.mxu0 %v26626_v53 }
 0x8c1   : > { %19158 = vmatmul.mubr.f32.vlgmr.msra.gmra.mxu1 %v26627_v25  ;;  %19170 = vmatprep.mubr.f32.mxu0 %v24157_v21 }
 0x8c2   : > { %19160 = vmatprep.mubr.f32.mxu1 %v26628_v17  ;;  %19180 = vmatpush3.msra.mxu1 %v24525_v20 }
 0x8c3   : > { %19181 = vmatprep.subr.mxu1 %v24566_v59 }
 0x8c4   : > { %19171 = vmatmul.mubr.f32.vlgmr.msra.gmra.mxu0 %v24148_v45  ;;  %19182 = vmatpush3.msra.mxu1 %v24566_v59 }
 0x8c5   : > { %19161 = vmatmul.mubr.f32.gmra.mxu1 %v26629_v14  ;;  %19173 = vmatprep.mubr.f32.mxu0 %v24180_v3 }
 0x8c6   : > { %19163 = vmatprep.mubr.f32.mxu1 %v26630_v13  ;;  %19213 = vmatprep.subr.mxu1 %v26625_v27 }
 0x8c8   : > { %19174 = vmatmul.mubr.f32.gmra.mxu0 %v26618_v30 }
 0x8c9   : > { %19164 = vmatmul.mubr.f32.gmra.mxu1 %v26631_v28  ;;  %19176 = vmatprep.mubr.f32.mxu0 %v26620_v36 }
 0x8ca   : > { %19183 = vmatprep.mubr.f32.mxu1 %v24157_v21 }
 0x8cc   : > { %19177 = vmatmul.mubr.f32.gmra.mxu0 %v26622_v50 }
 0x8cd   : > { %19184 = vmatmul.mubr.f32.vlgmr.msra.gmra.mxu1 %v24148_v45  ;;  %19204 = vmatprep.mubr.msk.f32.mxu0 %vm20028_vm6, %v26625_v27 }
 0x8ce   : > { %19186 = vmatprep.mubr.f32.mxu1 %v24180_v3 }
 0x8d1   : > { %19187 = vmatmul.mubr.f32.gmra.mxu1 %v26618_v30 }
 0x8d2   : > { %19189 = vmatprep.mubr.f32.mxu1 %v26620_v36 }
 0x8d5   : > { %19190 = vmatmul.mubr.f32.gmra.mxu1 %v26622_v50 }
 0x8d6   : > { %19225 = vmatprep.mubr.msk.f32.mxu1 %vm20028_vm6, %v26625_v27 }
 0x91e   : > { %v18948_v4 = vpop.f32.mrf.mxu0 }
 0x920   : > { %v8746_v40 = vpop.f32.mrf.mxu0 }
 0x923   : > { %v18951_v61 = vpop.f32.mrf.mxu0 }
 0x925   : > { %v8766_v58 = vpop.f32.mrf.mxu0 }
 0x928   : > { %v18954_v45 = vpop.f32.mrf.mxu0  ;;  %v18978_v21 = vpop.f32.mrf.mxu1 }
 0x929   : > { %v8964_v7 = vadd.f32 %v18978_v21, %v18948_v4 }
 0x92a   : > { %v24676_v3 = vpop.f32.mrf.mxu0  ;;  %v8957_v37 = vpop.f32.mrf.mxu1 }
 0x92b   : > { %v8958_v35 = vadd.f32 %v8957_v37, %v8746_v40 }
 0x92e   : > { %v24678_v0 = vpop.f32.mrf.mxu0  ;;  %v18981_v8 = vpop.f32.mrf.mxu1 }
 0x92f   : > { %v8976_v26 = vadd.f32 %v18981_v8, %v18951_v61 }
 0x930   : > { %v24680_v24 = vpop.f32.mrf.mxu0  ;;  %v8969_v31 = vpop.f32.mrf.mxu1 }
 0x931   : > { %v8970_v25 = vadd.f32 %v8969_v31, %v8766_v58 }
 0x932   : > { %v24682_v52 = vpop.f32.mrf.mxu0 }
 0x933   : > { %v18984_v54 = vpop.f32.mrf.mxu1 }
 0x934   : > { %v24684_v34 = vpop.f32.mrf.mxu0  ;;  %v8988_v4 = vadd.f32 %v18984_v54, %v18954_v45 }
 0x935   : > { %v8981_v42 = vpop.f32.mrf.mxu1 }
 0x936   : > { %v24686_v18 = vpop.f32.mrf.mxu0 }
 0x937   : > { %v18987_v6 = vpop.f32.mrf.mxu1 }
 0x938   : > { %v24688_v60 = vpop.f32.mrf.mxu0 }
 0x939   : > { %v8993_v12 = vpop.f32.mrf.mxu1 }
 0x93a   : > { %v19008_v51 = vpop.f32.mrf.mxu0  ;;  %v8994_v45 = vadd.f32 %v8993_v12, %v24680_v24  ;;  %v26635_v24 = vld [vmem:[#allocation59_spill] sm:$0xff] }
 0x93b   : > { %v18990_v57 = vpop.f32.mrf.mxu1  ;;  %v9115_v30 = vadd.f32 %v19008_v51, %v8964_v7  ;;  %v8982_v7 = vadd.f32 %v8981_v42, %v24676_v3 }
 0x93c   : > { %v9107_v63 = vpop.f32.mrf.mxu0 }
 0x93d   : > { %v24690_v1 = vpop.f32.mrf.mxu1  ;;  %v9108_v50 = vadd.f32 %v9107_v63, %v8958_v35  ;;  %v26633_v35 = vld [vmem:[#allocation70_spill] sm:$0xff] }
 0x93e   : > { %v19011_v46 = vpop.f32.mrf.mxu0 }
 0x93f   : > { %v24692_v33 = vpop.f32.mrf.mxu1  ;;  %v9129_v17 = vadd.f32 %v19011_v46, %v8976_v26  ;;  %v9000_v46 = vadd.f32 %v18987_v6, %v24678_v0 }
 0x940   : > { %v9121_v23 = vpop.f32.mrf.mxu0 }
 0x941   : > { %v24694_v49 = vpop.f32.mrf.mxu1  ;;  %v9122_v27 = vadd.f32 %v9121_v23, %v8970_v25 }
 0x942   : > { %v19014_v41 = vpop.f32.mrf.mxu0 }
 0x943   : > { %v19038_v38 = vpop.f32.mrf.mxu1  ;;  %v9143_v61 = vadd.f32 %v19014_v41, %v8988_v4 }
 0x944   : > { %v9135_v16 = vpop.f32.mrf.mxu0  ;;  %v9272_v29 = vadd.f32 %v19038_v38, %v9115_v30 }
 0x945   : > { %v9263_v20 = vpop.f32.mrf.mxu1  ;;  %v9136_v54 = vadd.f32 %v9135_v16, %v8982_v7 }
 0x946   : > { %v9264_v14 = vadd.f32 %v9263_v20, %v9108_v50 }
 0x948   : > { %v19017_v48 = vpop.f32.mrf.mxu0  ;;  %v19041_v19 = vpop.f32.mrf.mxu1 }
 0x94a   : > { %v24696_v2 = vpop.f32.mrf.mxu0  ;;  %v9279_v55 = vpop.f32.mrf.mxu1 }
 0x94b   : > { %v9280_v63 = vadd.f32 %v9279_v55, %v9122_v27  ;;  %v9006_v27 = vadd.f32 %v24690_v1, %v24684_v34  ;;  %v9157_v55 = vadd.f32 %v19017_v48, %v9000_v46  ;;  %v9150_v50 = vadd.f32 %v24696_v2, %v8994_v45  ;;  %v26637_v2 = vld [vmem:[#allocation26_spill] sm:$0xff] }
 0x94c   : > { %v24698_v39 = vpop.f32.mrf.mxu0 }
 0x94d   : > { %v19044_v56 = vpop.f32.mrf.mxu1 }
 0x94e   : > { %v24700_v62 = vpop.f32.mrf.mxu0  ;;  %v9304_v23 = vadd.f32 %v19044_v56, %v9143_v61 }
 0x94f   : > { %v9295_v11 = vpop.f32.mrf.mxu1 }
 0x950   : > { %v24702_v44 = vpop.f32.mrf.mxu0 }
 0x951   : > { %v19047_v59 = vpop.f32.mrf.mxu1 }
 0x952   : > { %v24704_v32 = vpop.f32.mrf.mxu0 }
 0x953   : > { %26632 = vst [vmem:[#allocation62_spill] sm:$0xff] %v24704_v32  ;;  %v24706_v10 = vpop.f32.mrf.mxu1  ;;  %v9288_v32 = vadd.f32 %v19041_v19, %v9129_v17  ;;  %v9012_v19 = vadd.f32 %v18990_v57, %v24682_v52  ;;  %v9024_v52 = vadd.f32 %v24692_v33, %v24686_v18  ;;  %v9018_v57 = vadd.f32 %v24694_v49, %v24688_v60 }
 0x954   : > { %v19068_v9 = vpop.f32.mrf.mxu0 }
 0x955   : > { %v24708_v43 = vpop.f32.mrf.mxu1  ;;  %v9447_v13 = vadd.f32 %v19068_v9, %v9272_v29  ;;  %v9320_v29 = vadd.f32 %v19047_v59, %v9157_v55 }
 0x956   : > { %v9440_v15 = vpop.f32.mrf.mxu0 }
 0x957   : > { %v24710_v47 = vpop.f32.mrf.mxu1  ;;  %v9441_v40 = vadd.f32 %v9440_v15, %v9264_v14  ;;  %v26634_v15 = vld [vmem:[#allocation24_spill] sm:$0xff]  ;;  %v9171_v14 = vadd.f32 %v24698_v39, %v9012_v19 }
 0x958   : > { %v19071_v22 = vpop.f32.mrf.mxu0 }
 0x959   : > { %v24712_v36 = vpop.f32.mrf.mxu1  ;;  %v9459_v38 = vadd.f32 %v19071_v22, %v9288_v32  ;;  %v9296_v32 = vadd.f32 %v9295_v11, %v9136_v54  ;;  %v26636_v11 = vld [vmem:[#allocation21_spill] sm:$0xff]  ;;  %v26639_v54 = vld [vmem:[#allocation67_spill] sm:$0xff] }
 0x95a   : > { %v9452_v5 = vpop.f32.mrf.mxu0  ;;  %v26640_v19 = vld [vmem:[#allocation62_spill] sm:$0xff] }
 0x95b   : > { %v24714_v53 = vpop.f32.mrf.mxu1  ;;  %v9453_v9 = vadd.f32 %v9452_v5, %v9280_v63 }
 0x95c   : > { %v19074_v28 = vpop.f32.mrf.mxu0 }
 0x95d   : > { %v19098_v21 = vpop.f32.mrf.mxu1  ;;  %v9471_v22 = vadd.f32 %v19074_v28, %v9304_v23 }
 0x95e   : > { %v9590_v37 = vadd.f32 %v19098_v21, %v9447_v13  ;;  %v9464_v51 = vpop.f32.mrf.mxu0  ;;  %v9312_v13 = vadd.f32 %v24706_v10, %v9150_v50 }
 0x95f   : > { %v9583_v8 = vpop.f32.mrf.mxu1  ;;  %v9465_v1 = vadd.f32 %v9464_v51, %v9296_v32  ;;  %v9336_v51 = vadd.f32 %v24708_v43, %v9171_v14 }
 0x960   : > { %v9654_v30 = vsub.f32 %v26633_v35, %v9590_v37  ;;  %v9584_v58 = vadd.f32 %v9583_v8, %v9441_v40  ;;  %v19077_v31 = vpop.f32.mrf.mxu0  ;;  %v9164_v40 = vadd.f32 %v24700_v62, %v9006_v27  ;;  %v9185_v37 = vadd.f32 %v24702_v44, %v9024_v52  ;;  %v26638_v8 = vld [vmem:[#allocation47_spill] sm:$0xff]  ;;  %v26641_v27 = vld [vmem:[#allocation74_spill] sm:$0xff] }
 0x961   : > { %v19101_v20 = vpop.f32.mrf.mxu1  ;;  %v9483_v28 = vadd.f32 %v19077_v31, %v9320_v29 }
 0x962   : > { %v9653_v3 = vsub.f32 %v26634_v15, %v9584_v58  ;;  %v9602_v42 = vadd.f32 %v19101_v20, %v9459_v38  ;;  %v9476_v41 = vpop.f32.mrf.mxu0  ;;  %v9666_v0 = vand.u32 2147483647, %v9654_v30  ;;  %v9328_v30 = vadd.f32 %v24710_v47, %v9164_v40  ;;  %v26645_v40 = vld [vmem:[#allocation66_spill] sm:$0xff] }
 0x963   : > { %v9595_v26 = vpop.f32.mrf.mxu1  ;;  %v9477_v61 = vadd.f32 %v9476_v41, %v9312_v13  ;;  %v9352_v15 = vadd.f32 %v24712_v36, %v9185_v37  ;;  %v26642_v36 = vld [vmem:[#allocation27_spill] sm:$0xff] }
 0x964   : > { %v9665_v6 = vand.u32 2147483647, %v9653_v3  ;;  %v9656_v12 = vsub.f32 %v26635_v24, %v9602_v42  ;;  %v9596_v16 = vadd.f32 %v9595_v26, %v9453_v9  ;;  %v19080_v56 = vpop.f32.mrf.mxu0  ;;  %v9678_v60 = vsel %vm3361_vm1, %v9666_v0, 0.0 }
 0x965   : > { %v19104_v34 = vpop.f32.mrf.mxu1  ;;  %v9495_v46 = vadd.f32 %v19080_v56, %v9336_v51  ;;  %v9178_v9 = vadd.f32 %v26640_v19, %v9018_v57 }
 0x966   : > { %v9677_v48 = vsel %vm3361_vm1, %v9665_v6, 0.0  ;;  %v9655_v5 = vsub.f32 %v26636_v11, %v9596_v16  ;;  %v9614_v25 = vadd.f32 %v19104_v34, %v9471_v22  ;;  %v9488_v17 = vpop.f32.mrf.mxu0  ;;  %v9668_v18 = vand.u32 2147483647, %v9656_v12  ;;  %v26643_v11 = vld [vmem:[#allocation60_spill] sm:$0xff] }
 0x967   : > { %v9607_v33 = vpop.f32.mrf.mxu1  ;;  %v9679_v7 = vadd.f32 %v9678_v60, %v9677_v48  ;;  %v9489_v41 = vadd.f32 %v9488_v17, %v9328_v30  ;;  %v9344_v26 = vadd.f32 %v24714_v53, %v9178_v9 }
 0x968   : > { %v9667_v49 = vand.u32 2147483647, %v9655_v5  ;;  %v9658_v59 = vsub.f32 %v26637_v2, %v9614_v25  ;;  %v9608_v4 = vadd.f32 %v9607_v33, %v9465_v1  ;;  %v19083_v21 = vpop.f32.mrf.mxu0  ;;  %v9682_v58 = vsel %vm3361_vm1, %v9668_v18, 0.0  ;;  %v26644_v33 = vld [vmem:[#allocation84_spill] sm:$0xff] }
 0x969   : > { %v19107_v39 = vpop.f32.mrf.mxu1  ;;  %v9507_v6 = vadd.f32 %v19083_v21, %v9352_v15 }
 0x96a   : > { %v9680_v10 = vsel %vm3361_vm1, %v9667_v49, 0.0  ;;  %v9657_v63 = vsub.f32 %v26638_v8, %v9608_v4  ;;  %v9626_v38 = vadd.f32 %v19107_v39, %v9483_v28  ;;  %v9500_v35 = vpop.f32.mrf.mxu0  ;;  %v9670_v45 = vand.u32 2147483647, %v9658_v59 }
 0x96b   : > { %v9681_v31 = vadd.f32 %v9680_v10, %v9679_v7  ;;  %v9619_v62 = vpop.f32.mrf.mxu1  ;;  %v9501_v1 = vadd.f32 %v9500_v35, %v9344_v26 }
 0x96c   : > { %v9669_v44 = vand.u32 2147483647, %v9657_v63  ;;  %v9660_v43 = vsub.f32 %v26639_v54, %v9626_v38  ;;  %v9620_v23 = vadd.f32 %v9619_v62, %v9477_v61  ;;  %v24744_v20 = vpop.f32.mrf.mxu0  ;;  %v9686_v16 = vsel %vm3361_vm1, %v9670_v45, 0.0 }
 0x96d   : > { %v9683_v3 = vadd.f32 %v9682_v58, %v9681_v31  ;;  %v19110_v42 = vpop.f32.mrf.mxu1 }
 0x96e   : > { %v9684_v47 = vsel %vm3361_vm1, %v9669_v44, 0.0  ;;  %v9659_v55 = vsub.f32 %v26641_v27, %v9620_v23  ;;  %v9638_v32 = vadd.f32 %v19110_v42, %v9495_v46  ;;  %v24750_v22 = vpop.f32.mrf.mxu0  ;;  %v9672_v24 = vand.u32 2147483647, %v9660_v43 }
 0x96f   : > { %v9685_v0 = vadd.f32 %v9684_v47, %v9683_v3  ;;  %v9631_v12 = vpop.f32.mrf.mxu1 }
 0x970   : > { %v9671_v56 = vand.u32 2147483647, %v9659_v55  ;;  %v9662_v52 = vsub.f32 %v26642_v36, %v9638_v32  ;;  %v9632_v57 = vadd.f32 %v9631_v12, %v9489_v41  ;;  %v19123_v50 = vpop.f32.mrf.mxu0  ;;  %v9690_v17 = vsel %vm3361_vm1, %v9672_v24, 0.0 }
 0x971   : > { %v9687_v29 = vadd.f32 %v9686_v16, %v9685_v0  ;;  %v19113_v34 = vpop.f32.mrf.mxu1 }
 0x972   : > { %v9688_v48 = vsel %vm3361_vm1, %v9671_v56, 0.0  ;;  %v9661_v5 = vsub.f32 %v26643_v11, %v9632_v57  ;;  %v9650_v25 = vadd.f32 %v19113_v34, %v9507_v6  ;;  %v9804_v53 = vpop.f32.mrf.mxu0  ;;  %v9674_v28 = vand.u32 2147483647, %v9662_v52 }
 0x973   : > { %v9689_v14 = vadd.f32 %v9688_v48, %v9687_v29  ;;  %v9643_v13 = vpop.f32.mrf.mxu1  ;;  %v10385_v29 = vld [vmem:[#allocation2 + $0x4a0] sm:$0xff] }
 0x974   : > { %v9673_v18 = vand.u32 2147483647, %v9661_v5  ;;  %v9664_v60 = vsub.f32 %v26644_v33, %v9650_v25  ;;  %v9644_v49 = vadd.f32 %v9643_v13, %v9501_v1  ;;  %v19126_v2 = vpop.f32.mrf.mxu0  ;;  %v9694_v61 = vsel %vm3361_vm1, %v9674_v28, 0.0 }
 0x975   : > { %v9691_v59 = vadd.f32 %v9690_v17, %v9689_v14  ;;  %v19133_v4 = vpop.f32.mrf.mxu1  ;;  %v10389_v17 = vsel %vm8632_vm5, %v10385_v29, 0 }
 0x976   : > { %v9692_v21 = vsel %vm3361_vm1, %v9673_v18, 0.0  ;;  %v9663_v37 = vsub.f32 %v26645_v40, %v9644_v49  ;;  %v9824_v51 = vpop.f32.mrf.mxu0  ;;  %v9676_v10 = vand.u32 2147483647, %v9664_v60  ;;  %v9922_v11 = vadd.f32 %v19133_v4, %v24744_v20  ;;  %v10386_v40 = vld [vmem:[#allocation2 + $0x4b0] sm:$0xff] }
 0x977   : > { %v9693_v7 = vadd.f32 %v9692_v21, %v9691_v59  ;;  %v9915_v39 = vpop.f32.mrf.mxu1  ;;  %v24768_v21 = vand.u32 4294901760, %v10389_v17 }
 0x978   : > { %v9675_v8 = vand.u32 2147483647, %v9663_v37  ;;  %v19146_v63 = vpop.f32.mrf.mxu0  ;;  %v9698_v62 = vsel %vm3361_vm1, %v9676_v10, 0.0  ;;  %v9916_v49 = vadd.f32 %v9915_v39, %v24750_v22 }
 0x979   : > { %v9695_v38 = vadd.f32 %v9694_v61, %v9693_v7  ;;  %v19136_v35 = vpop.f32.mrf.mxu1  ;;  %v10029_v18 = vadd.f32 %v19146_v63, %v9922_v11 }
 0x97a   : > { %v9696_v30 = vsel %vm3361_vm1, %v9675_v8, 0.0  ;;  %v10021_v58 = vpop.f32.mrf.mxu0  ;;  %v9934_v56 = vadd.f32 %v19136_v35, %v19123_v50  ;;  %v10392_v35 = vsel %vm8632_vm5, %v10386_v40, 0  ;;  %vm15835_vm1 = vcmask 48128  }
 0x97b   : > { %v9697_v31 = vadd.f32 %v9696_v30, %v9695_v38  ;;  %v9927_v46 = vpop.f32.mrf.mxu1  ;;  %v10022_v61 = vadd.f32 %v10021_v58, %v9916_v49 }
 0x97c   : > { %v19149_v45 = vpop.f32.mrf.mxu0  ;;  %v9928_v34 = vadd.f32 %v9927_v46, %v9804_v53 }
 0x97d   : > { %v9699_v44 = vadd.f32 %v9698_v62, %v9697_v31  ;;  %v19139_v54 = vpop.f32.mrf.mxu1  ;;  %v10043_v1 = vadd.f32 %v19149_v45, %v9934_v56  ;;  %v24774_v45 = vsub.f32 %v10389_v17, %v24768_v21 }
 0x97e   : > { %v10035_v43 = vpop.f32.mrf.mxu0  ;;  %v9946_v14 = vadd.f32 %v19139_v54, %v19126_v2 }
 0x97f   : > { %v9700_v23 = vrot.slane %v9699_v44, 4  ;;  %v9939_v19 = vpop.f32.mrf.mxu1  ;;  %v10036_v5 = vadd.f32 %v10035_v43, %v9928_v34 }
 0x980   : > { %v19152_v9 = vpop.f32.mrf.mxu0  ;;  %v9940_v33 = vadd.f32 %v9939_v19, %v9824_v51 }
 0x981   : > { %v9701_v15 = vadd.f32 %v9700_v23, %v9699_v44  ;;  %v19159_v3 = vpop.f32.mrf.mxu1  ;;  %v10057_v59 = vadd.f32 %v19152_v9, %v9946_v14  ;;  %v10387_v44 = vld [vmem:[#allocation2 + $0x4c0] sm:$0xff]  ;;  %v24776_v23 = vand.u32 4294901760, %v10392_v35 }
 0x982   : > { %v10049_v42 = vpop.f32.mrf.mxu0  ;;  %v10140_v37 = vadd.f32 %v19159_v3, %v10029_v18 }
 0x983   : > { %v9702_v41 = vrot.slane %v9701_v15, 2  ;;  %v10131_v47 = vpop.f32.mrf.mxu1  ;;  %v10050_v20 = vadd.f32 %v10049_v42, %v9940_v33 }
 0x984   : > { %v19172_v27 = vpop.f32.mrf.mxu0  ;;  %v10132_v30 = vadd.f32 %v10131_v47, %v10022_v61 }
 0x985   : > { %v9703_v55 = vadd.f32 %v9702_v41, %v9701_v15  ;;  %v19162_v32 = vpop.f32.mrf.mxu1  ;;  %v10255_v38 = vadd.f32 %v19172_v27, %v10140_v37  ;;  %v10395_v41 = vsel %vm8632_vm5, %v10387_v44, 0 }
 0x986   : > { %v10248_v26 = vpop.f32.mrf.mxu0  ;;  %v10156_v25 = vadd.f32 %v19162_v32, %v10043_v1 }
 0x987   : > { %v9704_v0 = vrot.slane %v9703_v55, 1  ;;  %v10147_v6 = vpop.f32.mrf.mxu1  ;;  %v10249_v58 = vadd.f32 %v10248_v26, %v10132_v30  ;;  %v24796_v26 = vsub.f32 %v10392_v35, %v24776_v23 }
 0x988   : > { %v19175_v24 = vpop.f32.mrf.mxu0  ;;  %v10148_v50 = vadd.f32 %v10147_v6, %v10036_v5 }
 0x989   : > { %v9705_v12 = vadd.f32 %v9704_v0, %v9703_v55  ;;  %v19165_v16 = vpop.f32.mrf.mxu1  ;;  %v10267_v60 = vadd.f32 %v19175_v24, %v10156_v25  ;;  %v10470_v55 = vand.u32 4294901760, %v24774_v45  ;;  %v26646_v24 = vmov 0.0  }
 0x98a   : > { %v10260_v57 = vpop.f32.mrf.mxu0  ;;  %v10172_v10 = vadd.f32 %v19165_v16, %v10057_v59  ;;  %v10480_v1 = vand.u32 4294901760, %v24796_v26 }
 0x98b   : > { %v9706_v36 = vmul.f32 0.00016276042, %v9705_v12  ;;  %v10163_v52 = vpop.f32.mrf.mxu1  ;;  %v10261_v4 = vadd.f32 %v10260_v57, %v10148_v50  ;;  %v24805_v12 = vand.u32 4294901760, %v10395_v41  ;;  %v10471_v29 = vsub.f32 %v24774_v45, %v10470_v55 }
 0x98c   : > { %v19178_v13 = vpop.f32.mrf.mxu0  ;;  %v10164_v63 = vadd.f32 %v10163_v52, %v10050_v20  ;;  %v10481_v33 = vsub.f32 %v24796_v26, %v10480_v1 }
 0x98d   : > { %9708 = vst.msk [vmem:[%s23424_s28 + $0x1] sm:$0x1] %vm9707_vm7, %v9706_v36  ;;  %v19185_v48 = vpop.f32.mrf.mxu1  ;;  %v10279_v22 = vadd.f32 %v19178_v13, %v10172_v10  ;;  %v24831_v5 = vsub.f32 %v10395_v41, %v24805_v12  ;;  %v10472_v18 = vand.u32 4294901760, %v10471_v29 }
 0x98e   : > { %v10272_v2 = vpop.f32.mrf.mxu0  ;;  %v10358_v46 = vadd.f32 %v19185_v48, %v10255_v38  ;;  %v10482_v40 = vand.u32 4294901760, %v10481_v33 }
 0x98f   : > { %v10351_v28 = vpop.f32.mrf.mxu1  ;;  %v10273_v62 = vadd.f32 %v10272_v2, %v10164_v63  ;;  %v10994_v2 = vld [vmem:[#allocation2 + $0x4d0] sm:$0xff] }
 0x990   : > { %v10352_v15 = vadd.f32 %v10351_v28, %v10249_v58  ;;  %v24786_v47 = vand.u32 4294901760, %v10358_v46 }
 0x991   : > { %v19188_v53 = vpop.f32.mrf.mxu1 }
 0x992   : > { %v10370_v7 = vadd.f32 %v19188_v53, %v10267_v60  ;;  %v24807_v16 = vand.u32 4294901760, %v10352_v15  ;;  %v24813_v52 = vsub.f32 %v10358_v46, %v24786_v47  ;;  %v10490_v60 = vand.u32 4294901760, %v24831_v5 }
 0x993   : > { %v10363_v8 = vpop.f32.mrf.mxu1 }
 0x994   : > { %v10364_v51 = vadd.f32 %v10363_v8, %v10261_v4  ;;  %v24771_v39 = vand.u32 4294901760, %v10370_v7  ;;  %v24834_v25 = vsub.f32 %v10352_v15, %v24807_v16  ;;  %v10549_v13 = vand.u32 4294901760, %v24813_v52 }
 0x995   : > { %v19191_v31 = vpop.f32.mrf.mxu1  ;;  %v10491_v20 = vsub.f32 %v24831_v5, %v10490_v60 }
 0x996   : > { %v10382_v54 = vadd.f32 %v19191_v31, %v10279_v22  ;;  %v24778_v19 = vand.u32 4294901760, %v10364_v51  ;;  %v24781_v3 = vsub.f32 %v10370_v7, %v24771_v39  ;;  %v10556_v49 = vand.u32 4294901760, %v24834_v25 }
 0x997   : > { %v10375_v43 = vpop.f32.mrf.mxu1  ;;  %v10550_v53 = vsub.f32 %v24813_v52, %v10549_v13  ;;  %v10492_v61 = vand.u32 4294901760, %v10491_v20 }
 0x998   : > { %v10376_v9 = vadd.f32 %v10375_v43, %v10273_v62  ;;  %v24783_v42 = vand.u32 4294901760, %v10382_v54  ;;  %v24799_v0 = vsub.f32 %v10364_v51, %v24778_v19  ;;  %v10535_v56 = vand.u32 4294901760, %v24781_v3 }
 0x999   : > { %v10557_v4 = vsub.f32 %v24834_v25, %v10556_v49  ;;  %v10551_v7 = vand.u32 4294901760, %v10550_v53 }
 0x99a   : > { %v24788_v27 = vand.u32 4294901760, %v10376_v9  ;;  %v24792_v32 = vsub.f32 %v10382_v54, %v24783_v42  ;;  %19193 = vmatpush3.msra.mxu0 %v24783_v42  ;;  %v10542_v48 = vand.u32 4294901760, %v24799_v0  ;;  %v10536_v17 = vsub.f32 %v24781_v3, %v10535_v56 }
 0x99b   : > { %19194 = vmatprep.subr.mxu0 %v26646_v24  ;;  %v10558_v10 = vand.u32 4294901760, %v10557_v4 }
 0x99c   : > { %v24802_v6 = vsub.f32 %v10376_v9, %v24788_v27  ;;  %v10521_v36 = vand.u32 4294901760, %v24792_v32  ;;  %19195 = vmatpush3.msra.mxu0 %v24788_v27  ;;  %v10543_v50 = vsub.f32 %v24799_v0, %v10542_v48  ;;  %v10537_v59 = vand.u32 4294901760, %v10536_v17 }
 0x99d   : > { %19196 = vmatprep.subr.mxu0 %v26646_v24 }
 0x99e   : > { %v10528_v57 = vand.u32 4294901760, %v24802_v6  ;;  %v10522_v34 = vsub.f32 %v24792_v32, %v10521_v36  ;;  %19197 = vmatpush3.msra.mxu0 %v24771_v39  ;;  %v10544_v37 = vand.u32 4294901760, %v10543_v50 }
 0x99f   : > { %19198 = vmatprep.subr.mxu0 %v26646_v24 }
 0x9a0   : > { %v10529_v11 = vsub.f32 %v24802_v6, %v10528_v57  ;;  %19199 = vmatpush3.msra.mxu0 %v24778_v19  ;;  %v10523_v14 = vand.u32 4294901760, %v10522_v34 }
 0x9a1   : > { %19200 = vmatprep.subr.mxu0 %v26646_v24 }
 0x9a2   : > { %v10530_v28 = vand.u32 4294901760, %v10529_v11  ;;  %19201 = vmatpush3.msra.mxu0 %v24786_v47  ;;  %19214 = vmatpush3.msra.mxu1 %v10523_v14 }
 0x9a3   : > { %19202 = vmatprep.subr.mxu0 %v26646_v24  ;;  %19215 = vmatprep.subr.mxu1 %v26646_v24 }
 0x9a4   : > { %19203 = vmatpush3.msra.mxu0 %v24807_v16  ;;  %19216 = vmatpush3.msra.mxu1 %v10530_v28 }
 0x9a5   : > { %19205 = vmatmul.mubr.f32.vlgmr.msra.gmra.mxu0 %v10472_v18  ;;  %19217 = vmatprep.subr.mxu1 %v26646_v24 }
 0x9a6   : > { %19234 = vmatprep.subr.mxu0 %v26646_v24  ;;  %19218 = vmatpush3.msra.mxu1 %v10537_v59 }
 0x9a7   : > { %19235 = vmatpush3.msra.mxu0 %v24792_v32  ;;  %19219 = vmatprep.subr.mxu1 %v26646_v24 }
 0x9a8   : > { %19236 = vmatprep.subr.mxu0 %v26646_v24  ;;  %19207 = vmatprep.mubr.msk.f32.mxu0 %vm20028_vm6, %v26646_v24 }
 0x9a9   : > { %19220 = vmatpush3.msra.mxu1 %v10544_v37  ;;  %19237 = vmatpush3.msra.mxu0 %v24802_v6 }
 0x9aa   : > { %19208 = vmatmul.mubr.f32.gmra.mxu0 %v10482_v40  ;;  %19221 = vmatprep.subr.mxu1 %v26646_v24 }
 0x9ab   : > { %19238 = vmatprep.subr.mxu0 %v26646_v24  ;;  %19222 = vmatpush3.msra.mxu1 %v10551_v7 }
 0x9ac   : > { %19239 = vmatpush3.msra.mxu0 %v24781_v3  ;;  %19223 = vmatprep.subr.mxu1 %v26646_v24 }
 0x9ad   : > { %19240 = vmatprep.subr.mxu0 %v26646_v24  ;;  %19210 = vmatprep.mubr.msk.f32.mxu0 %vm20028_vm6, %v26646_v24 }
 0x9ae   : > { %19224 = vmatpush3.msra.mxu1 %v10558_v10  ;;  %19241 = vmatpush3.msra.mxu0 %v24799_v0 }
 0x9af   : > { %19211 = vmatmul.mubr.f32.gmra.mxu0 %v10492_v61  ;;  %19226 = vmatmul.mubr.f32.vlgmr.msra.gmra.mxu1 %v24768_v21 }
 0x9b0   : > { %19242 = vmatprep.subr.mxu0 %v26646_v24  ;;  %19255 = vmatprep.subr.mxu1 %v26646_v24 }
 0x9b1   : > { %19243 = vmatpush3.msra.mxu0 %v24813_v52  ;;  %19256 = vmatpush3.msra.mxu1 %v24783_v42 }
 0x9b2   : > { %19244 = vmatprep.subr.mxu0 %v26646_v24  ;;  %19257 = vmatprep.subr.mxu1 %v26646_v24 }
 0x9b3   : > { %19228 = vmatprep.mubr.msk.f32.mxu1 %vm20028_vm6, %v26646_v24  ;;  %19245 = vmatpush3.msra.mxu0 %v24834_v25 }
 0x9b4   : > { %19246 = vmatprep.mubr.msk.f32.mxu0 %vm20028_vm6, %v26646_v24  ;;  %19258 = vmatpush3.msra.mxu1 %v24788_v27 }
 0x9b5   : > { %19229 = vmatmul.mubr.f32.gmra.mxu1 %v24776_v23  ;;  %19247 = vmatmul.mubr.f32.vlgmr.msra.gmra.mxu0 %v24774_v45 }
 0x9b6   : > { %19259 = vmatprep.subr.mxu1 %v26646_v24  ;;  %19276 = vmatprep.subr.mxu0 %v26646_v24 }
 0x9b7   : > { %19260 = vmatpush3.msra.mxu1 %v24771_v39  ;;  %19277 = vmatpush3.msra.mxu0 %v10521_v36 }
 0x9b8   : > { %19261 = vmatprep.subr.mxu1 %v26646_v24  ;;  %19278 = vmatprep.subr.mxu0 %v26646_v24 }
 0x9b9   : > { %19231 = vmatprep.mubr.msk.f32.mxu1 %vm20028_vm6, %v26646_v24  ;;  %19249 = vmatprep.mubr.msk.f32.mxu0 %vm20028_vm6, %v26646_v24 }
 0x9ba   : > { %19262 = vmatpush3.msra.mxu1 %v24778_v19  ;;  %19279 = vmatpush3.msra.mxu0 %v10528_v57 }
 0x9bb   : > { %19232 = vmatmul.mubr.f32.gmra.mxu1 %v24805_v12  ;;  %19250 = vmatmul.mubr.f32.gmra.mxu0 %v24796_v26 }
 0x9bc   : > { %19263 = vmatprep.subr.mxu1 %v26646_v24  ;;  %19280 = vmatprep.subr.mxu0 %v26646_v24 }
 0x9bd   : > { %19264 = vmatpush3.msra.mxu1 %v24786_v47  ;;  %19281 = vmatpush3.msra.mxu0 %v10535_v56 }
 0x9be   : > { %19265 = vmatprep.subr.mxu1 %v26646_v24  ;;  %19282 = vmatprep.subr.mxu0 %v26646_v24 }
 0x9bf   : > { %19252 = vmatprep.mubr.msk.f32.mxu0 %vm20028_vm6, %v26646_v24  ;;  %19266 = vmatpush3.msra.mxu1 %v24807_v16 }
 0x9c0   : > { %19267 = vmatprep.mubr.msk.f32.mxu1 %vm20028_vm6, %v26646_v24  ;;  %19283 = vmatpush3.msra.mxu0 %v10542_v48 }
 0x9c1   : > { %19253 = vmatmul.mubr.f32.gmra.mxu0 %v24831_v5  ;;  %19268 = vmatmul.mubr.f32.vlgmr.msra.gmra.mxu1 %v10470_v55 }
 0x9c2   : > { %19284 = vmatprep.subr.mxu0 %v26646_v24  ;;  %19297 = vmatprep.subr.mxu1 %v26646_v24 }
 0x9c3   : > { %19285 = vmatpush3.msra.mxu0 %v10549_v13  ;;  %19298 = vmatpush3.msra.mxu1 %v24783_v42 }
 0x9c4   : > { %19286 = vmatprep.subr.mxu0 %v26646_v24  ;;  %19299 = vmatprep.subr.mxu1 %v26646_v24 }
 0x9c5   : > { %19270 = vmatprep.mubr.msk.f32.mxu1 %vm20028_vm6, %v26646_v24  ;;  %19287 = vmatpush3.msra.mxu0 %v10556_v49 }
 0x9c6   : > { %19288 = vmatprep.mubr.msk.f32.mxu0 %vm20028_vm6, %v26646_v24  ;;  %19300 = vmatpush3.msra.mxu1 %v24788_v27 }
 0x9c7   : > { %19271 = vmatmul.mubr.f32.gmra.mxu1 %v10480_v1  ;;  %19289 = vmatmul.mubr.f32.vlgmr.msra.gmra.mxu0 %v24768_v21 }
 0x9c8   : > { %19301 = vmatprep.subr.mxu1 %v26646_v24  ;;  %19273 = vmatprep.mubr.msk.f32.mxu1 %vm20028_vm6, %v26646_v24 }
 0x9c9   : > { %19302 = vmatpush3.msra.mxu1 %v24771_v39  ;;  %19291 = vmatprep.mubr.msk.f32.mxu0 %vm20028_vm6, %v26646_v24 }
 0x9ca   : > { %19303 = vmatprep.subr.mxu1 %v26646_v24  ;;  %19318 = vmatprep.subr.mxu0 %v26646_v24 }
 0x9cb   : > { %19304 = vmatpush3.msra.mxu1 %v24778_v19  ;;  %19292 = vmatmul.mubr.f32.gmra.mxu0 %v24776_v23 }
 0x9cc   : > { %19274 = vmatmul.mubr.f32.gmra.mxu1 %v10490_v60  ;;  %19305 = vmatprep.subr.mxu1 %v26646_v24 }
 0x9cd   : > { %19306 = vmatpush3.msra.mxu1 %v24786_v47  ;;  %19294 = vmatprep.mubr.msk.f32.mxu0 %vm20028_vm6, %v26646_v24 }
 0x9ce   : > { %19307 = vmatprep.subr.mxu1 %v26646_v24  ;;  %19309 = vmatprep.mubr.msk.f32.mxu1 %vm20028_vm6, %v26646_v24 }
 0x9cf   : > { %19308 = vmatpush3.msra.mxu1 %v24807_v16  ;;  %19295 = vmatmul.mubr.f32.gmra.mxu0 %v24805_v12 }
 0x9d0   : > { %19310 = vmatmul.mubr.f32.vlgmr.msra.gmra.mxu1 %v24768_v21  ;;  %19329 = vmatprep.subr.mxu1 %v26646_v24  ;;  %v24977_v21 = vand.u32 4294901760, %v10994_v2 }
 0x9d1   : > { %19312 = vmatprep.mubr.msk.f32.mxu1 %vm20028_vm6, %v26646_v24  ;;  %19320 = vmatprep.mubr.msk.f32.mxu0 %vm20028_vm6, %v26646_v24 }
 0x9d2   : > { %v24980_v8 = vsub.f32 %v10994_v2, %v24977_v21  ;;  %19319 = vmatpush3.msra.mxu0 %v24977_v21 }
 0x9d3   : > { %19340 = vmatprep.subr.mxu0 %v26646_v24 }
 0x9d4   : > { %19313 = vmatmul.mubr.f32.gmra.mxu1 %v24776_v23  ;;  %v11134_v38 = vand.u32 4294901760, %v24980_v8 }
 0x9d5   : > { %19315 = vmatprep.mubr.msk.f32.mxu1 %vm20028_vm6, %v26646_v24 }
 0x9d6   : > { %v11135_v63 = vsub.f32 %v24980_v8, %v11134_v38 }
 0x9d8   : > { %19316 = vmatmul.mubr.f32.gmra.mxu1 %v24805_v12  ;;  %v11136_v51 = vand.u32 4294901760, %v11135_v63 }
 0x9d9   : > { %19331 = vmatprep.mubr.msk.f32.mxu1 %vm20028_vm6, %v26646_v24 }
 0x9da   : > { %19330 = vmatpush3.msra.mxu1 %v11136_v51 }
 0x9db   : > { %19351 = vmatprep.subr.mxu1 %v26646_v24 }
 0xa65   : > { %v10474_v35 = vpop.f32.mrf.mxu0 }
 0xa67   : > { %v19206_v30 = vpop.f32.mrf.mxu0 }
 0xa6a   : > { %v10484_v22 = vpop.f32.mrf.mxu0 }
 0xa6c   : > { %v19209_v39 = vpop.f32.mrf.mxu0 }
 0xa6f   : > { %v10494_v31 = vpop.f32.mrf.mxu0  ;;  %v10595_v46 = vpop.f32.mrf.mxu1 }
 0xa70   : > { %v10596_v32 = vadd.f32 %v10595_v46, %v10474_v35 }
 0xa71   : > { %v19212_v62 = vpop.f32.mrf.mxu0  ;;  %v19227_v45 = vpop.f32.mrf.mxu1 }
 0xa75   : > { %v10601_v44 = vpop.f32.mrf.mxu1  ;;  %v10691_v58 = vpop.f32.mrf.mxu0 }
 0xa76   : > { %v10692_v6 = vadd.f32 %v10691_v58, %v10596_v32  ;;  %v10602_v56 = vadd.f32 %v10601_v44, %v10484_v22 }
 0xa77   : > { %v19230_v54 = vpop.f32.mrf.mxu1  ;;  %v19248_v43 = vpop.f32.mrf.mxu0 }
 0xa7b   : > { %v10607_v23 = vpop.f32.mrf.mxu1  ;;  %v10698_v19 = vpop.f32.mrf.mxu0 }
 0xa7c   : > { %v10699_v29 = vadd.f32 %v10698_v19, %v10602_v56  ;;  %v10608_v11 = vadd.f32 %v10607_v23, %v10494_v31 }
 0xa7d   : > { %v19233_v9 = vpop.f32.mrf.mxu1  ;;  %v19251_v15 = vpop.f32.mrf.mxu0 }
 0xa81   : > { %v10705_v3 = vpop.f32.mrf.mxu0  ;;  %v10784_v42 = vpop.f32.mrf.mxu1 }
 0xa82   : > { %v10785_v36 = vadd.f32 %v10784_v42, %v10692_v6  ;;  %v10706_v13 = vadd.f32 %v10705_v3, %v10608_v11 }
 0xa83   : > { %v19254_v41 = vpop.f32.mrf.mxu0  ;;  %v19269_v47 = vpop.f32.mrf.mxu1 }
 0xa87   : > { %v10792_v27 = vpop.f32.mrf.mxu1  ;;  %v10889_v55 = vpop.f32.mrf.mxu0 }
 0xa88   : > { %v10890_v34 = vadd.f32 %v10889_v55, %v10785_v36  ;;  %v10793_v5 = vadd.f32 %v10792_v27, %v10699_v29 }
 0xa89   : > { %v19272_v26 = vpop.f32.mrf.mxu1  ;;  %v19290_v0 = vpop.f32.mrf.mxu0 }
 0xa8b   : > { %v10895_v12 = vpop.f32.mrf.mxu0 }
 0xa8c   : > { %v10800_v16 = vpop.f32.mrf.mxu1  ;;  %v10896_v28 = vadd.f32 %v10895_v12, %v10793_v5 }
 0xa8d   : > { %v19293_v52 = vpop.f32.mrf.mxu0  ;;  %v10801_v60 = vadd.f32 %v10800_v16, %v10706_v13 }
 0xa8e   : > { %v19275_v57 = vpop.f32.mrf.mxu1 }
 0xa8f   : > { %v10901_v1 = vpop.f32.mrf.mxu0 }
 0xa90   : > { %v10978_v48 = vpop.f32.mrf.mxu1  ;;  %v10902_v40 = vadd.f32 %v10901_v1, %v10801_v60 }
 0xa91   : > { %v24989_v25 = vadd.f32 %v10978_v48, %v10890_v34  ;;  %v19296_v17 = vpop.f32.mrf.mxu0 }
 0xa92   : > { %v19311_v14 = vpop.f32.mrf.mxu1  ;;  %v11538_v17 = vld [vmem:[#allocation2 + $0x4f0] sm:$0xff] }
 0xa93   : > { %v10997_v18 = vsel %vm10995_vm8, %v24989_v25, 0  ;;  %v11548_v60 = vsel %vm11543_vm9, %v11538_v17, 0 }
 0xa94   : > { %v24993_v33 = vand.u32 4294901760, %v10997_v18  ;;  %v10984_v50 = vpop.f32.mrf.mxu1 }
 0xa95   : > { %v24995_v49 = vadd.f32 %v10984_v50, %v10896_v28 }
 0xa96   : > { %v24998_v59 = vsub.f32 %v10997_v18, %v24993_v33  ;;  %v19314_v53 = vpop.f32.mrf.mxu1  ;;  %19332 = vmatmul.mubr.f32.vlgmr.msra.gmra.mxu1 %v24993_v33  ;;  %v11539_v18 = vld [vmem:[#allocation2 + $0x500] sm:$0xff] }
 0xa97   : > { %v11000_v37 = vsel %vm10995_vm8, %v24995_v49, 0  ;;  %19334 = vmatprep.mubr.msk.f32.mxu1 %vm20028_vm6, %v26646_v24  ;;  %19352 = vmatpush3.msra.mxu1 %v24977_v21 }
 0xa98   : > { %v25007_v20 = vand.u32 4294901760, %v24998_v59  ;;  %v25009_v4 = vand.u32 4294901760, %v11000_v37  ;;  %v10990_v7 = vpop.f32.mrf.mxu1  ;;  %19373 = vmatprep.subr.mxu1 %v26646_v24 }
 0xa99   : > { %v25012_v61 = vadd.f32 %v10990_v7, %v10902_v40 }
 0xa9a   : > { %v11074_v10 = vsub.f32 %v24998_v59, %v25007_v20  ;;  %v25017_v2 = vsub.f32 %v11000_v37, %v25009_v4  ;;  %v19317_v63 = vpop.f32.mrf.mxu1  ;;  %19335 = vmatmul.mubr.f32.gmra.mxu1 %v25009_v4  ;;  %v11540_v37 = vld [vmem:[#allocation2 + $0x510] sm:$0xff] }
 0xa9b   : > { %v11003_v51 = vsel %vm10995_vm8, %v25012_v61, 0  ;;  %19337 = vmatprep.mubr.msk.f32.mxu1 %vm20028_vm6, %v26646_v24  ;;  %v11551_v63 = vsel %vm11543_vm9, %v11539_v18, 0 }
 0xa9c   : > { %v25024_v35 = vand.u32 4294901760, %v11074_v10  ;;  %v25027_v30 = vand.u32 4294901760, %v25017_v2  ;;  %v25029_v22 = vand.u32 4294901760, %v11003_v51 }
 0xa9e   : > { %v25032_v39 = vsub.f32 %v11003_v51, %v25029_v22  ;;  %19321 = vmatmul.mubr.f32.vlgmr.msra.gmra.mxu0 %v25024_v35  ;;  %19338 = vmatmul.mubr.f32.gmra.mxu1 %v25029_v22  ;;  %v11084_v31 = vsub.f32 %v25017_v2, %v25027_v30 }
 0xa9f   : > { %19323 = vmatprep.mubr.msk.f32.mxu0 %vm20028_vm6, %v26646_v24  ;;  %19353 = vmatprep.mubr.msk.f32.mxu1 %vm20028_vm6, %v26646_v24 }
 0xaa0   : > { %v25043_v46 = vand.u32 4294901760, %v25032_v39  ;;  %v25045_v62 = vand.u32 4294901760, %v11084_v31  ;;  %19341 = vmatpush3.msra.mxu0 %v24980_v8 }
 0xaa1   : > { %19362 = vmatprep.subr.mxu0 %v26646_v24 }
 0xaa2   : > { %19324 = vmatmul.mubr.f32.gmra.mxu0 %v25045_v62  ;;  %19354 = vmatmul.mubr.f32.vlgmr.msra.gmra.mxu1 %v25007_v20  ;;  %v11094_v45 = vsub.f32 %v25032_v39, %v25043_v46 }
 0xaa3   : > { %19326 = vmatprep.mubr.msk.f32.mxu0 %vm20028_vm6, %v26646_v24  ;;  %19356 = vmatprep.mubr.msk.f32.mxu1 %vm20028_vm6, %v26646_v24 }
 0xaa4   : > { %v25057_v44 = vand.u32 4294901760, %v11094_v45  ;;  %19374 = vmatpush3.msra.mxu1 %v24977_v21  ;;  %v11537_v21 = vld [vmem:[#allocation2 + $0x4e0] sm:$0xff]  ;;  %v25107_v45 = vand.u32 4294901760, %v11548_v60 }
 0xaa5   : > { %v11545_v8 = vsel %vm11543_vm9, %v11537_v21, 0 }
 0xaa6   : > { %19327 = vmatmul.mubr.f32.gmra.mxu0 %v25057_v44  ;;  %19357 = vmatmul.mubr.f32.gmra.mxu1 %v25027_v30 }
 0xaa7   : > { %19342 = vmatprep.mubr.msk.f32.mxu0 %vm20028_vm6, %v26646_v24  ;;  %19359 = vmatprep.mubr.msk.f32.mxu1 %vm20028_vm6, %v26646_v24 }
 0xaaa   : > { %19343 = vmatmul.mubr.f32.vlgmr.msra.gmra.mxu0 %v24998_v59  ;;  %19360 = vmatmul.mubr.f32.gmra.mxu1 %v25043_v46 }
 0xaab   : > { %19345 = vmatprep.mubr.msk.f32.mxu0 %vm20028_vm6, %v26646_v24  ;;  %19375 = vmatprep.mubr.msk.f32.mxu1 %vm20028_vm6, %v26646_v24 }
 0xaac   : > { %19363 = vmatpush3.msra.mxu0 %v11134_v38  ;;  %v25095_v38 = vand.u32 4294901760, %v11545_v8 }
 0xaae   : > { %19346 = vmatmul.mubr.f32.gmra.mxu0 %v25017_v2  ;;  %19376 = vmatmul.mubr.f32.vlgmr.msra.gmra.mxu1 %v24993_v33  ;;  %v25098_v58 = vsub.f32 %v11545_v8, %v25095_v38 }
 0xaaf   : > { %19348 = vmatprep.mubr.msk.f32.mxu0 %vm20028_vm6, %v26646_v24  ;;  %19378 = vmatprep.mubr.msk.f32.mxu1 %vm20028_vm6, %v26646_v24 }
 0xab0   : > { %v11632_v54 = vand.u32 4294901760, %v25098_v58 }
 0xab2   : > { %19349 = vmatmul.mubr.f32.gmra.mxu0 %v25032_v39  ;;  %19379 = vmatmul.mubr.f32.gmra.mxu1 %v25009_v4  ;;  %v11633_v43 = vsub.f32 %v25098_v58, %v11632_v54 }
 0xab3   : > { %19364 = vmatprep.mubr.msk.f32.mxu0 %vm20028_vm6, %v26646_v24  ;;  %19381 = vmatprep.mubr.msk.f32.mxu1 %vm20028_vm6, %v26646_v24 }
 0xab4   : > { %v11634_v23 = vand.u32 4294901760, %v11633_v43  ;;  %v11554_v43 = vsel %vm11543_vm9, %v11540_v37, 0 }
 0xab6   : > { %19365 = vmatmul.mubr.f32.vlgmr.msra.gmra.mxu0 %v24993_v33  ;;  %19382 = vmatmul.mubr.f32.gmra.mxu1 %v25029_v22 }
 0xab7   : > { %19367 = vmatprep.mubr.msk.f32.mxu0 %vm20028_vm6, %v26646_v24  ;;  %19405 = vmatprep.mubr.f32.mxu1 %v25095_v38 }
 0xaba   : > { %19368 = vmatmul.mubr.f32.gmra.mxu0 %v25009_v4 }
 0xabb   : > { %19370 = vmatprep.mubr.msk.f32.mxu0 %vm20028_vm6, %v26646_v24 }
 0xabe   : > { %19371 = vmatmul.mubr.f32.gmra.mxu0 %v25029_v22 }
 0xabf   : > { %19390 = vmatprep.mubr.f32.mxu0 %v11634_v23 }
 0xb56   : > { %v11173_v19 = vpop.f32.mrf.mxu1 }
 0xb58   : > { %v19333_v9 = vpop.f32.mrf.mxu1 }
 0xb59   : > { %v25110_v9 = vand.u32 4294901760, %v11551_v63 }
 0xb5a   : > { %v11179_v15 = vpop.f32.mrf.mxu1 }
 0xb5c   : > { %v19336_v3 = vpop.f32.mrf.mxu1 }
 0xb5e   : > { %v11077_v42 = vpop.f32.mrf.mxu0  ;;  %v11185_v41 = vpop.f32.mrf.mxu1 }
 0xb5f   : > { %v11174_v48 = vadd.f32 %v11173_v19, %v11077_v42 }
 0xb60   : > { %v19322_v47 = vpop.f32.mrf.mxu0  ;;  %v19339_v27 = vpop.f32.mrf.mxu1 }
 0xb61   : > { %v11542_v47 = vld [vmem:[#allocation2 + $0x530] sm:$0xff] }
 0xb62   : > { %v11087_v55 = vpop.f32.mrf.mxu0  ;;  %v11347_v32 = vpop.f32.mrf.mxu1 }
 0xb63   : > { %v11180_v50 = vadd.f32 %v11179_v15, %v11087_v55  ;;  %v11541_v15 = vld [vmem:[#allocation2 + $0x520] sm:$0xff]  ;;  %v25113_v55 = vsub.f32 %v11548_v60, %v25107_v45 }
 0xb64   : > { %v19325_v26 = vpop.f32.mrf.mxu0  ;;  %v19355_v0 = vpop.f32.mrf.mxu1 }
 0xb66   : > { %v11097_v6 = vpop.f32.mrf.mxu0  ;;  %v11355_v12 = vpop.f32.mrf.mxu1 }
 0xb67   : > { %v11186_v21 = vadd.f32 %v11185_v41, %v11097_v6  ;;  %v11557_v41 = vsel %vm11543_vm9, %v11541_v15, 0 }
 0xb68   : > { %v19328_v16 = vpop.f32.mrf.mxu0  ;;  %v19358_v56 = vpop.f32.mrf.mxu1 }
 0xb69   : > { %v25119_v16 = vsub.f32 %v11551_v63, %v25110_v9  ;;  %v11560_v56 = vsel %vm11543_vm9, %v11542_v47, 0 }
 0xb6a   : > { %v11259_v36 = vpop.f32.mrf.mxu0  ;;  %v11363_v52 = vpop.f32.mrf.mxu1  ;;  %v25132_v17 = vand.u32 4294901760, %v11560_v56 }
 0xb6b   : > { %v11260_v14 = vadd.f32 %v11259_v36, %v11174_v48  ;;  %v25126_v48 = vand.u32 4294901760, %v11557_v41 }
 0xb6c   : > { %v19344_v57 = vpop.f32.mrf.mxu0  ;;  %v19361_v29 = vpop.f32.mrf.mxu1  ;;  %v25147_v37 = vsub.f32 %v11560_v56, %v25132_v17 }
 0xb6d   : > { %v11348_v10 = vadd.f32 %v11347_v32, %v11260_v14  ;;  %v25115_v32 = vand.u32 4294901760, %v11554_v43  ;;  %v11642_v29 = vand.u32 4294901760, %v25113_v55 }
 0xb6e   : > { %v11266_v34 = vpop.f32.mrf.mxu0  ;;  %v11521_v1 = vpop.f32.mrf.mxu1 }
 0xb6f   : > { %v11267_v7 = vadd.f32 %v11266_v34, %v11180_v50  ;;  %v25124_v34 = vsub.f32 %v11554_v43, %v25115_v32  ;;  %v11643_v18 = vsub.f32 %v25113_v55, %v11642_v29  ;;  %v25140_v50 = vsub.f32 %v11557_v41, %v25126_v48 }
 0xb70   : > { %v19347_v11 = vpop.f32.mrf.mxu0  ;;  %v19377_v5 = vpop.f32.mrf.mxu1 }
 0xb71   : > { %v11356_v42 = vadd.f32 %v11355_v12, %v11267_v7 }
 0xb72   : > { %v11273_v13 = vpop.f32.mrf.mxu0  ;;  %v11527_v28 = vpop.f32.mrf.mxu1 }
 0xb73   : > { %v11274_v3 = vadd.f32 %v11273_v13, %v11186_v21  ;;  %v11652_v13 = vand.u32 4294901760, %v25119_v16 }
 0xb74   : > { %v19350_v53 = vpop.f32.mrf.mxu0  ;;  %v19380_v40 = vpop.f32.mrf.mxu1 }
 0xb75   : > { %v11364_v57 = vadd.f32 %v11363_v52, %v11274_v3  ;;  %v11662_v40 = vand.u32 4294901760, %v25124_v34  ;;  %v11653_v7 = vsub.f32 %v25119_v16, %v11652_v13 }
 0xb76   : > { %v11437_v51 = vpop.f32.mrf.mxu0  ;;  %v11533_v31 = vpop.f32.mrf.mxu1 }
 0xb77   : > { %v11438_v8 = vadd.f32 %v11437_v51, %v11348_v10  ;;  %v11644_v51 = vand.u32 4294901760, %v11643_v18 }
 0xb78   : > { %v19366_v23 = vpop.f32.mrf.mxu0  ;;  %v19383_v19 = vpop.f32.mrf.mxu1 }
 0xb79   : > { %v11522_v26 = vadd.f32 %v11521_v1, %v11438_v8  ;;  %v11663_v8 = vsub.f32 %v25124_v34, %v11662_v40  ;;  %v11682_v23 = vand.u32 4294901760, %v25147_v37  ;;  %v11654_v19 = vand.u32 4294901760, %v11653_v7 }
 0xb7a   : > { %v11443_v27 = vpop.f32.mrf.mxu0 }
 0xb7b   : > { %v11444_v0 = vadd.f32 %v11443_v27, %v11356_v42  ;;  %v25128_v1 = vand.u32 4294901760, %v11522_v26  ;;  %v11664_v27 = vand.u32 4294901760, %v11663_v8 }
 0xb7c   : > { %v19369_v6 = vpop.f32.mrf.mxu0 }
 0xb7d   : > { %v11528_v36 = vadd.f32 %v11527_v28, %v11444_v0  ;;  %v11732_v60 = vsub.f32 %v11522_v26, %v25128_v1  ;;  %v11683_v0 = vsub.f32 %v25147_v37, %v11682_v23 }
 0xb7e   : > { %v11449_v12 = vpop.f32.mrf.mxu0 }
 0xb7f   : > { %v25130_v11 = vand.u32 4294901760, %v11528_v36  ;;  %v11450_v5 = vadd.f32 %v11449_v12, %v11364_v57  ;;  %v11733_v43 = vand.u32 4294901760, %v11732_v60  ;;  %v12281_v57 = vld [vmem:[#allocation2 + $0x540] sm:$0xff] }
 0xb80   : > { %v19372_v14 = vpop.f32.mrf.mxu0  ;;  %v25183_v12 = vand.u32 4294901760, %v12281_v57 }
 0xb81   : > { %v11725_v52 = vsub.f32 %v11528_v36, %v25130_v11  ;;  %v11534_v28 = vadd.f32 %v11533_v31, %v11450_v5  ;;  %v11672_v31 = vand.u32 4294901760, %v25140_v50  ;;  %v11734_v26 = vsub.f32 %v11732_v60, %v11733_v43 }
 0xb82   : > { %v11684_v36 = vand.u32 4294901760, %v11683_v0  ;;  %v12410_v5 = vsub.f32 %v12281_v57, %v25183_v12 }
 0xb83   : > { %v25143_v53 = vand.u32 4294901760, %v11534_v28  ;;  %v11726_v63 = vand.u32 4294901760, %v11725_v52  ;;  %v11673_v42 = vsub.f32 %v25140_v50, %v11672_v31  ;;  %v11735_v56 = vand.u32 4294901760, %v11734_v26 }
 0xb85   : > { %v11718_v10 = vsub.f32 %v11534_v28, %v25143_v53  ;;  %19384 = vmatprep.subr.mxu0 %v25143_v53  ;;  %v11727_v3 = vsub.f32 %v11725_v52, %v11726_v63  ;;  %v11674_v6 = vand.u32 4294901760, %v11673_v42 }
 0xb86   : > { %19385 = vmatpush3.msra.mxu0 %v25143_v53 }
 0xb87   : > { %19386 = vmatprep.subr.mxu0 %v25130_v11  ;;  %v11719_v21 = vand.u32 4294901760, %v11718_v10  ;;  %v11728_v41 = vand.u32 4294901760, %v11727_v3 }
 0xb88   : > { %19387 = vmatpush3.msra.mxu0 %v25130_v11 }
 0xb89   : > { %19388 = vmatprep.subr.mxu0 %v25128_v1  ;;  %v11720_v15 = vsub.f32 %v11718_v10, %v11719_v21 }
 0xb8a   : > { %19389 = vmatpush3.msra.mxu0 %v25128_v1 }
 0xb8b   : > { %19391 = vmatmul.mubr.f32.vlgmr.msra.gmra.mxu0 %v11644_v51  ;;  %19414 = vmatprep.subr.mxu0 %v11718_v10  ;;  %v11721_v47 = vand.u32 4294901760, %v11720_v15 }
 0xb8c   : > { %19415 = vmatpush3.msra.mxu0 %v11718_v10  ;;  %19393 = vmatprep.mubr.f32.mxu0 %v11654_v19 }
 0xb8d   : > { %19399 = vmatprep.subr.mxu1 %v11721_v47  ;;  %19416 = vmatprep.subr.mxu0 %v11725_v52 }
 0xb8e   : > { %19400 = vmatpush3.msra.mxu1 %v11721_v47  ;;  %19417 = vmatpush3.msra.mxu0 %v11725_v52 }
 0xb8f   : > { %19394 = vmatmul.mubr.f32.gmra.mxu0 %v11664_v27  ;;  %19401 = vmatprep.subr.mxu1 %v11728_v41 }
 0xb90   : > { %19418 = vmatprep.subr.mxu0 %v11732_v60  ;;  %19402 = vmatpush3.msra.mxu1 %v11728_v41 }
 0xb91   : > { %19419 = vmatpush3.msra.mxu0 %v11732_v60  ;;  %19403 = vmatprep.subr.mxu1 %v11735_v56 }
 0xb92   : > { %19444 = vmatprep.subr.mxu0 %v11719_v21  ;;  %19396 = vmatprep.mubr.f32.mxu0 %v11674_v6 }
 0xb93   : > { %19404 = vmatpush3.msra.mxu1 %v11735_v56  ;;  %19397 = vmatmul.mubr.f32.gmra.mxu0 %v11684_v36 }
 0xb94   : > { %19406 = vmatmul.mubr.f32.vlgmr.msra.gmra.mxu1 %v25107_v45  ;;  %19429 = vmatprep.subr.mxu1 %v25143_v53 }
 0xb95   : > { %19430 = vmatpush3.msra.mxu1 %v25143_v53  ;;  %19408 = vmatprep.mubr.f32.mxu1 %v25110_v9 }
 0xb96   : > { %19431 = vmatprep.subr.mxu1 %v25130_v11  ;;  %19420 = vmatprep.mubr.f32.mxu0 %v25098_v58  ;;  %v12411_v58 = vand.u32 4294901760, %v12410_v5 }
 0xb97   : > { %19432 = vmatpush3.msra.mxu1 %v25130_v11  ;;  %19421 = vmatmul.mubr.f32.vlgmr.msra.gmra.mxu0 %v25113_v55 }
 0xb98   : > { %19409 = vmatmul.mubr.f32.gmra.mxu1 %v25115_v32  ;;  %19433 = vmatprep.subr.mxu1 %v25128_v1 }
 0xb99   : > { %19445 = vmatpush3.msra.mxu0 %v11719_v21  ;;  %19434 = vmatpush3.msra.mxu1 %v25128_v1 }
 0xb9a   : > { %19446 = vmatprep.subr.mxu0 %v11726_v63  ;;  %19459 = vmatprep.subr.mxu1 %v25143_v53 }
 0xb9b   : > { %19447 = vmatpush3.msra.mxu0 %v11726_v63  ;;  %19411 = vmatprep.mubr.f32.mxu1 %v25126_v48 }
 0xb9c   : > { %19423 = vmatprep.mubr.f32.mxu0 %v25119_v16  ;;  %19448 = vmatprep.subr.mxu0 %v11733_v43 }
 0xb9d   : > { %19412 = vmatmul.mubr.f32.gmra.mxu1 %v25132_v17  ;;  %19424 = vmatmul.mubr.f32.gmra.mxu0 %v25124_v34 }
 0xb9e   : > { %19449 = vmatpush3.msra.mxu0 %v11733_v43  ;;  %19426 = vmatprep.mubr.f32.mxu0 %v25140_v50 }
 0xb9f   : > { %19435 = vmatprep.mubr.f32.mxu1 %v11632_v54  ;;  %19474 = vmatprep.subr.mxu0 %v26646_v24  ;;  %v12412_v54 = vsub.f32 %v12410_v5, %v12411_v58 }
 0xba1   : > { %19427 = vmatmul.mubr.f32.gmra.mxu0 %v25147_v37  ;;  %19436 = vmatmul.mubr.f32.vlgmr.msra.gmra.mxu1 %v11642_v29  ;;  %v12413_v55 = vand.u32 4294901760, %v12412_v54 }
 0xba2   : > { %19460 = vmatpush3.msra.mxu1 %v25143_v53  ;;  %19438 = vmatprep.mubr.f32.mxu1 %v11652_v13 }
 0xba3   : > { %19461 = vmatprep.subr.mxu1 %v25130_v11  ;;  %19450 = vmatprep.mubr.f32.mxu0 %v25095_v38 }
 0xba4   : > { %19462 = vmatpush3.msra.mxu1 %v25130_v11 }
 0xba5   : > { %19463 = vmatprep.subr.mxu1 %v25128_v1  ;;  %19439 = vmatmul.mubr.f32.gmra.mxu1 %v11662_v40 }
 0xba6   : > { %19451 = vmatmul.mubr.f32.vlgmr.msra.gmra.mxu0 %v25107_v45  ;;  %19464 = vmatpush3.msra.mxu1 %v25128_v1 }
 0xba7   : > { %19441 = vmatprep.mubr.f32.mxu1 %v11672_v31  ;;  %19453 = vmatprep.mubr.f32.mxu0 %v25110_v9 }
 0xba8   : > { %19475 = vmatpush3.msra.mxu0 %v25183_v12  ;;  %19485 = vmatprep.subr.mxu1 %v26646_v24 }
 0xba9   : > { %19442 = vmatmul.mubr.f32.gmra.mxu1 %v11682_v23  ;;  %19496 = vmatprep.subr.mxu0 %v26646_v24 }
 0xbaa   : > { %19454 = vmatmul.mubr.f32.gmra.mxu0 %v25115_v32  ;;  %19465 = vmatprep.mubr.f32.mxu1 %v25095_v38 }
 0xbab   : > { %19456 = vmatprep.mubr.f32.mxu0 %v25126_v48 }
 0xbad   : > { %19466 = vmatmul.mubr.f32.vlgmr.msra.gmra.mxu1 %v25107_v45 }
 0xbae   : > { %19457 = vmatmul.mubr.f32.gmra.mxu0 %v25132_v17  ;;  %19468 = vmatprep.mubr.f32.mxu1 %v25110_v9 }
 0xbaf   : > { %19476 = vmatprep.mubr.msk.f32.mxu0 %vm20028_vm6, %v26646_v24  ;;  %19486 = vmatpush3.msra.mxu1 %v12413_v55 }
 0xbb0   : > { %19507 = vmatprep.subr.mxu1 %v26646_v24 }
 0xbb1   : > { %19469 = vmatmul.mubr.f32.gmra.mxu1 %v25115_v32 }
 0xbb2   : > { %19477 = vmatmul.mubr.f32.vlgmr.msra.gmra.mxu0 %v25024_v35  ;;  %19471 = vmatprep.mubr.f32.mxu1 %v25126_v48 }
 0xbb3   : > { %19479 = vmatprep.mubr.msk.f32.mxu0 %vm20028_vm6, %v26646_v24  ;;  %19497 = vmatpush3.msra.mxu0 %v12410_v5 }
 0xbb4   : > { %19518 = vmatprep.subr.mxu0 %v26646_v24 }
 0xbb5   : > { %19472 = vmatmul.mubr.f32.gmra.mxu1 %v25132_v17 }
 0xbb6   : > { %19480 = vmatmul.mubr.f32.gmra.mxu0 %v25045_v62  ;;  %19487 = vmatprep.mubr.msk.f32.mxu1 %vm20028_vm6, %v26646_v24 }
 0xbb7   : > { %19482 = vmatprep.mubr.msk.f32.mxu0 %vm20028_vm6, %v26646_v24 }
 0xbb9   : > { %19488 = vmatmul.mubr.f32.vlgmr.msra.gmra.mxu1 %v24993_v33 }
 0xbba   : > { %19483 = vmatmul.mubr.f32.gmra.mxu0 %v25057_v44  ;;  %19490 = vmatprep.mubr.msk.f32.mxu1 %vm20028_vm6, %v26646_v24 }
 0xbbb   : > { %19498 = vmatprep.mubr.msk.f32.mxu0 %vm20028_vm6, %v26646_v24  ;;  %19508 = vmatpush3.msra.mxu1 %v25183_v12 }
 0xbbc   : > { %19529 = vmatprep.subr.mxu1 %v26646_v24 }
 0xbbd   : > { %19491 = vmatmul.mubr.f32.gmra.mxu1 %v25009_v4 }
 0xbbe   : > { %19499 = vmatmul.mubr.f32.vlgmr.msra.gmra.mxu0 %v24998_v59  ;;  %19493 = vmatprep.mubr.msk.f32.mxu1 %vm20028_vm6, %v26646_v24  ;;  %v12814_v59 = vld [vmem:[#allocation2 + $0x550] sm:$0xff] }
 0xbbf   : > { %19501 = vmatprep.mubr.msk.f32.mxu0 %vm20028_vm6, %v26646_v24  ;;  %19519 = vmatpush3.msra.mxu0 %v12411_v58  ;;  %v26647_v58 = vld [vmem:[#allocation77_spill] sm:$0xff] }
 0xbc1   : > { %19494 = vmatmul.mubr.f32.gmra.mxu1 %v25029_v22 }
 0xbc2   : > { %19502 = vmatmul.mubr.f32.gmra.mxu0 %v25017_v2  ;;  %19509 = vmatprep.mubr.msk.f32.mxu1 %vm20028_vm6, %v26646_v24 }
 0xbc3   : > { %19504 = vmatprep.mubr.msk.f32.mxu0 %vm20028_vm6, %v26646_v24 }
 0xbc5   : > { %19510 = vmatmul.mubr.f32.vlgmr.msra.gmra.mxu1 %v25007_v20  ;;  %v12817_v20 = vsel %vm11543_vm9, %v12814_v59, 0 }
 0xbc6   : > { %19505 = vmatmul.mubr.f32.gmra.mxu0 %v25032_v39  ;;  %19512 = vmatprep.mubr.msk.f32.mxu1 %vm20028_vm6, %v26646_v24  ;;  %v25284_v2 = vand.u32 4294901760, %v12817_v20 }
 0xbc7   : > { %19520 = vmatprep.mubr.msk.f32.mxu0 %vm20028_vm6, %v26646_v24  ;;  %19530 = vmatpush3.msra.mxu1 %v25183_v12 }
 0xbc8   : > { %v25287_v35 = vsub.f32 %v12817_v20, %v25284_v2 }
 0xbc9   : > { %19513 = vmatmul.mubr.f32.gmra.mxu1 %v25027_v30 }
 0xbca   : > { %19521 = vmatmul.mubr.f32.vlgmr.msra.gmra.mxu0 %v24993_v33  ;;  %19515 = vmatprep.mubr.msk.f32.mxu1 %vm20028_vm6, %v26646_v24 }
 0xbcb   : > { %19523 = vmatprep.mubr.msk.f32.mxu0 %vm20028_vm6, %v26646_v24 }
 0xbcd   : > { %19516 = vmatmul.mubr.f32.gmra.mxu1 %v25043_v46 }
 0xbce   : > { %19524 = vmatmul.mubr.f32.gmra.mxu0 %v25009_v4  ;;  %19531 = vmatprep.mubr.msk.f32.mxu1 %vm20028_vm6, %v26646_v24 }
 0xbcf   : > { %19526 = vmatprep.mubr.msk.f32.mxu0 %vm20028_vm6, %v26646_v24 }
 0xbd1   : > { %19532 = vmatmul.mubr.f32.vlgmr.msra.gmra.mxu1 %v24993_v33  ;;  %v12892_v33 = vand.u32 4294901760, %v25287_v35 }
 0xbd2   : > { %19527 = vmatmul.mubr.f32.gmra.mxu0 %v25029_v22  ;;  %19534 = vmatprep.mubr.msk.f32.mxu1 %vm20028_vm6, %v26646_v24 }
 0xbd5   : > { %19535 = vmatmul.mubr.f32.gmra.mxu1 %v25009_v4  ;;  %v12893_v4 = vsub.f32 %v25287_v35, %v12892_v33 }
 0xbd6   : > { %19537 = vmatprep.mubr.msk.f32.mxu1 %vm20028_vm6, %v26646_v24 }
 0xbd7   : > { %v12894_v30 = vand.u32 4294901760, %v12893_v4 }
 0xbd9   : > { %19538 = vmatmul.mubr.f32.gmra.mxu1 %v25029_v22  ;;  %19546 = vmatprep.mubr.f32.mxu0 %v12894_v30 }
 0xbda   : > { %19555 = vmatprep.mubr.f32.mxu1 %v25284_v2 }
 0xc4b   : > { %v19392_v39 = vpop.f32.mrf.mxu0 }
 0xc4d   : > { %v11636_v22 = vpop.f32.mrf.mxu0 }
 0xc4f   : > { %v19395_v46 = vpop.f32.mrf.mxu0 }
 0xc51   : > { %v11656_v62 = vpop.f32.mrf.mxu0 }
 0xc53   : > { %v19398_v44 = vpop.f32.mrf.mxu0 }
 0xc54   : > { %v19407_v38 = vpop.f32.mrf.mxu1 }
 0xc55   : > { %v11676_v45 = vpop.f32.mrf.mxu0  ;;  %v11779_v50 = vadd.f32 %v19407_v38, %v19392_v39 }
 0xc56   : > { %v11772_v9 = vpop.f32.mrf.mxu1 }
 0xc57   : > { %v19422_v32 = vpop.f32.mrf.mxu0  ;;  %v11773_v40 = vadd.f32 %v11772_v9, %v11636_v22  ;;  %v26648_v22 = vld [vmem:[#allocation48_spill] sm:$0xff] }
 0xc58   : > { %v19410_v16 = vpop.f32.mrf.mxu1  ;;  %v11888_v37 = vadd.f32 %v19422_v32, %v11779_v50 }
 0xc59   : > { %v11880_v29 = vpop.f32.mrf.mxu0  ;;  %v11791_v63 = vadd.f32 %v19410_v16, %v19395_v46 }
 0xc5a   : > { %v11784_v34 = vpop.f32.mrf.mxu1  ;;  %v11881_v51 = vadd.f32 %v11880_v29, %v11773_v40  ;;  %v26649_v29 = vld [vmem:[#allocation82_spill] sm:$0xff] }
 0xc5b   : > { %v11785_v43 = vadd.f32 %v11784_v34, %v11656_v62 }
 0xc5d   : > { %v19413_v48 = vpop.f32.mrf.mxu1  ;;  %v19425_v1 = vpop.f32.mrf.mxu0 }
 0xc5e   : > { %v11902_v23 = vadd.f32 %v19425_v1, %v11791_v63  ;;  %v11803_v42 = vadd.f32 %v19413_v48, %v19398_v44 }
 0xc5f   : > { %v11796_v11 = vpop.f32.mrf.mxu1  ;;  %v11894_v17 = vpop.f32.mrf.mxu0 }
 0xc60   : > { %v11895_v27 = vadd.f32 %v11894_v17, %v11785_v43  ;;  %v11797_v56 = vadd.f32 %v11796_v11, %v11676_v45 }
 0xc61   : > { %v19428_v14 = vpop.f32.mrf.mxu0  ;;  %v19437_v13 = vpop.f32.mrf.mxu1 }
 0xc62   : > { %v12000_v31 = vadd.f32 %v19437_v13, %v11888_v37  ;;  %v11916_v36 = vadd.f32 %v19428_v14, %v11803_v42  ;;  %v26650_v13 = vld [vmem:[#allocation86_spill] sm:$0xff]  ;;  %v26651_v37 = vld [vmem:[#allocation75_spill] sm:$0xff] }
 0xc63   : > { %v11908_v52 = vpop.f32.mrf.mxu0  ;;  %v11991_v28 = vpop.f32.mrf.mxu1 }
 0xc64   : > { %v11992_v19 = vadd.f32 %v11991_v28, %v11881_v51  ;;  %v11909_v20 = vadd.f32 %v11908_v52, %v11797_v56 }
 0xc65   : > { %v19440_v18 = vpop.f32.mrf.mxu1 }
 0xc66   : > { %v19452_v60 = vpop.f32.mrf.mxu0  ;;  %v12016_v26 = vadd.f32 %v19440_v18, %v11902_v23 }
 0xc67   : > { %v12007_v53 = vpop.f32.mrf.mxu1  ;;  %v12118_v15 = vadd.f32 %v19452_v60, %v12000_v31 }
 0xc68   : > { %v12111_v7 = vpop.f32.mrf.mxu0  ;;  %v12008_v12 = vadd.f32 %v12007_v53, %v11895_v27 }
 0xc69   : > { %v19443_v10 = vpop.f32.mrf.mxu1  ;;  %v12112_v0 = vadd.f32 %v12111_v7, %v11992_v19 }
 0xc6a   : > { %v19455_v21 = vpop.f32.mrf.mxu0  ;;  %v12032_v30 = vadd.f32 %v19443_v10, %v11916_v36 }
 0xc6b   : > { %v12023_v8 = vpop.f32.mrf.mxu1  ;;  %v12130_v5 = vadd.f32 %v19455_v21, %v12016_v26 }
 0xc6c   : > { %v12123_v3 = vpop.f32.mrf.mxu0  ;;  %v12024_v38 = vadd.f32 %v12023_v8, %v11909_v20  ;;  %v26652_v8 = vld [vmem:[#allocation56_spill] sm:$0xff] }
 0xc6d   : > { %v19467_v47 = vpop.f32.mrf.mxu1  ;;  %v12124_v39 = vadd.f32 %v12123_v3, %v12008_v12 }
 0xc6e   : > { %v19458_v41 = vpop.f32.mrf.mxu0  ;;  %v12222_v6 = vadd.f32 %v19467_v47, %v12118_v15 }
 0xc6f   : > { %v12215_v57 = vpop.f32.mrf.mxu1  ;;  %v12142_v45 = vadd.f32 %v19458_v41, %v12032_v30 }
 0xc70   : > { %v12250_v54 = vsub.f32 %v26647_v58, %v12222_v6  ;;  %v12135_v55 = vpop.f32.mrf.mxu0  ;;  %v12216_v59 = vadd.f32 %v12215_v57, %v12112_v0 }
 0xc71   : > { %v19470_v4 = vpop.f32.mrf.mxu1  ;;  %v12136_v17 = vadd.f32 %v12135_v55, %v12024_v38 }
 0xc72   : > { %v12249_v46 = vsub.f32 %v26648_v22, %v12216_v59  ;;  %v12234_v62 = vadd.f32 %v19470_v4, %v12130_v5  ;;  %v12354_v44 = vpop.f32.mrf.mxu0  ;;  %v12256_v9 = vand.u32 2147483647, %v12250_v54 }
 0xc73   : > { %v12227_v32 = vpop.f32.mrf.mxu1 }
 0xc74   : > { %v12255_v16 = vand.u32 2147483647, %v12249_v46  ;;  %v12252_v34 = vsub.f32 %v26649_v29, %v12234_v62  ;;  %v12228_v48 = vadd.f32 %v12227_v32, %v12124_v39  ;;  %v19478_v1 = vpop.f32.mrf.mxu0  ;;  %v12262_v50 = vsel %vm7927_vm4, %v12256_v9, 0.0 }
 0xc75   : > { %v19473_v11 = vpop.f32.mrf.mxu1 }
 0xc76   : > { %v12261_v14 = vsel %vm7927_vm4, %v12255_v16, 0.0  ;;  %v12251_v52 = vsub.f32 %v26650_v13, %v12228_v48  ;;  %v12246_v28 = vadd.f32 %v19473_v11, %v12142_v45  ;;  %v12364_v18 = vpop.f32.mrf.mxu0  ;;  %v12258_v53 = vand.u32 2147483647, %v12252_v34  ;;  %v12815_v45 = vld [vmem:[#allocation2 + $0x560] sm:$0xf] }
 0xc77   : > { %v12239_v60 = vpop.f32.mrf.mxu1  ;;  %v12263_v51 = vadd.f32 %v12262_v50, %v12261_v14 }
 0xc78   : > { %v12257_v40 = vand.u32 2147483647, %v12251_v52  ;;  %v12254_v7 = vsub.f32 %v26651_v37, %v12246_v28  ;;  %v12240_v10 = vadd.f32 %v12239_v60, %v12136_v17  ;;  %v19481_v63 = vpop.f32.mrf.mxu0  ;;  %v12266_v3 = vsel %vm7927_vm4, %v12258_v53, 0.0 }
 0xc79   : > { %v12450_v31 = vpop.f32.mrf.mxu1  ;;  %v12820_v17 = vsel %vm11543_vm9, %v12815_v45, 0 }
 0xc7a   : > { %v12264_v21 = vsel %vm7927_vm4, %v12257_v40, 0.0  ;;  %v12253_v43 = vsub.f32 %v26652_v8, %v12240_v10  ;;  %v12374_v23 = vpop.f32.mrf.mxu0  ;;  %v12260_v42 = vand.u32 2147483647, %v12254_v7  ;;  %v12451_v34 = vadd.f32 %v12450_v31, %v12354_v44 }
 0xc7b   : > { %v12265_v19 = vadd.f32 %v12264_v21, %v12263_v51  ;;  %v19489_v15 = vpop.f32.mrf.mxu1  ;;  %v25307_v37 = vand.u32 4294901760, %v12820_v17 }
 0xc7c   : > { %v12259_v47 = vand.u32 2147483647, %v12253_v43  ;;  %v19484_v27 = vpop.f32.mrf.mxu0  ;;  %v12270_v57 = vsel %vm7927_vm4, %v12260_v42, 0.0 }
 0xc7d   : > { %v12267_v26 = vadd.f32 %v12266_v3, %v12265_v19  ;;  %v12456_v0 = vpop.f32.mrf.mxu1  ;;  %v25311_v19 = vsub.f32 %v12820_v17, %v25307_v37 }
 0xc7e   : > { %v12268_v41 = vsel %vm7927_vm4, %v12259_v47, 0.0  ;;  %v12536_v6 = vpop.f32.mrf.mxu0  ;;  %v12457_v14 = vadd.f32 %v12456_v0, %v12364_v18  ;;  %vm16350_vm4 = vcmask 24576  }
 0xc7f   : > { %v12269_v56 = vadd.f32 %v12268_v41, %v12267_v26  ;;  %v19492_v36 = vpop.f32.mrf.mxu1  ;;  %v12537_v13 = vadd.f32 %v12536_v6, %v12451_v34 }
 0xc80   : > { %v19500_v12 = vpop.f32.mrf.mxu0 }
 0xc81   : > { %v12271_v5 = vadd.f32 %v12270_v57, %v12269_v56  ;;  %v12462_v58 = vpop.f32.mrf.mxu1 }
 0xc82   : > { %v12543_v54 = vpop.f32.mrf.mxu0  ;;  %v12463_v10 = vadd.f32 %v12462_v58, %v12374_v23  ;;  %v12902_v23 = vand.u32 4294901760, %v25311_v19 }
 0xc83   : > { %v12272_v55 = vrot.slane %v12271_v5, 4  ;;  %v19495_v59 = vpop.f32.mrf.mxu1  ;;  %v12544_v60 = vadd.f32 %v12543_v54, %v12457_v14 }
 0xc84   : > { %v19503_v20 = vpop.f32.mrf.mxu0 }
 0xc85   : > { %v12273_v4 = vadd.f32 %v12272_v55, %v12271_v5  ;;  %v12624_v30 = vpop.f32.mrf.mxu1  ;;  %v12903_v5 = vsub.f32 %v25311_v19, %v12902_v23 }
 0xc86   : > { %v12550_v39 = vpop.f32.mrf.mxu0  ;;  %v12625_v53 = vadd.f32 %v12624_v30, %v12537_v13 }
 0xc87   : > { %v12274_v22 = vrot.slane %v12273_v4, 2  ;;  %v19511_v46 = vpop.f32.mrf.mxu1  ;;  %v12551_v21 = vadd.f32 %v12550_v39, %v12463_v10  ;;  %v12904_v55 = vand.u32 4294901760, %v12903_v5 }
 0xc88   : > { %v19506_v62 = vpop.f32.mrf.mxu0 }
 0xc89   : > { %v12275_v38 = vadd.f32 %v12274_v22, %v12273_v4  ;;  %v12632_v9 = vpop.f32.mrf.mxu1 }
 0xc8a   : > { %v12714_v32 = vpop.f32.mrf.mxu0  ;;  %v12633_v44 = vadd.f32 %v12632_v9, %v12544_v60 }
 0xc8b   : > { %v12276_v16 = vrot.slane %v12275_v38, 1  ;;  %v19514_v29 = vpop.f32.mrf.mxu1  ;;  %v12715_v63 = vadd.f32 %v12714_v32, %v12625_v53 }
 0xc8c   : > { %v19522_v48 = vpop.f32.mrf.mxu0 }
 0xc8d   : > { %v12277_v1 = vadd.f32 %v12276_v16, %v12275_v38  ;;  %v12640_v11 = vpop.f32.mrf.mxu1 }
 0xc8e   : > { %v12720_v52 = vpop.f32.mrf.mxu0  ;;  %v12641_v3 = vadd.f32 %v12640_v11, %v12551_v21 }
 0xc8f   : > { %v12278_v28 = vmul.f32 0.0006510417, %v12277_v1  ;;  %v19517_v50 = vpop.f32.mrf.mxu1  ;;  %v12721_v8 = vadd.f32 %v12720_v52, %v12633_v44 }
 0xc90   : > { %v19525_v40 = vpop.f32.mrf.mxu0 }
 0xc91   : > { %12280 = vst.msk [vmem:[%s23424_s28 + $0x2] sm:$0x1] %vm12279_vm10, %v12278_v28  ;;  %v12798_v7 = vpop.f32.mrf.mxu1 }
 0xc92   : > { %v12726_v51 = vpop.f32.mrf.mxu0  ;;  %v12799_v43 = vadd.f32 %v12798_v7, %v12715_v63 }
 0xc93   : > { %v19533_v31 = vpop.f32.mrf.mxu1  ;;  %v12727_v27 = vadd.f32 %v12726_v51, %v12641_v3 }
 0xc94   : > { %v19528_v18 = vpop.f32.mrf.mxu0  ;;  %v25313_v26 = vand.u32 4294901760, %v12799_v43 }
 0xc95   : > { %v12804_v15 = vpop.f32.mrf.mxu1 }
 0xc96   : > { %v12805_v42 = vadd.f32 %v12804_v15, %v12721_v8  ;;  %v12952_v57 = vsub.f32 %v12799_v43, %v25313_v26 }
 0xc97   : > { %v19536_v47 = vpop.f32.mrf.mxu1 }
 0xc98   : > { %v12852_v0 = vand.u32 4294901760, %v12805_v42  ;;  %v12953_v20 = vand.u32 4294901760, %v12952_v57 }
 0xc99   : > { %v12810_v41 = vpop.f32.mrf.mxu1 }
 0xc9a   : > { %v12945_v6 = vsub.f32 %v12805_v42, %v12852_v0  ;;  %v12811_v56 = vadd.f32 %v12810_v41, %v12727_v27  ;;  %v12954_v22 = vsub.f32 %v12952_v57, %v12953_v20  ;;  %v13838_v41 = vld [vmem:[#allocation2 + $0x580] sm:$0xff] }
 0xc9b   : > { %v19539_v36 = vpop.f32.mrf.mxu1 }
 0xc9c   : > { %v12849_v12 = vand.u32 4294901760, %v12811_v56  ;;  %v12946_v54 = vand.u32 4294901760, %v12945_v6  ;;  %v12955_v62 = vand.u32 4294901760, %v12954_v22  ;;  %v13839_v36 = vld [vmem:[#allocation2 + $0x590] sm:$0xff] }
 0xc9e   : > { %v12938_v58 = vsub.f32 %v12811_v56, %v12849_v12  ;;  %19540 = vmatprep.subr.mxu0 %v12849_v12  ;;  %v12947_v30 = vsub.f32 %v12945_v6, %v12946_v54 }
 0xc9f   : > { %19541 = vmatpush3.msra.mxu0 %v12849_v12 }
 0xca0   : > { %19542 = vmatprep.subr.mxu0 %v12852_v0  ;;  %v12939_v59 = vand.u32 4294901760, %v12938_v58  ;;  %v12948_v46 = vand.u32 4294901760, %v12947_v30 }
 0xca1   : > { %19543 = vmatpush3.msra.mxu0 %v12852_v0 }
 0xca2   : > { %19544 = vmatprep.subr.mxu0 %v25313_v26  ;;  %v12940_v4 = vsub.f32 %v12938_v58, %v12939_v59 }
 0xca3   : > { %19545 = vmatpush3.msra.mxu0 %v25313_v26 }
 0xca4   : > { %19558 = vmatprep.subr.mxu0 %v12938_v58  ;;  %19547 = vmatmul.mubr.f32.vlgmr.msra.gmra.mxu0 %v12904_v55  ;;  %v12941_v39 = vand.u32 4294901760, %v12940_v4 }
 0xca5   : > { %19559 = vmatpush3.msra.mxu0 %v12938_v58  ;;  %19564 = vmatprep.mubr.f32.mxu0 %v25287_v35  ;;  %v13337_v35 = vld [vmem:[#allocation2 + $0x570] sm:$0xf]  ;;  %v13846_v58 = vsel %vm13841_vm13, %v13839_v36, 0 }
 0xca6   : > { %19549 = vmatprep.subr.mxu1 %v12941_v39  ;;  %19560 = vmatprep.subr.mxu0 %v12945_v6  ;;  %v25391_v4 = vand.u32 4294901760, %v13846_v58 }
 0xca7   : > { %19550 = vmatpush3.msra.mxu1 %v12941_v39  ;;  %19561 = vmatpush3.msra.mxu0 %v12945_v6  ;;  %v13843_v6 = vsel %vm13841_vm13, %v13838_v41, 0 }
 0xca8   : > { %19551 = vmatprep.subr.mxu1 %v12948_v46  ;;  %19562 = vmatprep.subr.mxu0 %v12952_v57 }
 0xca9   : > { %19552 = vmatpush3.msra.mxu1 %v12948_v46  ;;  %19563 = vmatpush3.msra.mxu0 %v12952_v57  ;;  %v25385_v57 = vand.u32 4294901760, %v13843_v6 }
 0xcaa   : > { %19553 = vmatprep.subr.mxu1 %v12955_v62  ;;  %19576 = vmatprep.subr.mxu0 %v12939_v59 }
 0xcab   : > { %19554 = vmatpush3.msra.mxu1 %v12955_v62  ;;  %19565 = vmatmul.mubr.f32.vlgmr.msra.gmra.mxu0 %v25311_v19 }
 0xcac   : > { %19577 = vmatpush3.msra.mxu0 %v12939_v59  ;;  %19567 = vmatprep.subr.mxu1 %v12849_v12  ;;  %v25389_v59 = vsub.f32 %v13843_v6, %v25385_v57 }
 0xcad   : > { %19578 = vmatprep.subr.mxu0 %v12946_v54  ;;  %19556 = vmatmul.mubr.f32.vlgmr.msra.gmra.mxu1 %v25307_v37 }
 0xcae   : > { %19568 = vmatpush3.msra.mxu1 %v12849_v12  ;;  %19579 = vmatpush3.msra.mxu0 %v12946_v54  ;;  %v13840_v54 = vld [vmem:[#allocation2 + $0x5a0] sm:$0xff] }
 0xcaf   : > { %19569 = vmatprep.subr.mxu1 %v12852_v0  ;;  %19580 = vmatprep.subr.mxu0 %v12953_v20  ;;  %v13849_v22 = vsel %vm13841_vm13, %v13840_v54, 0 }
 0xcb0   : > { %19570 = vmatpush3.msra.mxu1 %v12852_v0  ;;  %19581 = vmatpush3.msra.mxu0 %v12953_v20 }
 0xcb1   : > { %19571 = vmatprep.subr.mxu1 %v25313_v26  ;;  %19573 = vmatprep.mubr.f32.mxu1 %v12892_v33  ;;  %v13347_v33 = vsel %vm13345_vm11, %v13337_v35, 0 }
 0xcb2   : > { %19572 = vmatpush3.msra.mxu1 %v25313_v26  ;;  %19582 = vmatprep.mubr.f32.mxu0 %v25284_v2  ;;  %v13380_v38 = vand.u32 4294901760, %v13347_v33 }
 0xcb3   : > { %19574 = vmatmul.mubr.f32.vlgmr.msra.gmra.mxu1 %v12902_v23  ;;  %19585 = vmatprep.subr.mxu1 %v12849_v12 }
 0xcb4   : > { %19586 = vmatpush3.msra.mxu1 %v12849_v12  ;;  %19583 = vmatmul.mubr.f32.vlgmr.msra.gmra.mxu0 %v25307_v37  ;;  %v13467_v9 = vsub.f32 %v13347_v33, %v13380_v38  ;;  %v13923_v33 = vand.u32 4294901760, %v25389_v59 }
 0xcb5   : > { %19587 = vmatprep.subr.mxu1 %v12852_v0  ;;  %19591 = vmatprep.mubr.f32.mxu1 %v25284_v2 }
 0xcb6   : > { %19588 = vmatpush3.msra.mxu1 %v12852_v0  ;;  %19594 = vmatprep.subr.mxu0 %v13380_v38  ;;  %v13468_v32 = vand.u32 4294901760, %v13467_v9 }
 0xcb7   : > { %19589 = vmatprep.subr.mxu1 %v25313_v26  ;;  %19595 = vmatpush3.msra.mxu0 %v13380_v38 }
 0xcb8   : > { %19590 = vmatpush3.msra.mxu1 %v25313_v26  ;;  %19604 = vmatprep.subr.mxu0 %v13467_v9  ;;  %v13469_v45 = vsub.f32 %v13467_v9, %v13468_v32 }
 0xcb9   : > { %19592 = vmatmul.mubr.f32.vlgmr.msra.gmra.mxu1 %v25307_v37 }
 0xcba   : > { %v13470_v16 = vand.u32 4294901760, %v13469_v45  ;;  %v25398_v45 = vand.u32 4294901760, %v13849_v22 }
 0xcbc   : > { %19599 = vmatprep.subr.mxu1 %v13470_v16 }
 0xcbd   : > { %19600 = vmatpush3.msra.mxu1 %v13470_v16 }
 0xcbe   : > { %19609 = vmatprep.subr.mxu1 %v13380_v38 }
 0xd64   : > { %v19548_v2 = vpop.f32.mrf.mxu0 }
 0xd66   : > { %v12896_v29 = vpop.f32.mrf.mxu0 }
 0xd6b   : > { %v19566_v48 = vpop.f32.mrf.mxu0 }
 0xd6d   : > { %v19557_v34 = vpop.f32.mrf.mxu1  ;;  %v13076_v14 = vpop.f32.mrf.mxu0 }
 0xd6e   : > { %v12999_v1 = vadd.f32 %v19557_v34, %v19548_v2 }
 0xd6f   : > { %v12992_v11 = vpop.f32.mrf.mxu1 }
 0xd70   : > { %v12993_v17 = vadd.f32 %v12992_v11, %v12896_v29  ;;  %v13084_v13 = vadd.f32 %v19566_v48, %v12999_v1  ;;  %v13924_v1 = vsub.f32 %v25389_v59, %v13923_v33 }
 0xd72   : > { %v13077_v28 = vadd.f32 %v13076_v14, %v12993_v17 }
 0xd73   : > { %v19575_v52 = vpop.f32.mrf.mxu1 }
 0xd74   : > { %v13168_v50 = vadd.f32 %v19575_v52, %v13084_v13  ;;  %v19584_v60 = vpop.f32.mrf.mxu0  ;;  %v25405_v13 = vsub.f32 %v13849_v22, %v25398_v45 }
 0xd75   : > { %v13159_v53 = vpop.f32.mrf.mxu1 }
 0xd76   : > { %v13160_v40 = vadd.f32 %v13159_v53, %v13077_v28  ;;  %v13247_v37 = vpop.f32.mrf.mxu0  ;;  %v13254_v7 = vadd.f32 %v19584_v60, %v13168_v50 }
 0xd78   : > { %v13248_v44 = vadd.f32 %v13247_v37, %v13160_v40  ;;  %v13925_v40 = vand.u32 4294901760, %v13924_v1 }
 0xd79   : > { %v19593_v10 = vpop.f32.mrf.mxu1 }
 0xd7a   : > { %v25334_v63 = vadd.f32 %v19593_v10, %v13254_v7  ;;  %v13943_v7 = vand.u32 4294901760, %v25405_v13 }
 0xd7b   : > { %v13327_v51 = vpop.f32.mrf.mxu1 }
 0xd7c   : > { %v13343_v31 = vsel %vm13338_vm12, %v25334_v63, 0  ;;  %v25338_v21 = vadd.f32 %v13327_v51, %v13248_v44 }
 0xd7d   : > { %v25340_v8 = vand.u32 4294901760, %v13343_v31 }
 0xd7e   : > { %v13340_v43 = vsel %vm13338_vm12, %v25338_v21, 0 }
 0xd7f   : > { %v25345_v18 = vsub.f32 %v13343_v31, %v25340_v8  ;;  %v25347_v19 = vand.u32 4294901760, %v13340_v43 }
 0xd81   : > { %v25350_v15 = vand.u32 4294901760, %v25345_v18  ;;  %v25353_v3 = vsub.f32 %v13340_v43, %v25347_v19  ;;  %19601 = vmatprep.mubr.f32.mxu1 %v25347_v19 }
 0xd82   : > { %19602 = vmatmul.mubr.f32.vlgmr.msra.gmra.mxu1 %v25340_v8 }
 0xd83   : > { %19610 = vmatpush3.msra.mxu1 %v13380_v38  ;;  %v25358_v42 = vand.u32 4294901760, %v25353_v3  ;;  %v13428_v47 = vsub.f32 %v25345_v18, %v25350_v15 }
 0xd84   : > { %19619 = vmatprep.subr.mxu1 %v13380_v38 }
 0xd85   : > { %19611 = vmatprep.mubr.f32.mxu1 %v25358_v42  ;;  %v13418_v27 = vsub.f32 %v25353_v3, %v25358_v42  ;;  %v25369_v0 = vand.u32 4294901760, %v13428_v47  ;;  %v13944_v47 = vsub.f32 %v25405_v13, %v13943_v7 }
 0xd86   : > { %19612 = vmatmul.mubr.f32.vlgmr.msra.gmra.mxu1 %v25350_v15 }
 0xd87   : > { %19621 = vmatprep.mubr.f32.mxu1 %v25347_v19  ;;  %v25367_v26 = vand.u32 4294901760, %v13418_v27  ;;  %19620 = vmatpush3.msra.mxu1 %v13380_v38  ;;  %v14419_v27 = vld [vmem:[#allocation2 + $0x5b0] sm:$0xf] }
 0xd88   : > { %19637 = vmatprep.subr.mxu1 %v26646_v24 }
 0xd89   : > { %19596 = vmatprep.mubr.f32.mxu0 %v25367_v26 }
 0xd8a   : > { %19597 = vmatmul.mubr.f32.vlgmr.msra.gmra.mxu0 %v25369_v0  ;;  %19622 = vmatmul.mubr.f32.vlgmr.msra.gmra.mxu1 %v25340_v8 }
 0xd8b   : > { %19606 = vmatprep.mubr.f32.mxu0 %v25353_v3  ;;  %19605 = vmatpush3.msra.mxu0 %v13467_v9 }
 0xd8c   : > { %19614 = vmatprep.subr.mxu0 %v13468_v32  ;;  %19641 = vmatprep.mubr.msk.f32.mxu1 %vm20028_vm6, %v26646_v24 }
 0xd8e   : > { %19607 = vmatmul.mubr.f32.vlgmr.msra.gmra.mxu0 %v25345_v18 }
 0xd8f   : > { %19616 = vmatprep.mubr.f32.mxu0 %v25347_v19  ;;  %19615 = vmatpush3.msra.mxu0 %v13468_v32  ;;  %v25396_v32 = vsub.f32 %v13846_v58, %v25391_v4 }
 0xd90   : > { %19624 = vmatprep.subr.mxu0 %v26646_v24 }
 0xd91   : > { %v13933_v14 = vand.u32 4294901760, %v25396_v32 }
 0xd92   : > { %19617 = vmatmul.mubr.f32.vlgmr.msra.gmra.mxu0 %v25340_v8 }
 0xd93   : > { %19628 = vmatprep.mubr.msk.f32.mxu0 %vm20028_vm6, %v26646_v24  ;;  %v13934_v37 = vsub.f32 %v25396_v32, %v13933_v14 }
 0xd95   : > { %v13935_v43 = vand.u32 4294901760, %v13934_v37 }
 0xe42   : > { %v19603_v23 = vpop.f32.mrf.mxu1 }
 0xe44   : > { %v13507_v56 = vpop.f32.mrf.mxu1 }
 0xe46   : > { %v19613_v12 = vpop.f32.mrf.mxu1 }
 0xe48   : > { %v13668_v30 = vpop.f32.mrf.mxu1 }
 0xe4a   : > { %v19598_v5 = vpop.f32.mrf.mxu0  ;;  %v19623_v16 = vpop.f32.mrf.mxu1 }
 0xe4b   : > { %v13514_v20 = vadd.f32 %v19603_v23, %v19598_v5 }
 0xe4c   : > { %v13421_v55 = vpop.f32.mrf.mxu0  ;;  %v13828_v52 = vpop.f32.mrf.mxu1 }
 0xe4d   : > { %v13508_v46 = vadd.f32 %v13507_v56, %v13421_v55  ;;  %v14421_v56 = vsel %vm13345_vm11, %v14419_v27, 0 }
 0xe4e   : > { %v19608_v39 = vpop.f32.mrf.mxu0  ;;  %v25429_v5 = vand.u32 4294901760, %v14421_v56 }
 0xe4f   : > { %v13595_v62 = vadd.f32 %v19608_v39, %v13514_v20 }
 0xe50   : > { %v13587_v35 = vpop.f32.mrf.mxu0  ;;  %v14541_v58 = vsub.f32 %v14421_v56, %v25429_v5 }
 0xe51   : > { %v13588_v38 = vadd.f32 %v13587_v35, %v13508_v46  ;;  %v13677_v9 = vadd.f32 %v19613_v12, %v13595_v62  ;;  %v13945_v12 = vand.u32 4294901760, %v13944_v47 }
 0xe52   : > { %v19618_v2 = vpop.f32.mrf.mxu0  ;;  %v14542_v54 = vand.u32 4294901760, %v14541_v58 }
 0xe53   : > { %v13757_v29 = vadd.f32 %v19618_v2, %v13677_v9  ;;  %v13669_v34 = vadd.f32 %v13668_v30, %v13588_v38 }
 0xe54   : > { %v13750_v48 = vpop.f32.mrf.mxu0  ;;  %v14543_v55 = vsub.f32 %v14541_v58, %v14542_v54 }
 0xe55   : > { %v13835_v11 = vadd.f32 %v19623_v16, %v13757_v29  ;;  %v13751_v17 = vadd.f32 %v13750_v48, %v13669_v34 }
 0xe56   : > { %v14544_v20 = vand.u32 4294901760, %v14543_v55 }
 0xe57   : > { %v13852_v28 = vsel %vm13345_vm11, %v13835_v11, 0  ;;  %v13829_v50 = vadd.f32 %v13828_v52, %v13751_v17 }
 0xe58   : > { %v13883_v60 = vand.u32 4294901760, %v13852_v28 }
 0xe59   : > { %v25408_v53 = vand.u32 4294901760, %v13829_v50 }
 0xe5a   : > { %v13981_v10 = vsub.f32 %v13852_v28, %v13883_v60  ;;  %19625 = vmatpush3.msra.mxu0 %v13883_v60 }
 0xe5b   : > { %v13988_v44 = vsub.f32 %v13829_v50, %v25408_v53  ;;  %19626 = vmatprep.subr.mxu0 %v26646_v24 }
 0xe5c   : > { %19627 = vmatpush3.msra.mxu0 %v25408_v53  ;;  %v13982_v51 = vand.u32 4294901760, %v13981_v10 }
 0xe5d   : > { %v13989_v31 = vand.u32 4294901760, %v13988_v44  ;;  %19629 = vmatmul.mubr.f32.vlgmr.msra.gmra.mxu0 %v13925_v40  ;;  %19650 = vmatprep.subr.mxu0 %v26646_v24 }
 0xe5e   : > { %19651 = vmatpush3.msra.mxu0 %v13981_v10  ;;  %19631 = vmatprep.mubr.msk.f32.mxu0 %vm20028_vm6, %v26646_v24  ;;  %v13983_v23 = vsub.f32 %v13981_v10, %v13982_v51 }
 0xe5f   : > { %19652 = vmatprep.subr.mxu0 %v26646_v24  ;;  %v13990_v41 = vsub.f32 %v13988_v44, %v13989_v31 }
 0xe60   : > { %19653 = vmatpush3.msra.mxu0 %v13988_v44  ;;  %v13984_v6 = vand.u32 4294901760, %v13983_v23 }
 0xe61   : > { %19632 = vmatmul.mubr.f32.gmra.mxu0 %v13935_v43  ;;  %v13991_v36 = vand.u32 4294901760, %v13990_v41  ;;  %19676 = vmatprep.subr.mxu0 %v26646_v24  ;;  %v14912_v43 = vld [vmem:[#allocation2 + $0x5c0] sm:$0x3f] }
 0xe62   : > { %19638 = vmatpush3.msra.mxu1 %v13984_v6  ;;  %19634 = vmatprep.mubr.msk.f32.mxu0 %vm20028_vm6, %v26646_v24 }
 0xe63   : > { %19639 = vmatprep.subr.mxu1 %v26646_v24 }
 0xe64   : > { %19640 = vmatpush3.msra.mxu1 %v13991_v36  ;;  %v14914_v36 = vsel %vm13841_vm13, %v14912_v43, 0 }
 0xe65   : > { %19635 = vmatmul.mubr.f32.gmra.mxu0 %v13945_v12  ;;  %19642 = vmatmul.mubr.f32.vlgmr.msra.gmra.mxu1 %v25385_v57 }
 0xe66   : > { %19663 = vmatprep.subr.mxu1 %v26646_v24  ;;  %19644 = vmatprep.mubr.msk.f32.mxu1 %vm20028_vm6, %v26646_v24 }
 0xe67   : > { %19664 = vmatpush3.msra.mxu1 %v13883_v60  ;;  %19654 = vmatprep.mubr.msk.f32.mxu0 %vm20028_vm6, %v26646_v24 }
 0xe68   : > { %19665 = vmatprep.subr.mxu1 %v26646_v24 }
 0xe69   : > { %19666 = vmatpush3.msra.mxu1 %v25408_v53  ;;  %19655 = vmatmul.mubr.f32.vlgmr.msra.gmra.mxu0 %v25389_v59 }
 0xe6a   : > { %19645 = vmatmul.mubr.f32.gmra.mxu1 %v25391_v4  ;;  %19677 = vmatpush3.msra.mxu0 %v13982_v51 }
 0xe6b   : > { %19678 = vmatprep.subr.mxu0 %v26646_v24  ;;  %19647 = vmatprep.mubr.msk.f32.mxu1 %vm20028_vm6, %v26646_v24 }
 0xe6c   : > { %19679 = vmatpush3.msra.mxu0 %v13989_v31  ;;  %19657 = vmatprep.mubr.msk.f32.mxu0 %vm20028_vm6, %v26646_v24 }
 0xe6d   : > { %19658 = vmatmul.mubr.f32.gmra.mxu0 %v25396_v32  ;;  %19689 = vmatprep.subr.mxu1 %v26646_v24 }
 0xe6e   : > { %19648 = vmatmul.mubr.f32.gmra.mxu1 %v25398_v45  ;;  %19660 = vmatprep.mubr.msk.f32.mxu0 %vm20028_vm6, %v26646_v24 }
 0xe6f   : > { %19667 = vmatprep.mubr.msk.f32.mxu1 %vm20028_vm6, %v26646_v24  ;;  %19702 = vmatprep.subr.mxu0 %v25429_v5 }
 0xe71   : > { %19661 = vmatmul.mubr.f32.gmra.mxu0 %v25405_v13 }
 0xe72   : > { %19668 = vmatmul.mubr.f32.vlgmr.msra.gmra.mxu1 %v13923_v33  ;;  %19680 = vmatprep.mubr.msk.f32.mxu0 %vm20028_vm6, %v26646_v24 }
 0xe73   : > { %19690 = vmatpush3.msra.mxu1 %v13883_v60  ;;  %19670 = vmatprep.mubr.msk.f32.mxu1 %vm20028_vm6, %v26646_v24 }
 0xe74   : > { %19691 = vmatprep.subr.mxu1 %v26646_v24 }
 0xe75   : > { %19692 = vmatpush3.msra.mxu1 %v25408_v53  ;;  %19681 = vmatmul.mubr.f32.vlgmr.msra.gmra.mxu0 %v25385_v57 }
 0xe76   : > { %19671 = vmatmul.mubr.f32.gmra.mxu1 %v13933_v14  ;;  %19683 = vmatprep.mubr.msk.f32.mxu0 %vm20028_vm6, %v26646_v24 }
 0xe77   : > { %19673 = vmatprep.mubr.msk.f32.mxu1 %vm20028_vm6, %v26646_v24  ;;  %19703 = vmatpush3.msra.mxu0 %v25429_v5 }
 0xe78   : > { %19707 = vmatprep.subr.mxu1 %v14544_v20  ;;  %19712 = vmatprep.subr.mxu0 %v14541_v58 }
 0xe79   : > { %19684 = vmatmul.mubr.f32.gmra.mxu0 %v25391_v4 }
 0xe7a   : > { %19674 = vmatmul.mubr.f32.gmra.mxu1 %v13943_v7  ;;  %19686 = vmatprep.mubr.msk.f32.mxu0 %vm20028_vm6, %v26646_v24 }
 0xe7b   : > { %19693 = vmatprep.mubr.msk.f32.mxu1 %vm20028_vm6, %v26646_v24 }
 0xe7d   : > { %19687 = vmatmul.mubr.f32.gmra.mxu0 %v25398_v45 }
 0xe7e   : > { %19694 = vmatmul.mubr.f32.vlgmr.msra.gmra.mxu1 %v25385_v57  ;;  %19704 = vmatprep.mubr.f32.mxu0 %v25367_v26 }
 0xe7f   : > { %19696 = vmatprep.mubr.msk.f32.mxu1 %vm20028_vm6, %v26646_v24  ;;  %19708 = vmatpush3.msra.mxu1 %v14544_v20 }
 0xe80   : > { %19717 = vmatprep.subr.mxu1 %v25429_v5 }
 0xe81   : > { %19705 = vmatmul.mubr.f32.vlgmr.msra.gmra.mxu0 %v25369_v0 }
 0xe82   : > { %19697 = vmatmul.mubr.f32.gmra.mxu1 %v25391_v4  ;;  %19714 = vmatprep.mubr.f32.mxu0 %v25353_v3 }
 0xe83   : > { %19699 = vmatprep.mubr.msk.f32.mxu1 %vm20028_vm6, %v26646_v24  ;;  %19713 = vmatpush3.msra.mxu0 %v14541_v58 }
 0xe84   : > { %19722 = vmatprep.subr.mxu0 %v14542_v54 }
 0xe85   : > { %19715 = vmatmul.mubr.f32.vlgmr.msra.gmra.mxu0 %v25345_v18 }
 0xe86   : > { %19700 = vmatmul.mubr.f32.gmra.mxu1 %v25398_v45  ;;  %19724 = vmatprep.mubr.f32.mxu0 %v25347_v19 }
 0xe87   : > { %19709 = vmatprep.mubr.f32.mxu1 %v25347_v19  ;;  %19723 = vmatpush3.msra.mxu0 %v14542_v54 }
 0xe88   : > { %19732 = vmatprep.subr.mxu0 %v26646_v24 }
 0xe89   : > { %19725 = vmatmul.mubr.f32.vlgmr.msra.gmra.mxu0 %v25340_v8 }
 0xe8a   : > { %19710 = vmatmul.mubr.f32.vlgmr.msra.gmra.mxu1 %v25340_v8  ;;  %19736 = vmatprep.mubr.msk.f32.mxu0 %vm20028_vm6, %v26646_v24 }
 0xe8b   : > { %19719 = vmatprep.mubr.f32.mxu1 %v25358_v42  ;;  %19718 = vmatpush3.msra.mxu1 %v25429_v5 }
 0xe8c   : > { %19727 = vmatprep.subr.mxu1 %v25429_v5 }
 0xe8e   : > { %19720 = vmatmul.mubr.f32.vlgmr.msra.gmra.mxu1 %v25350_v15 }
 0xe8f   : > { %19729 = vmatprep.mubr.f32.mxu1 %v25347_v19  ;;  %19728 = vmatpush3.msra.mxu1 %v25429_v5 }
 0xe90   : > { %19739 = vmatprep.subr.mxu1 %v26646_v24 }
 0xe92   : > { %19730 = vmatmul.mubr.f32.vlgmr.msra.gmra.mxu1 %v25340_v8 }
 0xe93   : > { %19743 = vmatprep.mubr.msk.f32.mxu1 %vm20028_vm6, %v26646_v24 }
 0xf1d   : > { %v13927_v18 = vpop.f32.mrf.mxu0 }
 0xf1f   : > { %v19630_v3 = vpop.f32.mrf.mxu0 }
 0xf20   : > { %v25512_v3 = vand.u32 4294901760, %v14914_v36 }
 0xf21   : > { %v13937_v42 = vpop.f32.mrf.mxu0 }
 0xf23   : > { %v19633_v26 = vpop.f32.mrf.mxu0 }
 0xf25   : > { %v13947_v0 = vpop.f32.mrf.mxu0  ;;  %v14028_v57 = vpop.f32.mrf.mxu1 }
 0xf26   : > { %v14029_v16 = vadd.f32 %v14028_v57, %v13927_v18 }
 0xf27   : > { %v19636_v59 = vpop.f32.mrf.mxu0  ;;  %v19643_v4 = vpop.f32.mrf.mxu1 }
 0xf29   : > { %v14116_v15 = vpop.f32.mrf.mxu0 }
 0xf2a   : > { %v14034_v30 = vpop.f32.mrf.mxu1  ;;  %v14117_v34 = vadd.f32 %v14116_v15, %v14029_v16 }
 0xf2b   : > { %v19656_v19 = vpop.f32.mrf.mxu0  ;;  %v14035_v11 = vadd.f32 %v14034_v30, %v13937_v42 }
 0xf2c   : > { %v19646_v39 = vpop.f32.mrf.mxu1 }
 0xf2d   : > { %v14123_v22 = vpop.f32.mrf.mxu0 }
 0xf2e   : > { %v14040_v46 = vpop.f32.mrf.mxu1  ;;  %v14124_v52 = vadd.f32 %v14123_v22, %v14035_v11 }
 0xf2f   : > { %v19659_v62 = vpop.f32.mrf.mxu0  ;;  %v14041_v53 = vadd.f32 %v14040_v46, %v13947_v0 }
 0xf30   : > { %v19649_v35 = vpop.f32.mrf.mxu1 }
 0xf31   : > { %v14130_v8 = vpop.f32.mrf.mxu0 }
 0xf32   : > { %v14205_v33 = vpop.f32.mrf.mxu1  ;;  %v14131_v44 = vadd.f32 %v14130_v8, %v14041_v53 }
 0xf33   : > { %v19662_v38 = vpop.f32.mrf.mxu0  ;;  %v14206_v17 = vadd.f32 %v14205_v33, %v14117_v34 }
 0xf34   : > { %v19669_v9 = vpop.f32.mrf.mxu1 }
 0xf35   : > { %v14298_v32 = vpop.f32.mrf.mxu0 }
 0xf36   : > { %v14213_v45 = vpop.f32.mrf.mxu1  ;;  %v14299_v28 = vadd.f32 %v14298_v32, %v14206_v17 }
 0xf37   : > { %v19682_v2 = vpop.f32.mrf.mxu0  ;;  %v14214_v40 = vadd.f32 %v14213_v45, %v14124_v52 }
 0xf38   : > { %v19672_v29 = vpop.f32.mrf.mxu1 }
 0xf39   : > { %v14304_v48 = vpop.f32.mrf.mxu0 }
 0xf3a   : > { %v14221_v1 = vpop.f32.mrf.mxu1  ;;  %v14305_v51 = vadd.f32 %v14304_v48, %v14214_v40 }
 0xf3b   : > { %v19685_v14 = vpop.f32.mrf.mxu0  ;;  %v14222_v27 = vadd.f32 %v14221_v1, %v14131_v44 }
 0xf3c   : > { %v19675_v13 = vpop.f32.mrf.mxu1 }
 0xf3d   : > { %v14310_v50 = vpop.f32.mrf.mxu0 }
 0xf3e   : > { %v14383_v60 = vpop.f32.mrf.mxu1  ;;  %v14311_v12 = vadd.f32 %v14310_v50, %v14222_v27 }
 0xf3f   : > { %v14384_v37 = vadd.f32 %v14383_v60, %v14299_v28  ;;  %v19688_v7 = vpop.f32.mrf.mxu0 }
 0xf40   : > { %v19695_v10 = vpop.f32.mrf.mxu1 }
 0xf41   : > { %v19706_v31 = vpop.f32.mrf.mxu0  ;;  %v14399_v23 = vsub.f32 %v24989_v25, %v14384_v37 }
 0xf42   : > { %v14389_v47 = vpop.f32.mrf.mxu1 }
 0xf43   : > { %v14390_v41 = vadd.f32 %v14389_v47, %v14305_v51  ;;  %v14495_v6 = vpop.f32.mrf.mxu0  ;;  %v14402_v55 = vand.u32 2147483647, %v14399_v23 }
 0xf44   : > { %v19698_v56 = vpop.f32.mrf.mxu1 }
 0xf45   : > { %v14400_v5 = vsub.f32 %v24995_v49, %v14390_v41  ;;  %v19716_v54 = vpop.f32.mrf.mxu0  ;;  %v14405_v59 = vsel %vm10995_vm8, %v14402_v55, 0.0  ;;  %v25518_v49 = vsub.f32 %v14914_v36, %v25512_v3  ;;  %v15378_v41 = vld [vmem:[#allocation2 + $0x5d0] sm:$0x3] }
 0xf46   : > { %v14395_v58 = vpop.f32.mrf.mxu1 }
 0xf47   : > { %v14403_v20 = vand.u32 2147483647, %v14400_v5  ;;  %v14396_v18 = vadd.f32 %v14395_v58, %v14311_v12  ;;  %v14661_v0 = vpop.f32.mrf.mxu0  ;;  %v14988_v38 = vand.u32 4294901760, %v25518_v49 }
 0xf48   : > { %v19701_v42 = vpop.f32.mrf.mxu1 }
 0xf49   : > { %v14406_v26 = vsel %vm10995_vm8, %v14403_v20, 0.0  ;;  %v14401_v25 = vsub.f32 %v25012_v61, %v14396_v18  ;;  %v19726_v35 = vpop.f32.mrf.mxu0  ;;  %v14989_v11 = vsub.f32 %v25518_v49, %v14988_v38 }
 0xf4a   : > { %v19711_v57 = vpop.f32.mrf.mxu1  ;;  %v14407_v30 = vadd.f32 %v14406_v26, %v14405_v59 }
 0xf4b   : > { %v14404_v4 = vand.u32 2147483647, %v14401_v25  ;;  %v14588_v15 = vadd.f32 %v19711_v57, %v19706_v31  ;;  %v14824_v29 = vpop.f32.mrf.mxu0  ;;  %v14990_v53 = vand.u32 4294901760, %v14989_v11 }
 0xf4c   : > { %v14581_v19 = vpop.f32.mrf.mxu1 }
 0xf4d   : > { %v14408_v39 = vsel %vm10995_vm8, %v14404_v4, 0.0  ;;  %v14582_v22 = vadd.f32 %v14581_v19, %v14495_v6  ;;  %v14669_v46 = vadd.f32 %v19716_v54, %v14588_v15  ;;  %v15385_v6 = vsel %vm15383_vm15, %v15378_v41, 0 }
 0xf4e   : > { %v14409_v62 = vadd.f32 %v14408_v39, %v14407_v30  ;;  %v19721_v8 = vpop.f32.mrf.mxu1  ;;  %v15418_v56 = vand.u32 4294901760, %v15385_v6 }
 0xf4f   : > { %v14751_v33 = vadd.f32 %v19721_v8, %v14669_v46  ;;  %v14662_v61 = vadd.f32 %v14661_v0, %v14582_v22 }
 0xf50   : > { %v14410_v9 = vrot.slane %v14409_v62, 4  ;;  %v14742_v32 = vpop.f32.mrf.mxu1  ;;  %v15495_v36 = vsub.f32 %v15385_v6, %v15418_v56 }
 0xf51   : > { %v14743_v45 = vadd.f32 %v14742_v32, %v14662_v61  ;;  %v14831_v16 = vadd.f32 %v19726_v35, %v14751_v33  ;;  %v15833_v61 = vld [vmem:[#allocation2 + $0x5e0] sm:$0xff] }
 0xf52   : > { %v14411_v2 = vadd.f32 %v14410_v9, %v14409_v62  ;;  %v19731_v34 = vpop.f32.mrf.mxu1  ;;  %v15496_v12 = vand.u32 4294901760, %v15495_v36 }
 0xf53   : > { %v14909_v48 = vadd.f32 %v19731_v34, %v14831_v16  ;;  %v14825_v1 = vadd.f32 %v14824_v29, %v14743_v45  ;;  %v15834_v34 = vld [vmem:[#allocation2 + $0x5f0] sm:$0xf] }
 0xf54   : > { %v14412_v17 = vrot.slane %v14411_v2, 2  ;;  %v14902_v14 = vpop.f32.mrf.mxu1  ;;  %v15497_v5 = vsub.f32 %v15495_v36, %v15496_v12 }
 0xf55   : > { %v14917_v13 = vsel %vm13345_vm11, %v14909_v48, 0  ;;  %v14903_v52 = vadd.f32 %v14902_v14, %v14825_v1  ;;  %v15840_v1 = vsel %vm15835_vm1, %v15834_v34, 0 }
 0xf56   : > { %v14413_v28 = vadd.f32 %v14412_v17, %v14411_v2  ;;  %v14948_v50 = vand.u32 4294901760, %v14917_v13  ;;  %v15498_v58 = vand.u32 4294901760, %v15497_v5  ;;  %v15922_v14 = vand.u32 4294901760, %v15840_v1 }
 0xf57   : > { %v14951_v60 = vand.u32 4294901760, %v14903_v52 }
 0xf58   : > { %v14414_v40 = vrot.slane %v14413_v28, 1  ;;  %v15026_v37 = vsub.f32 %v14917_v13, %v14948_v50  ;;  %19733 = vmatpush3.msra.mxu0 %v14948_v50 }
 0xf59   : > { %v15033_v7 = vsub.f32 %v14903_v52, %v14951_v60  ;;  %19734 = vmatprep.subr.mxu0 %v26646_v24 }
 0xf5a   : > { %v14415_v10 = vadd.f32 %v14414_v40, %v14413_v28  ;;  %v15027_v44 = vand.u32 4294901760, %v15026_v37  ;;  %19735 = vmatpush3.msra.mxu0 %v14951_v60 }
 0xf5b   : > { %v15034_v51 = vand.u32 4294901760, %v15033_v7  ;;  %19746 = vmatprep.subr.mxu0 %v26646_v24  ;;  %19737 = vmatmul.mubr.f32.vlgmr.msra.gmra.mxu0 %v14990_v53 }
 0xf5c   : > { %v14416_v31 = vmul.f32 0.0026041667, %v14415_v10  ;;  %19747 = vmatpush3.msra.mxu0 %v15026_v37  ;;  %19750 = vmatprep.mubr.msk.f32.mxu0 %vm20028_vm6, %v26646_v24  ;;  %v15028_v43 = vsub.f32 %v15026_v37, %v15027_v44 }
 0xf5d   : > { %v15035_v47 = vsub.f32 %v15033_v7, %v15034_v51  ;;  %19748 = vmatprep.subr.mxu0 %v26646_v24 }
 0xf5e   : > { %14418 = vst.msk [vmem:[%s23424_s28 + $0x3] sm:$0x1] %vm14417_vm14, %v14416_v31  ;;  %19749 = vmatpush3.msra.mxu0 %v15033_v7  ;;  %v15029_v27 = vand.u32 4294901760, %v15028_v43 }
 0xf5f   : > { %19760 = vmatprep.subr.mxu0 %v26646_v24  ;;  %19751 = vmatmul.mubr.f32.vlgmr.msra.gmra.mxu0 %v25518_v49  ;;  %v15036_v23 = vand.u32 4294901760, %v15035_v47 }
 0xf60   : > { %19740 = vmatpush3.msra.mxu1 %v15029_v27  ;;  %19761 = vmatpush3.msra.mxu0 %v15027_v44 }
 0xf61   : > { %19741 = vmatprep.subr.mxu1 %v26646_v24  ;;  %19762 = vmatprep.subr.mxu0 %v26646_v24 }
 0xf62   : > { %19742 = vmatpush3.msra.mxu1 %v15036_v23  ;;  %19763 = vmatpush3.msra.mxu0 %v15034_v51 }
 0xf63   : > { %19744 = vmatmul.mubr.f32.vlgmr.msra.gmra.mxu1 %v25512_v3  ;;  %19753 = vmatprep.subr.mxu1 %v26646_v24 }
 0xf64   : > { %19754 = vmatpush3.msra.mxu1 %v14948_v50  ;;  %19757 = vmatprep.mubr.msk.f32.mxu1 %vm20028_vm6, %v26646_v24 }
 0xf65   : > { %19755 = vmatprep.subr.mxu1 %v26646_v24  ;;  %19764 = vmatprep.mubr.msk.f32.mxu0 %vm20028_vm6, %v26646_v24 }
 0xf66   : > { %19756 = vmatpush3.msra.mxu1 %v14951_v60  ;;  %19765 = vmatmul.mubr.f32.vlgmr.msra.gmra.mxu0 %v25512_v3 }
 0xf67   : > { %19758 = vmatmul.mubr.f32.vlgmr.msra.gmra.mxu1 %v14988_v38  ;;  %19767 = vmatprep.subr.mxu1 %v26646_v24  ;;  %v15837_v38 = vsel %vm15835_vm1, %v15833_v61, 0 }
 0xf68   : > { %19768 = vmatpush3.msra.mxu1 %v14948_v50  ;;  %19771 = vmatprep.mubr.msk.f32.mxu1 %vm20028_vm6, %v26646_v24  ;;  %v15912_v9 = vand.u32 4294901760, %v15837_v38  ;;  %v15923_v50 = vsub.f32 %v15840_v1, %v15922_v14 }
 0xf69   : > { %19769 = vmatprep.subr.mxu1 %v26646_v24  ;;  %19774 = vmatprep.subr.mxu0 %v26646_v24 }
 0xf6a   : > { %19770 = vmatpush3.msra.mxu1 %v14951_v60  ;;  %19776 = vmatprep.mubr.msk.f32.mxu0 %vm20028_vm6, %v26646_v24  ;;  %v15913_v32 = vsub.f32 %v15837_v38, %v15912_v9  ;;  %v15924_v7 = vand.u32 4294901760, %v15923_v50 }
 0xf6b   : > { %19772 = vmatmul.mubr.f32.vlgmr.msra.gmra.mxu1 %v25512_v3  ;;  %19779 = vmatprep.subr.mxu1 %v26646_v24 }
 0xf6c   : > { %19781 = vmatprep.mubr.msk.f32.mxu1 %vm20028_vm6, %v26646_v24  ;;  %19775 = vmatpush3.msra.mxu0 %v15418_v56  ;;  %v15914_v45 = vand.u32 4294901760, %v15913_v32  ;;  %v15925_v43 = vsub.f32 %v15923_v50, %v15924_v7 }
 0xf6d   : > { %19784 = vmatprep.subr.mxu0 %v26646_v24  ;;  %19780 = vmatpush3.msra.mxu1 %v15498_v58 }
 0xf6e   : > { %19789 = vmatprep.subr.mxu1 %v26646_v24  ;;  %v15915_v16 = vsub.f32 %v15913_v32, %v15914_v45  ;;  %v15926_v41 = vand.u32 4294901760, %v15925_v43 }
 0xf70   : > { %v15916_v2 = vand.u32 4294901760, %v15915_v16 }
0x101b   : > { %v14992_v54 = vpop.f32.mrf.mxu0 }
0x101d   : > { %v19738_v55 = vpop.f32.mrf.mxu0 }
0x101f   : > { %v15149_v20 = vpop.f32.mrf.mxu0 }
0x1021   : > { %v19752_v18 = vpop.f32.mrf.mxu0 }
0x1023   : > { %v15073_v3 = vpop.f32.mrf.mxu1 }
0x1024   : > { %v15074_v42 = vadd.f32 %v15073_v3, %v14992_v54 }
0x1025   : > { %v19745_v26 = vpop.f32.mrf.mxu1 }
0x1026   : > { %v15150_v25 = vadd.f32 %v15149_v20, %v15074_v42  ;;  %v15301_v0 = vpop.f32.mrf.mxu0 }
0x1027   : > { %v15224_v57 = vpop.f32.mrf.mxu1 }
0x1028   : > { %v15225_v59 = vadd.f32 %v15224_v57, %v15150_v25  ;;  %v19766_v4 = vpop.f32.mrf.mxu0 }
0x1029   : > { %v19759_v15 = vpop.f32.mrf.mxu1 }
0x102a   : > { %v15302_v49 = vadd.f32 %v15301_v0, %v15225_v59 }
0x102b   : > { %v15374_v30 = vpop.f32.mrf.mxu1 }
0x102c   : > { %v15375_v19 = vadd.f32 %v15374_v30, %v15302_v49 }
0x102d   : > { %v19773_v39 = vpop.f32.mrf.mxu1 }
0x102e   : > { %v15381_v22 = vsel %vm15379_vm0, %v15375_v19, 0 }
0x102f   : > { %v15453_v46 = vand.u32 4294901760, %v15381_v22 }
0x1031   : > { %v15454_v62 = vsub.f32 %v15381_v22, %v15453_v46  ;;  %19782 = vmatmul.mubr.f32.vlgmr.msra.gmra.mxu1 %v15453_v46 }
0x1032   : > { %19790 = vmatpush3.msra.mxu1 %v15418_v56  ;;  %19791 = vmatprep.mubr.msk.f32.mxu1 %vm20028_vm6, %v26646_v24 }
0x1033   : > { %v15455_v35 = vand.u32 4294901760, %v15454_v62  ;;  %19799 = vmatprep.subr.mxu1 %v26646_v24 }
0x1035   : > { %v15456_v8 = vsub.f32 %v15454_v62, %v15455_v35  ;;  %19792 = vmatmul.mubr.f32.vlgmr.msra.gmra.mxu1 %v15455_v35 }
0x1036   : > { %19800 = vmatpush3.msra.mxu1 %v15418_v56  ;;  %19801 = vmatprep.mubr.msk.f32.mxu1 %vm20028_vm6, %v26646_v24 }
0x1037   : > { %v15457_v33 = vand.u32 4294901760, %v15456_v8 }
0x1039   : > { %19777 = vmatmul.mubr.f32.vlgmr.msra.gmra.mxu0 %v15457_v33  ;;  %19802 = vmatmul.mubr.f32.vlgmr.msra.gmra.mxu1 %v15453_v46 }
0x103a   : > { %19785 = vmatpush3.msra.mxu0 %v15495_v36  ;;  %19786 = vmatprep.mubr.msk.f32.mxu0 %vm20028_vm6, %v26646_v24 }
0x103b   : > { %19794 = vmatprep.subr.mxu0 %v26646_v24  ;;  %19811 = vmatprep.mubr.f32.mxu1 %v15912_v9 }
0x103d   : > { %19787 = vmatmul.mubr.f32.vlgmr.msra.gmra.mxu0 %v15454_v62 }
0x103e   : > { %19795 = vmatpush3.msra.mxu0 %v15496_v12  ;;  %19796 = vmatprep.mubr.msk.f32.mxu0 %vm20028_vm6, %v26646_v24 }
0x1041   : > { %19797 = vmatmul.mubr.f32.vlgmr.msra.gmra.mxu0 %v15453_v46 }
0x1042   : > { %19806 = vmatprep.mubr.f32.mxu0 %v15916_v2 }
0x10f1   : > { %v15535_v29 = vpop.f32.mrf.mxu1 }
0x10f3   : > { %v19783_v48 = vpop.f32.mrf.mxu1 }
0x10f5   : > { %v15683_v11 = vpop.f32.mrf.mxu1 }
0x10f7   : > { %v19793_v17 = vpop.f32.mrf.mxu1 }
0x10f9   : > { %v15459_v13 = vpop.f32.mrf.mxu0  ;;  %v15829_v24 = vpop.f32.mrf.mxu1 }
0x10fa   : > { %v15536_v60 = vadd.f32 %v15535_v29, %v15459_v13 }
0x10fb   : > { %v19778_v52 = vpop.f32.mrf.mxu0  ;;  %v19803_v28 = vpop.f32.mrf.mxu1 }
0x10fd   : > { %v15609_v53 = vpop.f32.mrf.mxu0 }
0x10fe   : > { %v15610_v40 = vadd.f32 %v15609_v53, %v15536_v60 }
0x10ff   : > { %v19788_v37 = vpop.f32.mrf.mxu0 }
0x1100   : > { %v15684_v10 = vadd.f32 %v15683_v11, %v15610_v40 }
0x1101   : > { %v15757_v44 = vpop.f32.mrf.mxu0 }
0x1102   : > { %v15758_v51 = vadd.f32 %v15757_v44, %v15684_v10 }
0x1103   : > { %v19798_v31 = vpop.f32.mrf.mxu0 }
0x1104   : > { %v15830_v47 = vadd.f32 %v15829_v24, %v15758_v51 }
0x1106   : > { %v15844_v27 = vsel %vm15842_vm2, %v15830_v47, 0 }
0x1107   : > { %v15877_v23 = vand.u32 4294901760, %v15844_v27 }
0x1109   : > { %v15964_v6 = vsub.f32 %v15844_v27, %v15877_v23  ;;  %19804 = vmatprep.subr.mxu0 %v15877_v23 }
0x110a   : > { %19805 = vmatpush3.msra.mxu0 %v15877_v23 }
0x110b   : > { %19807 = vmatmul.mubr.f32.vlgmr.msra.gmra.mxu0 %v15926_v41  ;;  %19814 = vmatprep.subr.mxu0 %v15964_v6  ;;  %v15965_v56 = vand.u32 4294901760, %v15964_v6 }
0x110c   : > { %19815 = vmatpush3.msra.mxu0 %v15964_v6  ;;  %19816 = vmatprep.mubr.f32.mxu0 %v15913_v32 }
0x110d   : > { %19824 = vmatprep.subr.mxu0 %v15965_v56  ;;  %v15966_v36 = vsub.f32 %v15964_v6, %v15965_v56 }
0x110f   : > { %19817 = vmatmul.mubr.f32.vlgmr.msra.gmra.mxu0 %v15923_v50  ;;  %v15967_v12 = vand.u32 4294901760, %v15966_v36 }
0x1110   : > { %19825 = vmatpush3.msra.mxu0 %v15965_v56  ;;  %19826 = vmatprep.mubr.f32.mxu0 %v15912_v9 }
0x1111   : > { %19809 = vmatprep.subr.mxu1 %v15967_v12 }
0x1112   : > { %19810 = vmatpush3.msra.mxu1 %v15967_v12 }
0x1113   : > { %19812 = vmatmul.mubr.f32.vlgmr.msra.gmra.mxu1 %v15922_v14  ;;  %19819 = vmatprep.subr.mxu1 %v15877_v23 }
0x1114   : > { %19820 = vmatpush3.msra.mxu1 %v15877_v23  ;;  %19821 = vmatprep.mubr.f32.mxu1 %v15914_v45 }
0x1115   : > { %19829 = vmatprep.subr.mxu1 %v15877_v23  ;;  %19827 = vmatmul.mubr.f32.vlgmr.msra.gmra.mxu0 %v15922_v14 }
0x1117   : > { %19822 = vmatmul.mubr.f32.vlgmr.msra.gmra.mxu1 %v15924_v7 }
0x1118   : > { %19830 = vmatpush3.msra.mxu1 %v15877_v23  ;;  %19831 = vmatprep.mubr.f32.mxu1 %v15912_v9 }
0x111b   : > { %19832 = vmatmul.mubr.f32.vlgmr.msra.gmra.mxu1 %v15922_v14 }
0x11cb   : > { %v19808_v5 = vpop.f32.mrf.mxu0 }
0x11cd   : > { %v15918_v58 = vpop.f32.mrf.mxu0 }
0x11cf   : > { %v19818_v54 = vpop.f32.mrf.mxu0 }
0x11d1   : > { %v16084_v20 = vpop.f32.mrf.mxu0 }
0x11d3   : > { %v19813_v55 = vpop.f32.mrf.mxu1 }
0x11d4   : > { %v16011_v18 = vadd.f32 %v19813_v55, %v19808_v5 }
0x11d5   : > { %v16004_v3 = vpop.f32.mrf.mxu1  ;;  %v19828_v0 = vpop.f32.mrf.mxu0 }
0x11d6   : > { %v16005_v42 = vadd.f32 %v16004_v3, %v15918_v58  ;;  %v16092_v26 = vadd.f32 %v19818_v54, %v16011_v18 }
0x11d7   : > { %v19823_v25 = vpop.f32.mrf.mxu1  ;;  %v16247_v30 = vpop.f32.mrf.mxu0 }
0x11d8   : > { %v16085_v57 = vadd.f32 %v16084_v20, %v16005_v42  ;;  %v16174_v59 = vadd.f32 %v19823_v25, %v16092_v26 }
0x11d9   : > { %v16165_v4 = vpop.f32.mrf.mxu1 }
0x11da   : > { %v16166_v15 = vadd.f32 %v16165_v4, %v16085_v57  ;;  %v16254_v49 = vadd.f32 %v19828_v0, %v16174_v59 }
0x11db   : > { %v19833_v19 = vpop.f32.mrf.mxu1 }
0x11dc   : > { %v16248_v39 = vadd.f32 %v16247_v30, %v16166_v15  ;;  %v16332_v22 = vadd.f32 %v19833_v19, %v16254_v49 }
0x11dd   : > { %v16325_v46 = vpop.f32.mrf.mxu1 }
0x11de   : > { %v16336_v62 = vsub.f32 %v25334_v63, %v16332_v22  ;;  %v16326_v35 = vadd.f32 %v16325_v46, %v16248_v39 }
0x11e0   : > { %v16338_v8 = vand.u32 2147483647, %v16336_v62  ;;  %v16335_v33 = vsub.f32 %v25338_v21, %v16326_v35 }
0x11e2   : > { %v16337_v61 = vand.u32 2147483647, %v16335_v33  ;;  %v16341_v38 = vsel %vm16340_vm3, %v16338_v8, 0.0 }
0x11e4   : > { %v16339_v9 = vsel %vm13338_vm12, %v16337_v61, 0.0 }
0x11e5   : > { %v16342_v32 = vadd.f32 %v16341_v38, %v16339_v9 }
0x11e7   : > { %v16343_v45 = vrot.slane %v16342_v32, 4 }
0x11e9   : > { %v16344_v16 = vadd.f32 %v16343_v45, %v16342_v32 }
0x11eb   : > { %v16345_v2 = vrot.slane %v16344_v16, 2 }
0x11ed   : > { %v16346_v29 = vadd.f32 %v16345_v2, %v16344_v16 }
0x11ef   : > { %v16347_v34 = vrot.slane %v16346_v29, 1 }
0x11f1   : > { %v16348_v48 = vadd.f32 %v16347_v34, %v16346_v29 }
0x11f3   : > { %v16349_v1 = vmul.f32 0.010416667, %v16348_v48 }
0x11f5   : > { %16351 = vst.msk [vmem:[%s23424_s28 + $0x4] sm:$0x1] %vm16350_vm4, %v16349_v1 }
0x11f6 PF: > { %p14_p13 = scmp.ge.s32.totalorder %s20070_s16, 4   ;;  %s26653_s12 = smov %s20010_s13 }
0x11f7   : > { %s26654_s13 = smov %s20014_s14  ;;  %s26655_s14 = smov %s20080_s19 }
0x11f8   : > { %s26656_s15 = smov %s20070_s16  ;;  %16 = sbr.rel (!%p14_p13) target bundleno = 4 (0x4), region = 88 }
0x11fd   :  { %16371 = vsyncpa [#allocation3], 1 }
0x11fe   :  { %16373 = vsyncpa [#allocation3 + $0x1], 1 }
0x11ff   :  { %16374 = vsyncpa [#allocation5], 1 }
0x1200   :  { %16376 = vsyncpa [#allocation5 + $0x1], 1 }

</bundles_post_ra>
